<compile_context>
chip_gen: v7x
topology: tpu7x:2x2x1
jax: 0.10.0
libtpu: 0.0.40
codegen_flags: <defaults>
</compile_context>

<pallas_src>
import functools

import jax
import jax.numpy as jnp
from jax.experimental import pallas as pl
from jax.experimental.pallas import tpu as pltpu


def _round_up(x, m):
    return ((x + m - 1) // m) * m


# ------------------------------------------------------------------ fused kernel
def _ngu_fused_kernel(p_ref, w1_ref, b1_ref, w2_ref, b2_ref, w3_ref, b3_ref,
                      fcw_ref, fcb_ref, o_ref, h1_ref, h2_ref, *,
                      tb, oh1, ow1, oh2, ow2, oh3, ow3, c1, c2, c3, n_emb, chunk_i1):
    """One batch tile of the whole network.

    p_ref   : (ow1*oh1*tb, C*64) uint8  conv1 im2col patches, rows ordered (j1, i1, b)
    w1_ref  : (C*64, 32)         bf16   conv1 weight, columns = out channels
    w2_ref  : (4, 128, 64)       bf16   conv2 per-kh weights, rows ordered (kw, c_in)
    w3_ref  : (3, 192, 64)       bf16   conv3 per-kh weights, rows ordered (kw, c_in)
    fcw_ref : (S3, 64, 32)       bf16   fc weight split per conv3 spatial position
    b*_ref  : (1, N)             f32    biases
    o_ref   : (tb//4, 128)       f32    lane-packed embedding output (4 batch rows / row)
    h1_ref  : (oh1*tb, ow1*32)   bf16   scratch, conv1 activation, row = i1*tb + b
    h2_ref  : (tb, oh2*ow2*64)   bf16   scratch, conv2 activation, col = (i2*ow2+j2)*64 + c
    """
    f32, bf16 = jnp.float32, jnp.bfloat16
    m1 = oh1 * tb                      # rows of one conv1 j1-plane (= rows of h1)
    inv255 = 1.0 / 255.0

    # ---- conv1 (8x8 stride 4): one (chunk, C*64) x (C*64, 32) matmul per (j1, row-chunk).
    #      The /255 is applied on the f32 accumulator (linear, so equivalent to scaling x).
    w1 = w1_ref[...]
    b1 = b1_ref[...]
    rows = chunk_i1 * tb
    for j1 in range(ow1):
        for s in range(oh1 // chunk_i1):
            r0 = s * rows
            x = p_ref[j1 * m1 + r0:j1 * m1 + r0 + rows, :].astype(f32).astype(bf16)
            acc1 = jnp.dot(x, w1, preferred_element_type=f32)
            h1_ref[r0:r0 + rows, j1 * c1:(j1 + 1) * c1] = (
                jnp.maximum(acc1 * inv255 + b1, 0.0).astype(bf16))

    # ---- conv2 (4x4 stride 2): with h1 laid out as (i1*tb + b, j1*32 + c), every tap-row
    #      (kh) of one output position is ONE contiguous (tb, 128) slice -> 4 K=128 dots.
    b2 = b2_ref[...]
    w2k = [w2_ref[k] for k in range(4)]                 # 4 x (128, 64)
    for i2 in range(oh2):
        for j2 in range(ow2):
            acc2 = jnp.zeros((tb, c2), f32)
            col0 = 2 * j2 * c1
            for kh in range(4):
                row0 = (2 * i2 + kh) * tb
                acc2 = acc2 + jnp.dot(h1_ref[row0:row0 + tb, col0:col0 + 4 * c1],
                                      w2k[kh], preferred_element_type=f32)
            pos = i2 * ow2 + j2
            h2_ref[:, pos * c2:(pos + 1) * c2] = (
                jnp.maximum(acc2 + b2, 0.0).astype(bf16))

    # ---- conv3 (3x3 stride 1) fused with the fc (fc is linear, so it splits over conv3
    #      spatial positions): 3 K=192 dots per position + one (tb,64)x(64,32) fc dot.
    b3 = b3_ref[...]
    fcb = fcb_ref[...]
    w3k = [w3_ref[k] for k in range(3)]                 # 3 x (192, 64)
    out_acc = jnp.zeros((tb, n_emb), f32)
    for i3 in range(oh3):
        for j3 in range(ow3):
            acc3 = jnp.zeros((tb, c3), f32)
            for kh in range(3):
                col0 = ((i3 + kh) * ow2 + j3) * c2
                acc3 = acc3 + jnp.dot(h2_ref[:, col0:col0 + 3 * c2],
                                      w3k[kh], preferred_element_type=f32)
            h3 = jnp.maximum(acc3 + b3, 0.0).astype(bf16)
            out_acc = out_acc + jnp.dot(h3, fcw_ref[i3 * ow3 + j3],
                                        preferred_element_type=f32)

    out = jnp.maximum(out_acc + fcb, 0.0)               # (tb, 32) f32
    # Lane-dense epilogue: pack 4 batch rows per 128-lane output row (value-level concat,
    # sublane-aligned row slices) -> unmasked full-width stores.
    tb4 = tb // 4
    o_ref[...] = jnp.concatenate(
        [out[q * tb4:(q + 1) * tb4, :] for q in range(4)], axis=1)


# ------------------------------------------------------------------ XLA glue (uint8 only)
def _im2col_conv1(x_nchw, kh, kw, stride):
    """NCHW uint8 -> (ow, oh, B, C*KH*KW) patches, columns ordered (c, kh, kw)."""
    B, C, H, W = x_nchw.shape
    oh = (H - kh) // stride + 1
    ow = (W - kw) // stride + 1
    taps = []
    for i in range(kh):
        for j in range(kw):
            taps.append(x_nchw[:, :, i:i + stride * oh:stride, j:j + stride * ow:stride])
    t = jnp.stack(taps, axis=0).reshape(kh, kw, B, C, oh, ow)   # (i, j, b, c, i1, j1)
    t = t.transpose(5, 4, 2, 3, 0, 1)                            # (j1, i1, b, c, i, j)
    return t.reshape(ow, oh, B, C * kh * kw)


# ------------------------------------------------------------------ parameters
def init_params(key, in_channels, height, width):
    """Synthetic parameters with NguEmbeddingConvNet shapes (PyTorch layouts)."""
    oh1, ow1 = (height - 8) // 4 + 1, (width - 8) // 4 + 1
    oh2, ow2 = (oh1 - 4) // 2 + 1, (ow1 - 4) // 2 + 1
    oh3, ow3 = oh2 - 2, ow2 - 2
    out_features = 64 * oh3 * ow3
    ks = jax.random.split(key, 8)

    def normal(k, shape, fan_in):
        return (jax.random.normal(k, shape, jnp.float32) / jnp.sqrt(fan_in)).astype(jnp.float32)

    return {
        "w1": normal(ks[0], (32, in_channels, 8, 8), in_channels * 64),
        "b1": 0.01 * jax.random.normal(ks[1], (32,), jnp.float32),
        "w2": normal(ks[2], (64, 32, 4, 4), 32 * 16),
        "b2": 0.01 * jax.random.normal(ks[3], (64,), jnp.float32),
        "w3": normal(ks[4], (64, 64, 3, 3), 64 * 9),
        "b3": 0.01 * jax.random.normal(ks[5], (64,), jnp.float32),
        "fc_w": normal(ks[6], (32, out_features), out_features),   # torch Linear: (out, in)
        "fc_b": 0.01 * jax.random.normal(ks[7], (32,), jnp.float32),
    }


def prepare_params(params):
    """One-time re-layout of the PyTorch-shaped weights into kernel layouts (bf16)."""
    w1, w2, w3, fc_w = params["w1"], params["w2"], params["w3"], params["fc_w"]
    o1 = w1.shape[0]
    o2, i2c, kh2, kw2 = w2.shape
    o3, i3c, kh3, kw3 = w3.shape
    s3 = fc_w.shape[1] // o3
    w2_k = jnp.transpose(w2, (2, 3, 1, 0)).reshape(kh2, kw2 * i2c, o2)    # (4, 128, 64)
    w3_k = jnp.transpose(w3, (2, 3, 1, 0)).reshape(kh3, kw3 * i3c, o3)    # (3, 192, 64)
    fc_k = jnp.transpose(fc_w.reshape(fc_w.shape[0], o3, s3), (2, 1, 0))  # (s3, 64, 32)
    return {
        "w1": w1.reshape(o1, -1).T.astype(jnp.bfloat16),                  # (C*64, 32)
        "b1": params["b1"].reshape(1, -1).astype(jnp.float32),
        "w2": w2_k.astype(jnp.bfloat16),
        "b2": params["b2"].reshape(1, -1).astype(jnp.float32),
        "w3": w3_k.astype(jnp.bfloat16),
        "b3": params["b3"].reshape(1, -1).astype(jnp.float32),
        "fc_w": fc_k.astype(jnp.bfloat16),
        "fc_b": params["fc_b"].reshape(1, -1).astype(jnp.float32),
    }


# ------------------------------------------------------------------ forward
def ngu_embedding_forward(x_nchw_uint8, prepared, *, block_b=128):
    """relu(fc(NatureCNN(x/255))) — one fused Pallas kernel, gridded over batch tiles."""
    B, C, H, W = x_nchw_uint8.shape
    oh1, ow1 = (H - 8) // 4 + 1, (W - 8) // 4 + 1
    oh2, ow2 = (oh1 - 4) // 2 + 1, (ow1 - 4) // 2 + 1
    oh3, ow3 = oh2 - 2, ow2 - 2
    k1 = C * 64
    c1, c2, c3 = 32, 64, 64
    n_emb = prepared["fc_b"].shape[1]
    assert n_emb == 32, "NguEmbeddingConvNet.embed_size is 32"
    assert oh3 >= 1 and ow3 >= 1, "input spatial size too small for the Nature CNN"

    # Batch tile: multiple of 32 (sublane/lane alignment + lane-dense output packing);
    # prefer >=2 grid steps so both v7x TensorCores get work on the 'parallel' axis.
    tb = max(32, min(_round_up(block_b, 32), _round_up(B, 32)))
    if B > 32 and pl.cdiv(B, tb) < 2:
        tb = max(32, _round_up(pl.cdiv(B, 2), 32))
    nb = pl.cdiv(B, tb)
    bp = nb * tb

    # conv1 row-chunking keeps the u8->f32->bf16 intermediate at ~128 rows (vreg pressure).
    chunk_i1 = max(1, 128 // tb)
    while oh1 % chunk_i1:
        chunk_i1 -= 1

    x = x_nchw_uint8
    if bp != B:
        x = jnp.pad(x, ((0, bp - B), (0, 0), (0, 0), (0, 0)))

    # im2col for conv1 on the raw uint8 frames; rows ordered (tile, j1, i1, b_in_tile) so
    # the kernel sees each j1-plane as a contiguous row block and writes h1 directly in the
    # (i1*tb + b) order that conv2 consumes with plain static slices.
    cols = _im2col_conv1(x, 8, 8, 4)                                # (ow1, oh1, bp, k1) u8
    patches = (cols.reshape(ow1, oh1, nb, tb, k1)
                   .transpose(2, 0, 1, 3, 4)
                   .reshape(nb * ow1 * oh1 * tb, k1))

    kernel = functools.partial(
        _ngu_fused_kernel, tb=tb, oh1=oh1, ow1=ow1, oh2=oh2, ow2=ow2,
        oh3=oh3, ow3=ow3, c1=c1, c2=c2, c3=c3, n_emb=n_emb, chunk_i1=chunk_i1)

    flops = 2 * bp * (oh1 * ow1 * k1 * c1
                      + oh2 * ow2 * (16 * c1) * c2
                      + oh3 * ow3 * (9 * c2) * c3
                      + oh3 * ow3 * c3 * n_emb)
    bytes_accessed = (int(patches.size)
                      + sum(int(v.size) * v.dtype.itemsize for v in prepared.values())
                      + bp * n_emb * 4)

    out_packed = pl.pallas_call(
        kernel,
        out_shape=jax.ShapeDtypeStruct((bp // 4, 4 * n_emb), jnp.float32),
        grid_spec=pltpu.PrefetchScalarGridSpec(
            num_scalar_prefetch=0,
            grid=(nb,),
            in_specs=[
                pl.BlockSpec((ow1 * oh1 * tb, k1), lambda i: (i, 0)),      # uint8 patches
                pl.BlockSpec(prepared["w1"].shape, lambda i: (0, 0)),
                pl.BlockSpec(prepared["b1"].shape, lambda i: (0, 0)),
                pl.BlockSpec(prepared["w2"].shape, lambda i: (0, 0, 0)),
                pl.BlockSpec(prepared["b2"].shape, lambda i: (0, 0)),
                pl.BlockSpec(prepared["w3"].shape, lambda i: (0, 0, 0)),
                pl.BlockSpec(prepared["b3"].shape, lambda i: (0, 0)),
                pl.BlockSpec(prepared["fc_w"].shape, lambda i: (0, 0, 0)),
                pl.BlockSpec(prepared["fc_b"].shape, lambda i: (0, 0)),
            ],
            out_specs=pl.BlockSpec((tb // 4, 4 * n_emb), lambda i: (i, 0)),
            scratch_shapes=[
                pltpu.VMEM((oh1 * tb, ow1 * c1), jnp.bfloat16),    # conv1 activation
                pltpu.VMEM((tb, oh2 * ow2 * c2), jnp.bfloat16),    # conv2 activation
            ]),
        compiler_params=pltpu.CompilerParams(
            dimension_semantics=("parallel",),
            vmem_limit_bytes=48 * 1024 * 1024,
        ),
        cost_estimate=pl.CostEstimate(flops=flops, transcendentals=0,
                                      bytes_accessed=bytes_accessed),
    )(patches, prepared["w1"], prepared["b1"], prepared["w2"], prepared["b2"],
      prepared["w3"], prepared["b3"], prepared["fc_w"], prepared["fc_b"])

    # Undo the 4-way batch interleave of the lane-dense packed output (tiny XLA transpose).
    out = (out_packed.reshape(nb, tb // 4, 4, n_emb)
                     .transpose(0, 2, 1, 3)
                     .reshape(bp, n_emb))
    return out[:B]


# ------------------------------------------------------------------ pure-JAX reference
def ngu_embedding_reference(x_u8, params):
    x = x_u8.astype(jnp.float32) / 255.0

    def conv(h, w, b, stride):
        y = jax.lax.conv_general_dilated(
            h, w, window_strides=(stride, stride), padding="VALID",
            dimension_numbers=("NCHW", "OIHW", "NCHW"))
        return jnp.maximum(y + b[None, :, None, None], 0.0)

    h = conv(x, params["w1"], params["b1"], 4)
    h = conv(h, params["w2"], params["b2"], 2)
    h = conv(h, params["w3"], params["b3"], 1)
    h = h.reshape(h.shape[0], -1)
    return jnp.maximum(h @ params["fc_w"].T + params["fc_b"], 0.0)


# ------------------------------------------------------------------ main
if __name__ == "__main__":
    # NCHW uint8 frames; 36x36 spatial gives Nature-CNN feature maps 8 -> 3 -> 1.
    C, H, W = 4, 36, 36
    key = jax.random.PRNGKey(0)
    k_x1, k_x2, k_p = jax.random.split(key, 3)

    params = init_params(k_p, C, H, W)
    prepared = prepare_params(params)

    fwd = jax.jit(ngu_embedding_forward, static_argnames=("block_b",))

    # Case 1: tiny batch (single grid step, padded tile).
    x1 = jax.random.randint(k_x1, (2, C, H, W), 0, 256, dtype=jnp.int32).astype(jnp.uint8)
    emb1 = jax.block_until_ready(fwd(x1, prepared, block_b=128))
    assert emb1.shape == (2, 32), emb1.shape
    assert emb1.dtype == jnp.float32
    assert bool(jnp.all(jnp.isfinite(emb1))) and bool(jnp.all(emb1 >= 0.0))
    ref1 = jax.block_until_ready(ngu_embedding_reference(x1, params))
    err1 = float(jnp.max(jnp.abs(emb1 - ref1)))
    assert err1 < 5e-2, f"case1 mismatch vs reference: max abs err {err1}"

    # Case 2: batch not a multiple of the tile (3 grid steps + trailing padding).
    x2 = jax.random.randint(k_x2, (70, C, H, W), 0, 256, dtype=jnp.int32).astype(jnp.uint8)
    emb2 = jax.block_until_ready(fwd(x2, prepared, block_b=32))
    assert emb2.shape == (70, 32), emb2.shape
    ref2 = jax.block_until_ready(ngu_embedding_reference(x2, params))
    err2 = float(jnp.max(jnp.abs(emb2 - ref2)))
    assert err2 < 5e-2, f"case2 mismatch vs reference: max abs err {err2}"

    print("KERNEL_OK")
</pallas_src>

<mosaic_0001>
module attributes {stable_mosaic.version = 11 : i64} {
  func.func @_ngu_fused_kernel(%arg0: i32, %arg1: memref<2048x256xi8, #tpu.memory_space<vmem>>, %arg2: memref<256x32xbf16, #tpu.memory_space<vmem>>, %arg3: memref<1x32xf32, #tpu.memory_space<vmem>>, %arg4: memref<4x128x64xbf16, #tpu.memory_space<vmem>>, %arg5: memref<1x64xf32, #tpu.memory_space<vmem>>, %arg6: memref<3x192x64xbf16, #tpu.memory_space<vmem>>, %arg7: memref<1x64xf32, #tpu.memory_space<vmem>>, %arg8: memref<1x64x32xbf16, #tpu.memory_space<vmem>>, %arg9: memref<1x32xf32, #tpu.memory_space<vmem>>, %arg10: memref<8x128xf32, #tpu.memory_space<vmem>>, %arg11: memref<256x256xbf16, #tpu.memory_space<vmem>>, %arg12: memref<32x576xbf16, #tpu.memory_space<vmem>>) attributes {dimension_semantics = [#tpu.dimension_semantics<parallel>], iteration_bounds = array<i64: 1>, scalar_prefetch = 0 : i64, scratch_operands = 2 : i64, tpu.core_type = #tpu.core_type<tc>, window_params = [{transform_indices = @transform_0, window_bounds = array<i64: 2048, 256>}, {pipeline_mode = #tpu.pipeline_mode<synchronous>, transform_indices = @transform_1, window_bounds = array<i64: 256, 32>}, {pipeline_mode = #tpu.pipeline_mode<synchronous>, transform_indices = @transform_2, window_bounds = array<i64: 1, 32>}, {pipeline_mode = #tpu.pipeline_mode<synchronous>, transform_indices = @transform_3, window_bounds = array<i64: 4, 128, 64>}, {pipeline_mode = #tpu.pipeline_mode<synchronous>, transform_indices = @transform_4, window_bounds = array<i64: 1, 64>}, {pipeline_mode = #tpu.pipeline_mode<synchronous>, transform_indices = @transform_5, window_bounds = array<i64: 3, 192, 64>}, {pipeline_mode = #tpu.pipeline_mode<synchronous>, transform_indices = @transform_6, window_bounds = array<i64: 1, 64>}, {pipeline_mode = #tpu.pipeline_mode<synchronous>, transform_indices = @transform_7, window_bounds = array<i64: 1, 64, 32>}, {pipeline_mode = #tpu.pipeline_mode<synchronous>, transform_indices = @transform_8, window_bounds = array<i64: 1, 32>}, {transform_indices = @transform_9, window_bounds = array<i64: 8, 128>}]} {
    %c0 = arith.constant 0 : index
    %c0_0 = arith.constant 0 : index
    %0 = vector.load %arg2[%c0, %c0_0] : memref<256x32xbf16, #tpu.memory_space<vmem>>, vector<256x32xbf16>
    %c0_1 = arith.constant 0 : index
    %c0_2 = arith.constant 0 : index
    %1 = vector.load %arg3[%c0_1, %c0_2] : memref<1x32xf32, #tpu.memory_space<vmem>>, vector<1x32xf32>
    %c0_3 = arith.constant 0 : index
    %c0_4 = arith.constant 0 : index
    %2 = vector.load %arg1[%c0_3, %c0_4] : memref<2048x256xi8, #tpu.memory_space<vmem>>, vector<128x256xi8>
    %3 = arith.uitofp %2 : vector<128x256xi8> to vector<128x256xf32>
    %4 = arith.truncf %3 : vector<128x256xf32> to vector<128x256xbf16>
    %cst = arith.constant dense<0.000000e+00> : vector<128x32xf32>
    %5 = tpu.matmul %4, %0, %cst {dimension_numbers = #tpu.dot_dimension_numbers<[1], [0], [0], [1], [0, 0, 1, 1], [], []>} : vector<128x256xbf16>, vector<256x32xbf16>, vector<128x32xf32> -> vector<128x32xf32>
    %cst_5 = arith.constant 0.00392156886 : f32
    %6 = vector.broadcast %cst_5 : f32 to vector<128x32xf32>
    %7 = arith.mulf %5, %6 : vector<128x32xf32>
    %8 = vector.broadcast %1 : vector<1x32xf32> to vector<128x32xf32>
    %9 = arith.addf %7, %8 : vector<128x32xf32>
    %cst_6 = arith.constant 0.000000e+00 : f32
    %10 = vector.broadcast %cst_6 : f32 to vector<128x32xf32>
    %11 = arith.maximumf %9, %10 : vector<128x32xf32>
    %12 = arith.truncf %11 : vector<128x32xf32> to vector<128x32xbf16>
    %c0_7 = arith.constant 0 : index
    %c0_8 = arith.constant 0 : index
    %13 = vector.load %arg11[%c0_7, %c0_8] : memref<256x256xbf16, #tpu.memory_space<vmem>>, vector<128x32xbf16>
    tpu.vector_store %arg11[%c0_7, %c0_8], %12 {strides = array<i32>} : memref<256x256xbf16, #tpu.memory_space<vmem>>, vector<128x32xbf16>,
    %c128 = arith.constant 128 : index
    %c0_9 = arith.constant 0 : index
    %14 = vector.load %arg1[%c128, %c0_9] : memref<2048x256xi8, #tpu.memory_space<vmem>>, vector<128x256xi8>
    %15 = arith.uitofp %14 : vector<128x256xi8> to vector<128x256xf32>
    %16 = arith.truncf %15 : vector<128x256xf32> to vector<128x256xbf16>
    %cst_10 = arith.constant dense<0.000000e+00> : vector<128x32xf32>
    %17 = tpu.matmul %16, %0, %cst_10 {dimension_numbers = #tpu.dot_dimension_numbers<[1], [0], [0], [1], [0, 0, 1, 1], [], []>} : vector<128x256xbf16>, vector<256x32xbf16>, vector<128x32xf32> -> vector<128x32xf32>
    %cst_11 = arith.constant 0.00392156886 : f32
    %18 = vector.broadcast %cst_11 : f32 to vector<128x32xf32>
    %19 = arith.mulf %17, %18 : vector<128x32xf32>
    %20 = vector.broadcast %1 : vector<1x32xf32> to vector<128x32xf32>
    %21 = arith.addf %19, %20 : vector<128x32xf32>
    %cst_12 = arith.constant 0.000000e+00 : f32
    %22 = vector.broadcast %cst_12 : f32 to vector<128x32xf32>
    %23 = arith.maximumf %21, %22 : vector<128x32xf32>
    %24 = arith.truncf %23 : vector<128x32xf32> to vector<128x32xbf16>
    %c128_13 = arith.constant 128 : index
    %c0_14 = arith.constant 0 : index
    %25 = vector.load %arg11[%c128_13, %c0_14] : memref<256x256xbf16, #tpu.memory_space<vmem>>, vector<128x32xbf16>
    tpu.vector_store %arg11[%c128_13, %c0_14], %24 {strides = array<i32>} : memref<256x256xbf16, #tpu.memory_space<vmem>>, vector<128x32xbf16>,
    %c256 = arith.constant 256 : index
    %c0_15 = arith.constant 0 : index
    %26 = vector.load %arg1[%c256, %c0_15] : memref<2048x256xi8, #tpu.memory_space<vmem>>, vector<128x256xi8>
    %27 = arith.uitofp %26 : vector<128x256xi8> to vector<128x256xf32>
    %28 = arith.truncf %27 : vector<128x256xf32> to vector<128x256xbf16>
    %cst_16 = arith.constant dense<0.000000e+00> : vector<128x32xf32>
    %29 = tpu.matmul %28, %0, %cst_16 {dimension_numbers = #tpu.dot_dimension_numbers<[1], [0], [0], [1], [0, 0, 1, 1], [], []>} : vector<128x256xbf16>, vector<256x32xbf16>, vector<128x32xf32> -> vector<128x32xf32>
    %cst_17 = arith.constant 0.00392156886 : f32
    %30 = vector.broadcast %cst_17 : f32 to vector<128x32xf32>
    %31 = arith.mulf %29, %30 : vector<128x32xf32>
    %32 = vector.broadcast %1 : vector<1x32xf32> to vector<128x32xf32>
    %33 = arith.addf %31, %32 : vector<128x32xf32>
    %cst_18 = arith.constant 0.000000e+00 : f32
    %34 = vector.broadcast %cst_18 : f32 to vector<128x32xf32>
    %35 = arith.maximumf %33, %34 : vector<128x32xf32>
    %36 = arith.truncf %35 : vector<128x32xf32> to vector<128x32xbf16>
    %c0_19 = arith.constant 0 : index
    %c32 = arith.constant 32 : index
    %37 = vector.load %arg11[%c0_19, %c32] : memref<256x256xbf16, #tpu.memory_space<vmem>>, vector<128x32xbf16>
    tpu.vector_store %arg11[%c0_19, %c32], %36 {strides = array<i32>} : memref<256x256xbf16, #tpu.memory_space<vmem>>, vector<128x32xbf16>,
    %c384 = arith.constant 384 : index
    %c0_20 = arith.constant 0 : index
    %38 = vector.load %arg1[%c384, %c0_20] : memref<2048x256xi8, #tpu.memory_space<vmem>>, vector<128x256xi8>
    %39 = arith.uitofp %38 : vector<128x256xi8> to vector<128x256xf32>
    %40 = arith.truncf %39 : vector<128x256xf32> to vector<128x256xbf16>
    %cst_21 = arith.constant dense<0.000000e+00> : vector<128x32xf32>
    %41 = tpu.matmul %40, %0, %cst_21 {dimension_numbers = #tpu.dot_dimension_numbers<[1], [0], [0], [1], [0, 0, 1, 1], [], []>} : vector<128x256xbf16>, vector<256x32xbf16>, vector<128x32xf32> -> vector<128x32xf32>
    %cst_22 = arith.constant 0.00392156886 : f32
    %42 = vector.broadcast %cst_22 : f32 to vector<128x32xf32>
    %43 = arith.mulf %41, %42 : vector<128x32xf32>
    %44 = vector.broadcast %1 : vector<1x32xf32> to vector<128x32xf32>
    %45 = arith.addf %43, %44 : vector<128x32xf32>
    %cst_23 = arith.constant 0.000000e+00 : f32
    %46 = vector.broadcast %cst_23 : f32 to vector<128x32xf32>
    %47 = arith.maximumf %45, %46 : vector<128x32xf32>
    %48 = arith.truncf %47 : vector<128x32xf32> to vector<128x32xbf16>
    %c128_24 = arith.constant 128 : index
    %c32_25 = arith.constant 32 : index
    %49 = vector.load %arg11[%c128_24, %c32_25] : memref<256x256xbf16, #tpu.memory_space<vmem>>, vector<128x32xbf16>
    tpu.vector_store %arg11[%c128_24, %c32_25], %48 {strides = array<i32>} : memref<256x256xbf16, #tpu.memory_space<vmem>>, vector<128x32xbf16>,
    %c512 = arith.constant 512 : index
    %c0_26 = arith.constant 0 : index
    %50 = vector.load %arg1[%c512, %c0_26] : memref<2048x256xi8, #tpu.memory_space<vmem>>, vector<128x256xi8>
    %51 = arith.uitofp %50 : vector<128x256xi8> to vector<128x256xf32>
    %52 = arith.truncf %51 : vector<128x256xf32> to vector<128x256xbf16>
    %cst_27 = arith.constant dense<0.000000e+00> : vector<128x32xf32>
    %53 = tpu.matmul %52, %0, %cst_27 {dimension_numbers = #tpu.dot_dimension_numbers<[1], [0], [0], [1], [0, 0, 1, 1], [], []>} : vector<128x256xbf16>, vector<256x32xbf16>, vector<128x32xf32> -> vector<128x32xf32>
    %cst_28 = arith.constant 0.00392156886 : f32
    %54 = vector.broadcast %cst_28 : f32 to vector<128x32xf32>
    %55 = arith.mulf %53, %54 : vector<128x32xf32>
    %56 = vector.broadcast %1 : vector<1x32xf32> to vector<128x32xf32>
    %57 = arith.addf %55, %56 : vector<128x32xf32>
    %cst_29 = arith.constant 0.000000e+00 : f32
    %58 = vector.broadcast %cst_29 : f32 to vector<128x32xf32>
    %59 = arith.maximumf %57, %58 : vector<128x32xf32>
    %60 = arith.truncf %59 : vector<128x32xf32> to vector<128x32xbf16>
    %c0_30 = arith.constant 0 : index
    %c64 = arith.constant 64 : index
    %61 = vector.load %arg11[%c0_30, %c64] : memref<256x256xbf16, #tpu.memory_space<vmem>>, vector<128x32xbf16>
    tpu.vector_store %arg11[%c0_30, %c64], %60 {strides = array<i32>} : memref<256x256xbf16, #tpu.memory_space<vmem>>, vector<128x32xbf16>,
    %c640 = arith.constant 640 : index
    %c0_31 = arith.constant 0 : index
    %62 = vector.load %arg1[%c640, %c0_31] : memref<2048x256xi8, #tpu.memory_space<vmem>>, vector<128x256xi8>
    %63 = arith.uitofp %62 : vector<128x256xi8> to vector<128x256xf32>
    %64 = arith.truncf %63 : vector<128x256xf32> to vector<128x256xbf16>
    %cst_32 = arith.constant dense<0.000000e+00> : vector<128x32xf32>
    %65 = tpu.matmul %64, %0, %cst_32 {dimension_numbers = #tpu.dot_dimension_numbers<[1], [0], [0], [1], [0, 0, 1, 1], [], []>} : vector<128x256xbf16>, vector<256x32xbf16>, vector<128x32xf32> -> vector<128x32xf32>
    %cst_33 = arith.constant 0.00392156886 : f32
    %66 = vector.broadcast %cst_33 : f32 to vector<128x32xf32>
    %67 = arith.mulf %65, %66 : vector<128x32xf32>
    %68 = vector.broadcast %1 : vector<1x32xf32> to vector<128x32xf32>
    %69 = arith.addf %67, %68 : vector<128x32xf32>
    %cst_34 = arith.constant 0.000000e+00 : f32
    %70 = vector.broadcast %cst_34 : f32 to vector<128x32xf32>
    %71 = arith.maximumf %69, %70 : vector<128x32xf32>
    %72 = arith.truncf %71 : vector<128x32xf32> to vector<128x32xbf16>
    %c128_35 = arith.constant 128 : index
    %c64_36 = arith.constant 64 : index
    %73 = vector.load %arg11[%c128_35, %c64_36] : memref<256x256xbf16, #tpu.memory_space<vmem>>, vector<128x32xbf16>
    tpu.vector_store %arg11[%c128_35, %c64_36], %72 {strides = array<i32>} : memref<256x256xbf16, #tpu.memory_space<vmem>>, vector<128x32xbf16>,
    %c768 = arith.constant 768 : index
    %c0_37 = arith.constant 0 : index
    %74 = vector.load %arg1[%c768, %c0_37] : memref<2048x256xi8, #tpu.memory_space<vmem>>, vector<128x256xi8>
    %75 = arith.uitofp %74 : vector<128x256xi8> to vector<128x256xf32>
    %76 = arith.truncf %75 : vector<128x256xf32> to vector<128x256xbf16>
    %cst_38 = arith.constant dense<0.000000e+00> : vector<128x32xf32>
    %77 = tpu.matmul %76, %0, %cst_38 {dimension_numbers = #tpu.dot_dimension_numbers<[1], [0], [0], [1], [0, 0, 1, 1], [], []>} : vector<128x256xbf16>, vector<256x32xbf16>, vector<128x32xf32> -> vector<128x32xf32>
    %cst_39 = arith.constant 0.00392156886 : f32
    %78 = vector.broadcast %cst_39 : f32 to vector<128x32xf32>
    %79 = arith.mulf %77, %78 : vector<128x32xf32>
    %80 = vector.broadcast %1 : vector<1x32xf32> to vector<128x32xf32>
    %81 = arith.addf %79, %80 : vector<128x32xf32>
    %cst_40 = arith.constant 0.000000e+00 : f32
    %82 = vector.broadcast %cst_40 : f32 to vector<128x32xf32>
    %83 = arith.maximumf %81, %82 : vector<128x32xf32>
    %84 = arith.truncf %83 : vector<128x32xf32> to vector<128x32xbf16>
    %c0_41 = arith.constant 0 : index
    %c96 = arith.constant 96 : index
    %85 = vector.load %arg11[%c0_41, %c96] : memref<256x256xbf16, #tpu.memory_space<vmem>>, vector<128x32xbf16>
    tpu.vector_store %arg11[%c0_41, %c96], %84 {strides = array<i32>} : memref<256x256xbf16, #tpu.memory_space<vmem>>, vector<128x32xbf16>,
    %c896 = arith.constant 896 : index
    %c0_42 = arith.constant 0 : index
    %86 = vector.load %arg1[%c896, %c0_42] : memref<2048x256xi8, #tpu.memory_space<vmem>>, vector<128x256xi8>
    %87 = arith.uitofp %86 : vector<128x256xi8> to vector<128x256xf32>
    %88 = arith.truncf %87 : vector<128x256xf32> to vector<128x256xbf16>
    %cst_43 = arith.constant dense<0.000000e+00> : vector<128x32xf32>
    %89 = tpu.matmul %88, %0, %cst_43 {dimension_numbers = #tpu.dot_dimension_numbers<[1], [0], [0], [1], [0, 0, 1, 1], [], []>} : vector<128x256xbf16>, vector<256x32xbf16>, vector<128x32xf32> -> vector<128x32xf32>
    %cst_44 = arith.constant 0.00392156886 : f32
    %90 = vector.broadcast %cst_44 : f32 to vector<128x32xf32>
    %91 = arith.mulf %89, %90 : vector<128x32xf32>
    %92 = vector.broadcast %1 : vector<1x32xf32> to vector<128x32xf32>
    %93 = arith.addf %91, %92 : vector<128x32xf32>
    %cst_45 = arith.constant 0.000000e+00 : f32
    %94 = vector.broadcast %cst_45 : f32 to vector<128x32xf32>
    %95 = arith.maximumf %93, %94 : vector<128x32xf32>
    %96 = arith.truncf %95 : vector<128x32xf32> to vector<128x32xbf16>
    %c128_46 = arith.constant 128 : index
    %c96_47 = arith.constant 96 : index
    %97 = vector.load %arg11[%c128_46, %c96_47] : memref<256x256xbf16, #tpu.memory_space<vmem>>, vector<128x32xbf16>
    tpu.vector_store %arg11[%c128_46, %c96_47], %96 {strides = array<i32>} : memref<256x256xbf16, #tpu.memory_space<vmem>>, vector<128x32xbf16>,
    %c1024 = arith.constant 1024 : index
    %c0_48 = arith.constant 0 : index
    %98 = vector.load %arg1[%c1024, %c0_48] : memref<2048x256xi8, #tpu.memory_space<vmem>>, vector<128x256xi8>
    %99 = arith.uitofp %98 : vector<128x256xi8> to vector<128x256xf32>
    %100 = arith.truncf %99 : vector<128x256xf32> to vector<128x256xbf16>
    %cst_49 = arith.constant dense<0.000000e+00> : vector<128x32xf32>
    %101 = tpu.matmul %100, %0, %cst_49 {dimension_numbers = #tpu.dot_dimension_numbers<[1], [0], [0], [1], [0, 0, 1, 1], [], []>} : vector<128x256xbf16>, vector<256x32xbf16>, vector<128x32xf32> -> vector<128x32xf32>
    %cst_50 = arith.constant 0.00392156886 : f32
    %102 = vector.broadcast %cst_50 : f32 to vector<128x32xf32>
    %103 = arith.mulf %101, %102 : vector<128x32xf32>
    %104 = vector.broadcast %1 : vector<1x32xf32> to vector<128x32xf32>
    %105 = arith.addf %103, %104 : vector<128x32xf32>
    %cst_51 = arith.constant 0.000000e+00 : f32
    %106 = vector.broadcast %cst_51 : f32 to vector<128x32xf32>
    %107 = arith.maximumf %105, %106 : vector<128x32xf32>
    %108 = arith.truncf %107 : vector<128x32xf32> to vector<128x32xbf16>
    %c0_52 = arith.constant 0 : index
    %c128_53 = arith.constant 128 : index
    %109 = vector.load %arg11[%c0_52, %c128_53] : memref<256x256xbf16, #tpu.memory_space<vmem>>, vector<128x32xbf16>
    tpu.vector_store %arg11[%c0_52, %c128_53], %108 {strides = array<i32>} : memref<256x256xbf16, #tpu.memory_space<vmem>>, vector<128x32xbf16>,
    %c1152 = arith.constant 1152 : index
    %c0_54 = arith.constant 0 : index
    %110 = vector.load %arg1[%c1152, %c0_54] : memref<2048x256xi8, #tpu.memory_space<vmem>>, vector<128x256xi8>
    %111 = arith.uitofp %110 : vector<128x256xi8> to vector<128x256xf32>
    %112 = arith.truncf %111 : vector<128x256xf32> to vector<128x256xbf16>
    %cst_55 = arith.constant dense<0.000000e+00> : vector<128x32xf32>
    %113 = tpu.matmul %112, %0, %cst_55 {dimension_numbers = #tpu.dot_dimension_numbers<[1], [0], [0], [1], [0, 0, 1, 1], [], []>} : vector<128x256xbf16>, vector<256x32xbf16>, vector<128x32xf32> -> vector<128x32xf32>
    %cst_56 = arith.constant 0.00392156886 : f32
    %114 = vector.broadcast %cst_56 : f32 to vector<128x32xf32>
    %115 = arith.mulf %113, %114 : vector<128x32xf32>
    %116 = vector.broadcast %1 : vector<1x32xf32> to vector<128x32xf32>
    %117 = arith.addf %115, %116 : vector<128x32xf32>
    %cst_57 = arith.constant 0.000000e+00 : f32
    %118 = vector.broadcast %cst_57 : f32 to vector<128x32xf32>
    %119 = arith.maximumf %117, %118 : vector<128x32xf32>
    %120 = arith.truncf %119 : vector<128x32xf32> to vector<128x32xbf16>
    %c128_58 = arith.constant 128 : index
    %c128_59 = arith.constant 128 : index
    %121 = vector.load %arg11[%c128_58, %c128_59] : memref<256x256xbf16, #tpu.memory_space<vmem>>, vector<128x32xbf16>
    tpu.vector_store %arg11[%c128_58, %c128_59], %120 {strides = array<i32>} : memref<256x256xbf16, #tpu.memory_space<vmem>>, vector<128x32xbf16>,
    %c1280 = arith.constant 1280 : index
    %c0_60 = arith.constant 0 : index
    %122 = vector.load %arg1[%c1280, %c0_60] : memref<2048x256xi8, #tpu.memory_space<vmem>>, vector<128x256xi8>
    %123 = arith.uitofp %122 : vector<128x256xi8> to vector<128x256xf32>
    %124 = arith.truncf %123 : vector<128x256xf32> to vector<128x256xbf16>
    %cst_61 = arith.constant dense<0.000000e+00> : vector<128x32xf32>
    %125 = tpu.matmul %124, %0, %cst_61 {dimension_numbers = #tpu.dot_dimension_numbers<[1], [0], [0], [1], [0, 0, 1, 1], [], []>} : vector<128x256xbf16>, vector<256x32xbf16>, vector<128x32xf32> -> vector<128x32xf32>
    %cst_62 = arith.constant 0.00392156886 : f32
    %126 = vector.broadcast %cst_62 : f32 to vector<128x32xf32>
    %127 = arith.mulf %125, %126 : vector<128x32xf32>
    %128 = vector.broadcast %1 : vector<1x32xf32> to vector<128x32xf32>
    %129 = arith.addf %127, %128 : vector<128x32xf32>
    %cst_63 = arith.constant 0.000000e+00 : f32
    %130 = vector.broadcast %cst_63 : f32 to vector<128x32xf32>
    %131 = arith.maximumf %129, %130 : vector<128x32xf32>
    %132 = arith.truncf %131 : vector<128x32xf32> to vector<128x32xbf16>
    %c0_64 = arith.constant 0 : index
    %c160 = arith.constant 160 : index
    %133 = vector.load %arg11[%c0_64, %c160] : memref<256x256xbf16, #tpu.memory_space<vmem>>, vector<128x32xbf16>
    tpu.vector_store %arg11[%c0_64, %c160], %132 {strides = array<i32>} : memref<256x256xbf16, #tpu.memory_space<vmem>>, vector<128x32xbf16>,
    %c1408 = arith.constant 1408 : index
    %c0_65 = arith.constant 0 : index
    %134 = vector.load %arg1[%c1408, %c0_65] : memref<2048x256xi8, #tpu.memory_space<vmem>>, vector<128x256xi8>
    %135 = arith.uitofp %134 : vector<128x256xi8> to vector<128x256xf32>
    %136 = arith.truncf %135 : vector<128x256xf32> to vector<128x256xbf16>
    %cst_66 = arith.constant dense<0.000000e+00> : vector<128x32xf32>
    %137 = tpu.matmul %136, %0, %cst_66 {dimension_numbers = #tpu.dot_dimension_numbers<[1], [0], [0], [1], [0, 0, 1, 1], [], []>} : vector<128x256xbf16>, vector<256x32xbf16>, vector<128x32xf32> -> vector<128x32xf32>
    %cst_67 = arith.constant 0.00392156886 : f32
    %138 = vector.broadcast %cst_67 : f32 to vector<128x32xf32>
    %139 = arith.mulf %137, %138 : vector<128x32xf32>
    %140 = vector.broadcast %1 : vector<1x32xf32> to vector<128x32xf32>
    %141 = arith.addf %139, %140 : vector<128x32xf32>
    %cst_68 = arith.constant 0.000000e+00 : f32
    %142 = vector.broadcast %cst_68 : f32 to vector<128x32xf32>
    %143 = arith.maximumf %141, %142 : vector<128x32xf32>
    %144 = arith.truncf %143 : vector<128x32xf32> to vector<128x32xbf16>
    %c128_69 = arith.constant 128 : index
    %c160_70 = arith.constant 160 : index
    %145 = vector.load %arg11[%c128_69, %c160_70] : memref<256x256xbf16, #tpu.memory_space<vmem>>, vector<128x32xbf16>
    tpu.vector_store %arg11[%c128_69, %c160_70], %144 {strides = array<i32>} : memref<256x256xbf16, #tpu.memory_space<vmem>>, vector<128x32xbf16>,
    %c1536 = arith.constant 1536 : index
    %c0_71 = arith.constant 0 : index
    %146 = vector.load %arg1[%c1536, %c0_71] : memref<2048x256xi8, #tpu.memory_space<vmem>>, vector<128x256xi8>
    %147 = arith.uitofp %146 : vector<128x256xi8> to vector<128x256xf32>
    %148 = arith.truncf %147 : vector<128x256xf32> to vector<128x256xbf16>
    %cst_72 = arith.constant dense<0.000000e+00> : vector<128x32xf32>
    %149 = tpu.matmul %148, %0, %cst_72 {dimension_numbers = #tpu.dot_dimension_numbers<[1], [0], [0], [1], [0, 0, 1, 1], [], []>} : vector<128x256xbf16>, vector<256x32xbf16>, vector<128x32xf32> -> vector<128x32xf32>
    %cst_73 = arith.constant 0.00392156886 : f32
    %150 = vector.broadcast %cst_73 : f32 to vector<128x32xf32>
    %151 = arith.mulf %149, %150 : vector<128x32xf32>
    %152 = vector.broadcast %1 : vector<1x32xf32> to vector<128x32xf32>
    %153 = arith.addf %151, %152 : vector<128x32xf32>
    %cst_74 = arith.constant 0.000000e+00 : f32
    %154 = vector.broadcast %cst_74 : f32 to vector<128x32xf32>
    %155 = arith.maximumf %153, %154 : vector<128x32xf32>
    %156 = arith.truncf %155 : vector<128x32xf32> to vector<128x32xbf16>
    %c0_75 = arith.constant 0 : index
    %c192 = arith.constant 192 : index
    %157 = vector.load %arg11[%c0_75, %c192] : memref<256x256xbf16, #tpu.memory_space<vmem>>, vector<128x32xbf16>
    tpu.vector_store %arg11[%c0_75, %c192], %156 {strides = array<i32>} : memref<256x256xbf16, #tpu.memory_space<vmem>>, vector<128x32xbf16>,
    %c1664 = arith.constant 1664 : index
    %c0_76 = arith.constant 0 : index
    %158 = vector.load %arg1[%c1664, %c0_76] : memref<2048x256xi8, #tpu.memory_space<vmem>>, vector<128x256xi8>
    %159 = arith.uitofp %158 : vector<128x256xi8> to vector<128x256xf32>
    %160 = arith.truncf %159 : vector<128x256xf32> to vector<128x256xbf16>
    %cst_77 = arith.constant dense<0.000000e+00> : vector<128x32xf32>
    %161 = tpu.matmul %160, %0, %cst_77 {dimension_numbers = #tpu.dot_dimension_numbers<[1], [0], [0], [1], [0, 0, 1, 1], [], []>} : vector<128x256xbf16>, vector<256x32xbf16>, vector<128x32xf32> -> vector<128x32xf32>
    %cst_78 = arith.constant 0.00392156886 : f32
    %162 = vector.broadcast %cst_78 : f32 to vector<128x32xf32>
    %163 = arith.mulf %161, %162 : vector<128x32xf32>
    %164 = vector.broadcast %1 : vector<1x32xf32> to vector<128x32xf32>
    %165 = arith.addf %163, %164 : vector<128x32xf32>
    %cst_79 = arith.constant 0.000000e+00 : f32
    %166 = vector.broadcast %cst_79 : f32 to vector<128x32xf32>
    %167 = arith.maximumf %165, %166 : vector<128x32xf32>
    %168 = arith.truncf %167 : vector<128x32xf32> to vector<128x32xbf16>
    %c128_80 = arith.constant 128 : index
    %c192_81 = arith.constant 192 : index
    %169 = vector.load %arg11[%c128_80, %c192_81] : memref<256x256xbf16, #tpu.memory_space<vmem>>, vector<128x32xbf16>
    tpu.vector_store %arg11[%c128_80, %c192_81], %168 {strides = array<i32>} : memref<256x256xbf16, #tpu.memory_space<vmem>>, vector<128x32xbf16>,
    %c1792 = arith.constant 1792 : index
    %c0_82 = arith.constant 0 : index
    %170 = vector.load %arg1[%c1792, %c0_82] : memref<2048x256xi8, #tpu.memory_space<vmem>>, vector<128x256xi8>
    %171 = arith.uitofp %170 : vector<128x256xi8> to vector<128x256xf32>
    %172 = arith.truncf %171 : vector<128x256xf32> to vector<128x256xbf16>
    %cst_83 = arith.constant dense<0.000000e+00> : vector<128x32xf32>
    %173 = tpu.matmul %172, %0, %cst_83 {dimension_numbers = #tpu.dot_dimension_numbers<[1], [0], [0], [1], [0, 0, 1, 1], [], []>} : vector<128x256xbf16>, vector<256x32xbf16>, vector<128x32xf32> -> vector<128x32xf32>
    %cst_84 = arith.constant 0.00392156886 : f32
    %174 = vector.broadcast %cst_84 : f32 to vector<128x32xf32>
    %175 = arith.mulf %173, %174 : vector<128x32xf32>
    %176 = vector.broadcast %1 : vector<1x32xf32> to vector<128x32xf32>
    %177 = arith.addf %175, %176 : vector<128x32xf32>
    %cst_85 = arith.constant 0.000000e+00 : f32
    %178 = vector.broadcast %cst_85 : f32 to vector<128x32xf32>
    %179 = arith.maximumf %177, %178 : vector<128x32xf32>
    %180 = arith.truncf %179 : vector<128x32xf32> to vector<128x32xbf16>
    %c0_86 = arith.constant 0 : index
    %c224 = arith.constant 224 : index
    %181 = vector.load %arg11[%c0_86, %c224] : memref<256x256xbf16, #tpu.memory_space<vmem>>, vector<128x32xbf16>
    tpu.vector_store %arg11[%c0_86, %c224], %180 {strides = array<i32>} : memref<256x256xbf16, #tpu.memory_space<vmem>>, vector<128x32xbf16>,
    %c1920 = arith.constant 1920 : index
    %c0_87 = arith.constant 0 : index
    %182 = vector.load %arg1[%c1920, %c0_87] : memref<2048x256xi8, #tpu.memory_space<vmem>>, vector<128x256xi8>
    %183 = arith.uitofp %182 : vector<128x256xi8> to vector<128x256xf32>
    %184 = arith.truncf %183 : vector<128x256xf32> to vector<128x256xbf16>
    %cst_88 = arith.constant dense<0.000000e+00> : vector<128x32xf32>
    %185 = tpu.matmul %184, %0, %cst_88 {dimension_numbers = #tpu.dot_dimension_numbers<[1], [0], [0], [1], [0, 0, 1, 1], [], []>} : vector<128x256xbf16>, vector<256x32xbf16>, vector<128x32xf32> -> vector<128x32xf32>
    %cst_89 = arith.constant 0.00392156886 : f32
    %186 = vector.broadcast %cst_89 : f32 to vector<128x32xf32>
    %187 = arith.mulf %185, %186 : vector<128x32xf32>
    %188 = vector.broadcast %1 : vector<1x32xf32> to vector<128x32xf32>
    %189 = arith.addf %187, %188 : vector<128x32xf32>
    %cst_90 = arith.constant 0.000000e+00 : f32
    %190 = vector.broadcast %cst_90 : f32 to vector<128x32xf32>
    %191 = arith.maximumf %189, %190 : vector<128x32xf32>
    %192 = arith.truncf %191 : vector<128x32xf32> to vector<128x32xbf16>
    %c128_91 = arith.constant 128 : index
    %c224_92 = arith.constant 224 : index
    %193 = vector.load %arg11[%c128_91, %c224_92] : memref<256x256xbf16, #tpu.memory_space<vmem>>, vector<128x32xbf16>
    tpu.vector_store %arg11[%c128_91, %c224_92], %192 {strides = array<i32>} : memref<256x256xbf16, #tpu.memory_space<vmem>>, vector<128x32xbf16>,
    %c0_93 = arith.constant 0 : index
    %c0_94 = arith.constant 0 : index
    %194 = vector.load %arg5[%c0_93, %c0_94] : memref<1x64xf32, #tpu.memory_space<vmem>>, vector<1x64xf32>
    %c0_95 = arith.constant 0 : index
    %c0_96 = arith.constant 0 : index
    %c0_97 = arith.constant 0 : index
    %195 = vector.load %arg4[%c0_95, %c0_96, %c0_97] : memref<4x128x64xbf16, #tpu.memory_space<vmem>>, vector<1x128x64xbf16>
    %196 = vector.shape_cast %195 : vector<1x128x64xbf16> to vector<128x64xbf16>
    %c1 = arith.constant 1 : index
    %c0_98 = arith.constant 0 : index
    %c0_99 = arith.constant 0 : index
    %197 = vector.load %arg4[%c1, %c0_98, %c0_99] : memref<4x128x64xbf16, #tpu.memory_space<vmem>>, vector<1x128x64xbf16>
    %198 = vector.shape_cast %197 : vector<1x128x64xbf16> to vector<128x64xbf16>
    %c2 = arith.constant 2 : index
    %c0_100 = arith.constant 0 : index
    %c0_101 = arith.constant 0 : index
    %199 = vector.load %arg4[%c2, %c0_100, %c0_101] : memref<4x128x64xbf16, #tpu.memory_space<vmem>>, vector<1x128x64xbf16>
    %200 = vector.shape_cast %199 : vector<1x128x64xbf16> to vector<128x64xbf16>
    %c3 = arith.constant 3 : index
    %c0_102 = arith.constant 0 : index
    %c0_103 = arith.constant 0 : index
    %201 = vector.load %arg4[%c3, %c0_102, %c0_103] : memref<4x128x64xbf16, #tpu.memory_space<vmem>>, vector<1x128x64xbf16>
    %202 = vector.shape_cast %201 : vector<1x128x64xbf16> to vector<128x64xbf16>
    %cst_104 = arith.constant 0.000000e+00 : f32
    %203 = vector.broadcast %cst_104 : f32 to vector<32x64xf32>
    %c0_105 = arith.constant 0 : index
    %c0_106 = arith.constant 0 : index
    %204 = vector.load %arg11[%c0_105, %c0_106] : memref<256x256xbf16, #tpu.memory_space<vmem>>, vector<32x128xbf16>
    %cst_107 = arith.constant dense<0.000000e+00> : vector<32x64xf32>
    %205 = tpu.matmul %204, %196, %cst_107 {dimension_numbers = #tpu.dot_dimension_numbers<[1], [0], [0], [1], [0, 0, 1, 1], [], []>} : vector<32x128xbf16>, vector<128x64xbf16>, vector<32x64xf32> -> vector<32x64xf32>
    %206 = arith.addf %203, %205 : vector<32x64xf32>
    %c32_108 = arith.constant 32 : index
    %c0_109 = arith.constant 0 : index
    %207 = vector.load %arg11[%c32_108, %c0_109] : memref<256x256xbf16, #tpu.memory_space<vmem>>, vector<32x128xbf16>
    %cst_110 = arith.constant dense<0.000000e+00> : vector<32x64xf32>
    %208 = tpu.matmul %207, %198, %cst_110 {dimension_numbers = #tpu.dot_dimension_numbers<[1], [0], [0], [1], [0, 0, 1, 1], [], []>} : vector<32x128xbf16>, vector<128x64xbf16>, vector<32x64xf32> -> vector<32x64xf32>
    %209 = arith.addf %206, %208 : vector<32x64xf32>
    %c64_111 = arith.constant 64 : index
    %c0_112 = arith.constant 0 : index
    %210 = vector.load %arg11[%c64_111, %c0_112] : memref<256x256xbf16, #tpu.memory_space<vmem>>, vector<32x128xbf16>
    %cst_113 = arith.constant dense<0.000000e+00> : vector<32x64xf32>
    %211 = tpu.matmul %210, %200, %cst_113 {dimension_numbers = #tpu.dot_dimension_numbers<[1], [0], [0], [1], [0, 0, 1, 1], [], []>} : vector<32x128xbf16>, vector<128x64xbf16>, vector<32x64xf32> -> vector<32x64xf32>
    %212 = arith.addf %209, %211 : vector<32x64xf32>
    %c96_114 = arith.constant 96 : index
    %c0_115 = arith.constant 0 : index
    %213 = vector.load %arg11[%c96_114, %c0_115] : memref<256x256xbf16, #tpu.memory_space<vmem>>, vector<32x128xbf16>
    %cst_116 = arith.constant dense<0.000000e+00> : vector<32x64xf32>
    %214 = tpu.matmul %213, %202, %cst_116 {dimension_numbers = #tpu.dot_dimension_numbers<[1], [0], [0], [1], [0, 0, 1, 1], [], []>} : vector<32x128xbf16>, vector<128x64xbf16>, vector<32x64xf32> -> vector<32x64xf32>
    %215 = arith.addf %212, %214 : vector<32x64xf32>
    %216 = vector.broadcast %194 : vector<1x64xf32> to vector<32x64xf32>
    %217 = arith.addf %215, %216 : vector<32x64xf32>
    %cst_117 = arith.constant 0.000000e+00 : f32
    %218 = vector.broadcast %cst_117 : f32 to vector<32x64xf32>
    %219 = arith.maximumf %217, %218 : vector<32x64xf32>
    %220 = arith.truncf %219 : vector<32x64xf32> to vector<32x64xbf16>
    %c0_118 = arith.constant 0 : index
    %c0_119 = arith.constant 0 : index
    %221 = vector.load %arg12[%c0_118, %c0_119] : memref<32x576xbf16, #tpu.memory_space<vmem>>, vector<32x64xbf16>
    tpu.vector_store %arg12[%c0_118, %c0_119], %220 {strides = array<i32>} : memref<32x576xbf16, #tpu.memory_space<vmem>>, vector<32x64xbf16>,
    %cst_120 = arith.constant 0.000000e+00 : f32
    %222 = vector.broadcast %cst_120 : f32 to vector<32x64xf32>
    %c0_121 = arith.constant 0 : index
    %c64_122 = arith.constant 64 : index
    %223 = vector.load %arg11[%c0_121, %c64_122] : memref<256x256xbf16, #tpu.memory_space<vmem>>, vector<32x128xbf16>
    %cst_123 = arith.constant dense<0.000000e+00> : vector<32x64xf32>
    %224 = tpu.matmul %223, %196, %cst_123 {dimension_numbers = #tpu.dot_dimension_numbers<[1], [0], [0], [1], [0, 0, 1, 1], [], []>} : vector<32x128xbf16>, vector<128x64xbf16>, vector<32x64xf32> -> vector<32x64xf32>
    %225 = arith.addf %222, %224 : vector<32x64xf32>
    %c32_124 = arith.constant 32 : index
    %c64_125 = arith.constant 64 : index
    %226 = vector.load %arg11[%c32_124, %c64_125] : memref<256x256xbf16, #tpu.memory_space<vmem>>, vector<32x128xbf16>
    %cst_126 = arith.constant dense<0.000000e+00> : vector<32x64xf32>
    %227 = tpu.matmul %226, %198, %cst_126 {dimension_numbers = #tpu.dot_dimension_numbers<[1], [0], [0], [1], [0, 0, 1, 1], [], []>} : vector<32x128xbf16>, vector<128x64xbf16>, vector<32x64xf32> -> vector<32x64xf32>
    %228 = arith.addf %225, %227 : vector<32x64xf32>
    %c64_127 = arith.constant 64 : index
    %c64_128 = arith.constant 64 : index
    %229 = vector.load %arg11[%c64_127, %c64_128] : memref<256x256xbf16, #tpu.memory_space<vmem>>, vector<32x128xbf16>
    %cst_129 = arith.constant dense<0.000000e+00> : vector<32x64xf32>
    %230 = tpu.matmul %229, %200, %cst_129 {dimension_numbers = #tpu.dot_dimension_numbers<[1], [0], [0], [1], [0, 0, 1, 1], [], []>} : vector<32x128xbf16>, vector<128x64xbf16>, vector<32x64xf32> -> vector<32x64xf32>
    %231 = arith.addf %228, %230 : vector<32x64xf32>
    %c96_130 = arith.constant 96 : index
    %c64_131 = arith.constant 64 : index
    %232 = vector.load %arg11[%c96_130, %c64_131] : memref<256x256xbf16, #tpu.memory_space<vmem>>, vector<32x128xbf16>
    %cst_132 = arith.constant dense<0.000000e+00> : vector<32x64xf32>
    %233 = tpu.matmul %232, %202, %cst_132 {dimension_numbers = #tpu.dot_dimension_numbers<[1], [0], [0], [1], [0, 0, 1, 1], [], []>} : vector<32x128xbf16>, vector<128x64xbf16>, vector<32x64xf32> -> vector<32x64xf32>
    %234 = arith.addf %231, %233 : vector<32x64xf32>
    %235 = vector.broadcast %194 : vector<1x64xf32> to vector<32x64xf32>
    %236 = arith.addf %234, %235 : vector<32x64xf32>
    %cst_133 = arith.constant 0.000000e+00 : f32
    %237 = vector.broadcast %cst_133 : f32 to vector<32x64xf32>
    %238 = arith.maximumf %236, %237 : vector<32x64xf32>
    %239 = arith.truncf %238 : vector<32x64xf32> to vector<32x64xbf16>
    %c0_134 = arith.constant 0 : index
    %c64_135 = arith.constant 64 : index
    %240 = vector.load %arg12[%c0_134, %c64_135] : memref<32x576xbf16, #tpu.memory_space<vmem>>, vector<32x64xbf16>
    tpu.vector_store %arg12[%c0_134, %c64_135], %239 {strides = array<i32>} : memref<32x576xbf16, #tpu.memory_space<vmem>>, vector<32x64xbf16>,
    %cst_136 = arith.constant 0.000000e+00 : f32
    %241 = vector.broadcast %cst_136 : f32 to vector<32x64xf32>
    %c0_137 = arith.constant 0 : index
    %c128_138 = arith.constant 128 : index
    %242 = vector.load %arg11[%c0_137, %c128_138] : memref<256x256xbf16, #tpu.memory_space<vmem>>, vector<32x128xbf16>
    %cst_139 = arith.constant dense<0.000000e+00> : vector<32x64xf32>
    %243 = tpu.matmul %242, %196, %cst_139 {dimension_numbers = #tpu.dot_dimension_numbers<[1], [0], [0], [1], [0, 0, 1, 1], [], []>} : vector<32x128xbf16>, vector<128x64xbf16>, vector<32x64xf32> -> vector<32x64xf32>
    %244 = arith.addf %241, %243 : vector<32x64xf32>
    %c32_140 = arith.constant 32 : index
    %c128_141 = arith.constant 128 : index
    %245 = vector.load %arg11[%c32_140, %c128_141] : memref<256x256xbf16, #tpu.memory_space<vmem>>, vector<32x128xbf16>
    %cst_142 = arith.constant dense<0.000000e+00> : vector<32x64xf32>
    %246 = tpu.matmul %245, %198, %cst_142 {dimension_numbers = #tpu.dot_dimension_numbers<[1], [0], [0], [1], [0, 0, 1, 1], [], []>} : vector<32x128xbf16>, vector<128x64xbf16>, vector<32x64xf32> -> vector<32x64xf32>
    %247 = arith.addf %244, %246 : vector<32x64xf32>
    %c64_143 = arith.constant 64 : index
    %c128_144 = arith.constant 128 : index
    %248 = vector.load %arg11[%c64_143, %c128_144] : memref<256x256xbf16, #tpu.memory_space<vmem>>, vector<32x128xbf16>
    %cst_145 = arith.constant dense<0.000000e+00> : vector<32x64xf32>
    %249 = tpu.matmul %248, %200, %cst_145 {dimension_numbers = #tpu.dot_dimension_numbers<[1], [0], [0], [1], [0, 0, 1, 1], [], []>} : vector<32x128xbf16>, vector<128x64xbf16>, vector<32x64xf32> -> vector<32x64xf32>
    %250 = arith.addf %247, %249 : vector<32x64xf32>
    %c96_146 = arith.constant 96 : index
    %c128_147 = arith.constant 128 : index
    %251 = vector.load %arg11[%c96_146, %c128_147] : memref<256x256xbf16, #tpu.memory_space<vmem>>, vector<32x128xbf16>
    %cst_148 = arith.constant dense<0.000000e+00> : vector<32x64xf32>
    %252 = tpu.matmul %251, %202, %cst_148 {dimension_numbers = #tpu.dot_dimension_numbers<[1], [0], [0], [1], [0, 0, 1, 1], [], []>} : vector<32x128xbf16>, vector<128x64xbf16>, vector<32x64xf32> -> vector<32x64xf32>
    %253 = arith.addf %250, %252 : vector<32x64xf32>
    %254 = vector.broadcast %194 : vector<1x64xf32> to vector<32x64xf32>
    %255 = arith.addf %253, %254 : vector<32x64xf32>
    %cst_149 = arith.constant 0.000000e+00 : f32
    %256 = vector.broadcast %cst_149 : f32 to vector<32x64xf32>
    %257 = arith.maximumf %255, %256 : vector<32x64xf32>
    %258 = arith.truncf %257 : vector<32x64xf32> to vector<32x64xbf16>
    %c0_150 = arith.constant 0 : index
    %c128_151 = arith.constant 128 : index
    %259 = vector.load %arg12[%c0_150, %c128_151] : memref<32x576xbf16, #tpu.memory_space<vmem>>, vector<32x64xbf16>
    tpu.vector_store %arg12[%c0_150, %c128_151], %258 {strides = array<i32>} : memref<32x576xbf16, #tpu.memory_space<vmem>>, vector<32x64xbf16>,
    %cst_152 = arith.constant 0.000000e+00 : f32
    %260 = vector.broadcast %cst_152 : f32 to vector<32x64xf32>
    %c64_153 = arith.constant 64 : index
    %c0_154 = arith.constant 0 : index
    %261 = vector.load %arg11[%c64_153, %c0_154] : memref<256x256xbf16, #tpu.memory_space<vmem>>, vector<32x128xbf16>
    %cst_155 = arith.constant dense<0.000000e+00> : vector<32x64xf32>
    %262 = tpu.matmul %261, %196, %cst_155 {dimension_numbers = #tpu.dot_dimension_numbers<[1], [0], [0], [1], [0, 0, 1, 1], [], []>} : vector<32x128xbf16>, vector<128x64xbf16>, vector<32x64xf32> -> vector<32x64xf32>
    %263 = arith.addf %260, %262 : vector<32x64xf32>
    %c96_156 = arith.constant 96 : index
    %c0_157 = arith.constant 0 : index
    %264 = vector.load %arg11[%c96_156, %c0_157] : memref<256x256xbf16, #tpu.memory_space<vmem>>, vector<32x128xbf16>
    %cst_158 = arith.constant dense<0.000000e+00> : vector<32x64xf32>
    %265 = tpu.matmul %264, %198, %cst_158 {dimension_numbers = #tpu.dot_dimension_numbers<[1], [0], [0], [1], [0, 0, 1, 1], [], []>} : vector<32x128xbf16>, vector<128x64xbf16>, vector<32x64xf32> -> vector<32x64xf32>
    %266 = arith.addf %263, %265 : vector<32x64xf32>
    %c128_159 = arith.constant 128 : index
    %c0_160 = arith.constant 0 : index
    %267 = vector.load %arg11[%c128_159, %c0_160] : memref<256x256xbf16, #tpu.memory_space<vmem>>, vector<32x128xbf16>
    %cst_161 = arith.constant dense<0.000000e+00> : vector<32x64xf32>
    %268 = tpu.matmul %267, %200, %cst_161 {dimension_numbers = #tpu.dot_dimension_numbers<[1], [0], [0], [1], [0, 0, 1, 1], [], []>} : vector<32x128xbf16>, vector<128x64xbf16>, vector<32x64xf32> -> vector<32x64xf32>
    %269 = arith.addf %266, %268 : vector<32x64xf32>
    %c160_162 = arith.constant 160 : index
    %c0_163 = arith.constant 0 : index
    %270 = vector.load %arg11[%c160_162, %c0_163] : memref<256x256xbf16, #tpu.memory_space<vmem>>, vector<32x128xbf16>
    %cst_164 = arith.constant dense<0.000000e+00> : vector<32x64xf32>
    %271 = tpu.matmul %270, %202, %cst_164 {dimension_numbers = #tpu.dot_dimension_numbers<[1], [0], [0], [1], [0, 0, 1, 1], [], []>} : vector<32x128xbf16>, vector<128x64xbf16>, vector<32x64xf32> -> vector<32x64xf32>
    %272 = arith.addf %269, %271 : vector<32x64xf32>
    %273 = vector.broadcast %194 : vector<1x64xf32> to vector<32x64xf32>
    %274 = arith.addf %272, %273 : vector<32x64xf32>
    %cst_165 = arith.constant 0.000000e+00 : f32
    %275 = vector.broadcast %cst_165 : f32 to vector<32x64xf32>
    %276 = arith.maximumf %274, %275 : vector<32x64xf32>
    %277 = arith.truncf %276 : vector<32x64xf32> to vector<32x64xbf16>
    %c0_166 = arith.constant 0 : index
    %c192_167 = arith.constant 192 : index
    %278 = vector.load %arg12[%c0_166, %c192_167] : memref<32x576xbf16, #tpu.memory_space<vmem>>, vector<32x64xbf16>
    tpu.vector_store %arg12[%c0_166, %c192_167], %277 {strides = array<i32>} : memref<32x576xbf16, #tpu.memory_space<vmem>>, vector<32x64xbf16>,
    %cst_168 = arith.constant 0.000000e+00 : f32
    %279 = vector.broadcast %cst_168 : f32 to vector<32x64xf32>
    %c64_169 = arith.constant 64 : index
    %c64_170 = arith.constant 64 : index
    %280 = vector.load %arg11[%c64_169, %c64_170] : memref<256x256xbf16, #tpu.memory_space<vmem>>, vector<32x128xbf16>
    %cst_171 = arith.constant dense<0.000000e+00> : vector<32x64xf32>
    %281 = tpu.matmul %280, %196, %cst_171 {dimension_numbers = #tpu.dot_dimension_numbers<[1], [0], [0], [1], [0, 0, 1, 1], [], []>} : vector<32x128xbf16>, vector<128x64xbf16>, vector<32x64xf32> -> vector<32x64xf32>
    %282 = arith.addf %279, %281 : vector<32x64xf32>
    %c96_172 = arith.constant 96 : index
    %c64_173 = arith.constant 64 : index
    %283 = vector.load %arg11[%c96_172, %c64_173] : memref<256x256xbf16, #tpu.memory_space<vmem>>, vector<32x128xbf16>
    %cst_174 = arith.constant dense<0.000000e+00> : vector<32x64xf32>
    %284 = tpu.matmul %283, %198, %cst_174 {dimension_numbers = #tpu.dot_dimension_numbers<[1], [0], [0], [1], [0, 0, 1, 1], [], []>} : vector<32x128xbf16>, vector<128x64xbf16>, vector<32x64xf32> -> vector<32x64xf32>
    %285 = arith.addf %282, %284 : vector<32x64xf32>
    %c128_175 = arith.constant 128 : index
    %c64_176 = arith.constant 64 : index
    %286 = vector.load %arg11[%c128_175, %c64_176] : memref<256x256xbf16, #tpu.memory_space<vmem>>, vector<32x128xbf16>
    %cst_177 = arith.constant dense<0.000000e+00> : vector<32x64xf32>
    %287 = tpu.matmul %286, %200, %cst_177 {dimension_numbers = #tpu.dot_dimension_numbers<[1], [0], [0], [1], [0, 0, 1, 1], [], []>} : vector<32x128xbf16>, vector<128x64xbf16>, vector<32x64xf32> -> vector<32x64xf32>
    %288 = arith.addf %285, %287 : vector<32x64xf32>
    %c160_178 = arith.constant 160 : index
    %c64_179 = arith.constant 64 : index
    %289 = vector.load %arg11[%c160_178, %c64_179] : memref<256x256xbf16, #tpu.memory_space<vmem>>, vector<32x128xbf16>
    %cst_180 = arith.constant dense<0.000000e+00> : vector<32x64xf32>
    %290 = tpu.matmul %289, %202, %cst_180 {dimension_numbers = #tpu.dot_dimension_numbers<[1], [0], [0], [1], [0, 0, 1, 1], [], []>} : vector<32x128xbf16>, vector<128x64xbf16>, vector<32x64xf32> -> vector<32x64xf32>
    %291 = arith.addf %288, %290 : vector<32x64xf32>
    %292 = vector.broadcast %194 : vector<1x64xf32> to vector<32x64xf32>
    %293 = arith.addf %291, %292 : vector<32x64xf32>
    %cst_181 = arith.constant 0.000000e+00 : f32
    %294 = vector.broadcast %cst_181 : f32 to vector<32x64xf32>
    %295 = arith.maximumf %293, %294 : vector<32x64xf32>
    %296 = arith.truncf %295 : vector<32x64xf32> to vector<32x64xbf16>
    %c0_182 = arith.constant 0 : index
    %c256_183 = arith.constant 256 : index
    %297 = vector.load %arg12[%c0_182, %c256_183] : memref<32x576xbf16, #tpu.memory_space<vmem>>, vector<32x64xbf16>
    tpu.vector_store %arg12[%c0_182, %c256_183], %296 {strides = array<i32>} : memref<32x576xbf16, #tpu.memory_space<vmem>>, vector<32x64xbf16>,
    %cst_184 = arith.constant 0.000000e+00 : f32
    %298 = vector.broadcast %cst_184 : f32 to vector<32x64xf32>
    %c64_185 = arith.constant 64 : index
    %c128_186 = arith.constant 128 : index
    %299 = vector.load %arg11[%c64_185, %c128_186] : memref<256x256xbf16, #tpu.memory_space<vmem>>, vector<32x128xbf16>
    %cst_187 = arith.constant dense<0.000000e+00> : vector<32x64xf32>
    %300 = tpu.matmul %299, %196, %cst_187 {dimension_numbers = #tpu.dot_dimension_numbers<[1], [0], [0], [1], [0, 0, 1, 1], [], []>} : vector<32x128xbf16>, vector<128x64xbf16>, vector<32x64xf32> -> vector<32x64xf32>
    %301 = arith.addf %298, %300 : vector<32x64xf32>
    %c96_188 = arith.constant 96 : index
    %c128_189 = arith.constant 128 : index
    %302 = vector.load %arg11[%c96_188, %c128_189] : memref<256x256xbf16, #tpu.memory_space<vmem>>, vector<32x128xbf16>
    %cst_190 = arith.constant dense<0.000000e+00> : vector<32x64xf32>
    %303 = tpu.matmul %302, %198, %cst_190 {dimension_numbers = #tpu.dot_dimension_numbers<[1], [0], [0], [1], [0, 0, 1, 1], [], []>} : vector<32x128xbf16>, vector<128x64xbf16>, vector<32x64xf32> -> vector<32x64xf32>
    %304 = arith.addf %301, %303 : vector<32x64xf32>
    %c128_191 = arith.constant 128 : index
    %c128_192 = arith.constant 128 : index
    %305 = vector.load %arg11[%c128_191, %c128_192] : memref<256x256xbf16, #tpu.memory_space<vmem>>, vector<32x128xbf16>
    %cst_193 = arith.constant dense<0.000000e+00> : vector<32x64xf32>
    %306 = tpu.matmul %305, %200, %cst_193 {dimension_numbers = #tpu.dot_dimension_numbers<[1], [0], [0], [1], [0, 0, 1, 1], [], []>} : vector<32x128xbf16>, vector<128x64xbf16>, vector<32x64xf32> -> vector<32x64xf32>
    %307 = arith.addf %304, %306 : vector<32x64xf32>
    %c160_194 = arith.constant 160 : index
    %c128_195 = arith.constant 128 : index
    %308 = vector.load %arg11[%c160_194, %c128_195] : memref<256x256xbf16, #tpu.memory_space<vmem>>, vector<32x128xbf16>
    %cst_196 = arith.constant dense<0.000000e+00> : vector<32x64xf32>
    %309 = tpu.matmul %308, %202, %cst_196 {dimension_numbers = #tpu.dot_dimension_numbers<[1], [0], [0], [1], [0, 0, 1, 1], [], []>} : vector<32x128xbf16>, vector<128x64xbf16>, vector<32x64xf32> -> vector<32x64xf32>
    %310 = arith.addf %307, %309 : vector<32x64xf32>
    %311 = vector.broadcast %194 : vector<1x64xf32> to vector<32x64xf32>
    %312 = arith.addf %310, %311 : vector<32x64xf32>
    %cst_197 = arith.constant 0.000000e+00 : f32
    %313 = vector.broadcast %cst_197 : f32 to vector<32x64xf32>
    %314 = arith.maximumf %312, %313 : vector<32x64xf32>
    %315 = arith.truncf %314 : vector<32x64xf32> to vector<32x64xbf16>
    %c0_198 = arith.constant 0 : index
    %c320 = arith.constant 320 : index
    %316 = vector.load %arg12[%c0_198, %c320] : memref<32x576xbf16, #tpu.memory_space<vmem>>, vector<32x64xbf16>
    tpu.vector_store %arg12[%c0_198, %c320], %315 {strides = array<i32>} : memref<32x576xbf16, #tpu.memory_space<vmem>>, vector<32x64xbf16>,
    %cst_199 = arith.constant 0.000000e+00 : f32
    %317 = vector.broadcast %cst_199 : f32 to vector<32x64xf32>
    %c128_200 = arith.constant 128 : index
    %c0_201 = arith.constant 0 : index
    %318 = vector.load %arg11[%c128_200, %c0_201] : memref<256x256xbf16, #tpu.memory_space<vmem>>, vector<32x128xbf16>
    %cst_202 = arith.constant dense<0.000000e+00> : vector<32x64xf32>
    %319 = tpu.matmul %318, %196, %cst_202 {dimension_numbers = #tpu.dot_dimension_numbers<[1], [0], [0], [1], [0, 0, 1, 1], [], []>} : vector<32x128xbf16>, vector<128x64xbf16>, vector<32x64xf32> -> vector<32x64xf32>
    %320 = arith.addf %317, %319 : vector<32x64xf32>
    %c160_203 = arith.constant 160 : index
    %c0_204 = arith.constant 0 : index
    %321 = vector.load %arg11[%c160_203, %c0_204] : memref<256x256xbf16, #tpu.memory_space<vmem>>, vector<32x128xbf16>
    %cst_205 = arith.constant dense<0.000000e+00> : vector<32x64xf32>
    %322 = tpu.matmul %321, %198, %cst_205 {dimension_numbers = #tpu.dot_dimension_numbers<[1], [0], [0], [1], [0, 0, 1, 1], [], []>} : vector<32x128xbf16>, vector<128x64xbf16>, vector<32x64xf32> -> vector<32x64xf32>
    %323 = arith.addf %320, %322 : vector<32x64xf32>
    %c192_206 = arith.constant 192 : index
    %c0_207 = arith.constant 0 : index
    %324 = vector.load %arg11[%c192_206, %c0_207] : memref<256x256xbf16, #tpu.memory_space<vmem>>, vector<32x128xbf16>
    %cst_208 = arith.constant dense<0.000000e+00> : vector<32x64xf32>
    %325 = tpu.matmul %324, %200, %cst_208 {dimension_numbers = #tpu.dot_dimension_numbers<[1], [0], [0], [1], [0, 0, 1, 1], [], []>} : vector<32x128xbf16>, vector<128x64xbf16>, vector<32x64xf32> -> vector<32x64xf32>
    %326 = arith.addf %323, %325 : vector<32x64xf32>
    %c224_209 = arith.constant 224 : index
    %c0_210 = arith.constant 0 : index
    %327 = vector.load %arg11[%c224_209, %c0_210] : memref<256x256xbf16, #tpu.memory_space<vmem>>, vector<32x128xbf16>
    %cst_211 = arith.constant dense<0.000000e+00> : vector<32x64xf32>
    %328 = tpu.matmul %327, %202, %cst_211 {dimension_numbers = #tpu.dot_dimension_numbers<[1], [0], [0], [1], [0, 0, 1, 1], [], []>} : vector<32x128xbf16>, vector<128x64xbf16>, vector<32x64xf32> -> vector<32x64xf32>
    %329 = arith.addf %326, %328 : vector<32x64xf32>
    %330 = vector.broadcast %194 : vector<1x64xf32> to vector<32x64xf32>
    %331 = arith.addf %329, %330 : vector<32x64xf32>
    %cst_212 = arith.constant 0.000000e+00 : f32
    %332 = vector.broadcast %cst_212 : f32 to vector<32x64xf32>
    %333 = arith.maximumf %331, %332 : vector<32x64xf32>
    %334 = arith.truncf %333 : vector<32x64xf32> to vector<32x64xbf16>
    %c0_213 = arith.constant 0 : index
    %c384_214 = arith.constant 384 : index
    %335 = vector.load %arg12[%c0_213, %c384_214] : memref<32x576xbf16, #tpu.memory_space<vmem>>, vector<32x64xbf16>
    tpu.vector_store %arg12[%c0_213, %c384_214], %334 {strides = array<i32>} : memref<32x576xbf16, #tpu.memory_space<vmem>>, vector<32x64xbf16>,
    %cst_215 = arith.constant 0.000000e+00 : f32
    %336 = vector.broadcast %cst_215 : f32 to vector<32x64xf32>
    %c128_216 = arith.constant 128 : index
    %c64_217 = arith.constant 64 : index
    %337 = vector.load %arg11[%c128_216, %c64_217] : memref<256x256xbf16, #tpu.memory_space<vmem>>, vector<32x128xbf16>
    %cst_218 = arith.constant dense<0.000000e+00> : vector<32x64xf32>
    %338 = tpu.matmul %337, %196, %cst_218 {dimension_numbers = #tpu.dot_dimension_numbers<[1], [0], [0], [1], [0, 0, 1, 1], [], []>} : vector<32x128xbf16>, vector<128x64xbf16>, vector<32x64xf32> -> vector<32x64xf32>
    %339 = arith.addf %336, %338 : vector<32x64xf32>
    %c160_219 = arith.constant 160 : index
    %c64_220 = arith.constant 64 : index
    %340 = vector.load %arg11[%c160_219, %c64_220] : memref<256x256xbf16, #tpu.memory_space<vmem>>, vector<32x128xbf16>
    %cst_221 = arith.constant dense<0.000000e+00> : vector<32x64xf32>
    %341 = tpu.matmul %340, %198, %cst_221 {dimension_numbers = #tpu.dot_dimension_numbers<[1], [0], [0], [1], [0, 0, 1, 1], [], []>} : vector<32x128xbf16>, vector<128x64xbf16>, vector<32x64xf32> -> vector<32x64xf32>
    %342 = arith.addf %339, %341 : vector<32x64xf32>
    %c192_222 = arith.constant 192 : index
    %c64_223 = arith.constant 64 : index
    %343 = vector.load %arg11[%c192_222, %c64_223] : memref<256x256xbf16, #tpu.memory_space<vmem>>, vector<32x128xbf16>
    %cst_224 = arith.constant dense<0.000000e+00> : vector<32x64xf32>
    %344 = tpu.matmul %343, %200, %cst_224 {dimension_numbers = #tpu.dot_dimension_numbers<[1], [0], [0], [1], [0, 0, 1, 1], [], []>} : vector<32x128xbf16>, vector<128x64xbf16>, vector<32x64xf32> -> vector<32x64xf32>
    %345 = arith.addf %342, %344 : vector<32x64xf32>
    %c224_225 = arith.constant 224 : index
    %c64_226 = arith.constant 64 : index
    %346 = vector.load %arg11[%c224_225, %c64_226] : memref<256x256xbf16, #tpu.memory_space<vmem>>, vector<32x128xbf16>
    %cst_227 = arith.constant dense<0.000000e+00> : vector<32x64xf32>
    %347 = tpu.matmul %346, %202, %cst_227 {dimension_numbers = #tpu.dot_dimension_numbers<[1], [0], [0], [1], [0, 0, 1, 1], [], []>} : vector<32x128xbf16>, vector<128x64xbf16>, vector<32x64xf32> -> vector<32x64xf32>
    %348 = arith.addf %345, %347 : vector<32x64xf32>
    %349 = vector.broadcast %194 : vector<1x64xf32> to vector<32x64xf32>
    %350 = arith.addf %348, %349 : vector<32x64xf32>
    %cst_228 = arith.constant 0.000000e+00 : f32
    %351 = vector.broadcast %cst_228 : f32 to vector<32x64xf32>
    %352 = arith.maximumf %350, %351 : vector<32x64xf32>
    %353 = arith.truncf %352 : vector<32x64xf32> to vector<32x64xbf16>
    %c0_229 = arith.constant 0 : index
    %c448 = arith.constant 448 : index
    %354 = vector.load %arg12[%c0_229, %c448] : memref<32x576xbf16, #tpu.memory_space<vmem>>, vector<32x64xbf16>
    tpu.vector_store %arg12[%c0_229, %c448], %353 {strides = array<i32>} : memref<32x576xbf16, #tpu.memory_space<vmem>>, vector<32x64xbf16>,
    %cst_230 = arith.constant 0.000000e+00 : f32
    %355 = vector.broadcast %cst_230 : f32 to vector<32x64xf32>
    %c128_231 = arith.constant 128 : index
    %c128_232 = arith.constant 128 : index
    %356 = vector.load %arg11[%c128_231, %c128_232] : memref<256x256xbf16, #tpu.memory_space<vmem>>, vector<32x128xbf16>
    %cst_233 = arith.constant dense<0.000000e+00> : vector<32x64xf32>
    %357 = tpu.matmul %356, %196, %cst_233 {dimension_numbers = #tpu.dot_dimension_numbers<[1], [0], [0], [1], [0, 0, 1, 1], [], []>} : vector<32x128xbf16>, vector<128x64xbf16>, vector<32x64xf32> -> vector<32x64xf32>
    %358 = arith.addf %355, %357 : vector<32x64xf32>
    %c160_234 = arith.constant 160 : index
    %c128_235 = arith.constant 128 : index
    %359 = vector.load %arg11[%c160_234, %c128_235] : memref<256x256xbf16, #tpu.memory_space<vmem>>, vector<32x128xbf16>
    %cst_236 = arith.constant dense<0.000000e+00> : vector<32x64xf32>
    %360 = tpu.matmul %359, %198, %cst_236 {dimension_numbers = #tpu.dot_dimension_numbers<[1], [0], [0], [1], [0, 0, 1, 1], [], []>} : vector<32x128xbf16>, vector<128x64xbf16>, vector<32x64xf32> -> vector<32x64xf32>
    %361 = arith.addf %358, %360 : vector<32x64xf32>
    %c192_237 = arith.constant 192 : index
    %c128_238 = arith.constant 128 : index
    %362 = vector.load %arg11[%c192_237, %c128_238] : memref<256x256xbf16, #tpu.memory_space<vmem>>, vector<32x128xbf16>
    %cst_239 = arith.constant dense<0.000000e+00> : vector<32x64xf32>
    %363 = tpu.matmul %362, %200, %cst_239 {dimension_numbers = #tpu.dot_dimension_numbers<[1], [0], [0], [1], [0, 0, 1, 1], [], []>} : vector<32x128xbf16>, vector<128x64xbf16>, vector<32x64xf32> -> vector<32x64xf32>
    %364 = arith.addf %361, %363 : vector<32x64xf32>
    %c224_240 = arith.constant 224 : index
    %c128_241 = arith.constant 128 : index
    %365 = vector.load %arg11[%c224_240, %c128_241] : memref<256x256xbf16, #tpu.memory_space<vmem>>, vector<32x128xbf16>
    %cst_242 = arith.constant dense<0.000000e+00> : vector<32x64xf32>
    %366 = tpu.matmul %365, %202, %cst_242 {dimension_numbers = #tpu.dot_dimension_numbers<[1], [0], [0], [1], [0, 0, 1, 1], [], []>} : vector<32x128xbf16>, vector<128x64xbf16>, vector<32x64xf32> -> vector<32x64xf32>
    %367 = arith.addf %364, %366 : vector<32x64xf32>
    %368 = vector.broadcast %194 : vector<1x64xf32> to vector<32x64xf32>
    %369 = arith.addf %367, %368 : vector<32x64xf32>
    %cst_243 = arith.constant 0.000000e+00 : f32
    %370 = vector.broadcast %cst_243 : f32 to vector<32x64xf32>
    %371 = arith.maximumf %369, %370 : vector<32x64xf32>
    %372 = arith.truncf %371 : vector<32x64xf32> to vector<32x64xbf16>
    %c0_244 = arith.constant 0 : index
    %c512_245 = arith.constant 512 : index
    %373 = vector.load %arg12[%c0_244, %c512_245] : memref<32x576xbf16, #tpu.memory_space<vmem>>, vector<32x64xbf16>
    tpu.vector_store %arg12[%c0_244, %c512_245], %372 {strides = array<i32>} : memref<32x576xbf16, #tpu.memory_space<vmem>>, vector<32x64xbf16>,
    %c0_246 = arith.constant 0 : index
    %c0_247 = arith.constant 0 : index
    %374 = vector.load %arg7[%c0_246, %c0_247] : memref<1x64xf32, #tpu.memory_space<vmem>>, vector<1x64xf32>
    %c0_248 = arith.constant 0 : index
    %c0_249 = arith.constant 0 : index
    %375 = vector.load %arg9[%c0_248, %c0_249] : memref<1x32xf32, #tpu.memory_space<vmem>>, vector<1x32xf32>
    %c0_250 = arith.constant 0 : index
    %c0_251 = arith.constant 0 : index
    %c0_252 = arith.constant 0 : index
    %376 = vector.load %arg6[%c0_250, %c0_251, %c0_252] : memref<3x192x64xbf16, #tpu.memory_space<vmem>>, vector<1x192x64xbf16>
    %377 = vector.shape_cast %376 : vector<1x192x64xbf16> to vector<192x64xbf16>
    %c1_253 = arith.constant 1 : index
    %c0_254 = arith.constant 0 : index
    %c0_255 = arith.constant 0 : index
    %378 = vector.load %arg6[%c1_253, %c0_254, %c0_255] : memref<3x192x64xbf16, #tpu.memory_space<vmem>>, vector<1x192x64xbf16>
    %379 = vector.shape_cast %378 : vector<1x192x64xbf16> to vector<192x64xbf16>
    %c2_256 = arith.constant 2 : index
    %c0_257 = arith.constant 0 : index
    %c0_258 = arith.constant 0 : index
    %380 = vector.load %arg6[%c2_256, %c0_257, %c0_258] : memref<3x192x64xbf16, #tpu.memory_space<vmem>>, vector<1x192x64xbf16>
    %381 = vector.shape_cast %380 : vector<1x192x64xbf16> to vector<192x64xbf16>
    %cst_259 = arith.constant 0.000000e+00 : f32
    %382 = vector.broadcast %cst_259 : f32 to vector<32x32xf32>
    %cst_260 = arith.constant 0.000000e+00 : f32
    %383 = vector.broadcast %cst_260 : f32 to vector<32x64xf32>
    %c0_261 = arith.constant 0 : index
    %c0_262 = arith.constant 0 : index
    %384 = vector.load %arg12[%c0_261, %c0_262] : memref<32x576xbf16, #tpu.memory_space<vmem>>, vector<32x192xbf16>
    %cst_263 = arith.constant dense<0.000000e+00> : vector<32x64xf32>
    %385 = tpu.matmul %384, %377, %cst_263 {dimension_numbers = #tpu.dot_dimension_numbers<[1], [0], [0], [1], [0, 0, 1, 1], [], []>} : vector<32x192xbf16>, vector<192x64xbf16>, vector<32x64xf32> -> vector<32x64xf32>
    %386 = arith.addf %383, %385 : vector<32x64xf32>
    %c0_264 = arith.constant 0 : index
    %c192_265 = arith.constant 192 : index
    %387 = vector.load %arg12[%c0_264, %c192_265] : memref<32x576xbf16, #tpu.memory_space<vmem>>, vector<32x192xbf16>
    %cst_266 = arith.constant dense<0.000000e+00> : vector<32x64xf32>
    %388 = tpu.matmul %387, %379, %cst_266 {dimension_numbers = #tpu.dot_dimension_numbers<[1], [0], [0], [1], [0, 0, 1, 1], [], []>} : vector<32x192xbf16>, vector<192x64xbf16>, vector<32x64xf32> -> vector<32x64xf32>
    %389 = arith.addf %386, %388 : vector<32x64xf32>
    %c0_267 = arith.constant 0 : index
    %c384_268 = arith.constant 384 : index
    %390 = vector.load %arg12[%c0_267, %c384_268] : memref<32x576xbf16, #tpu.memory_space<vmem>>, vector<32x192xbf16>
    %cst_269 = arith.constant dense<0.000000e+00> : vector<32x64xf32>
    %391 = tpu.matmul %390, %381, %cst_269 {dimension_numbers = #tpu.dot_dimension_numbers<[1], [0], [0], [1], [0, 0, 1, 1], [], []>} : vector<32x192xbf16>, vector<192x64xbf16>, vector<32x64xf32> -> vector<32x64xf32>
    %392 = arith.addf %389, %391 : vector<32x64xf32>
    %393 = vector.broadcast %374 : vector<1x64xf32> to vector<32x64xf32>
    %394 = arith.addf %392, %393 : vector<32x64xf32>
    %cst_270 = arith.constant 0.000000e+00 : f32
    %395 = vector.broadcast %cst_270 : f32 to vector<32x64xf32>
    %396 = arith.maximumf %394, %395 : vector<32x64xf32>
    %397 = arith.truncf %396 : vector<32x64xf32> to vector<32x64xbf16>
    %c0_271 = arith.constant 0 : index
    %c0_272 = arith.constant 0 : index
    %c0_273 = arith.constant 0 : index
    %398 = vector.load %arg8[%c0_271, %c0_272, %c0_273] : memref<1x64x32xbf16, #tpu.memory_space<vmem>>, vector<1x64x32xbf16>
    %399 = vector.shape_cast %398 : vector<1x64x32xbf16> to vector<64x32xbf16>
    %cst_274 = arith.constant dense<0.000000e+00> : vector<32x32xf32>
    %400 = tpu.matmul %397, %399, %cst_274 {dimension_numbers = #tpu.dot_dimension_numbers<[1], [0], [0], [1], [0, 0, 1, 1], [], []>} : vector<32x64xbf16>, vector<64x32xbf16>, vector<32x32xf32> -> vector<32x32xf32>
    %401 = arith.addf %382, %400 : vector<32x32xf32>
    %402 = vector.broadcast %375 : vector<1x32xf32> to vector<32x32xf32>
    %403 = arith.addf %401, %402 : vector<32x32xf32>
    %cst_275 = arith.constant 0.000000e+00 : f32
    %404 = vector.broadcast %cst_275 : f32 to vector<32x32xf32>
    %405 = arith.maximumf %403, %404 : vector<32x32xf32>
    %406 = vector.extract_strided_slice %405 {offsets = [0, 0], sizes = [8, 32], strides = [1, 1]} : vector<32x32xf32> to vector<8x32xf32>
    %407 = vector.extract_strided_slice %405 {offsets = [8, 0], sizes = [8, 32], strides = [1, 1]} : vector<32x32xf32> to vector<8x32xf32>
    %408 = vector.extract_strided_slice %405 {offsets = [16, 0], sizes = [8, 32], strides = [1, 1]} : vector<32x32xf32> to vector<8x32xf32>
    %409 = vector.extract_strided_slice %405 {offsets = [24, 0], sizes = [8, 32], strides = [1, 1]} : vector<32x32xf32> to vector<8x32xf32>
    %410 = tpu.concatenate %406, %407, %408, %409 in 1 : vector<8x32xf32>, vector<8x32xf32>, vector<8x32xf32>, vector<8x32xf32> -> vector<8x128xf32>
    %c0_276 = arith.constant 0 : index
    %c0_277 = arith.constant 0 : index
    %411 = vector.load %arg10[%c0_276, %c0_277] : memref<8x128xf32, #tpu.memory_space<vmem>>, vector<8x128xf32>
    tpu.vector_store %arg10[%c0_276, %c0_277], %410 {strides = array<i32>} : memref<8x128xf32, #tpu.memory_space<vmem>>, vector<8x128xf32>,
    return
  }
  func.func @transform_0(%arg0: i32) -> (i32, i32) {
    %c0_i32 = arith.constant 0 : i32
    %c0_i32_0 = arith.constant 0 : i32
    return %arg0, %c0_i32 : i32, i32
  }
  func.func @transform_1(%arg0: i32) -> (i32, i32) {
    %c0_i32 = arith.constant 0 : i32
    %c0_i32_0 = arith.constant 0 : i32
    %c0_i32_1 = arith.constant 0 : i32
    return %c0_i32, %c0_i32_0 : i32, i32
  }
  func.func @transform_2(%arg0: i32) -> (i32, i32) {
    %c0_i32 = arith.constant 0 : i32
    %c0_i32_0 = arith.constant 0 : i32
    %c0_i32_1 = arith.constant 0 : i32
    return %c0_i32, %c0_i32_0 : i32, i32
  }
  func.func @transform_3(%arg0: i32) -> (i32, i32, i32) {
    %c0_i32 = arith.constant 0 : i32
    %c0_i32_0 = arith.constant 0 : i32
    %c0_i32_1 = arith.constant 0 : i32
    %c0_i32_2 = arith.constant 0 : i32
    return %c0_i32, %c0_i32_0, %c0_i32_1 : i32, i32, i32
  }
  func.func @transform_4(%arg0: i32) -> (i32, i32) {
    %c0_i32 = arith.constant 0 : i32
    %c0_i32_0 = arith.constant 0 : i32
    %c0_i32_1 = arith.constant 0 : i32
    return %c0_i32, %c0_i32_0 : i32, i32
  }
  func.func @transform_5(%arg0: i32) -> (i32, i32, i32) {
    %c0_i32 = arith.constant 0 : i32
    %c0_i32_0 = arith.constant 0 : i32
    %c0_i32_1 = arith.constant 0 : i32
    %c0_i32_2 = arith.constant 0 : i32
    return %c0_i32, %c0_i32_0, %c0_i32_1 : i32, i32, i32
  }
  func.func @transform_6(%arg0: i32) -> (i32, i32) {
    %c0_i32 = arith.constant 0 : i32
    %c0_i32_0 = arith.constant 0 : i32
    %c0_i32_1 = arith.constant 0 : i32
    return %c0_i32, %c0_i32_0 : i32, i32
  }
  func.func @transform_7(%arg0: i32) -> (i32, i32, i32) {
    %c0_i32 = arith.constant 0 : i32
    %c0_i32_0 = arith.constant 0 : i32
    %c0_i32_1 = arith.constant 0 : i32
    %c0_i32_2 = arith.constant 0 : i32
    return %c0_i32, %c0_i32_0, %c0_i32_1 : i32, i32, i32
  }
  func.func @transform_8(%arg0: i32) -> (i32, i32) {
    %c0_i32 = arith.constant 0 : i32
    %c0_i32_0 = arith.constant 0 : i32
    %c0_i32_1 = arith.constant 0 : i32
    return %c0_i32, %c0_i32_0 : i32, i32
  }
  func.func @transform_9(%arg0: i32) -> (i32, i32) {
    %c0_i32 = arith.constant 0 : i32
    %c0_i32_0 = arith.constant 0 : i32
    return %arg0, %c0_i32 : i32, i32
  }
}

</mosaic_0001>

<bundles_post_ra>
// kernel: ngu_embedding_forward.1
= control target key start
LH: loop header
LB: loop body
LE: loop exit
PB: predicated region body
PF: predicated region fallthrough
CT: control target
= control target key end

     0   :  { %vm345_vm0 = vcmask 261120   ;;  %s9283_s10 = smov 32   ;;  %s9284_s15 = smov 64   ;;  %vm748_vm1 = vcmask 523520   ;;  %vm1183_vm2 = vcmask 785920   ;;  %vm1618_vm3 = vcmask 1048320   ;;  %s12493_s1 = inlined_call_operand.vmem [shape: bf16[256,32], index: 1, kind: input, shape index: {}]   ;;  %s12494_s0 = inlined_call_operand.vmem [shape: u8[2048,256], index: 0, kind: input, shape index: {}]   ;;  %s12495_s2 = inlined_call_operand.vmem [shape: f32[1,32], index: 2, kind: input, shape index: {}]   ;;  %s12496_s3 = inlined_call_operand.vmem [shape: bf16[4,128,64], index: 3, kind: input, shape index: {}]   ;;  %s12497_s4 = inlined_call_operand.vmem [shape: f32[1,64], index: 4, kind: input, shape index: {}]   ;;  %s12498_s5 = inlined_call_operand.vmem [shape: bf16[3,192,64], index: 5, kind: input, shape index: {}]   ;;  %s12499_s7 = inlined_call_operand.vmem [shape: bf16[1,64,32], index: 7, kind: input, shape index: {}]   ;;  %s12500_s6 = inlined_call_operand.vmem [shape: f32[1,64], index: 6, kind: input, shape index: {}]   ;;  %s12501_s8 = inlined_call_operand.vmem [shape: f32[1,32], index: 8, kind: input, shape index: {}]   ;;  %s12502_s9 = inlined_call_operand.vmem [shape: f32[8,128], index: 9, kind: output, shape index: {}]  }
   0x1   :  { %v9340_v0 = vld [vmem:[%s12493_s1 + $0x40] sm:$0xff]   ;;  %v9351_v2 = vld [vmem:[%s12493_s1 + $0x48] sm:$0xff]   ;;  %v9365_v4 = vld [vmem:[%s12493_s1 + $0x50] sm:$0xff]   ;;  %s9285_s29 = smov 96   ;;  %vm4004_vm4 = vcmask 523264   ;;  %vm4310_vm5 = vcmask 1048064  }
   0x2   :  { %v9345_v1 = vld [vmem:[%s12493_s1] sm:$0xff]   ;;  %6866 = vmatprep.subr.bf16.mxu0 %v9340_v0  ;;  %6930 = vmatprep.subr.bf16.mxu1 %v9340_v0  ;;  %v9358_v3 = vld [vmem:[%s12493_s1 + $0x8] sm:$0xff]   ;;  %v9372_v5 = vld [vmem:[%s12493_s1 + $0x10] sm:$0xff]   ;;  %vm6663_vm6 = vcmask 785408  }
   0x3   :  { %6867 = vmatpush3.bf16.msra.mxu0 %v9345_v1  ;;  %6931 = vmatpush3.bf16.msra.mxu1 %v9345_v1  ;;  %v9379_v6 = vld [vmem:[%s12493_s1 + $0x58] sm:$0xff]   ;;  %v9393_v8 = vld [vmem:[%s12493_s1 + $0x60] sm:$0xff]   ;;  %v9407_v10 = vld [vmem:[%s12493_s1 + $0x68] sm:$0xff]  }
   0x4   :  { %6868 = vmatprep.subr.bf16.mxu0 %v9351_v2  ;;  %6932 = vmatprep.subr.bf16.mxu1 %v9351_v2  ;;  %v9386_v7 = vld [vmem:[%s12493_s1 + $0x18] sm:$0xff]   ;;  %v9400_v9 = vld [vmem:[%s12493_s1 + $0x20] sm:$0xff]   ;;  %v67_v11 = vld [vmem:[%s12494_s0 + $0x8] sm:$0xff] }
   0x5   :  { %v75_v12 = vunpack.c.l.u8.bf16 %v67_v11  ;;  %v9417_v13 = vld [vmem:[%s12493_s1 + $0x28] sm:$0xff]   ;;  %v9423_v14 = vld [vmem:[%s12493_s1 + $0x70] sm:$0xff]   ;;  %v9437_v16 = vld [vmem:[%s12493_s1 + $0x78] sm:$0xff]   ;;  %v77_v20 = vunpack.c.h.u8.bf16 %v67_v11 }
   0x6   :  { %v9431_v15 = vld [vmem:[%s12493_s1 + $0x30] sm:$0xff]   ;;  %v9445_v17 = vld [vmem:[%s12493_s1 + $0x38] sm:$0xff]   ;;  %v66_v18 = vld [vmem:[%s12494_s0] sm:$0xff] }
   0x7   :  { %6869 = vmatpush3.bf16.msra.mxu0 %v9358_v3  ;;  %6933 = vmatpush3.bf16.msra.mxu1 %v9358_v3  ;;  %v74_v19 = vunpack.c.l.u8.bf16 %v66_v18  ;;  %v69_v21 = vld [vmem:[%s12494_s0 + $0x18] sm:$0xff]  ;;  %v76_v22 = vunpack.c.h.u8.bf16 %v66_v18  ;;  %v68_v24 = vld [vmem:[%s12494_s0 + $0x10] sm:$0xff]  ;;  %v71_v27 = vld [vmem:[%s12494_s0 + $0x28] sm:$0xff] }
   0x8   :  { %6870 = vmatprep.subr.bf16.mxu0 %v9365_v4  ;;  %6934 = vmatprep.subr.bf16.mxu1 %v9365_v4  ;;  %v79_v23 = vunpack.c.l.u8.bf16 %v69_v21  ;;  %v78_v25 = vunpack.c.l.u8.bf16 %v68_v24  ;;  %v81_v26 = vunpack.c.h.u8.bf16 %v69_v21  ;;  %v80_v28 = vunpack.c.h.u8.bf16 %v68_v24  ;;  %v70_v30 = vld [vmem:[%s12494_s0 + $0x20] sm:$0xff]  ;;  %v73_v33 = vld [vmem:[%s12494_s0 + $0x38] sm:$0xff]  ;;  %v72_v36 = vld [vmem:[%s12494_s0 + $0x30] sm:$0xff] }
   0x9   :  { %218 = vmatprep.mubr.bf16.mxu0 %v75_v12  ;;  %v83_v29 = vunpack.c.l.u8.bf16 %v71_v27  ;;  %v82_v31 = vunpack.c.l.u8.bf16 %v70_v30  ;;  %v85_v32 = vunpack.c.h.u8.bf16 %v71_v27  ;;  %v84_v34 = vunpack.c.h.u8.bf16 %v70_v30  ;;  %v540_v39 = vld [vmem:[%s12494_s0 + $0x88] sm:$0xff]  ;;  %v539_v42 = vld [vmem:[%s12494_s0 + $0x80] sm:$0xff]  ;;  %v542_v45 = vld [vmem:[%s12494_s0 + $0x98] sm:$0xff] }
   0xa   :  { %v87_v35 = vunpack.c.l.u8.bf16 %v73_v33  ;;  %v86_v37 = vunpack.c.l.u8.bf16 %v72_v36  ;;  %v89_v38 = vunpack.c.h.u8.bf16 %v73_v33  ;;  %v88_v40 = vunpack.c.h.u8.bf16 %v72_v36  ;;  %v541_v48 = vld [vmem:[%s12494_s0 + $0x90] sm:$0xff]  ;;  %v544_v51 = vld [vmem:[%s12494_s0 + $0xa8] sm:$0xff]  ;;  %v543_v54 = vld [vmem:[%s12494_s0 + $0xa0] sm:$0xff] }
   0xb   :  { %6871 = vmatpush3.bf16.msra.mxu0 %v9372_v5  ;;  %6935 = vmatpush3.bf16.msra.mxu1 %v9372_v5  ;;  %v548_v41 = vunpack.c.l.u8.bf16 %v540_v39  ;;  %v547_v43 = vunpack.c.l.u8.bf16 %v539_v42  ;;  %v550_v44 = vunpack.c.h.u8.bf16 %v540_v39  ;;  %v549_v46 = vunpack.c.h.u8.bf16 %v539_v42  ;;  %v546_v57 = vld [vmem:[%s12494_s0 + $0xb8] sm:$0xff]  ;;  %v545_v60 = vld [vmem:[%s12494_s0 + $0xb0] sm:$0xff]  ;;  %v975_v63 = vld [vmem:[%s12494_s0 + $0x108] sm:$0xff] }
   0xc   :  { %6872 = vmatprep.subr.bf16.mxu0 %v9379_v6  ;;  %6936 = vmatprep.subr.bf16.mxu1 %v9379_v6  ;;  %v552_v47 = vunpack.c.l.u8.bf16 %v542_v45  ;;  %v551_v49 = vunpack.c.l.u8.bf16 %v541_v48  ;;  %v554_v50 = vunpack.c.h.u8.bf16 %v542_v45  ;;  %v553_v52 = vunpack.c.h.u8.bf16 %v541_v48  ;;  %v974_v18 = vld [vmem:[%s12494_s0 + $0x100] sm:$0xff]  ;;  %v977_v21 = vld [vmem:[%s12494_s0 + $0x118] sm:$0xff]  ;;  %v976_v24 = vld [vmem:[%s12494_s0 + $0x110] sm:$0xff] }
   0xd   :  { %v556_v53 = vunpack.c.l.u8.bf16 %v544_v51  ;;  %v555_v55 = vunpack.c.l.u8.bf16 %v543_v54  ;;  %v558_v56 = vunpack.c.h.u8.bf16 %v544_v51  ;;  %v557_v58 = vunpack.c.h.u8.bf16 %v543_v54  ;;  %v979_v27 = vld [vmem:[%s12494_s0 + $0x128] sm:$0xff]  ;;  %v978_v30 = vld [vmem:[%s12494_s0 + $0x120] sm:$0xff]  ;;  %v981_v33 = vld [vmem:[%s12494_s0 + $0x138] sm:$0xff] }
   0xe   :  { %v560_v59 = vunpack.c.l.u8.bf16 %v546_v57  ;;  %v559_v61 = vunpack.c.l.u8.bf16 %v545_v60  ;;  %v562_v62 = vunpack.c.h.u8.bf16 %v546_v57  ;;  %v561_v11 = vunpack.c.h.u8.bf16 %v545_v60  ;;  %v980_v36 = vld [vmem:[%s12494_s0 + $0x130] sm:$0xff]  ;;  %v1410_v39 = vld [vmem:[%s12494_s0 + $0x188] sm:$0xff]  ;;  %v354_v42 = vld [vmem:[%s12494_s0 + $0x40] sm:$0xff] }
   0xf   :  { %6873 = vmatpush3.bf16.msra.mxu0 %v9386_v7  ;;  %6937 = vmatpush3.bf16.msra.mxu1 %v9386_v7  ;;  %v983_v12 = vunpack.c.l.u8.bf16 %v975_v63  ;;  %v1418_v45 = vunpack.c.l.u8.bf16 %v1410_v39  ;;  %v1412_v51 = vld [vmem:[%s12494_s0 + $0x198] sm:$0xff]  ;;  %v356_v54 = vld [vmem:[%s12494_s0 + $0x50] sm:$0xff] }
  0x10   :  { %6874 = vmatprep.subr.bf16.mxu0 %v9393_v8  ;;  %6938 = vmatprep.subr.bf16.mxu1 %v9393_v8  ;;  %v1422_v57 = vunpack.c.l.u8.bf16 %v1412_v51 }
  0x13   :  { %6875 = vmatpush3.bf16.msra.mxu0 %v9400_v9  ;;  %6939 = vmatpush3.bf16.msra.mxu1 %v9400_v9 }
  0x14   :  { %6876 = vmatprep.subr.bf16.mxu0 %v9407_v10  ;;  %6940 = vmatprep.subr.bf16.mxu1 %v9407_v10 }
  0x17   :  { %6877 = vmatpush3.bf16.msra.mxu0 %v9417_v13  ;;  %6941 = vmatpush3.bf16.msra.mxu1 %v9417_v13 }
  0x18   :  { %6878 = vmatprep.subr.bf16.mxu0 %v9423_v14  ;;  %6942 = vmatprep.subr.bf16.mxu1 %v9423_v14 }
  0x1b   :  { %6879 = vmatpush3.bf16.msra.mxu0 %v9431_v15  ;;  %6943 = vmatpush3.bf16.msra.mxu1 %v9431_v15 }
  0x1c   :  { %6880 = vmatprep.subr.bf16.mxu0 %v9437_v16  ;;  %6944 = vmatprep.subr.bf16.mxu1 %v9437_v16 }
  0x1f   :  { %6881 = vmatpush3.bf16.msra.mxu0 %v9445_v17  ;;  %6945 = vmatpush3.bf16.msra.mxu1 %v9445_v17 }
  0x20   :  { %6994 = vmatprep.subr.bf16.mxu0 %v9340_v0  ;;  %7058 = vmatprep.subr.bf16.mxu1 %v9340_v0 }
  0x22   :  { %219 = vmatmul.mubr.bf16.vlgmr.msra.gmra.mrb[0].mxu0 %v74_v19  ;;  %v982_v19 = vunpack.c.l.u8.bf16 %v974_v18 }
  0x23   :  { %6995 = vmatpush3.bf16.msra.mxu0 %v9345_v1  ;;  %226 = vmatprep.mubr.bf16.mxu0 %v77_v20  ;;  %v985_v20 = vunpack.c.h.u8.bf16 %v975_v63  ;;  %v1414_v63 = vld [vmem:[%s12494_s0 + $0x1a8] sm:$0xff] }
  0x24   :  { %6996 = vmatprep.subr.bf16.mxu0 %v9351_v2 }
  0x27   :  { %6997 = vmatpush3.bf16.msra.mxu0 %v9358_v3 }
  0x28   :  { %6998 = vmatprep.subr.bf16.mxu0 %v9365_v4 }
  0x2a   :  { %227 = vmatmul.mubr.bf16.gmra.mrb[4].mxu0 %v76_v22  ;;  %v984_v22 = vunpack.c.h.u8.bf16 %v974_v18 }
  0x2b   :  { %234 = vmatprep.mubr.bf16.mxu0 %v79_v23  ;;  %6999 = vmatpush3.bf16.msra.mxu0 %v9372_v5  ;;  %v987_v23 = vunpack.c.l.u8.bf16 %v977_v21 }
  0x2c   :  { %7000 = vmatprep.subr.bf16.mxu0 %v9379_v6 }
  0x2f   :  { %7001 = vmatpush3.bf16.msra.mxu0 %v9386_v7 }
  0x30   :  { %7002 = vmatprep.subr.bf16.mxu0 %v9393_v8 }
  0x32   :  { %235 = vmatmul.mubr.bf16.gmra.mrb[8].mxu0 %v78_v25  ;;  %v986_v25 = vunpack.c.l.u8.bf16 %v976_v24 }
  0x33   :  { %242 = vmatprep.mubr.bf16.mxu0 %v81_v26  ;;  %7003 = vmatpush3.bf16.msra.mxu0 %v9400_v9  ;;  %v989_v26 = vunpack.c.h.u8.bf16 %v977_v21 }
  0x34   :  { %7004 = vmatprep.subr.bf16.mxu0 %v9407_v10 }
  0x37   :  { %7005 = vmatpush3.bf16.msra.mxu0 %v9417_v13 }
  0x38   :  { %7006 = vmatprep.subr.bf16.mxu0 %v9423_v14 }
  0x3a   :  { %243 = vmatmul.mubr.bf16.gmra.mrb[12].mxu0 %v80_v28  ;;  %v988_v28 = vunpack.c.h.u8.bf16 %v976_v24  ;;  %v1426_v24 = vunpack.c.l.u8.bf16 %v1414_v63 }
  0x3b   :  { %250 = vmatprep.mubr.bf16.mxu0 %v83_v29  ;;  %7007 = vmatpush3.bf16.msra.mxu0 %v9431_v15  ;;  %v991_v29 = vunpack.c.l.u8.bf16 %v979_v27 }
  0x3c   :  { %7008 = vmatprep.subr.bf16.mxu0 %v9437_v16 }
  0x3f   :  { %7009 = vmatpush3.bf16.msra.mxu0 %v9445_v17 }
  0x40   :  { %7122 = vmatprep.subr.bf16.mxu0 %v9340_v0 }
  0x42   :  { %251 = vmatmul.mubr.bf16.gmra.mrb[16].mxu0 %v82_v31  ;;  %v990_v31 = vunpack.c.l.u8.bf16 %v978_v30 }
  0x43   :  { %258 = vmatprep.mubr.bf16.mxu0 %v85_v32  ;;  %v993_v32 = vunpack.c.h.u8.bf16 %v979_v27  ;;  %v9635_v27 = vld [vmem:[%s12495_s2] ss:$0 sm:$0xff] }
  0x4a   :  { %259 = vmatmul.mubr.bf16.gmra.mrb[20].mxu0 %v84_v34  ;;  %v992_v34 = vunpack.c.h.u8.bf16 %v978_v30  ;;  %v1413_v30 = vld [vmem:[%s12494_s0 + $0x1a0] sm:$0xff] }
  0x4b   :  { %266 = vmatprep.mubr.bf16.mxu0 %v87_v35  ;;  %v995_v35 = vunpack.c.l.u8.bf16 %v981_v33 }
  0x52   :  { %267 = vmatmul.mubr.bf16.gmra.mrb[24].mxu0 %v86_v37  ;;  %v994_v37 = vunpack.c.l.u8.bf16 %v980_v36 }
  0x53   :  { %274 = vmatprep.mubr.bf16.mxu0 %v89_v38  ;;  %v997_v38 = vunpack.c.h.u8.bf16 %v981_v33 }
  0x5a   :  { %275 = vmatmul.mubr.bf16.gmra.mrb[28].mxu0 %v88_v40  ;;  %v355_v40 = vld [vmem:[%s12494_s0 + $0x48] sm:$0xff] }
  0x5b   :  { %595 = vmatprep.mubr.bf16.mxu0 %v548_v41  ;;  %v363_v41 = vunpack.c.l.u8.bf16 %v355_v40 }
  0x5d   :  { %410 = vmatprep.mubr.bf16.mxu1 %v363_v41 }
  0x62   :  { %596 = vmatmul.mubr.bf16.vlgmr.msra.gmra.mrb[32].mxu0 %v547_v43  ;;  %v996_v43 = vunpack.c.h.u8.bf16 %v980_v36 }
  0x63   :  { %7123 = vmatpush3.bf16.msra.mxu0 %v9345_v1  ;;  %603 = vmatprep.mubr.bf16.mxu0 %v550_v44  ;;  %v362_v44 = vunpack.c.l.u8.bf16 %v354_v42 }
  0x64   :  { %7124 = vmatprep.subr.bf16.mxu0 %v9351_v2 }
  0x65   :  { %411 = vmatmul.mubr.bf16.vlgmr.msra.gmra.mrb[0].mxu1 %v362_v44 }
  0x66   :  { %7059 = vmatpush3.bf16.msra.mxu1 %v9345_v1 }
  0x67   :  { %7125 = vmatpush3.bf16.msra.mxu0 %v9358_v3  ;;  %7060 = vmatprep.subr.bf16.mxu1 %v9351_v2 }
  0x68   :  { %7126 = vmatprep.subr.bf16.mxu0 %v9365_v4 }
  0x6a   :  { %604 = vmatmul.mubr.bf16.gmra.mrb[36].mxu0 %v549_v46  ;;  %v1409_v46 = vld [vmem:[%s12494_s0 + $0x180] sm:$0xff]  ;;  %7061 = vmatpush3.bf16.msra.mxu1 %v9358_v3 }
  0x6b   :  { %611 = vmatprep.mubr.bf16.mxu0 %v552_v47  ;;  %7127 = vmatpush3.bf16.msra.mxu0 %v9372_v5  ;;  %v365_v47 = vunpack.c.h.u8.bf16 %v355_v40  ;;  %v1417_v48 = vunpack.c.l.u8.bf16 %v1409_v46  ;;  %v1428_v40 = vunpack.c.h.u8.bf16 %v1414_v63 }
  0x6c   :  { %7128 = vmatprep.subr.bf16.mxu0 %v9379_v6  ;;  %7062 = vmatprep.subr.bf16.mxu1 %v9365_v4 }
  0x6d   :  { %418 = vmatprep.mubr.bf16.mxu1 %v365_v47 }
  0x6e   :  { %7063 = vmatpush3.bf16.msra.mxu1 %v9372_v5 }
  0x6f   :  { %7129 = vmatpush3.bf16.msra.mxu0 %v9386_v7  ;;  %7064 = vmatprep.subr.bf16.mxu1 %v9379_v6 }
  0x70   :  { %7130 = vmatprep.subr.bf16.mxu0 %v9393_v8 }
  0x72   :  { %612 = vmatmul.mubr.bf16.gmra.mrb[40].mxu0 %v551_v49  ;;  %v364_v49 = vunpack.c.h.u8.bf16 %v354_v42  ;;  %7065 = vmatpush3.bf16.msra.mxu1 %v9386_v7 }
  0x73   :  { %619 = vmatprep.mubr.bf16.mxu0 %v554_v50  ;;  %7131 = vmatpush3.bf16.msra.mxu0 %v9400_v9  ;;  %v1420_v50 = vunpack.c.h.u8.bf16 %v1410_v39 }
  0x74   :  { %7132 = vmatprep.subr.bf16.mxu0 %v9407_v10  ;;  %419 = vmatmul.mubr.bf16.gmra.mrb[4].mxu1 %v364_v49 }
  0x75   :  { %7066 = vmatprep.subr.bf16.mxu1 %v9393_v8 }
  0x76   :  { %7067 = vmatpush3.bf16.msra.mxu1 %v9400_v9 }
  0x77   :  { %7133 = vmatpush3.bf16.msra.mxu0 %v9417_v13  ;;  %7068 = vmatprep.subr.bf16.mxu1 %v9407_v10 }
  0x78   :  { %7134 = vmatprep.subr.bf16.mxu0 %v9423_v14 }
  0x7a   :  { %620 = vmatmul.mubr.bf16.gmra.mrb[44].mxu0 %v553_v52  ;;  %v357_v52 = vld [vmem:[%s12494_s0 + $0x58] sm:$0xff]  ;;  %7069 = vmatpush3.bf16.msra.mxu1 %v9417_v13 }
  0x7b   :  { %627 = vmatprep.mubr.bf16.mxu0 %v556_v53  ;;  %7135 = vmatpush3.bf16.msra.mxu0 %v9431_v15  ;;  %v367_v53 = vunpack.c.l.u8.bf16 %v357_v52 }
  0x7c   :  { %7136 = vmatprep.subr.bf16.mxu0 %v9437_v16  ;;  %7070 = vmatprep.subr.bf16.mxu1 %v9423_v14 }
  0x7d   :  { %426 = vmatprep.mubr.bf16.mxu1 %v367_v53  ;;  %v360_v53 = vld [vmem:[%s12494_s0 + $0x70] sm:$0xff] }
  0x7e   :  { %7071 = vmatpush3.bf16.msra.mxu1 %v9431_v15 }
  0x7f   :  { %7137 = vmatpush3.bf16.msra.mxu0 %v9445_v17  ;;  %7072 = vmatprep.subr.bf16.mxu1 %v9437_v16 }
  0x80   :  { %7250 = vmatprep.subr.bf16.mxu0 %v9340_v0 }
  0x82   :  { %628 = vmatmul.mubr.bf16.gmra.mrb[48].mxu0 %v555_v55  ;;  %v1419_v55 = vunpack.c.h.u8.bf16 %v1409_v46  ;;  %7073 = vmatpush3.bf16.msra.mxu1 %v9445_v17 }
  0x83   :  { %635 = vmatprep.mubr.bf16.mxu0 %v558_v56  ;;  %v366_v56 = vunpack.c.l.u8.bf16 %v356_v54  ;;  %7186 = vmatprep.subr.bf16.mxu1 %v9340_v0 }
  0x85   :  { %427 = vmatmul.mubr.bf16.gmra.mrb[8].mxu1 %v366_v56  ;;  %v1427_v56 = vunpack.c.h.u8.bf16 %v1413_v30 }
  0x8a   :  { %636 = vmatmul.mubr.bf16.gmra.mrb[52].mxu0 %v557_v58  ;;  %v1411_v58 = vld [vmem:[%s12494_s0 + $0x190] sm:$0xff] }
  0x8b   :  { %643 = vmatprep.mubr.bf16.mxu0 %v560_v59  ;;  %v369_v59 = vunpack.c.h.u8.bf16 %v357_v52  ;;  %v1421_v60 = vunpack.c.l.u8.bf16 %v1411_v58  ;;  %v1423_v21 = vunpack.c.h.u8.bf16 %v1411_v58 }
  0x8d   :  { %434 = vmatprep.mubr.bf16.mxu1 %v369_v59 }
  0x92   :  { %644 = vmatmul.mubr.bf16.gmra.mrb[56].mxu0 %v559_v61  ;;  %v368_v61 = vunpack.c.h.u8.bf16 %v356_v54 }
  0x93   :  { %651 = vmatprep.mubr.bf16.mxu0 %v562_v62  ;;  %v1424_v62 = vunpack.c.h.u8.bf16 %v1412_v51 }
  0x94   :  { %435 = vmatmul.mubr.bf16.gmra.mrb[12].mxu1 %v368_v61 }
  0x9a   :  { %652 = vmatmul.mubr.bf16.gmra.mrb[60].mxu0 %v561_v11  ;;  %v359_v11 = vld [vmem:[%s12494_s0 + $0x68] sm:$0xff] }
  0x9b   :  { %1030 = vmatprep.mubr.bf16.mxu0 %v983_v12  ;;  %v371_v18 = vunpack.c.l.u8.bf16 %v359_v11 }
  0x9d   :  { %442 = vmatprep.mubr.bf16.mxu1 %v371_v18 }
  0xa2   :  { %1031 = vmatmul.mubr.bf16.vlgmr.msra.gmra.mrb[64].mxu0 %v982_v19  ;;  %v358_v19 = vld [vmem:[%s12494_s0 + $0x60] sm:$0xff] }
  0xa3   :  { %7251 = vmatpush3.bf16.msra.mxu0 %v9345_v1  ;;  %1038 = vmatprep.mubr.bf16.mxu0 %v985_v20 }
  0xa4   :  { %7252 = vmatprep.subr.bf16.mxu0 %v9351_v2 }
  0xa7   :  { %7253 = vmatpush3.bf16.msra.mxu0 %v9358_v3 }
  0xa8   :  { %7254 = vmatprep.subr.bf16.mxu0 %v9365_v4 }
  0xaa   :  { %1039 = vmatmul.mubr.bf16.gmra.mrb[68].mxu0 %v984_v22  ;;  %v370_v22 = vunpack.c.l.u8.bf16 %v358_v19 }
  0xab   :  { %1046 = vmatprep.mubr.bf16.mxu0 %v987_v23  ;;  %7255 = vmatpush3.bf16.msra.mxu0 %v9372_v5 }
  0xac   :  { %7256 = vmatprep.subr.bf16.mxu0 %v9379_v6  ;;  %443 = vmatmul.mubr.bf16.gmra.mrb[16].mxu1 %v370_v22 }
  0xaf   :  { %7257 = vmatpush3.bf16.msra.mxu0 %v9386_v7 }
  0xb0   :  { %7258 = vmatprep.subr.bf16.mxu0 %v9393_v8 }
  0xb2   :  { %1047 = vmatmul.mubr.bf16.gmra.mrb[72].mxu0 %v986_v25 }
  0xb3   :  { %1054 = vmatprep.mubr.bf16.mxu0 %v989_v26  ;;  %7259 = vmatpush3.bf16.msra.mxu0 %v9400_v9 }
  0xb4   :  { %7260 = vmatprep.subr.bf16.mxu0 %v9407_v10 }
  0xb7   :  { %7261 = vmatpush3.bf16.msra.mxu0 %v9417_v13 }
  0xb8   :  { %7262 = vmatprep.subr.bf16.mxu0 %v9423_v14 }
  0xba   :  { %1055 = vmatmul.mubr.bf16.gmra.mrb[76].mxu0 %v988_v28 }
  0xbb   :  { %1062 = vmatprep.mubr.bf16.mxu0 %v991_v29  ;;  %7263 = vmatpush3.bf16.msra.mxu0 %v9431_v15 }
  0xbc   :  { %7264 = vmatprep.subr.bf16.mxu0 %v9437_v16 }
  0xbf   :  { %7265 = vmatpush3.bf16.msra.mxu0 %v9445_v17 }
  0xc0   :  { %7378 = vmatprep.subr.bf16.mxu0 %v9340_v0 }
  0xc2   :  { %1063 = vmatmul.mubr.bf16.gmra.mrb[80].mxu0 %v990_v31 }
  0xc3   :  { %1070 = vmatprep.mubr.bf16.mxu0 %v993_v32 }
  0xca   :  { %1071 = vmatmul.mubr.bf16.gmra.mrb[84].mxu0 %v992_v34  ;;  %v373_v34 = vunpack.c.h.u8.bf16 %v359_v11 }
  0xcb   :  { %1078 = vmatprep.mubr.bf16.mxu0 %v995_v35 }
  0xcc   :  { %450 = vmatprep.mubr.bf16.mxu1 %v373_v34 }
  0xd2   :  { %1079 = vmatmul.mubr.bf16.gmra.mrb[88].mxu0 %v994_v37  ;;  %v1425_v37 = vunpack.c.l.u8.bf16 %v1413_v30 }
  0xd3   :  { %1086 = vmatprep.mubr.bf16.mxu0 %v997_v38  ;;  %v372_v38 = vunpack.c.h.u8.bf16 %v358_v19  ;;  %v1415_v19 = vld [vmem:[%s12494_s0 + $0x1b0] sm:$0xff] }
  0xd5   :  { %451 = vmatmul.mubr.bf16.gmra.mrb[20].mxu1 %v372_v38 }
  0xda   :  { %1087 = vmatmul.mubr.bf16.gmra.mrb[92].mxu0 %v996_v43 }
  0xdb   :  { %1465 = vmatprep.mubr.bf16.mxu0 %v1418_v45 }
  0xe2   :  { %1466 = vmatmul.mubr.bf16.vlgmr.msra.gmra.mrb[96].mxu0 %v1417_v48 }
  0xe3   :  { %7379 = vmatpush3.bf16.msra.mxu0 %v9345_v1  ;;  %1473 = vmatprep.mubr.bf16.mxu0 %v1420_v50  ;;  %v1416_v50 = vld [vmem:[%s12494_s0 + $0x1b8] sm:$0xff] }
  0xe4   :  { %7380 = vmatprep.subr.bf16.mxu0 %v9351_v2  ;;  %v1430_v59 = vunpack.c.l.u8.bf16 %v1416_v50  ;;  %v1432_v30 = vunpack.c.h.u8.bf16 %v1416_v50 }
  0xe7   :  { %7381 = vmatpush3.bf16.msra.mxu0 %v9358_v3 }
  0xe8   :  { %7382 = vmatprep.subr.bf16.mxu0 %v9365_v4 }
  0xea   :  { %1474 = vmatmul.mubr.bf16.gmra.mrb[100].mxu0 %v1419_v55 }
  0xeb   :  { %1481 = vmatprep.mubr.bf16.mxu0 %v1422_v57  ;;  %7383 = vmatpush3.bf16.msra.mxu0 %v9372_v5  ;;  %v374_v57 = vunpack.c.l.u8.bf16 %v360_v53 }
  0xec   :  { %7384 = vmatprep.subr.bf16.mxu0 %v9379_v6 }
  0xef   :  { %7385 = vmatpush3.bf16.msra.mxu0 %v9386_v7 }
  0xf0   :  { %7386 = vmatprep.subr.bf16.mxu0 %v9393_v8 }
  0xf2   :  { %1482 = vmatmul.mubr.bf16.gmra.mrb[104].mxu0 %v1421_v60 }
  0xf3   :  { %1489 = vmatprep.mubr.bf16.mxu0 %v1424_v62  ;;  %7387 = vmatpush3.bf16.msra.mxu0 %v9400_v9 }
  0xf4   :  { %7388 = vmatprep.subr.bf16.mxu0 %v9407_v10 }
  0xf5   :  { %v6882_v12 = vpop.f32.mrb[0].mxu0 }
  0xf6   :  { %v6883_v20 = vpop.f32.mrb[1].mxu0 }
  0xf7   :  { %v6885_v23 = vpop.f32.mrb[2].mxu0  ;;  %7389 = vmatpush3.bf16.msra.mxu0 %v9417_v13  ;;  %v6884_v25 = vadd.f32 %v6883_v20, %v6882_v12 }
  0xf8   :  { %v6886_v26 = vpop.f32.mrb[3].mxu0  ;;  %7390 = vmatprep.subr.bf16.mxu0 %v9423_v14 }
  0xf9   :  { %v6887_v28 = vadd.f32 %v6886_v26, %v6885_v23  ;;  %v283_v29 = vmul.f32 0.003921569, %v6884_v25  ;;  %v1429_v26 = vunpack.c.l.u8.bf16 %v1415_v19 }
  0xfa   :  { %1490 = vmatmul.mubr.bf16.gmra.mrb[108].mxu0 %v1423_v21 }
  0xfb   :  { %1497 = vmatprep.mubr.bf16.mxu0 %v1426_v24  ;;  %7391 = vmatpush3.bf16.msra.mxu0 %v9431_v15  ;;  %v284_v31 = vmul.f32 0.003921569, %v6887_v28  ;;  %v305_v32 = vadd.f32 %v9635_v27, %v283_v29  ;;  %v376_v28 = vunpack.c.h.u8.bf16 %v360_v53 }
  0xfc   :  { %7392 = vmatprep.subr.bf16.mxu0 %v9437_v16 }
  0xfd   :  { %v6888_v33 = vpop.f32.mrb[4].mxu0  ;;  %v306_v35 = vadd.f32 %v9635_v27, %v284_v31  ;;  %v321_v41 = vmax.f32 %v305_v32, 0.0 }
  0xfe   :  { %v6889_v36 = vpop.f32.mrb[5].mxu0 }
  0xff   :  { %v6891_v39 = vpop.f32.mrb[6].mxu0  ;;  %7393 = vmatpush3.bf16.msra.mxu0 %v9445_v17  ;;  %v322_v42 = vmax.f32 %v306_v35, 0.0  ;;  %v6890_v43 = vadd.f32 %v6889_v36, %v6888_v33 }
 0x100   :  { %v6892_v44 = vpop.f32.mrb[7].mxu0  ;;  %7506 = vmatprep.subr.bf16.mxu0 %v9340_v0  ;;  %v361_v0 = vld [vmem:[%s12494_s0 + $0x78] sm:$0xff] }
 0x101   :  { %v337_v45 = vpack.c.bf16 %v322_v42, %v321_v41  ;;  %v6893_v46 = vadd.f32 %v6892_v44, %v6891_v39  ;;  %v285_v47 = vmul.f32 0.003921569, %v6890_v43  ;;  %v375_v52 = vunpack.c.l.u8.bf16 %v361_v0  ;;  %v758_v41 = vld [vmem:[%s12494_s0 + $0xc8] sm:$0xff]  ;;  %v757_v44 = vld [vmem:[%s12494_s0 + $0xc0] sm:$0xff] }
 0x102   :  { %1498 = vmatmul.mubr.bf16.gmra.mrb[112].mxu0 %v1425_v37  ;;  %v377_v23 = vunpack.c.h.u8.bf16 %v361_v0  ;;  %v766_v43 = vunpack.c.l.u8.bf16 %v758_v41 }
 0x103   :  { %1505 = vmatprep.mubr.bf16.mxu0 %v1428_v40  ;;  %346 = vst.msk [vmem:[#allocation2] sm:$0xff] %vm345_vm0, %v337_v45  ;;  %v286_v48 = vmul.f32 0.003921569, %v6893_v46  ;;  %v307_v49 = vadd.f32 %v9635_v27, %v285_v47  ;;  %458 = vmatprep.mubr.bf16.mxu1 %v375_v52  ;;  %v1845_v40 = vld [vmem:[%s12494_s0 + $0x208] sm:$0xff]  ;;  %v1431_v47 = vunpack.c.h.u8.bf16 %v1415_v19 }
 0x104   :  { %459 = vmatmul.mubr.bf16.gmra.mrb[24].mxu1 %v374_v57  ;;  %v1853_v50 = vunpack.c.l.u8.bf16 %v1845_v40  ;;  %v1844_v57 = vld [vmem:[%s12494_s0 + $0x200] sm:$0xff] }
 0x105   :  { %v6894_v51 = vpop.f32.mrb[8].mxu0  ;;  %v308_v54 = vadd.f32 %v9635_v27, %v286_v48  ;;  %v323_v61 = vmax.f32 %v307_v49, 0.0  ;;  %466 = vmatprep.mubr.bf16.mxu1 %v377_v23  ;;  %v765_v48 = vunpack.c.l.u8.bf16 %v757_v44 }
 0x106   :  { %v6895_v55 = vpop.f32.mrb[9].mxu0 }
 0x107   :  { %v6897_v58 = vpop.f32.mrb[10].mxu0  ;;  %v6896_v60 = vadd.f32 %v6895_v55, %v6894_v51  ;;  %v324_v62 = vmax.f32 %v308_v54, 0.0 }
 0x108   :  { %v6898_v63 = vpop.f32.mrb[11].mxu0 }
 0x109   :  { %v6899_v11 = vadd.f32 %v6898_v63, %v6897_v58  ;;  %v287_v12 = vmul.f32 0.003921569, %v6896_v60  ;;  %v338_v18 = vpack.c.bf16 %v324_v62, %v323_v61  ;;  %v768_v61 = vunpack.c.h.u8.bf16 %v758_v41 }
 0x10a   :  { %1506 = vmatmul.mubr.bf16.gmra.mrb[116].mxu0 %v1427_v56 }
 0x10b   :  { %1513 = vmatprep.mubr.bf16.mxu0 %v1430_v59  ;;  %v288_v20 = vmul.f32 0.003921569, %v6899_v11  ;;  %v309_v21 = vadd.f32 %v9635_v27, %v287_v12  ;;  %347 = vst.msk [vmem:[#allocation2 + $0x10] sm:$0xff] %vm345_vm0, %v338_v18  ;;  %v1852_v11 = vunpack.c.l.u8.bf16 %v1844_v57  ;;  %v767_v12 = vunpack.c.h.u8.bf16 %v757_v44 }
 0x10c   :  { %467 = vmatmul.mubr.bf16.gmra.mrb[28].mxu1 %v376_v28 }
 0x10d   :  { %v6900_v22 = vpop.f32.mrb[12].mxu0  ;;  %v310_v24 = vadd.f32 %v9635_v27, %v288_v20  ;;  %v325_v31 = vmax.f32 %v309_v21, 0.0  ;;  %813 = vmatprep.mubr.bf16.mxu1 %v766_v43  ;;  %v1855_v20 = vunpack.c.h.u8.bf16 %v1845_v40 }
 0x10e   :  { %v6901_v25 = vpop.f32.mrb[13].mxu0 }
 0x10f   :  { %v6903_v29 = vpop.f32.mrb[14].mxu0  ;;  %v326_v32 = vmax.f32 %v310_v24, 0.0  ;;  %v6902_v33 = vadd.f32 %v6901_v25, %v6900_v22 }
 0x110   :  { %v6904_v34 = vpop.f32.mrb[15].mxu0 }
 0x111   :  { %v339_v35 = vpack.c.bf16 %v326_v32, %v325_v31  ;;  %v6905_v36 = vadd.f32 %v6904_v34, %v6903_v29  ;;  %v289_v37 = vmul.f32 0.003921569, %v6902_v33  ;;  %v760_v31 = vld [vmem:[%s12494_s0 + $0xd8] sm:$0xff] }
 0x112   :  { %1514 = vmatmul.mubr.bf16.gmra.mrb[120].mxu0 %v1429_v26  ;;  %v770_v34 = vunpack.c.l.u8.bf16 %v760_v31 }
 0x113   :  { %1521 = vmatprep.mubr.bf16.mxu0 %v1432_v30  ;;  %348 = vst.msk [vmem:[#allocation2 + $0x20] sm:$0xff] %vm345_vm0, %v339_v35  ;;  %v290_v38 = vmul.f32 0.003921569, %v6905_v36  ;;  %v311_v39 = vadd.f32 %v9635_v27, %v289_v37  ;;  %v1847_v30 = vld [vmem:[%s12494_s0 + $0x218] sm:$0xff] }
 0x114   :  { %814 = vmatmul.mubr.bf16.vlgmr.msra.gmra.mrb[32].mxu1 %v765_v48  ;;  %v1857_v41 = vunpack.c.l.u8.bf16 %v1847_v30 }
 0x115   :  { %v6906_v42 = vpop.f32.mrb[16].mxu0  ;;  %v312_v45 = vadd.f32 %v9635_v27, %v290_v38  ;;  %v327_v0 = vmax.f32 %v311_v39, 0.0  ;;  %7187 = vmatpush3.bf16.msra.mxu1 %v9345_v1  ;;  %821 = vmatprep.mubr.bf16.mxu1 %v768_v61 }
 0x116   :  { %v6907_v46 = vpop.f32.mrb[17].mxu0  ;;  %7188 = vmatprep.subr.bf16.mxu1 %v9351_v2 }
 0x117   :  { %v6909_v49 = vpop.f32.mrb[18].mxu0  ;;  %v328_v51 = vmax.f32 %v312_v45, 0.0  ;;  %v6908_v52 = vadd.f32 %v6907_v46, %v6906_v42 }
 0x118   :  { %v6910_v53 = vpop.f32.mrb[19].mxu0 }
 0x119   :  { %v340_v54 = vpack.c.bf16 %v328_v51, %v327_v0  ;;  %v6911_v55 = vadd.f32 %v6910_v53, %v6909_v49  ;;  %v291_v56 = vmul.f32 0.003921569, %v6908_v52  ;;  %7189 = vmatpush3.bf16.msra.mxu1 %v9358_v3  ;;  %v772_v49 = vunpack.c.h.u8.bf16 %v760_v31  ;;  %v1848_v31 = vld [vmem:[%s12494_s0 + $0x220] sm:$0xff] }
 0x11a   :  { %1522 = vmatmul.mubr.bf16.gmra.mrb[124].mxu0 %v1431_v47  ;;  %7190 = vmatprep.subr.bf16.mxu1 %v9365_v4 }
 0x11b   :  { %1900 = vmatprep.mubr.bf16.mxu0 %v1853_v50  ;;  %349 = vst.msk [vmem:[#allocation2 + $0x30] sm:$0xff] %vm345_vm0, %v340_v54  ;;  %v292_v58 = vmul.f32 0.003921569, %v6911_v55  ;;  %v313_v59 = vadd.f32 %v9635_v27, %v291_v56 }
 0x11c   :  { %822 = vmatmul.mubr.bf16.gmra.mrb[36].mxu1 %v767_v12 }
 0x11d   :  { %v6912_v60 = vpop.f32.mrb[20].mxu0  ;;  %v314_v62 = vadd.f32 %v9635_v27, %v292_v58  ;;  %v329_v21 = vmax.f32 %v313_v59, 0.0  ;;  %7191 = vmatpush3.bf16.msra.mxu1 %v9372_v5  ;;  %829 = vmatprep.mubr.bf16.mxu1 %v770_v34  ;;  %v1860_v34 = vunpack.c.l.u8.bf16 %v1848_v31 }
 0x11e   :  { %v6913_v63 = vpop.f32.mrb[21].mxu0  ;;  %7192 = vmatprep.subr.bf16.mxu1 %v9379_v6 }
 0x11f   :  { %v6914_v18 = vadd.f32 %v6913_v63, %v6912_v60  ;;  %v6915_v19 = vpop.f32.mrb[22].mxu0  ;;  %v330_v22 = vmax.f32 %v314_v62, 0.0 }
 0x120   :  { %v6916_v23 = vpop.f32.mrb[23].mxu0 }
 0x121   :  { %v293_v24 = vmul.f32 0.003921569, %v6914_v18  ;;  %v6917_v25 = vadd.f32 %v6916_v23, %v6915_v19  ;;  %v341_v26 = vpack.c.bf16 %v330_v22, %v329_v21  ;;  %7193 = vmatpush3.bf16.msra.mxu1 %v9386_v7 }
 0x122   :  { %1901 = vmatmul.mubr.bf16.vlgmr.msra.gmra.mrb[128].mxu0 %v1852_v11  ;;  %7194 = vmatprep.subr.bf16.mxu1 %v9393_v8 }
 0x123   :  { %v315_v28 = vadd.f32 %v9635_v27, %v293_v24  ;;  %v294_v29 = vmul.f32 0.003921569, %v6917_v25  ;;  %7507 = vmatpush3.bf16.msra.mxu0 %v9345_v1  ;;  %1908 = vmatprep.mubr.bf16.mxu0 %v1855_v20  ;;  %350 = vst.msk [vmem:[#allocation2 + $0x40] sm:$0xff] %vm345_vm0, %v341_v26  ;;  %v759_v1 = vld [vmem:[%s12494_s0 + $0xd0] sm:$0xff] }
 0x124   :  { %7508 = vmatprep.subr.bf16.mxu0 %v9351_v2  ;;  %v1854_v2 = vunpack.c.h.u8.bf16 %v1844_v57  ;;  %v769_v36 = vunpack.c.l.u8.bf16 %v759_v1  ;;  %v771_v51 = vunpack.c.h.u8.bf16 %v759_v1 }
 0x125   :  { %v316_v32 = vadd.f32 %v9635_v27, %v294_v29  ;;  %v6918_v33 = vpop.f32.mrb[24].mxu0  ;;  %v331_v37 = vmax.f32 %v315_v28, 0.0  ;;  %7195 = vmatpush3.bf16.msra.mxu1 %v9400_v9 }
 0x126   :  { %v6919_v35 = vpop.f32.mrb[25].mxu0  ;;  %830 = vmatmul.mubr.bf16.gmra.mrb[40].mxu1 %v769_v36  ;;  %7196 = vmatprep.subr.bf16.mxu1 %v9407_v10 }
 0x127   :  { %v332_v38 = vmax.f32 %v316_v32, 0.0  ;;  %v6920_v39 = vadd.f32 %v6919_v35, %v6918_v33  ;;  %v6921_v40 = vpop.f32.mrb[26].mxu0  ;;  %7509 = vmatpush3.bf16.msra.mxu0 %v9358_v3  ;;  %v1846_v3 = vld [vmem:[%s12494_s0 + $0x210] sm:$0xff]  ;;  %837 = vmatprep.mubr.bf16.mxu1 %v772_v49 }
 0x128   :  { %v6922_v42 = vpop.f32.mrb[27].mxu0  ;;  %7510 = vmatprep.subr.bf16.mxu0 %v9365_v4  ;;  %v1856_v0 = vunpack.c.l.u8.bf16 %v1846_v3  ;;  %v1858_v12 = vunpack.c.h.u8.bf16 %v1846_v3 }
 0x129   :  { %v295_v43 = vmul.f32 0.003921569, %v6920_v39  ;;  %v6923_v44 = vadd.f32 %v6922_v42, %v6921_v40  ;;  %v342_v45 = vpack.c.bf16 %v332_v38, %v331_v37  ;;  %7197 = vmatpush3.bf16.msra.mxu1 %v9417_v13 }
 0x12a   :  { %1909 = vmatmul.mubr.bf16.gmra.mrb[132].mxu0 %v1854_v2  ;;  %7198 = vmatprep.subr.bf16.mxu1 %v9423_v14 }
 0x12b   :  { %v317_v46 = vadd.f32 %v9635_v27, %v295_v43  ;;  %v296_v47 = vmul.f32 0.003921569, %v6923_v44  ;;  %1916 = vmatprep.mubr.bf16.mxu0 %v1857_v41  ;;  %7511 = vmatpush3.bf16.msra.mxu0 %v9372_v5  ;;  %351 = vst.msk [vmem:[#allocation2 + $0x50] sm:$0xff] %vm345_vm0, %v342_v45  ;;  %v1859_v5 = vunpack.c.h.u8.bf16 %v1847_v30  ;;  %v1851_v43 = vld [vmem:[%s12494_s0 + $0x238] sm:$0xff] }
 0x12c   :  { %7512 = vmatprep.subr.bf16.mxu0 %v9379_v6 }
 0x12d   :  { %v318_v4 = vadd.f32 %v9635_v27, %v296_v47  ;;  %v6924_v48 = vpop.f32.mrb[28].mxu0  ;;  %v333_v52 = vmax.f32 %v317_v46, 0.0  ;;  %7199 = vmatpush3.bf16.msra.mxu1 %v9431_v15  ;;  %v763_v47 = vld [vmem:[%s12494_s0 + $0xf0] sm:$0xff] }
 0x12e   :  { %v6925_v50 = vpop.f32.mrb[29].mxu0  ;;  %838 = vmatmul.mubr.bf16.gmra.mrb[44].mxu1 %v771_v51  ;;  %7200 = vmatprep.subr.bf16.mxu1 %v9437_v16 }
 0x12f   :  { %v334_v53 = vmax.f32 %v318_v4, 0.0  ;;  %v6926_v54 = vadd.f32 %v6925_v50, %v6924_v48  ;;  %v6927_v55 = vpop.f32.mrb[30].mxu0  ;;  %7513 = vmatpush3.bf16.msra.mxu0 %v9386_v7  ;;  %v1849_v7 = vld [vmem:[%s12494_s0 + $0x228] sm:$0xff]  ;;  %v1862_v4 = vunpack.c.h.u8.bf16 %v1848_v31  ;;  %v777_v48 = vunpack.c.l.u8.bf16 %v763_v47 }
 0x130   :  { %v6928_v6 = vpop.f32.mrb[31].mxu0  ;;  %7514 = vmatprep.subr.bf16.mxu0 %v9393_v8  ;;  %v762_v8 = vld [vmem:[%s12494_s0 + $0xe8] sm:$0xff]  ;;  %v1861_v23 = vunpack.c.l.u8.bf16 %v1849_v7  ;;  %v1863_v38 = vunpack.c.h.u8.bf16 %v1849_v7 }
 0x131   :  { %v343_v56 = vpack.c.bf16 %v334_v53, %v333_v52  ;;  %v297_v57 = vmul.f32 0.003921569, %v6926_v54  ;;  %v6929_v58 = vadd.f32 %v6928_v6, %v6927_v55  ;;  %v774_v63 = vunpack.c.l.u8.bf16 %v762_v8  ;;  %7201 = vmatpush3.bf16.msra.mxu1 %v9445_v17 }
 0x132   :  { %1917 = vmatmul.mubr.bf16.gmra.mrb[136].mxu0 %v1856_v0  ;;  %v776_v32 = vunpack.c.h.u8.bf16 %v762_v8  ;;  %v1865_v52 = vunpack.c.l.u8.bf16 %v1851_v43 }
 0x133   :  { %v319_v59 = vadd.f32 %v9635_v27, %v297_v57  ;;  %v298_v60 = vmul.f32 0.003921569, %v6929_v58  ;;  %1924 = vmatprep.mubr.bf16.mxu0 %v1859_v5  ;;  %7515 = vmatpush3.bf16.msra.mxu0 %v9400_v9  ;;  %352 = vst.msk [vmem:[#allocation2 + $0x60] sm:$0xff] %vm345_vm0, %v343_v56  ;;  %v761_v9 = vld [vmem:[%s12494_s0 + $0xe0] sm:$0xff]  ;;  %v1850_v57 = vld [vmem:[%s12494_s0 + $0x230] sm:$0xff] }
 0x134   :  { %7516 = vmatprep.subr.bf16.mxu0 %v9407_v10  ;;  %v773_v18 = vunpack.c.l.u8.bf16 %v761_v9  ;;  %v9740_v10 = vld [vmem:[%s12493_s1 + $0x40] sm:$0xff]   ;;  %845 = vmatprep.mubr.bf16.mxu1 %v774_v63  ;;  %v775_v1 = vunpack.c.h.u8.bf16 %v761_v9  ;;  %v1864_v8 = vunpack.c.l.u8.bf16 %v1850_v57 }
 0x135   :  { %v320_v61 = vadd.f32 %v9635_v27, %v298_v60  ;;  %v7010_v62 = vpop.f32.mrb[32].mxu0  ;;  %7314 = vmatprep.subr.bf16.mxu1 %v9740_v10  ;;  %v335_v19 = vmax.f32 %v319_v59, 0.0 }
 0x136   :  { %v7011_v11 = vpop.f32.mrb[33].mxu0  ;;  %846 = vmatmul.mubr.bf16.gmra.mrb[48].mxu1 %v773_v18 }
 0x137   :  { %v336_v20 = vmax.f32 %v320_v61, 0.0  ;;  %v7012_v21 = vadd.f32 %v7011_v11, %v7010_v62  ;;  %v7013_v22 = vpop.f32.mrb[34].mxu0  ;;  %7517 = vmatpush3.bf16.msra.mxu0 %v9417_v13  ;;  %853 = vmatprep.mubr.bf16.mxu1 %v776_v32  ;;  %v779_v61 = vunpack.c.h.u8.bf16 %v763_v47 }
 0x138   :  { %v7014_v24 = vpop.f32.mrb[35].mxu0  ;;  %7518 = vmatprep.subr.bf16.mxu0 %v9423_v14 }
 0x139   :  { %v344_v25 = vpack.c.bf16 %v336_v20, %v335_v19  ;;  %v660_v26 = vmul.f32 0.003921569, %v7012_v21  ;;  %v7015_v28 = vadd.f32 %v7014_v24, %v7013_v22  ;;  %v2215_v24 = vld [vmem:[%s12494_s0 + $0x288] sm:$0xff] }
 0x13a   :  { %1925 = vmatmul.mubr.bf16.gmra.mrb[140].mxu0 %v1858_v12  ;;  %v1867_v12 = vunpack.c.h.u8.bf16 %v1851_v43 }
 0x13b   :  { %v676_v29 = vadd.f32 %v9635_v27, %v660_v26  ;;  %v661_v30 = vmul.f32 0.003921569, %v7015_v28  ;;  %1932 = vmatprep.mubr.bf16.mxu0 %v1861_v23  ;;  %7519 = vmatpush3.bf16.msra.mxu0 %v9431_v15  ;;  %353 = vst.msk [vmem:[#allocation2 + $0x70] sm:$0xff] %vm345_vm0, %v344_v25  ;;  %v1193_v25 = vld [vmem:[%s12494_s0 + $0x148] sm:$0xff] }
 0x13c   :  { %7520 = vmatprep.subr.bf16.mxu0 %v9437_v16 }
 0x13d   :  { %v677_v13 = vadd.f32 %v9635_v27, %v661_v30  ;;  %v7016_v14 = vpop.f32.mrb[36].mxu0  ;;  %v692_v35 = vmax.f32 %v676_v29, 0.0  ;;  %v1201_v29 = vunpack.c.l.u8.bf16 %v1193_v25  ;;  %v1192_v30 = vld [vmem:[%s12494_s0 + $0x140] sm:$0xff] }
 0x13e   :  { %v7017_v33 = vpop.f32.mrb[37].mxu0  ;;  %854 = vmatmul.mubr.bf16.gmra.mrb[52].mxu1 %v775_v1 }
 0x13f   :  { %v693_v2 = vmax.f32 %v677_v13, 0.0  ;;  %v7018_v36 = vadd.f32 %v7017_v33, %v7016_v14  ;;  %v7019_v37 = vpop.f32.mrb[38].mxu0  ;;  %7521 = vmatpush3.bf16.msra.mxu0 %v9445_v17  ;;  %v764_v17 = vld [vmem:[%s12494_s0 + $0xf8] sm:$0xff]  ;;  %v1866_v13 = vunpack.c.h.u8.bf16 %v1850_v57  ;;  %v1200_v14 = vunpack.c.l.u8.bf16 %v1192_v30 }
 0x140   :  { %v7020_v15 = vpop.f32.mrb[39].mxu0  ;;  %7634 = vmatprep.subr.bf16.mxu0 %v9740_v10  ;;  %v778_v46 = vunpack.c.l.u8.bf16 %v764_v17  ;;  %v780_v60 = vunpack.c.h.u8.bf16 %v764_v17 }
 0x141   :  { %v662_v16 = vmul.f32 0.003921569, %v7018_v36  ;;  %v7021_v39 = vadd.f32 %v7020_v15, %v7019_v37  ;;  %v9755_v40 = vpack.c.bf16 %v693_v2, %v692_v35  ;;  %v2223_v35 = vunpack.c.l.u8.bf16 %v2215_v24  ;;  %v9790_v15 = vld [vmem:[%s12493_s1] sm:$0xff]  }
 0x142   :  { %1933 = vmatmul.mubr.bf16.gmra.mrb[144].mxu0 %v1860_v34  ;;  %861 = vmatprep.mubr.bf16.mxu1 %v778_v46 }
 0x143   :  { %v678_v41 = vadd.f32 %v9635_v27, %v662_v16  ;;  %v663_v42 = vmul.f32 0.003921569, %v7021_v39  ;;  %1940 = vmatprep.mubr.bf16.mxu0 %v1863_v38  ;;  %v9796_v16 = vld [vmem:[%s12493_s1 + $0x48] sm:$0xff]  }
 0x145   :  { %v679_v44 = vadd.f32 %v9635_v27, %v663_v42  ;;  %v7022_v45 = vpop.f32.mrb[40].mxu0  ;;  %v694_v49 = vmax.f32 %v678_v41, 0.0  ;;  %v2214_v42 = vld [vmem:[%s12494_s0 + $0x280] sm:$0xff] }
 0x146   :  { %v7023_v3 = vpop.f32.mrb[41].mxu0  ;;  %862 = vmatmul.mubr.bf16.gmra.mrb[56].mxu1 %v777_v48  ;;  %v2222_v47 = vunpack.c.l.u8.bf16 %v2214_v42 }
 0x147   :  { %v695_v50 = vmax.f32 %v679_v44, 0.0  ;;  %v7024_v0 = vadd.f32 %v7023_v3, %v7022_v45  ;;  %v7025_v51 = vpop.f32.mrb[42].mxu0  ;;  %869 = vmatprep.mubr.bf16.mxu1 %v780_v60  ;;  %v1203_v44 = vunpack.c.h.u8.bf16 %v1193_v25  ;;  %v9808_v45 = vld [vmem:[%s12493_s1 + $0x8] sm:$0xff]   ;;  %v1202_v3 = vunpack.c.h.u8.bf16 %v1192_v30  ;;  %v1195_v60 = vld [vmem:[%s12494_s0 + $0x158] sm:$0xff] }
 0x148   :  { %v7026_v53 = vpop.f32.mrb[43].mxu0  ;;  %v9872_v30 = vld [vmem:[%s12493_s1 + $0x68] sm:$0xff]  }
 0x149   :  { %v664_v54 = vmul.f32 0.003921569, %v7024_v0  ;;  %v7027_v55 = vadd.f32 %v7026_v53, %v7025_v51  ;;  %v9768_v5 = vpack.c.bf16 %v695_v50, %v694_v49  ;;  %v2225_v51 = vunpack.c.h.u8.bf16 %v2215_v24 }
 0x14a   :  { %1941 = vmatmul.mubr.bf16.gmra.mrb[148].mxu0 %v1862_v4  ;;  %v9814_v4 = vld [vmem:[%s12493_s1 + $0x50] sm:$0xff]  }
 0x14b   :  { %v680_v6 = vadd.f32 %v9635_v27, %v664_v54  ;;  %v665_v56 = vmul.f32 0.003921569, %v7027_v55  ;;  %1948 = vmatprep.mubr.bf16.mxu0 %v1865_v52  ;;  %v9820_v55 = vld [vmem:[%s12493_s1 + $0x10] sm:$0xff]  }
 0x14d   :  { %v681_v58 = vadd.f32 %v9635_v27, %v665_v56  ;;  %v7028_v59 = vpop.f32.mrb[44].mxu0  ;;  %v696_v9 = vmax.f32 %v680_v6, 0.0  ;;  %v9828_v56 = vld [vmem:[%s12493_s1 + $0x58] sm:$0xff]  }
 0x14e   :  { %v7029_v7 = vpop.f32.mrb[45].mxu0  ;;  %870 = vmatmul.mubr.bf16.gmra.mrb[60].mxu1 %v779_v61  ;;  %v1205_v61 = vunpack.c.l.u8.bf16 %v1195_v60 }
 0x14f   :  { %v7030_v62 = vadd.f32 %v7029_v7, %v7028_v59  ;;  %v7031_v63 = vpop.f32.mrb[46].mxu0  ;;  %v697_v11 = vmax.f32 %v681_v58, 0.0  ;;  %1248 = vmatprep.mubr.bf16.mxu1 %v1201_v29  ;;  %v9837_v59 = vld [vmem:[%s12494_s0 + $0x298] sm:$0xff] }
 0x150   :  { %v7032_v18 = vpop.f32.mrb[47].mxu0 }
 0x151   :  { %v666_v19 = vmul.f32 0.003921569, %v7030_v62  ;;  %v7033_v20 = vadd.f32 %v7032_v18, %v7031_v63  ;;  %v710_v21 = vpack.c.bf16 %v697_v11, %v696_v9  ;;  %v1194_v62 = vld [vmem:[%s12494_s0 + $0x150] sm:$0xff]  ;;  %v9849_v63 = vld [vmem:[%s12493_s1 + $0x18] sm:$0xff]   ;;  %v2224_v11 = vunpack.c.h.u8.bf16 %v2214_v42  ;;  %v9855_v18 = vld [vmem:[%s12493_s1 + $0x60] sm:$0xff]  }
 0x152   :  { %1949 = vmatmul.mubr.bf16.gmra.mrb[152].mxu0 %v1864_v8 }
 0x153   :  { %v682_v22 = vadd.f32 %v9635_v27, %v666_v19  ;;  %v667_v23 = vmul.f32 0.003921569, %v7033_v20  ;;  %728 = vrot.lane.b32.xlu0 %v710_v21, %s9283_s10  ;;  %1956 = vmatprep.mubr.bf16.mxu0 %v1867_v12  ;;  %v1204_v12 = vunpack.c.l.u8.bf16 %v1194_v62 }
 0x155   :  { %v683_v26 = vadd.f32 %v9635_v27, %v667_v23  ;;  %v7034_v28 = vpop.f32.mrb[48].mxu0  ;;  %v698_v34 = vmax.f32 %v682_v22, 0.0  ;;  %v2227_v23 = vunpack.c.l.u8.bf16 %v9837_v59 }
 0x156   :  { %v7035_v31 = vpop.f32.mrb[49].mxu0  ;;  %1249 = vmatmul.mubr.bf16.vlgmr.msra.gmra.mrb[64].mxu1 %v1200_v14  ;;  %v2216_v14 = vld [vmem:[%s12494_s0 + $0x290] sm:$0xff] }
 0x157   :  { %v7036_v32 = vadd.f32 %v7035_v31, %v7034_v28  ;;  %v7037_v33 = vpop.f32.mrb[50].mxu0  ;;  %v699_v1 = vmax.f32 %v683_v26, 0.0  ;;  %7315 = vmatpush3.bf16.msra.mxu1 %v9790_v15  ;;  %1256 = vmatprep.mubr.bf16.mxu1 %v1203_v44  ;;  %v9864_v28 = vld [vmem:[%s12493_s1 + $0x20] sm:$0xff]  }
 0x158   :  { %v7038_v2 = vpop.f32.mrb[51].mxu0  ;;  %7316 = vmatprep.subr.bf16.mxu1 %v9796_v16 }
 0x159   :  { %v668_v36 = vmul.f32 0.003921569, %v7036_v32  ;;  %v7039_v37 = vadd.f32 %v7038_v2, %v7037_v33  ;;  %v711_v38 = vpack.c.bf16 %v699_v1, %v698_v34  ;;  %v1207_v34 = vunpack.c.h.u8.bf16 %v1195_v60  ;;  %v9885_v1 = vld [vmem:[%s12493_s1 + $0x28] sm:$0xff]  }
 0x15a   :  { %1957 = vmatmul.mubr.bf16.gmra.mrb[156].mxu0 %v1866_v13  ;;  %v2226_v2 = vunpack.c.l.u8.bf16 %v2216_v14  ;;  %v2228_v60 = vunpack.c.h.u8.bf16 %v2216_v14 }
 0x15b   :  { %v684_v39 = vadd.f32 %v9635_v27, %v668_v36  ;;  %v669_v41 = vmul.f32 0.003921569, %v7039_v37  ;;  %730 = vrot.lane.b32.xlu1 %v711_v38, %s9283_s10  ;;  %2270 = vmatprep.mubr.bf16.mxu0 %v2223_v35  ;;  %v1206_v36 = vunpack.c.h.u8.bf16 %v1194_v62  ;;  %v9891_v37 = vld [vmem:[%s12493_s1 + $0x70] sm:$0xff]  }
 0x15c   :  { %7317 = vmatpush3.bf16.msra.mxu1 %v9808_v45 }
 0x15d   :  { %v685_v43 = vadd.f32 %v9635_v27, %v669_v41  ;;  %v7040_v17 = vpop.f32.mrb[52].mxu0  ;;  %7318 = vmatprep.subr.bf16.mxu1 %v9814_v4  ;;  %v700_v48 = vmax.f32 %v684_v39, 0.0 }
 0x15e   :  { %v7041_v46 = vpop.f32.mrb[53].mxu0  ;;  %1257 = vmatmul.mubr.bf16.gmra.mrb[68].mxu1 %v1202_v3 }
 0x15f   :  { %v701_v49 = vmax.f32 %v685_v43, 0.0  ;;  %v7042_v50 = vadd.f32 %v7041_v46, %v7040_v17  ;;  %v7043_v0 = vpop.f32.mrb[54].mxu0  ;;  %1264 = vmatprep.mubr.bf16.mxu1 %v1205_v61  ;;  %v2229_v43 = vunpack.c.h.u8.bf16 %v9837_v59 }
 0x160   :  { %v7044_v52 = vpop.f32.mrb[55].mxu0  ;;  %7319 = vmatpush3.bf16.msra.mxu1 %v9820_v55 }
 0x161   :  { %v670_v53 = vmul.f32 0.003921569, %v7042_v50  ;;  %v7045_v54 = vadd.f32 %v7044_v52, %v7043_v0  ;;  %v9823_v6 = vpack.c.bf16 %v701_v49, %v700_v48  ;;  %7320 = vmatprep.subr.bf16.mxu1 %v9828_v56  ;;  %v9908_v48 = vld [vmem:[%s12493_s1 + $0x78] sm:$0xff]   ;;  %v2219_v0 = vld [vmem:[%s12494_s0 + $0x2a8] sm:$0xff] }
 0x162   :  { %2271 = vmatmul.mubr.bf16.vlgmr.msra.gmra.mrb[160].mxu0 %v2222_v47  ;;  %v9900_v47 = vld [vmem:[%s12493_s1 + $0x30] sm:$0xff]  }
 0x163   :  { %v686_v57 = vadd.f32 %v9635_v27, %v670_v53  ;;  %v671_v58 = vmul.f32 0.003921569, %v7045_v54  ;;  %7635 = vmatpush3.bf16.msra.mxu0 %v9790_v15  ;;  %2278 = vmatprep.mubr.bf16.mxu0 %v2225_v51  ;;  %v1197_v51 = vld [vmem:[%s12494_s0 + $0x168] sm:$0xff] }
 0x164   :  { %7636 = vmatprep.subr.bf16.mxu0 %v9796_v16  ;;  %7321 = vmatpush3.bf16.msra.mxu1 %v9849_v63  ;;  %v1209_v54 = vunpack.c.l.u8.bf16 %v1197_v51 }
 0x165   :  { %v687_v7 = vadd.f32 %v9635_v27, %v671_v58  ;;  %v7046_v8 = vpop.f32.mrb[56].mxu0  ;;  %7322 = vmatprep.subr.bf16.mxu1 %v9855_v18  ;;  %v702_v19 = vmax.f32 %v686_v57, 0.0  ;;  %v1196_v57 = vld [vmem:[%s12494_s0 + $0x160] sm:$0xff]  ;;  %v9927_v58 = vld [vmem:[%s12493_s1 + $0x38] sm:$0xff]  }
 0x166   :  { %v7047_v9 = vpop.f32.mrb[57].mxu0  ;;  %1265 = vmatmul.mubr.bf16.gmra.mrb[72].mxu1 %v1204_v12 }
 0x167   :  { %v703_v20 = vmax.f32 %v687_v7, 0.0  ;;  %v7048_v21 = vadd.f32 %v7047_v9, %v7046_v8  ;;  %v7049_v22 = vpop.f32.mrb[58].mxu0  ;;  %7637 = vmatpush3.bf16.msra.mxu0 %v9808_v45  ;;  %1272 = vmatprep.mubr.bf16.mxu1 %v1207_v34  ;;  %v1208_v7 = vunpack.c.l.u8.bf16 %v1196_v57 }
 0x168   :  { %v7050_v24 = vpop.f32.mrb[59].mxu0  ;;  %7638 = vmatprep.subr.bf16.mxu0 %v9814_v4  ;;  %7323 = vmatpush3.bf16.msra.mxu1 %v9864_v28 }
 0x169   :  { %v672_v25 = vmul.f32 0.003921569, %v7048_v21  ;;  %v7051_v26 = vadd.f32 %v7050_v24, %v7049_v22  ;;  %v9867_v29 = vpack.c.bf16 %v703_v20, %v702_v19  ;;  %7324 = vmatprep.subr.bf16.mxu1 %v9872_v30  ;;  %v2218_v24 = vld [vmem:[%s12494_s0 + $0x2a0] sm:$0xff] }
 0x16a   :  { %2279 = vmatmul.mubr.bf16.gmra.mrb[164].mxu0 %v2224_v11  ;;  %v2231_v11 = vunpack.c.l.u8.bf16 %v2219_v0  ;;  %v2230_v14 = vunpack.c.l.u8.bf16 %v2218_v24 }
 0x16b   :  { %v688_v31 = vadd.f32 %v9635_v27, %v672_v25  ;;  %v673_v13 = vmul.f32 0.003921569, %v7051_v26  ;;  %2286 = vmatprep.mubr.bf16.mxu0 %v2227_v23  ;;  %7639 = vmatpush3.bf16.msra.mxu0 %v9820_v55 }
 0x16c   :  { %7640 = vmatprep.subr.bf16.mxu0 %v9828_v56  ;;  %7325 = vmatpush3.bf16.msra.mxu1 %v9885_v1 }
 0x16d   :  { %v689_v32 = vadd.f32 %v9635_v27, %v673_v13  ;;  %v7052_v33 = vpop.f32.mrb[60].mxu0  ;;  %7326 = vmatprep.subr.bf16.mxu1 %v9891_v37  ;;  %v704_v38 = vmax.f32 %v688_v31, 0.0  ;;  %v1211_v31 = vunpack.c.h.u8.bf16 %v1197_v51  ;;  %v1198_v51 = vld [vmem:[%s12494_s0 + $0x170] sm:$0xff] }
 0x16e   :  { %v7053_v35 = vpop.f32.mrb[61].mxu0  ;;  %1273 = vmatmul.mubr.bf16.gmra.mrb[76].mxu1 %v1206_v36  ;;  %v2233_v36 = vunpack.c.h.u8.bf16 %v2219_v0 }
 0x16f   :  { %v705_v39 = vmax.f32 %v689_v32, 0.0  ;;  %v7054_v41 = vadd.f32 %v7053_v35, %v7052_v33  ;;  %v7055_v42 = vpop.f32.mrb[62].mxu0  ;;  %7641 = vmatpush3.bf16.msra.mxu0 %v9849_v63  ;;  %1280 = vmatprep.mubr.bf16.mxu1 %v1209_v54  ;;  %v1210_v32 = vunpack.c.h.u8.bf16 %v1196_v57  ;;  %v1212_v54 = vunpack.c.l.u8.bf16 %v1198_v51 }
 0x170   :  { %v7056_v17 = vpop.f32.mrb[63].mxu0  ;;  %7642 = vmatprep.subr.bf16.mxu0 %v9855_v18  ;;  %7327 = vmatpush3.bf16.msra.mxu1 %v9900_v47 }
 0x171   :  { %v674_v44 = vmul.f32 0.003921569, %v7054_v41  ;;  %v7057_v46 = vadd.f32 %v7056_v17, %v7055_v42  ;;  %v9903_v3 = vpack.c.bf16 %v705_v39, %v704_v38  ;;  %7328 = vmatprep.subr.bf16.mxu1 %v9908_v48 }
 0x172   :  { %2287 = vmatmul.mubr.bf16.gmra.mrb[168].mxu0 %v2226_v2 }
 0x173   :  { %v690_v49 = vadd.f32 %v9635_v27, %v674_v44  ;;  %v675_v50 = vmul.f32 0.003921569, %v7057_v46  ;;  %2294 = vmatprep.mubr.bf16.mxu0 %v2229_v43  ;;  %7643 = vmatpush3.bf16.msra.mxu0 %v9864_v28  ;;  %v2221_v44 = vld [vmem:[%s12494_s0 + $0x2b8] sm:$0xff] }
 0x174   :  { %7644 = vmatprep.subr.bf16.mxu0 %v9872_v30  ;;  %7329 = vmatpush3.bf16.msra.mxu1 %v9927_v58  ;;  %v1199_v46 = vld [vmem:[%s12494_s0 + $0x178] sm:$0xff] }
 0x175   :  { %v691_v52 = vadd.f32 %v9635_v27, %v675_v50  ;;  %v7138_v53 = vpop.f32.mrb[64].mxu0  ;;  %7442 = vmatprep.subr.bf16.mxu1 %v9740_v10  ;;  %v706_v8 = vmax.f32 %v690_v49, 0.0  ;;  %v1213_v0 = vunpack.c.l.u8.bf16 %v1199_v46 }
 0x176   :  { %v7139_v59 = vpop.f32.mrb[65].mxu0  ;;  %1281 = vmatmul.mubr.bf16.gmra.mrb[80].mxu1 %v1208_v7 }
 0x177   :  { %v707_v61 = vmax.f32 %v691_v52, 0.0  ;;  %v7140_v62 = vadd.f32 %v7139_v59, %v7138_v53  ;;  %v7141_v9 = vpop.f32.mrb[66].mxu0  ;;  %7645 = vmatpush3.bf16.msra.mxu0 %v9885_v1  ;;  %1288 = vmatprep.mubr.bf16.mxu1 %v1211_v31  ;;  %v2232_v53 = vunpack.c.h.u8.bf16 %v2218_v24  ;;  %v1215_v24 = vunpack.c.h.u8.bf16 %v1199_v46 }
 0x178   :  { %v7142_v12 = vpop.f32.mrb[67].mxu0  ;;  %7646 = vmatprep.subr.bf16.mxu0 %v9891_v37  ;;  %v1214_v31 = vunpack.c.h.u8.bf16 %v1198_v51 }
 0x179   :  { %v1095_v19 = vmul.f32 0.003921569, %v7140_v62  ;;  %v7143_v20 = vadd.f32 %v7142_v12, %v7141_v9  ;;  %v9933_v21 = vpack.c.bf16 %v707_v61, %v706_v8  ;;  %v2235_v8 = vunpack.c.l.u8.bf16 %v2221_v44 }
 0x17a   :  { %2295 = vmatmul.mubr.bf16.gmra.mrb[172].mxu0 %v2228_v60 }
 0x17b   :  { %v1111_v22 = vadd.f32 %v9635_v27, %v1095_v19  ;;  %v1096_v23 = vmul.f32 0.003921569, %v7143_v20  ;;  %2302 = vmatprep.mubr.bf16.mxu0 %v2231_v11  ;;  %7647 = vmatpush3.bf16.msra.mxu0 %v9900_v47  ;;  %v2220_v20 = vld [vmem:[%s12494_s0 + $0x2b0] sm:$0xff] }
 0x17c   :  { %7648 = vmatprep.subr.bf16.mxu0 %v9908_v48  ;;  %v2236_v51 = vunpack.c.h.u8.bf16 %v2220_v20 }
 0x17d   :  { %v1112_v25 = vadd.f32 %v9635_v27, %v1096_v23  ;;  %v7144_v26 = vpop.f32.mrb[68].mxu0  ;;  %v1127_v33 = vmax.f32 %v1111_v22, 0.0 }
 0x17e   :  { %v7145_v13 = vpop.f32.mrb[69].mxu0  ;;  %1289 = vmatmul.mubr.bf16.gmra.mrb[84].mxu1 %v1210_v32 }
 0x17f   :  { %v1128_v34 = vmax.f32 %v1112_v25, 0.0  ;;  %v7146_v35 = vadd.f32 %v7145_v13, %v7144_v26  ;;  %v7147_v2 = vpop.f32.mrb[70].mxu0  ;;  %7649 = vmatpush3.bf16.msra.mxu0 %v9927_v58  ;;  %1296 = vmatprep.mubr.bf16.mxu1 %v1213_v0  ;;  %v2234_v26 = vunpack.c.l.u8.bf16 %v2220_v20 }
 0x180   :  { %v7148_v38 = vpop.f32.mrb[71].mxu0  ;;  %7762 = vmatprep.subr.bf16.mxu0 %v9740_v10 }
 0x181   :  { %v1097_v39 = vmul.f32 0.003921569, %v7146_v35  ;;  %v7149_v41 = vadd.f32 %v7148_v38, %v7147_v2  ;;  %v9944_v42 = vpack.c.bf16 %v1128_v34, %v1127_v33  ;;  %v2237_v34 = vunpack.c.h.u8.bf16 %v2221_v44 }
 0x182   :  { %2303 = vmatmul.mubr.bf16.gmra.mrb[176].mxu0 %v2230_v14 }
 0x183   :  { %v1113_v43 = vadd.f32 %v9635_v27, %v1097_v39  ;;  %v1098_v17 = vmul.f32 0.003921569, %v7149_v41  ;;  %2310 = vmatprep.mubr.bf16.mxu0 %v2233_v36 }
 0x185   :  { %v1114_v49 = vadd.f32 %v9635_v27, %v1098_v17  ;;  %v7150_v50 = vpop.f32.mrb[72].mxu0  ;;  %v1129_v57 = vmax.f32 %v1113_v43, 0.0  ;;  %v2649_v43 = vld [vmem:[%s12494_s0 + $0x308] sm:$0xff] }
 0x186   :  { %v7151_v52 = vpop.f32.mrb[73].mxu0  ;;  %1297 = vmatmul.mubr.bf16.gmra.mrb[88].mxu1 %v1212_v54  ;;  %v1628_v17 = vld [vmem:[%s12494_s0 + $0x1c8] sm:$0xff] }
 0x187   :  { %v1130_v59 = vmax.f32 %v1114_v49, 0.0  ;;  %v7152_v60 = vadd.f32 %v7151_v52, %v7150_v50  ;;  %v7153_v7 = vpop.f32.mrb[74].mxu0  ;;  %1304 = vmatprep.mubr.bf16.mxu1 %v1215_v24  ;;  %v1636_v49 = vunpack.c.l.u8.bf16 %v1628_v17  ;;  %v1627_v50 = vld [vmem:[%s12494_s0 + $0x1c0] sm:$0xff] }
 0x188   :  { %v7154_v61 = vpop.f32.mrb[75].mxu0  ;;  %v1635_v52 = vunpack.c.l.u8.bf16 %v1627_v50 }
 0x189   :  { %v1099_v62 = vmul.f32 0.003921569, %v7152_v60  ;;  %v7155_v9 = vadd.f32 %v7154_v61, %v7153_v7  ;;  %v9957_v11 = vpack.c.bf16 %v1130_v59, %v1129_v57  ;;  %v2657_v60 = vunpack.c.l.u8.bf16 %v2649_v43 }
 0x18a   :  { %2311 = vmatmul.mubr.bf16.gmra.mrb[180].mxu0 %v2232_v53 }
 0x18b   :  { %v1115_v12 = vadd.f32 %v9635_v27, %v1099_v62  ;;  %v1100_v19 = vmul.f32 0.003921569, %v7155_v9  ;;  %2318 = vmatprep.mubr.bf16.mxu0 %v2235_v8 }
 0x18d   :  { %v1116_v22 = vadd.f32 %v9635_v27, %v1100_v19  ;;  %v7156_v23 = vpop.f32.mrb[76].mxu0  ;;  %v1131_v13 = vmax.f32 %v1115_v12, 0.0  ;;  %v9967_v27 = vld [vmem:[%s12495_s2] ss:$0 sm:$0xff] }
 0x18e   :  { %v7157_v25 = vpop.f32.mrb[77].mxu0  ;;  %1305 = vmatmul.mubr.bf16.gmra.mrb[92].mxu1 %v1214_v31  ;;  %v2648_v19 = vld [vmem:[%s12494_s0 + $0x300] sm:$0xff] }
 0x18f   :  { %v1132_v14 = vmax.f32 %v1116_v22, 0.0  ;;  %v7158_v32 = vadd.f32 %v7157_v25, %v7156_v23  ;;  %v7159_v33 = vpop.f32.mrb[78].mxu0  ;;  %1683 = vmatprep.mubr.bf16.mxu1 %v1636_v49  ;;  %v1638_v23 = vunpack.c.h.u8.bf16 %v1628_v17  ;;  %v2656_v25 = vunpack.c.l.u8.bf16 %v2648_v19  ;;  %v1629_v49 = vld [vmem:[%s12494_s0 + $0x1d0] sm:$0xff] }
 0x190   :  { %v7160_v35 = vpop.f32.mrb[79].mxu0 }
 0x191   :  { %v1101_v2 = vmul.f32 0.003921569, %v7158_v32  ;;  %v7161_v36 = vadd.f32 %v7160_v35, %v7159_v33  ;;  %v1145_v38 = vpack.c.bf16 %v1132_v14, %v1131_v13  ;;  %v2659_v33 = vunpack.c.h.u8.bf16 %v2649_v43  ;;  %v1630_v43 = vld [vmem:[%s12494_s0 + $0x1d8] sm:$0xff] }
 0x192   :  { %2319 = vmatmul.mubr.bf16.gmra.mrb[184].mxu0 %v2234_v26  ;;  %v1637_v26 = vunpack.c.h.u8.bf16 %v1627_v50 }
 0x193   :  { %v1117_v39 = vadd.f32 %v9967_v27, %v1101_v2  ;;  %v1102_v41 = vmul.f32 0.003921569, %v7161_v36  ;;  %1163 = vrot.lane.b32.xlu1 %v1145_v38, %s9284_s15  ;;  %2326 = vmatprep.mubr.bf16.mxu0 %v2237_v34 }
 0x195   :  { %v1118_v44 = vadd.f32 %v9967_v27, %v1102_v41  ;;  %v7162_v46 = vpop.f32.mrb[80].mxu0  ;;  %v1133_v53 = vmax.f32 %v1117_v39, 0.0  ;;  %v2651_v41 = vld [vmem:[%s12494_s0 + $0x318] sm:$0xff] }
 0x196   :  { %v7163_v0 = vpop.f32.mrb[81].mxu0  ;;  %1684 = vmatmul.mubr.bf16.vlgmr.msra.gmra.mrb[96].mxu1 %v1635_v52 }
 0x197   :  { %v1134_v54 = vmax.f32 %v1118_v44, 0.0  ;;  %v7164_v57 = vadd.f32 %v7163_v0, %v7162_v46  ;;  %v7165_v59 = vpop.f32.mrb[82].mxu0  ;;  %7443 = vmatpush3.bf16.msra.mxu1 %v9790_v15  ;;  %1691 = vmatprep.mubr.bf16.mxu1 %v1638_v23  ;;  %v1640_v46 = vunpack.c.l.u8.bf16 %v1630_v43  ;;  %v2658_v0 = vunpack.c.h.u8.bf16 %v2648_v19 }
 0x198   :  { %v7166_v7 = vpop.f32.mrb[83].mxu0  ;;  %7444 = vmatprep.subr.bf16.mxu1 %v9796_v16 }
 0x199   :  { %v1103_v8 = vmul.f32 0.003921569, %v7164_v57  ;;  %v7167_v61 = vadd.f32 %v7166_v7, %v7165_v59  ;;  %v1146_v62 = vpack.c.bf16 %v1134_v54, %v1133_v53  ;;  %v2661_v59 = vunpack.c.l.u8.bf16 %v2651_v41 }
 0x19a   :  { %2327 = vmatmul.mubr.bf16.gmra.mrb[188].mxu0 %v2236_v51  ;;  %v1639_v51 = vunpack.c.l.u8.bf16 %v1629_v49 }
 0x19b   :  { %v1119_v9 = vadd.f32 %v9967_v27, %v1103_v8  ;;  %v1104_v12 = vmul.f32 0.003921569, %v7167_v61  ;;  %1165 = vrot.lane.b32.xlu0 %v1146_v62, %s9284_s15  ;;  %2704 = vmatprep.mubr.bf16.mxu0 %v2657_v60 }
 0x19c   :  { %7445 = vmatpush3.bf16.msra.mxu1 %v9808_v45 }
 0x19d   :  { %v1120_v20 = vadd.f32 %v9967_v27, %v1104_v12  ;;  %v7168_v22 = vpop.f32.mrb[84].mxu0  ;;  %7446 = vmatprep.subr.bf16.mxu1 %v9814_v4  ;;  %v1135_v31 = vmax.f32 %v1119_v9, 0.0  ;;  %v2650_v12 = vld [vmem:[%s12494_s0 + $0x310] sm:$0xff] }
 0x19e   :  { %v7169_v24 = vpop.f32.mrb[85].mxu0  ;;  %1692 = vmatmul.mubr.bf16.gmra.mrb[100].mxu1 %v1637_v26 }
 0x19f   :  { %v1136_v13 = vmax.f32 %v1120_v20, 0.0  ;;  %v7170_v14 = vadd.f32 %v7169_v24, %v7168_v22  ;;  %v7171_v32 = vpop.f32.mrb[86].mxu0  ;;  %1699 = vmatprep.mubr.bf16.mxu1 %v1640_v46  ;;  %v1642_v22 = vunpack.c.h.u8.bf16 %v1630_v43  ;;  %v2660_v24 = vunpack.c.l.u8.bf16 %v2650_v12  ;;  %v1632_v43 = vld [vmem:[%s12494_s0 + $0x1e8] sm:$0xff] }
 0x1a0   :  { %v7172_v34 = vpop.f32.mrb[87].mxu0  ;;  %7447 = vmatpush3.bf16.msra.mxu1 %v9820_v55  ;;  %v1644_v46 = vunpack.c.l.u8.bf16 %v1632_v43 }
 0x1a1   :  { %v1105_v35 = vmul.f32 0.003921569, %v7170_v14  ;;  %v7173_v2 = vadd.f32 %v7172_v34, %v7171_v32  ;;  %v9992_v36 = vpack.c.bf16 %v1136_v13, %v1135_v31  ;;  %7448 = vmatprep.subr.bf16.mxu1 %v9828_v56  ;;  %v2663_v32 = vunpack.c.h.u8.bf16 %v2651_v41  ;;  %v2653_v41 = vld [vmem:[%s12494_s0 + $0x328] sm:$0xff] }
 0x1a2   :  { %2705 = vmatmul.mubr.bf16.vlgmr.msra.gmra.mrb[192].mxu0 %v2656_v25  ;;  %v1641_v25 = vunpack.c.h.u8.bf16 %v1629_v49  ;;  %v1631_v49 = vld [vmem:[%s12494_s0 + $0x1e0] sm:$0xff] }
 0x1a3   :  { %v1121_v38 = vadd.f32 %v9967_v27, %v1105_v35  ;;  %v1106_v39 = vmul.f32 0.003921569, %v7173_v2  ;;  %7763 = vmatpush3.bf16.msra.mxu0 %v9790_v15  ;;  %2712 = vmatprep.mubr.bf16.mxu0 %v2659_v33 }
 0x1a4   :  { %7764 = vmatprep.subr.bf16.mxu0 %v9796_v16  ;;  %7449 = vmatpush3.bf16.msra.mxu1 %v9849_v63 }
 0x1a5   :  { %v1122_v17 = vadd.f32 %v9967_v27, %v1106_v39  ;;  %v7174_v44 = vpop.f32.mrb[88].mxu0  ;;  %7450 = vmatprep.subr.bf16.mxu1 %v9855_v18  ;;  %v1137_v52 = vmax.f32 %v1121_v38, 0.0 }
 0x1a6   :  { %v7175_v50 = vpop.f32.mrb[89].mxu0  ;;  %1700 = vmatmul.mubr.bf16.gmra.mrb[104].mxu1 %v1639_v51  ;;  %v1643_v51 = vunpack.c.l.u8.bf16 %v1631_v49 }
 0x1a7   :  { %v1138_v53 = vmax.f32 %v1122_v17, 0.0  ;;  %v7176_v54 = vadd.f32 %v7175_v50, %v7174_v44  ;;  %v7177_v57 = vpop.f32.mrb[90].mxu0  ;;  %7765 = vmatpush3.bf16.msra.mxu0 %v9808_v45  ;;  %1707 = vmatprep.mubr.bf16.mxu1 %v1642_v22  ;;  %v1646_v22 = vunpack.c.h.u8.bf16 %v1632_v43 }
 0x1a8   :  { %v7178_v60 = vpop.f32.mrb[91].mxu0  ;;  %7766 = vmatprep.subr.bf16.mxu0 %v9814_v4  ;;  %7451 = vmatpush3.bf16.msra.mxu1 %v9864_v28 }
 0x1a9   :  { %v1107_v7 = vmul.f32 0.003921569, %v7176_v54  ;;  %v7179_v8 = vadd.f32 %v7178_v60, %v7177_v57  ;;  %v10013_v61 = vpack.c.bf16 %v1138_v53, %v1137_v52  ;;  %7452 = vmatprep.subr.bf16.mxu1 %v9872_v30 }
 0x1aa   :  { %2713 = vmatmul.mubr.bf16.gmra.mrb[196].mxu0 %v2658_v0  ;;  %v2662_v0 = vunpack.c.h.u8.bf16 %v2650_v12  ;;  %v2652_v12 = vld [vmem:[%s12494_s0 + $0x320] sm:$0xff] }
 0x1ab   :  { %v1123_v62 = vadd.f32 %v9967_v27, %v1107_v7  ;;  %v1108_v9 = vmul.f32 0.003921569, %v7179_v8  ;;  %2720 = vmatprep.mubr.bf16.mxu0 %v2661_v59  ;;  %7767 = vmatpush3.bf16.msra.mxu0 %v9820_v55  ;;  %v2665_v59 = vunpack.c.l.u8.bf16 %v2653_v41 }
 0x1ac   :  { %7768 = vmatprep.subr.bf16.mxu0 %v9828_v56  ;;  %7453 = vmatpush3.bf16.msra.mxu1 %v9885_v1 }
 0x1ad   :  { %v1124_v19 = vadd.f32 %v9967_v27, %v1108_v9  ;;  %v7180_v20 = vpop.f32.mrb[92].mxu0  ;;  %7454 = vmatprep.subr.bf16.mxu1 %v9891_v37  ;;  %v1139_v26 = vmax.f32 %v1123_v62, 0.0 }
 0x1ae   :  { %v7181_v23 = vpop.f32.mrb[93].mxu0  ;;  %1708 = vmatmul.mubr.bf16.gmra.mrb[108].mxu1 %v1641_v25  ;;  %v1645_v25 = vunpack.c.h.u8.bf16 %v1631_v49 }
 0x1af   :  { %v1140_v31 = vmax.f32 %v1124_v19, 0.0  ;;  %v7182_v13 = vadd.f32 %v7181_v23, %v7180_v20  ;;  %v7183_v14 = vpop.f32.mrb[94].mxu0  ;;  %7769 = vmatpush3.bf16.msra.mxu0 %v9849_v63  ;;  %1715 = vmatprep.mubr.bf16.mxu1 %v1644_v46 }
 0x1b0   :  { %v7184_v33 = vpop.f32.mrb[95].mxu0  ;;  %7770 = vmatprep.subr.bf16.mxu0 %v9855_v18  ;;  %7455 = vmatpush3.bf16.msra.mxu1 %v9900_v47 }
 0x1b1   :  { %v1109_v34 = vmul.f32 0.003921569, %v7182_v13  ;;  %v7185_v35 = vadd.f32 %v7184_v33, %v7183_v14  ;;  %v10028_v2 = vpack.c.bf16 %v1140_v31, %v1139_v26  ;;  %7456 = vmatprep.subr.bf16.mxu1 %v9908_v48 }
 0x1b2   :  { %2721 = vmatmul.mubr.bf16.gmra.mrb[200].mxu0 %v2660_v24  ;;  %v2664_v24 = vunpack.c.l.u8.bf16 %v2652_v12 }
 0x1b3   :  { %v1125_v38 = vadd.f32 %v9967_v27, %v1109_v34  ;;  %v1110_v39 = vmul.f32 0.003921569, %v7185_v35  ;;  %2728 = vmatprep.mubr.bf16.mxu0 %v2663_v32  ;;  %7771 = vmatpush3.bf16.msra.mxu0 %v9864_v28  ;;  %v2667_v32 = vunpack.c.h.u8.bf16 %v2653_v41  ;;  %v1634_v41 = vld [vmem:[%s12494_s0 + $0x1f8] sm:$0xff] }
 0x1b4   :  { %7772 = vmatprep.subr.bf16.mxu0 %v9872_v30  ;;  %7457 = vmatpush3.bf16.msra.mxu1 %v9927_v58 }
 0x1b5   :  { %v1126_v17 = vadd.f32 %v9967_v27, %v1110_v39  ;;  %v7266_v44 = vpop.f32.mrb[96].mxu0  ;;  %7570 = vmatprep.subr.bf16.mxu1 %v9740_v10  ;;  %v1141_v52 = vmax.f32 %v1125_v38, 0.0 }
 0x1b6   :  { %v7267_v50 = vpop.f32.mrb[97].mxu0  ;;  %1716 = vmatmul.mubr.bf16.gmra.mrb[112].mxu1 %v1643_v51 }
 0x1b7   :  { %v1142_v53 = vmax.f32 %v1126_v17, 0.0  ;;  %v7268_v54 = vadd.f32 %v7267_v50, %v7266_v44  ;;  %v7269_v57 = vpop.f32.mrb[98].mxu0  ;;  %7773 = vmatpush3.bf16.msra.mxu0 %v9885_v1  ;;  %1723 = vmatprep.mubr.bf16.mxu1 %v1646_v22  ;;  %v2655_v17 = vld [vmem:[%s12494_s0 + $0x338] sm:$0xff]  ;;  %v1648_v50 = vunpack.c.l.u8.bf16 %v1634_v41 }
 0x1b8   :  { %v7270_v60 = vpop.f32.mrb[99].mxu0  ;;  %7774 = vmatprep.subr.bf16.mxu0 %v9891_v37 }
 0x1b9   :  { %v1530_v7 = vmul.f32 0.003921569, %v7268_v54  ;;  %v7271_v8 = vadd.f32 %v7270_v60, %v7269_v57  ;;  %v10048_v62 = vpack.c.bf16 %v1142_v53, %v1141_v52  ;;  %v2666_v52 = vunpack.c.h.u8.bf16 %v2652_v12  ;;  %v2654_v12 = vld [vmem:[%s12494_s0 + $0x330] sm:$0xff] }
 0x1ba   :  { %2729 = vmatmul.mubr.bf16.gmra.mrb[204].mxu0 %v2662_v0  ;;  %v1633_v0 = vld [vmem:[%s12494_s0 + $0x1f0] sm:$0xff] }
 0x1bb   :  { %v1546_v9 = vadd.f32 %v9967_v27, %v1530_v7  ;;  %v1531_v10 = vmul.f32 0.003921569, %v7271_v8  ;;  %2736 = vmatprep.mubr.bf16.mxu0 %v2665_v59  ;;  %7775 = vmatpush3.bf16.msra.mxu0 %v9900_v47  ;;  %v1647_v53 = vunpack.c.l.u8.bf16 %v1633_v0  ;;  %v2669_v7 = vunpack.c.l.u8.bf16 %v2655_v17 }
 0x1bc   :  { %7776 = vmatprep.subr.bf16.mxu0 %v9908_v48 }
 0x1bd   :  { %v1547_v19 = vadd.f32 %v9967_v27, %v1531_v10  ;;  %v7272_v20 = vpop.f32.mrb[100].mxu0  ;;  %v1562_v26 = vmax.f32 %v1546_v9, 0.0 }
 0x1be   :  { %v7273_v23 = vpop.f32.mrb[101].mxu0  ;;  %1724 = vmatmul.mubr.bf16.gmra.mrb[116].mxu1 %v1645_v25 }
 0x1bf   :  { %v1563_v31 = vmax.f32 %v1547_v19, 0.0  ;;  %v7274_v13 = vadd.f32 %v7273_v23, %v7272_v20  ;;  %v7275_v14 = vpop.f32.mrb[102].mxu0  ;;  %7777 = vmatpush3.bf16.msra.mxu0 %v9927_v58  ;;  %1731 = vmatprep.mubr.bf16.mxu1 %v1648_v50 }
 0x1c0   :  { %v7276_v33 = vpop.f32.mrb[103].mxu0 }
 0x1c1   :  { %v1532_v34 = vmul.f32 0.003921569, %v7274_v13  ;;  %v7277_v35 = vadd.f32 %v7276_v33, %v7275_v14  ;;  %v10058_v38 = vpack.c.bf16 %v1563_v31, %v1562_v26  ;;  %v1650_v26 = vunpack.c.h.u8.bf16 %v1634_v41 }
 0x1c2   :  { %2737 = vmatmul.mubr.bf16.gmra.mrb[208].mxu0 %v2664_v24  ;;  %v2668_v13 = vunpack.c.l.u8.bf16 %v2654_v12  ;;  %v1649_v14 = vunpack.c.h.u8.bf16 %v1633_v0  ;;  %v3083_v0 = vld [vmem:[%s12494_s0 + $0x388] sm:$0xff] }
 0x1c3   :  { %v1548_v39 = vadd.f32 %v9967_v27, %v1532_v34  ;;  %v1533_v43 = vmul.f32 0.003921569, %v7277_v35  ;;  %2744 = vmatprep.mubr.bf16.mxu0 %v2667_v32 }
 0x1c5   :  { %v1549_v44 = vadd.f32 %v9967_v27, %v1533_v43  ;;  %v7278_v46 = vpop.f32.mrb[104].mxu0  ;;  %v729_v49 = vpop.permute.xlu0 %728  ;;  %v1564_v54 = vmax.f32 %v1548_v39, 0.0  ;;  %v2671_v39 = vunpack.c.h.u8.bf16 %v2655_v17  ;;  %v2030_v17 = vld [vmem:[%s12494_s0 + $0x248] sm:$0xff] }
 0x1c6   :  { %751 = vst.msk [vmem:[#allocation2 + $0x20] sm:$0xff] %vm748_vm1, %v729_v49  ;;  %v7279_v51 = vpop.f32.mrb[105].mxu0  ;;  %1732 = vmatmul.mubr.bf16.gmra.mrb[120].mxu1 %v1647_v53  ;;  %v2038_v53 = vunpack.c.l.u8.bf16 %v2030_v17 }
 0x1c7   :  { %v1565_v57 = vmax.f32 %v1549_v44, 0.0  ;;  %v7280_v59 = vadd.f32 %v7279_v51, %v7278_v46  ;;  %v7281_v60 = vpop.f32.mrb[106].mxu0  ;;  %1739 = vmatprep.mubr.bf16.mxu1 %v1650_v26 }
 0x1c8   :  { %v7282_v8 = vpop.f32.mrb[107].mxu0 }
 0x1c9   :  { %v1534_v9 = vmul.f32 0.003921569, %v7280_v59  ;;  %v7283_v10 = vadd.f32 %v7282_v8, %v7281_v60  ;;  %v10072_v19 = vpack.c.bf16 %v1565_v57, %v1564_v54  ;;  %v2029_v54 = vld [vmem:[%s12494_s0 + $0x240] sm:$0xff]  ;;  %v2670_v59 = vunpack.c.h.u8.bf16 %v2654_v12 }
 0x1ca   :  { %2745 = vmatmul.mubr.bf16.gmra.mrb[212].mxu0 %v2666_v52  ;;  %v2037_v60 = vunpack.c.l.u8.bf16 %v2029_v54 }
 0x1cb   :  { %v1550_v20 = vadd.f32 %v9967_v27, %v1534_v9  ;;  %v1535_v22 = vmul.f32 0.003921569, %v7283_v10  ;;  %2752 = vmatprep.mubr.bf16.mxu0 %v2669_v7 }
 0x1cd   :  { %v1551_v23 = vadd.f32 %v9967_v27, %v1535_v22  ;;  %v7284_v24 = vpop.f32.mrb[108].mxu0  ;;  %v731_v25 = vpop.permute.xlu1 %730  ;;  %v1566_v32 = vmax.f32 %v1550_v20, 0.0  ;;  %v3091_v20 = vunpack.c.l.u8.bf16 %v3083_v0 }
 0x1ce   :  { %752 = vst.msk [vmem:[#allocation2 + $0x30] sm:$0xff] %vm748_vm1, %v731_v25  ;;  %v7285_v31 = vpop.f32.mrb[109].mxu0  ;;  %1740 = vmatmul.mubr.bf16.gmra.mrb[124].mxu1 %v1649_v14 }
 0x1cf   :  { %v1567_v33 = vmax.f32 %v1551_v23, 0.0  ;;  %v7286_v34 = vadd.f32 %v7285_v31, %v7284_v24  ;;  %v7287_v35 = vpop.f32.mrb[110].mxu0  ;;  %2085 = vmatprep.mubr.bf16.mxu1 %v2038_v53  ;;  %v3082_v31 = vld [vmem:[%s12494_s0 + $0x380] sm:$0xff] }
 0x1d0   :  { %v7288_v43 = vpop.f32.mrb[111].mxu0 }
 0x1d1   :  { %v1536_v44 = vmul.f32 0.003921569, %v7286_v34  ;;  %v7289_v46 = vadd.f32 %v7288_v43, %v7287_v35  ;;  %v1580_v49 = vpack.c.bf16 %v1567_v33, %v1566_v32  ;;  %v2040_v32 = vunpack.c.h.u8.bf16 %v2030_v17  ;;  %v2032_v17 = vld [vmem:[%s12494_s0 + $0x258] sm:$0xff] }
 0x1d2   :  { %2753 = vmatmul.mubr.bf16.gmra.mrb[216].mxu0 %v2668_v13  ;;  %v3090_v33 = vunpack.c.l.u8.bf16 %v3082_v31  ;;  %v2039_v34 = vunpack.c.h.u8.bf16 %v2029_v54  ;;  %v3092_v54 = vunpack.c.h.u8.bf16 %v3082_v31  ;;  %v2044_v31 = vunpack.c.h.u8.bf16 %v2032_v17 }
 0x1d3   :  { %v1552_v50 = vadd.f32 %v9967_v27, %v1536_v44  ;;  %v1537_v41 = vmul.f32 0.003921569, %v7289_v46  ;;  %1598 = vrot.lane.b32.xlu1 %v1580_v49, %s9285_s29  ;;  %2760 = vmatprep.mubr.bf16.mxu0 %v2671_v39  ;;  %v3093_v44 = vunpack.c.h.u8.bf16 %v3083_v0  ;;  %v3085_v0 = vld [vmem:[%s12494_s0 + $0x398] sm:$0xff] }
 0x1d5   :  { %v1553_v51 = vadd.f32 %v9967_v27, %v1537_v41  ;;  %v7290_v52 = vpop.f32.mrb[112].mxu0  ;;  %v1568_v7 = vmax.f32 %v1552_v50, 0.0 }
 0x1d6   :  { %v7291_v57 = vpop.f32.mrb[113].mxu0  ;;  %2086 = vmatmul.mubr.bf16.vlgmr.msra.gmra.mrb[128].mxu1 %v2037_v60 }
 0x1d7   :  { %v1569_v8 = vmax.f32 %v1553_v51, 0.0  ;;  %v7292_v9 = vadd.f32 %v7291_v57, %v7290_v52  ;;  %v7293_v10 = vpop.f32.mrb[114].mxu0  ;;  %7571 = vmatpush3.bf16.msra.mxu1 %v9790_v15  ;;  %2093 = vmatprep.mubr.bf16.mxu1 %v2040_v32  ;;  %v2042_v52 = vunpack.c.l.u8.bf16 %v2032_v17 }
 0x1d8   :  { %v7294_v22 = vpop.f32.mrb[115].mxu0  ;;  %7572 = vmatprep.subr.bf16.mxu1 %v9796_v16 }
 0x1d9   :  { %v1538_v23 = vmul.f32 0.003921569, %v7292_v9  ;;  %v7295_v24 = vadd.f32 %v7294_v22, %v7293_v10  ;;  %v10093_v25 = vpack.c.bf16 %v1569_v8, %v1568_v7  ;;  %v3095_v9 = vunpack.c.l.u8.bf16 %v3085_v0 }
 0x1da   :  { %2761 = vmatmul.mubr.bf16.gmra.mrb[220].mxu0 %v2670_v59 }
 0x1db   :  { %v1554_v12 = vadd.f32 %v9967_v27, %v1538_v23  ;;  %v1539_v26 = vmul.f32 0.003921569, %v7295_v24  ;;  %3138 = vmatprep.mubr.bf16.mxu0 %v3091_v20  ;;  %7573 = vmatpush3.bf16.msra.mxu1 %v9808_v45  ;;  %v3084_v24 = vld [vmem:[%s12494_s0 + $0x390] sm:$0xff] }
 0x1dc   :  { %7574 = vmatprep.subr.bf16.mxu1 %v9814_v4 }
 0x1dd   :  { %v1555_v13 = vadd.f32 %v9967_v27, %v1539_v26  ;;  %v7296_v14 = vpop.f32.mrb[116].mxu0  ;;  %v1570_v16 = vmax.f32 %v1554_v12, 0.0 }
 0x1de   :  { %v7297_v15 = vpop.f32.mrb[117].mxu0  ;;  %2094 = vmatmul.mubr.bf16.gmra.mrb[132].mxu1 %v2039_v34  ;;  %v3097_v34 = vunpack.c.h.u8.bf16 %v3085_v0  ;;  %v3096_v0 = vunpack.c.h.u8.bf16 %v3084_v24 }
 0x1df   :  { %v1571_v35 = vmax.f32 %v1555_v13, 0.0  ;;  %v7298_v39 = vadd.f32 %v7297_v15, %v7296_v14  ;;  %v7299_v43 = vpop.f32.mrb[118].mxu0  ;;  %7575 = vmatpush3.bf16.msra.mxu1 %v9820_v55  ;;  %2101 = vmatprep.mubr.bf16.mxu1 %v2042_v52  ;;  %v3094_v13 = vunpack.c.l.u8.bf16 %v3084_v24 }
 0x1e0   :  { %v7300_v46 = vpop.f32.mrb[119].mxu0  ;;  %7576 = vmatprep.subr.bf16.mxu1 %v9828_v56  ;;  %v2031_v56 = vld [vmem:[%s12494_s0 + $0x250] sm:$0xff] }
 0x1e1   :  { %v1540_v49 = vmul.f32 0.003921569, %v7298_v39  ;;  %v7301_v50 = vadd.f32 %v7300_v46, %v7299_v43  ;;  %v10104_v41 = vpack.c.bf16 %v1571_v35, %v1570_v16  ;;  %v2041_v57 = vunpack.c.l.u8.bf16 %v2031_v56  ;;  %v2034_v46 = vld [vmem:[%s12494_s0 + $0x268] sm:$0xff] }
 0x1e2   :  { %3139 = vmatmul.mubr.bf16.vlgmr.msra.gmra.mrb[224].mxu0 %v3090_v33  ;;  %v2043_v14 = vunpack.c.h.u8.bf16 %v2031_v56 }
 0x1e3   :  { %v1556_v45 = vadd.f32 %v9967_v27, %v1540_v49  ;;  %v1541_v4 = vmul.f32 0.003921569, %v7301_v50  ;;  %3146 = vmatprep.mubr.bf16.mxu0 %v3093_v44  ;;  %7577 = vmatpush3.bf16.msra.mxu1 %v9849_v63  ;;  %v10139_v44 = vld [vmem:[%s12494_s0 + $0x3a8] sm:$0xff]  ;;  %v6946_v50 = vpop.f32.mrb[0].mxu1 }
 0x1e4   :  { %7578 = vmatprep.subr.bf16.mxu1 %v9855_v18  ;;  %v6947_v17 = vpop.f32.mrb[1].mxu1 }
 0x1e5   :  { %v1557_v51 = vadd.f32 %v9967_v27, %v1541_v4  ;;  %v7302_v55 = vpop.f32.mrb[120].mxu0  ;;  %v1572_v59 = vmax.f32 %v1556_v45, 0.0  ;;  %v2046_v45 = vunpack.c.l.u8.bf16 %v2034_v46 }
 0x1e6   :  { %v7303_v53 = vpop.f32.mrb[121].mxu0  ;;  %2102 = vmatmul.mubr.bf16.gmra.mrb[136].mxu1 %v2041_v57  ;;  %v3099_v57 = vunpack.c.l.u8.bf16 %v10139_v44 }
 0x1e7   :  { %v1573_v60 = vmax.f32 %v1557_v51, 0.0  ;;  %v7304_v7 = vadd.f32 %v7303_v53, %v7302_v55  ;;  %v7305_v8 = vpop.f32.mrb[122].mxu0  ;;  %7579 = vmatpush3.bf16.msra.mxu1 %v9864_v28  ;;  %2109 = vmatprep.mubr.bf16.mxu1 %v2044_v31  ;;  %v10152_v55 = vld [vmem:[%s12493_s1 + $0x40] sm:$0xff]   ;;  %v2048_v31 = vunpack.c.h.u8.bf16 %v2034_v46 }
 0x1e8   :  { %v7306_v10 = vpop.f32.mrb[123].mxu0  ;;  %7580 = vmatprep.subr.bf16.mxu1 %v9872_v30 }
 0x1e9   :  { %v1542_v20 = vmul.f32 0.003921569, %v7304_v7  ;;  %v7307_v22 = vadd.f32 %v7306_v10, %v7305_v8  ;;  %v10121_v23 = vpack.c.bf16 %v1573_v60, %v1572_v59  ;;  %v6949_v59 = vpop.f32.mrb[2].mxu1 }
 0x1ea   :  { %3147 = vmatmul.mubr.bf16.gmra.mrb[228].mxu0 %v3092_v54  ;;  %v6950_v60 = vpop.f32.mrb[3].mxu1 }
 0x1eb   :  { %v1558_v63 = vadd.f32 %v9967_v27, %v1542_v20  ;;  %v1543_v18 = vmul.f32 0.003921569, %v7307_v22  ;;  %3154 = vmatprep.mubr.bf16.mxu0 %v3095_v9  ;;  %7581 = vmatpush3.bf16.msra.mxu1 %v9885_v1  ;;  %v10162_v22 = vld [vmem:[%s12494_s0 + $0x3a0] sm:$0xff] }
 0x1ec   :  { %7582 = vmatprep.subr.bf16.mxu1 %v9891_v37 }
 0x1ed   :  { %v1559_v12 = vadd.f32 %v9967_v27, %v1543_v18  ;;  %v7308_v26 = vpop.f32.mrb[124].mxu0  ;;  %v1574_v30 = vmax.f32 %v1558_v63, 0.0  ;;  %v6948_v63 = vadd.f32 %v6947_v17, %v6946_v50  ;;  %v6951_v18 = vadd.f32 %v6950_v60, %v6949_v59 }
 0x1ee   :  { %v7309_v28 = vpop.f32.mrb[125].mxu0  ;;  %2110 = vmatmul.mubr.bf16.gmra.mrb[140].mxu1 %v2043_v14  ;;  %v3098_v14 = vunpack.c.l.u8.bf16 %v10162_v22 }
 0x1ef   :  { %v1575_v32 = vmax.f32 %v1559_v12, 0.0  ;;  %v7310_v15 = vadd.f32 %v7309_v28, %v7308_v26  ;;  %v7311_v33 = vpop.f32.mrb[126].mxu0  ;;  %7583 = vmatpush3.bf16.msra.mxu1 %v9900_v47  ;;  %2117 = vmatprep.mubr.bf16.mxu1 %v2046_v45  ;;  %v6952_v26 = vpop.f32.mrb[4].mxu1  ;;  %v475_v28 = vmul.f32 0.003921569, %v6948_v63 }
 0x1f0   :  { %v7312_v16 = vpop.f32.mrb[127].mxu0  ;;  %7584 = vmatprep.subr.bf16.mxu1 %v9908_v48  ;;  %v2033_v48 = vld [vmem:[%s12494_s0 + $0x260] sm:$0xff] }
 0x1f1   :  { %v1544_v35 = vmul.f32 0.003921569, %v7310_v15  ;;  %v7313_v39 = vadd.f32 %v7312_v16, %v7311_v33  ;;  %v10132_v43 = vpack.c.bf16 %v1575_v32, %v1574_v30  ;;  %v2045_v51 = vunpack.c.l.u8.bf16 %v2033_v48  ;;  %v6953_v32 = vpop.f32.mrb[5].mxu1 }
 0x1f2   :  { %3155 = vmatmul.mubr.bf16.gmra.mrb[232].mxu0 %v3094_v13  ;;  %v3101_v30 = vunpack.c.h.u8.bf16 %v10139_v44  ;;  %v2047_v15 = vunpack.c.h.u8.bf16 %v2033_v48  ;;  %v476_v33 = vmul.f32 0.003921569, %v6951_v18 }
 0x1f3   :  { %12503 = vst [vmem:[#allocation4_spill] sm:$0xff] %v10132_v43  ;;  %v1560_v1 = vadd.f32 %v9967_v27, %v1544_v35  ;;  %v1545_v37 = vmul.f32 0.003921569, %v7313_v39  ;;  %3162 = vmatprep.mubr.bf16.mxu0 %v3097_v34  ;;  %7585 = vmatpush3.bf16.msra.mxu1 %v9927_v58 }
 0x1f4   :  { %7698 = vmatprep.subr.bf16.mxu1 %v10152_v55 }
 0x1f5   :  { %v1561_v47 = vadd.f32 %v9967_v27, %v1545_v37  ;;  %v7394_v49 = vpop.f32.mrb[128].mxu0  ;;  %v1576_v52 = vmax.f32 %v1560_v1, 0.0  ;;  %v6955_v1 = vpop.f32.mrb[6].mxu1  ;;  %v491_v37 = vadd.f32 %v9967_v27, %v475_v28 }
 0x1f6   :  { %v7395_v4 = vpop.f32.mrb[129].mxu0  ;;  %2118 = vmatmul.mubr.bf16.gmra.mrb[144].mxu1 %v2045_v51  ;;  %v6956_v46 = vpop.f32.mrb[7].mxu1  ;;  %v10174_v51 = vld [vmem:[%s12494_s0 + $0x3b8] sm:$0xff] }
 0x1f7   :  { %v1577_v56 = vmax.f32 %v1561_v47, 0.0  ;;  %v7396_v53 = vadd.f32 %v7395_v4, %v7394_v49  ;;  %v7397_v54 = vpop.f32.mrb[130].mxu0  ;;  %2125 = vmatprep.mubr.bf16.mxu1 %v2048_v31  ;;  %v492_v49 = vadd.f32 %v9967_v27, %v476_v33  ;;  %v507_v44 = vmax.f32 %v491_v37, 0.0  ;;  %v6958_v18 = vpop.f32.mrb[8].mxu1 }
 0x1f8   :  { %v7398_v58 = vpop.f32.mrb[131].mxu0  ;;  %v3103_v63 = vunpack.c.l.u8.bf16 %v10174_v51 }
 0x1f9   :  { %v1965_v7 = vmul.f32 0.003921569, %v7396_v53  ;;  %v7399_v8 = vadd.f32 %v7398_v58, %v7397_v54  ;;  %v10156_v9 = vpack.c.bf16 %v1577_v56, %v1576_v52  ;;  %v508_v48 = vmax.f32 %v492_v49, 0.0  ;;  %v2036_v53 = vld [vmem:[%s12494_s0 + $0x278] sm:$0xff] }
 0x1fa   :  { %3163 = vmatmul.mubr.bf16.gmra.mrb[236].mxu0 %v3096_v0  ;;  %v6954_v52 = vadd.f32 %v6953_v32, %v6952_v26  ;;  %v6957_v56 = vadd.f32 %v6956_v46, %v6955_v1  ;;  %v2050_v60 = vunpack.c.l.u8.bf16 %v2036_v53  ;;  %v10194_v46 = vld [vmem:[%s12494_s0 + $0x3b0] sm:$0xff] }
 0x1fb   :  { %v1981_v10 = vadd.f32 %v9967_v27, %v1965_v7  ;;  %v1966_v20 = vmul.f32 0.003921569, %v7399_v8  ;;  %3170 = vmatprep.mubr.bf16.mxu0 %v3099_v57  ;;  %v523_v54 = vpack.c.bf16 %v508_v48, %v507_v44  ;;  %v2035_v7 = vld [vmem:[%s12494_s0 + $0x270] sm:$0xff] }
 0x1fc   :  { %v477_v8 = vmul.f32 0.003921569, %v6954_v52 }
 0x1fd   :  { %v1982_v24 = vadd.f32 %v9967_v27, %v1966_v20  ;;  %v7400_v12 = vpop.f32.mrb[132].mxu0  ;;  %v1997_v34 = vmax.f32 %v1981_v10, 0.0  ;;  %v3100_v20 = vunpack.c.h.u8.bf16 %v10162_v22  ;;  %531 = vst.msk [vmem:[#allocation2 + $0x80] sm:$0xff] %vm345_vm0, %v523_v54  ;;  %v3105_v54 = vunpack.c.h.u8.bf16 %v10174_v51 }
 0x1fe   :  { %v7401_v13 = vpop.f32.mrb[133].mxu0  ;;  %2126 = vmatmul.mubr.bf16.gmra.mrb[148].mxu1 %v2047_v15 }
 0x1ff   :  { %v1998_v16 = vmax.f32 %v1982_v24, 0.0  ;;  %v7402_v35 = vadd.f32 %v7401_v13, %v7400_v12  ;;  %v7403_v39 = vpop.f32.mrb[134].mxu0  ;;  %v2049_v24 = vunpack.c.l.u8.bf16 %v2035_v7  ;;  %v478_v12 = vmul.f32 0.003921569, %v6957_v56  ;;  %2133 = vmatprep.mubr.bf16.mxu1 %v2050_v60 }
 0x200   :  { %v7404_v47 = vpop.f32.mrb[135].mxu0  ;;  %v3102_v56 = vunpack.c.l.u8.bf16 %v10194_v46 }
 0x201   :  { %v2013_v50 = vpack.c.bf16 %v1998_v16, %v1997_v34  ;;  %v1967_v45 = vmul.f32 0.003921569, %v7402_v35  ;;  %v7405_v4 = vadd.f32 %v7404_v47, %v7403_v39  ;;  %v494_v22 = vadd.f32 %v9967_v27, %v478_v12 }
 0x202   :  { %3171 = vmatmul.mubr.bf16.gmra.mrb[240].mxu0 %v3098_v14  ;;  %v6959_v14 = vpop.f32.mrb[9].mxu1 }
 0x203   :  { %2021 = vst.msk [vmem:[#allocation2 + $0x8] sm:$0xff] %vm345_vm0, %v2013_v50  ;;  %v1983_v0 = vadd.f32 %v9967_v27, %v1967_v45  ;;  %v1968_v17 = vmul.f32 0.003921569, %v7405_v4  ;;  %3178 = vmatprep.mubr.bf16.mxu0 %v3101_v30  ;;  %v493_v30 = vadd.f32 %v9967_v27, %v477_v8  ;;  %v6961_v15 = vpop.f32.mrb[10].mxu1  ;;  %v510_v1 = vmax.f32 %v494_v22, 0.0  ;;  %v10208_v22 = vld [vmem:[%s12494_s0 + $0x2c8] sm:$0xff] }
 0x204   :  { %v6962_v35 = vpop.f32.mrb[11].mxu1  ;;  %v6960_v49 = vadd.f32 %v6959_v14, %v6958_v18 }
 0x205   :  { %v1984_v57 = vadd.f32 %v9967_v27, %v1968_v17  ;;  %v7406_v59 = vpop.f32.mrb[136].mxu0  ;;  %v1164_v58 = vpop.permute.xlu1 %1163  ;;  %v1999_v26 = vmax.f32 %v1983_v0, 0.0  ;;  %v509_v39 = vmax.f32 %v493_v30, 0.0  ;;  %v6963_v50 = vadd.f32 %v6962_v35, %v6961_v15 }
 0x206   :  { %1186 = vst.msk [vmem:[#allocation2 + $0x20] sm:$0xff] %vm1183_vm2, %v1164_v58  ;;  %v7407_v10 = vpop.f32.mrb[137].mxu0  ;;  %2134 = vmatmul.mubr.bf16.gmra.mrb[152].mxu1 %v2049_v24  ;;  %v2052_v0 = vunpack.c.h.u8.bf16 %v2036_v53  ;;  %v479_v17 = vmul.f32 0.003921569, %v6960_v49  ;;  %v3104_v49 = vunpack.c.h.u8.bf16 %v10194_v46 }
 0x207   :  { %v2000_v31 = vmax.f32 %v1984_v57, 0.0  ;;  %v7408_v28 = vadd.f32 %v7407_v10, %v7406_v59  ;;  %v7409_v13 = vpop.f32.mrb[138].mxu0  ;;  %v524_v45 = vpack.c.bf16 %v510_v1, %v509_v39  ;;  %v6964_v57 = vpop.f32.mrb[12].mxu1  ;;  %v2051_v59 = vunpack.c.h.u8.bf16 %v2035_v7  ;;  %v2431_v1 = vld [vmem:[%s12494_s0 + $0x2c0] sm:$0xff] }
 0x208   :  { %v7410_v32 = vpop.f32.mrb[139].mxu0  ;;  %v480_v58 = vmul.f32 0.003921569, %v6963_v50  ;;  %2141 = vmatprep.mubr.bf16.mxu1 %v2052_v0  ;;  %v495_v53 = vadd.f32 %v9967_v27, %v479_v17  ;;  %v2440_v39 = vunpack.c.l.u8.bf16 %v10208_v22 }
 0x209   :  { %v2014_v33 = vpack.c.bf16 %v2000_v31, %v1999_v26  ;;  %v1969_v34 = vmul.f32 0.003921569, %v7408_v28  ;;  %v7411_v16 = vadd.f32 %v7410_v32, %v7409_v13  ;;  %532 = vst.msk [vmem:[#allocation2 + $0x90] sm:$0xff] %vm345_vm0, %v524_v45  ;;  %v2439_v45 = vunpack.c.l.u8.bf16 %v2431_v1 }
 0x20a   :  { %3179 = vmatmul.mubr.bf16.gmra.mrb[244].mxu0 %v3100_v20  ;;  %v496_v12 = vadd.f32 %v9967_v27, %v480_v58  ;;  %v511_v28 = vmax.f32 %v495_v53, 0.0 }
 0x20b   :  { %2022 = vst.msk [vmem:[#allocation2 + $0x18] sm:$0xff] %vm345_vm0, %v2014_v33  ;;  %v1985_v37 = vadd.f32 %v9967_v27, %v1969_v34  ;;  %v1970_v47 = vmul.f32 0.003921569, %v7411_v16  ;;  %3186 = vmatprep.mubr.bf16.mxu0 %v3103_v63  ;;  %v6965_v63 = vpop.f32.mrb[13].mxu1 }
 0x20c   :  { %v6967_v24 = vpop.f32.mrb[14].mxu1  ;;  %v512_v13 = vmax.f32 %v496_v12, 0.0  ;;  %v6966_v32 = vadd.f32 %v6965_v63, %v6964_v57  ;;  %v10228_v63 = vld [vmem:[%s12493_s1 + $0x48] sm:$0xff]  }
 0x20d   :  { %v1986_v4 = vadd.f32 %v9967_v27, %v1970_v47  ;;  %v7412_v44 = vpop.f32.mrb[140].mxu0  ;;  %v1166_v48 = vpop.permute.xlu0 %1165  ;;  %v2001_v60 = vmax.f32 %v1985_v37, 0.0 }
 0x20e   :  { %1187 = vst.msk [vmem:[#allocation2 + $0x30] sm:$0xff] %vm1183_vm2, %v1166_v48  ;;  %v7413_v52 = vpop.f32.mrb[141].mxu0  ;;  %2142 = vmatmul.mubr.bf16.gmra.mrb[156].mxu1 %v2051_v59  ;;  %v6968_v7 = vpop.f32.mrb[15].mxu1  ;;  %v525_v33 = vpack.c.bf16 %v512_v13, %v511_v28  ;;  %v481_v37 = vmul.f32 0.003921569, %v6966_v32  ;;  %v10244_v32 = vld [vmem:[%s12493_s1 + $0x8] sm:$0xff]  }
 0x20f   :  { %v2002_v8 = vmax.f32 %v1986_v4, 0.0  ;;  %v7414_v10 = vadd.f32 %v7413_v52, %v7412_v44  ;;  %v7415_v20 = vpop.f32.mrb[142].mxu0  ;;  %v6969_v15 = vadd.f32 %v6968_v7, %v6967_v24  ;;  %v6970_v35 = vpop.f32.mrb[16].mxu1  ;;  %2487 = vmatprep.mubr.bf16.mxu1 %v2440_v39 }
 0x210   :  { %v7416_v18 = vpop.f32.mrb[143].mxu0  ;;  %v6971_v50 = vpop.f32.mrb[17].mxu1  ;;  %533 = vst.msk [vmem:[#allocation2 + $0xa0] sm:$0xff] %vm345_vm0, %v525_v33 }
 0x211   :  { %v2015_v26 = vpack.c.bf16 %v2002_v8, %v2001_v60  ;;  %v1971_v51 = vmul.f32 0.003921569, %v7414_v10  ;;  %v7417_v31 = vadd.f32 %v7416_v18, %v7415_v20  ;;  %v482_v4 = vmul.f32 0.003921569, %v6969_v15  ;;  %v6973_v52 = vpop.f32.mrb[18].mxu1  ;;  %v10222_v10 = vld [vmem:[%s12493_s1] sm:$0xff]  }
 0x212   :  { %3187 = vmatmul.mubr.bf16.gmra.mrb[248].mxu0 %v3102_v56  ;;  %v497_v56 = vadd.f32 %v9967_v27, %v481_v37  ;;  %v6974_v57 = vpop.f32.mrb[19].mxu1  ;;  %v6972_v8 = vadd.f32 %v6971_v50, %v6970_v35  ;;  %v10235_v18 = vld [vmem:[%s12495_s2] ss:$0 sm:$0xff]  ;;  %v10251_v35 = vld [vmem:[%s12493_s1 + $0x50] sm:$0xff]  }
 0x213   :  { %2023 = vst.msk [vmem:[#allocation2 + $0x28] sm:$0xff] %vm345_vm0, %v2015_v26  ;;  %v1987_v14 = vadd.f32 %v9967_v27, %v1971_v51  ;;  %v1972_v30 = vmul.f32 0.003921569, %v7417_v31  ;;  %3194 = vmatprep.mubr.bf16.mxu0 %v3105_v54  ;;  %v498_v59 = vadd.f32 %v9967_v27, %v482_v4  ;;  %v6975_v20 = vadd.f32 %v6974_v57, %v6973_v52  ;;  %v10258_v52 = vld [vmem:[%s12493_s1 + $0x10] sm:$0xff]  }
 0x214   :  { %v483_v26 = vmul.f32 0.003921569, %v6972_v8  ;;  %v2434_v8 = vld [vmem:[%s12494_s0 + $0x2d8] sm:$0xff] }
 0x215   :  { %v1988_v34 = vadd.f32 %v9967_v27, %v1972_v30  ;;  %v7418_v16 = vpop.f32.mrb[144].mxu0  ;;  %v2003_v44 = vmax.f32 %v1987_v14, 0.0  ;;  %v513_v27 = vmax.f32 %v497_v56, 0.0  ;;  %v514_v53 = vmax.f32 %v498_v59, 0.0  ;;  %v6976_v14 = vpop.f32.mrb[20].mxu1 }
 0x216   :  { %v7419_v47 = vpop.f32.mrb[145].mxu0  ;;  %2488 = vmatmul.mubr.bf16.vlgmr.msra.gmra.mrb[160].mxu1 %v2439_v45  ;;  %v484_v51 = vmul.f32 0.003921569, %v6975_v20  ;;  %v499_v13 = vadd.f32 %v10235_v18, %v483_v26  ;;  %v2442_v30 = vunpack.c.h.u8.bf16 %v10208_v22  ;;  %v2433_v26 = vld [vmem:[%s12494_s0 + $0x2d0] sm:$0xff] }
 0x217   :  { %v2004_v48 = vmax.f32 %v1988_v34, 0.0  ;;  %v7420_v0 = vadd.f32 %v7419_v47, %v7418_v16  ;;  %v7421_v17 = vpop.f32.mrb[146].mxu0  ;;  %7699 = vmatpush3.bf16.msra.mxu1 %v10222_v10  ;;  %v526_v31 = vpack.c.bf16 %v514_v53, %v513_v27  ;;  %v6977_v34 = vpop.f32.mrb[21].mxu1  ;;  %v2441_v16 = vunpack.c.h.u8.bf16 %v2431_v1 }
 0x218   :  { %v7422_v54 = vpop.f32.mrb[147].mxu0  ;;  %7700 = vmatprep.subr.bf16.mxu1 %v10228_v63  ;;  %v500_v33 = vadd.f32 %v10235_v18, %v484_v51  ;;  %2495 = vmatprep.mubr.bf16.mxu1 %v2442_v30  ;;  %v6979_v50 = vpop.f32.mrb[22].mxu1  ;;  %v10280_v51 = vld [vmem:[%s12493_s1 + $0x18] sm:$0xff]  }
 0x219   :  { %v2016_v58 = vpack.c.bf16 %v2004_v48, %v2003_v44  ;;  %v1973_v46 = vmul.f32 0.003921569, %v7420_v0  ;;  %v7423_v60 = vadd.f32 %v7422_v54, %v7421_v17  ;;  %534 = vst.msk [vmem:[#allocation2 + $0xb0] sm:$0xff] %vm345_vm0, %v526_v31  ;;  %v6980_v1 = vpop.f32.mrb[23].mxu1  ;;  %v6978_v17 = vadd.f32 %v6977_v34, %v6976_v14  ;;  %v10264_v54 = vld [vmem:[%s12493_s1 + $0x58] sm:$0xff]   ;;  %v10288_v14 = vld [vmem:[%s12493_s1 + $0x60] sm:$0xff]  }
 0x21a   :  { %3195 = vmatmul.mubr.bf16.gmra.mrb[252].mxu0 %v3104_v49  ;;  %v515_v49 = vmax.f32 %v499_v13, 0.0  ;;  %v516_v4 = vmax.f32 %v500_v33, 0.0  ;;  %v6981_v56 = vadd.f32 %v6980_v1, %v6979_v50  ;;  %v2443_v13 = vunpack.c.l.u8.bf16 %v2433_v26  ;;  %v10294_v1 = vld [vmem:[%s12493_s1 + $0x20] sm:$0xff]  }
 0x21b   :  { %2024 = vst.msk [vmem:[#allocation2 + $0x38] sm:$0xff] %vm345_vm0, %v2016_v58  ;;  %v1989_v24 = vadd.f32 %v10235_v18, %v1973_v46  ;;  %v1974_v12 = vmul.f32 0.003921569, %v7423_v60  ;;  %7701 = vmatpush3.bf16.msra.mxu1 %v10244_v32  ;;  %v485_v58 = vmul.f32 0.003921569, %v6978_v17 }
 0x21c   :  { %7702 = vmatprep.subr.bf16.mxu1 %v10251_v35  ;;  %v527_v46 = vpack.c.bf16 %v516_v4, %v515_v49  ;;  %v486_v60 = vmul.f32 0.003921569, %v6981_v56 }
 0x21d   :  { %v1990_v7 = vadd.f32 %v10235_v18, %v1974_v12  ;;  %v7424_v28 = vpop.f32.mrb[148].mxu0  ;;  %v2005_v22 = vmax.f32 %v1989_v24, 0.0  ;;  %v501_v53 = vadd.f32 %v10235_v18, %v485_v58  ;;  %v6982_v24 = vpop.f32.mrb[24].mxu1  ;;  %v2444_v12 = vunpack.c.l.u8.bf16 %v2434_v8 }
 0x21e   :  { %v7425_v15 = vpop.f32.mrb[149].mxu0  ;;  %2496 = vmatmul.mubr.bf16.gmra.mrb[164].mxu1 %v2441_v16  ;;  %535 = vst.msk [vmem:[#allocation2 + $0xc0] sm:$0xff] %vm345_vm0, %v527_v46 }
 0x21f   :  { %v2006_v39 = vmax.f32 %v1990_v7, 0.0  ;;  %v7426_v37 = vadd.f32 %v7425_v15, %v7424_v28  ;;  %v7427_v47 = vpop.f32.mrb[150].mxu0  ;;  %7703 = vmatpush3.bf16.msra.mxu1 %v10258_v52  ;;  %v502_v7 = vadd.f32 %v10235_v18, %v486_v60  ;;  %v6983_v28 = vpop.f32.mrb[25].mxu1  ;;  %v517_v16 = vmax.f32 %v501_v53, 0.0  ;;  %2503 = vmatprep.mubr.bf16.mxu1 %v2444_v12  ;;  %v10310_v53 = vld [vmem:[%s12493_s1 + $0x28] sm:$0xff]  }
 0x220   :  { %v7428_v45 = vpop.f32.mrb[151].mxu0  ;;  %7704 = vmatprep.subr.bf16.mxu1 %v10264_v54  ;;  %v6984_v4 = vadd.f32 %v6983_v28, %v6982_v24  ;;  %v10318_v28 = vld [vmem:[%s12493_s1 + $0x70] sm:$0xff]  }
 0x221   :  { %v2017_v44 = vpack.c.bf16 %v2006_v39, %v2005_v22  ;;  %v1975_v48 = vmul.f32 0.003921569, %v7426_v37  ;;  %v7429_v0 = vadd.f32 %v7428_v45, %v7427_v47  ;;  %v6985_v22 = vpop.f32.mrb[26].mxu1  ;;  %v518_v37 = vmax.f32 %v502_v7, 0.0 }
 0x222   :  { %v6986_v47 = vpop.f32.mrb[27].mxu1  ;;  %v487_v56 = vmul.f32 0.003921569, %v6984_v4  ;;  %v2445_v7 = vunpack.c.h.u8.bf16 %v2433_v26  ;;  %v10330_v4 = vld [vmem:[%s12493_s1 + $0x78] sm:$0xff]  }
 0x223   :  { %2025 = vst.msk [vmem:[#allocation2 + $0x48] sm:$0xff] %vm345_vm0, %v2017_v44  ;;  %v1991_v57 = vadd.f32 %v10235_v18, %v1975_v48  ;;  %v1976_v59 = vmul.f32 0.003921569, %v7429_v0  ;;  %7705 = vmatpush3.bf16.msra.mxu1 %v10280_v51  ;;  %v6987_v44 = vadd.f32 %v6986_v47, %v6985_v22  ;;  %v10300_v48 = vld [vmem:[%s12493_s1 + $0x68] sm:$0xff]  }
 0x224   :  { %7706 = vmatprep.subr.bf16.mxu1 %v10288_v14  ;;  %v503_v60 = vadd.f32 %v10235_v18, %v487_v56 }
 0x225   :  { %v1992_v20 = vadd.f32 %v10235_v18, %v1976_v59  ;;  %v7430_v27 = vpop.f32.mrb[152].mxu0  ;;  %v2007_v30 = vmax.f32 %v1991_v57, 0.0  ;;  %v528_v57 = vpack.c.bf16 %v518_v37, %v517_v16  ;;  %v488_v59 = vmul.f32 0.003921569, %v6987_v44 }
 0x226   :  { %v7431_v31 = vpop.f32.mrb[153].mxu0  ;;  %2504 = vmatmul.mubr.bf16.gmra.mrb[168].mxu1 %v2443_v13 }
 0x227   :  { %v2008_v15 = vmax.f32 %v1992_v20, 0.0  ;;  %v7432_v33 = vadd.f32 %v7431_v31, %v7430_v27  ;;  %v7433_v34 = vpop.f32.mrb[154].mxu0  ;;  %7707 = vmatpush3.bf16.msra.mxu1 %v10294_v1  ;;  %v6988_v20 = vpop.f32.mrb[28].mxu1  ;;  %v2446_v27 = vunpack.c.h.u8.bf16 %v2434_v8  ;;  %536 = vst.msk [vmem:[#allocation2 + $0xd0] sm:$0xff] %vm345_vm0, %v528_v57  ;;  %v504_v12 = vadd.f32 %v10235_v18, %v488_v59  ;;  %v2436_v59 = vld [vmem:[%s12494_s0 + $0x2e8] sm:$0xff] }
 0x228   :  { %v7434_v39 = vpop.f32.mrb[155].mxu0  ;;  %7708 = vmatprep.subr.bf16.mxu1 %v10300_v48  ;;  %v6989_v31 = vpop.f32.mrb[29].mxu1 }
 0x229   :  { %v2018_v49 = vpack.c.bf16 %v2008_v15, %v2007_v30  ;;  %v1977_v50 = vmul.f32 0.003921569, %v7432_v33  ;;  %v7435_v45 = vadd.f32 %v7434_v39, %v7433_v34  ;;  %v519_v33 = vmax.f32 %v503_v60, 0.0  ;;  %2511 = vmatprep.mubr.bf16.mxu1 %v2446_v27  ;;  %v6991_v34 = vpop.f32.mrb[30].mxu1 }
 0x22a   :  { %v520_v22 = vmax.f32 %v504_v12, 0.0  ;;  %v6992_v39 = vpop.f32.mrb[31].mxu1  ;;  %v2448_v27 = vunpack.c.l.u8.bf16 %v2436_v59  ;;  %v10346_v12 = vld [vmem:[%s12493_s1 + $0x38] sm:$0xff]  }
 0x22b   :  { %2026 = vst.msk [vmem:[#allocation2 + $0x58] sm:$0xff] %vm345_vm0, %v2018_v49  ;;  %v1993_v0 = vadd.f32 %v10235_v18, %v1977_v50  ;;  %v1978_v17 = vmul.f32 0.003921569, %v7435_v45  ;;  %7709 = vmatpush3.bf16.msra.mxu1 %v10310_v53  ;;  %v6990_v49 = vadd.f32 %v6989_v31, %v6988_v20  ;;  %v10324_v50 = vld [vmem:[%s12493_s1 + $0x30] sm:$0xff]   ;;  %v6993_v45 = vadd.f32 %v6992_v39, %v6991_v34  ;;  %v7074_v20 = vpop.f32.mrb[32].mxu1 }
 0x22c   :  { %7710 = vmatprep.subr.bf16.mxu1 %v10318_v28  ;;  %v529_v56 = vpack.c.bf16 %v520_v22, %v519_v33 }
 0x22d   :  { %v1994_v58 = vadd.f32 %v10235_v18, %v1978_v17  ;;  %v7436_v46 = vpop.f32.mrb[156].mxu0  ;;  %v2009_v8 = vmax.f32 %v1993_v0, 0.0  ;;  %v489_v17 = vmul.f32 0.003921569, %v6990_v49  ;;  %v490_v57 = vmul.f32 0.003921569, %v6993_v45 }
 0x22e   :  { %v7437_v24 = vpop.f32.mrb[157].mxu0  ;;  %2512 = vmatmul.mubr.bf16.gmra.mrb[172].mxu1 %v2445_v7  ;;  %537 = vst.msk [vmem:[#allocation2 + $0xe0] sm:$0xff] %vm345_vm0, %v529_v56 }
 0x22f   :  { %v2010_v13 = vmax.f32 %v1994_v58, 0.0  ;;  %v7438_v30 = vadd.f32 %v7437_v24, %v7436_v46  ;;  %v7439_v15 = vpop.f32.mrb[158].mxu0  ;;  %7711 = vmatpush3.bf16.msra.mxu1 %v10324_v50  ;;  %v505_v60 = vadd.f32 %v10235_v18, %v489_v17  ;;  %v2435_v24 = vld [vmem:[%s12494_s0 + $0x2e0] sm:$0xff]  ;;  %v506_v7 = vadd.f32 %v10235_v18, %v490_v57  ;;  %2519 = vmatprep.mubr.bf16.mxu1 %v2448_v27 }
 0x230   :  { %v7440_v16 = vpop.f32.mrb[159].mxu0  ;;  %7712 = vmatprep.subr.bf16.mxu1 %v10330_v4 }
 0x231   :  { %v2019_v37 = vpack.c.bf16 %v2010_v13, %v2009_v8  ;;  %v1979_v26 = vmul.f32 0.003921569, %v7438_v30  ;;  %v7441_v47 = vadd.f32 %v7440_v16, %v7439_v15  ;;  %v7075_v8 = vpop.f32.mrb[33].mxu1  ;;  %v2447_v13 = vunpack.c.l.u8.bf16 %v2435_v24 }
 0x232   :  { %v521_v16 = vmax.f32 %v505_v60, 0.0  ;;  %v7077_v22 = vpop.f32.mrb[34].mxu1 }
 0x233   :  { %2027 = vst.msk [vmem:[#allocation2 + $0x68] sm:$0xff] %vm345_vm0, %v2019_v37  ;;  %v1995_v44 = vadd.f32 %v10235_v18, %v1979_v26  ;;  %v1980_v0 = vmul.f32 0.003921569, %v7441_v47  ;;  %7713 = vmatpush3.bf16.msra.mxu1 %v10346_v12  ;;  %v522_v37 = vmax.f32 %v506_v7, 0.0  ;;  %v7078_v26 = vpop.f32.mrb[35].mxu1 }
 0x234   :  { %7826 = vmatprep.subr.bf16.mxu1 %v10152_v55  ;;  %v7079_v17 = vadd.f32 %v7078_v26, %v7077_v22  ;;  %v7080_v27 = vpop.f32.mrb[36].mxu1 }
 0x235   :  { %v1996_v58 = vadd.f32 %v10235_v18, %v1980_v0  ;;  %v7522_v46 = vpop.f32.mrb[160].mxu0  ;;  %v2011_v30 = vmax.f32 %v1995_v44, 0.0  ;;  %v7076_v0 = vadd.f32 %v7075_v8, %v7074_v20  ;;  %v530_v44 = vpack.c.bf16 %v522_v37, %v521_v16  ;;  %v7081_v8 = vpop.f32.mrb[37].mxu1 }
 0x236   :  { %v7523_v31 = vpop.f32.mrb[161].mxu0  ;;  %2520 = vmatmul.mubr.bf16.gmra.mrb[176].mxu1 %v2447_v13  ;;  %v7083_v16 = vpop.f32.mrb[38].mxu1 }
 0x237   :  { %v2012_v15 = vmax.f32 %v1996_v58, 0.0  ;;  %v7524_v33 = vadd.f32 %v7523_v31, %v7522_v46  ;;  %v7525_v34 = vpop.f32.mrb[162].mxu0  ;;  %v878_v55 = vmul.f32 0.003921569, %v7076_v0  ;;  %v879_v58 = vmul.f32 0.003921569, %v7079_v17 }
 0x238   :  { %v7526_v39 = vpop.f32.mrb[163].mxu0  ;;  %v2450_v31 = vunpack.c.h.u8.bf16 %v2436_v59  ;;  %538 = vst.msk [vmem:[#allocation2 + $0xf0] sm:$0xff] %vm345_vm0, %v530_v44  ;;  %v7084_v37 = vpop.f32.mrb[39].mxu1 }
 0x239   :  { %v2020_v47 = vpack.c.bf16 %v2012_v15, %v2011_v30  ;;  %v2335_v49 = vmul.f32 0.003921569, %v7524_v33  ;;  %v7527_v45 = vadd.f32 %v7526_v39, %v7525_v34  ;;  %v894_v13 = vadd.f32 %v10235_v18, %v878_v55 }
 0x23a   :  { %v895_v20 = vadd.f32 %v10235_v18, %v879_v58  ;;  %v2449_v30 = vunpack.c.h.u8.bf16 %v2435_v24  ;;  %2527 = vmatprep.mubr.bf16.mxu1 %v2450_v31  ;;  %v2437_v31 = vld [vmem:[%s12494_s0 + $0x2f0] sm:$0xff] }
 0x23b   :  { %2028 = vst.msk [vmem:[#allocation2 + $0x78] sm:$0xff] %vm345_vm0, %v2020_v47  ;;  %v2336_v56 = vmul.f32 0.003921569, %v7527_v45  ;;  %v2351_v57 = vadd.f32 %v10235_v18, %v2335_v49  ;;  %v7082_v47 = vadd.f32 %v7081_v8, %v7080_v27  ;;  %v7085_v49 = vadd.f32 %v7084_v37, %v7083_v16  ;;  %v7086_v8 = vpop.f32.mrb[40].mxu1 }
 0x23c   :  { %v910_v0 = vmax.f32 %v894_v13, 0.0  ;;  %v911_v17 = vmax.f32 %v895_v20, 0.0 }
 0x23d   :  { %v2352_v46 = vadd.f32 %v10235_v18, %v2336_v56  ;;  %v7528_v60 = vpop.f32.mrb[164].mxu0  ;;  %v2367_v22 = vmax.f32 %v2351_v57, 0.0  ;;  %v880_v55 = vmul.f32 0.003921569, %v7082_v47  ;;  %v881_v44 = vmul.f32 0.003921569, %v7085_v49 }
 0x23e   :  { %v7529_v7 = vpop.f32.mrb[165].mxu0  ;;  %2528 = vmatmul.mubr.bf16.gmra.mrb[180].mxu1 %v2449_v30  ;;  %v2438_v57 = vld [vmem:[%s12494_s0 + $0x2f8] sm:$0xff]  ;;  %v10364_v58 = vpack.c.bf16 %v911_v17, %v910_v0 }
 0x23f   :  { %v2368_v15 = vmax.f32 %v2352_v46, 0.0  ;;  %v7530_v33 = vadd.f32 %v7529_v7, %v7528_v60  ;;  %v7531_v34 = vpop.f32.mrb[166].mxu0  ;;  %v896_v13 = vadd.f32 %v10235_v18, %v880_v55  ;;  %v897_v20 = vadd.f32 %v10235_v18, %v881_v44 }
 0x240   :  { %v7532_v39 = vpop.f32.mrb[167].mxu0  ;;  %12504 = vst [vmem:[#allocation5_spill] sm:$0xff] %v10364_v58  ;;  %v2452_v30 = vunpack.c.l.u8.bf16 %v2438_v57 }
 0x241   :  { %v2337_v26 = vmul.f32 0.003921569, %v7530_v33  ;;  %v7533_v59 = vadd.f32 %v7532_v39, %v7531_v34  ;;  %v10358_v45 = vpack.c.bf16 %v2368_v15, %v2367_v22  ;;  %v2451_v15 = vunpack.c.l.u8.bf16 %v2437_v31  ;;  %v7087_v39 = vpop.f32.mrb[41].mxu1 }
 0x242   :  { %2535 = vmatprep.mubr.bf16.mxu1 %v2452_v30  ;;  %v7088_v0 = vadd.f32 %v7087_v39, %v7086_v8  ;;  %v912_v55 = vmax.f32 %v896_v13, 0.0  ;;  %v913_v44 = vmax.f32 %v897_v20, 0.0  ;;  %v2454_v8 = vunpack.c.h.u8.bf16 %v2438_v57 }
 0x243   :  { %v2353_v24 = vadd.f32 %v10235_v18, %v2337_v26  ;;  %v2338_v56 = vmul.f32 0.003921569, %v7533_v59  ;;  %v7089_v26 = vpop.f32.mrb[42].mxu1 }
 0x244   :  { %v7090_v17 = vpop.f32.mrb[43].mxu1 }
 0x245   :  { %v2354_v46 = vadd.f32 %v10235_v18, %v2338_v56  ;;  %v7534_v60 = vpop.f32.mrb[168].mxu0  ;;  %v1599_v27 = vpop.permute.xlu1 %1598  ;;  %v2369_v33 = vmax.f32 %v2353_v24, 0.0  ;;  %v7091_v56 = vadd.f32 %v7090_v17, %v7089_v26 }
 0x246   :  { %1621 = vst.msk [vmem:[#allocation2 + $0x20] sm:$0xff] %vm1618_vm3, %v1599_v27  ;;  %v7535_v7 = vpop.f32.mrb[169].mxu0  ;;  %2536 = vmatmul.mubr.bf16.gmra.mrb[184].mxu1 %v2451_v15 }
 0x247   :  { %v2370_v34 = vmax.f32 %v2354_v46, 0.0  ;;  %v7536_v16 = vadd.f32 %v7535_v7, %v7534_v60  ;;  %v7537_v22 = vpop.f32.mrb[170].mxu0  ;;  %v882_v46 = vmul.f32 0.003921569, %v7088_v0  ;;  %v883_v60 = vmul.f32 0.003921569, %v7091_v56  ;;  %2543 = vmatprep.mubr.bf16.mxu1 %v2454_v8 }
 0x248   :  { %v7538_v37 = vpop.f32.mrb[171].mxu0  ;;  %v10376_v7 = vpack.c.bf16 %v913_v44, %v912_v55 }
 0x249   :  { %v2339_v59 = vmul.f32 0.003921569, %v7536_v16  ;;  %v7539_v47 = vadd.f32 %v7538_v37, %v7537_v22  ;;  %v10373_v49 = vpack.c.bf16 %v2370_v34, %v2369_v33  ;;  %v898_v33 = vadd.f32 %v10235_v18, %v882_v46  ;;  %v7092_v34 = vpop.f32.mrb[44].mxu1 }
 0x24a   :  { %12505 = vst [vmem:[#allocation6_spill] sm:$0xff] %v10376_v7  ;;  %v899_v13 = vadd.f32 %v10235_v18, %v883_v60  ;;  %v7093_v20 = vpop.f32.mrb[45].mxu1  ;;  %v2453_v22 = vunpack.c.h.u8.bf16 %v2437_v31 }
 0x24b   :  { %v2355_v27 = vadd.f32 %v10235_v18, %v2339_v59  ;;  %v2340_v24 = vmul.f32 0.003921569, %v7539_v47  ;;  %v914_v47 = vmax.f32 %v898_v33, 0.0  ;;  %v7095_v0 = vpop.f32.mrb[46].mxu1  ;;  %v7094_v57 = vadd.f32 %v7093_v20, %v7092_v34  ;;  %v2865_v20 = vld [vmem:[%s12494_s0 + $0x340] sm:$0xff] }
 0x24c   :  { %v915_v56 = vmax.f32 %v899_v13, 0.0  ;;  %v7096_v55 = vpop.f32.mrb[47].mxu1 }
 0x24d   :  { %v2356_v30 = vadd.f32 %v10235_v18, %v2340_v24  ;;  %v7540_v58 = vpop.f32.mrb[172].mxu0  ;;  %v3586_v16 = vld [vmem:[#allocation2 + $0x20] sm:$0xff]  ;;  %v2371_v39 = vmax.f32 %v2355_v27, 0.0  ;;  %v884_v31 = vmul.f32 0.003921569, %v7094_v57 }
 0x24e   :  { %v7541_v15 = vpop.f32.mrb[173].mxu0  ;;  %8272 = vmatprep.mubr.bf16.mxu0 %v3586_v16  ;;  %2544 = vmatmul.mubr.bf16.gmra.mrb[188].mxu1 %v2453_v22  ;;  %v7097_v16 = vadd.f32 %v7096_v55, %v7095_v0 }
 0x24f   :  { %v2372_v37 = vmax.f32 %v2356_v30, 0.0  ;;  %v7542_v26 = vadd.f32 %v7541_v15, %v7540_v58  ;;  %v7543_v59 = vpop.f32.mrb[174].mxu0  ;;  %v10383_v58 = vpack.c.bf16 %v915_v56, %v914_v47  ;;  %v2866_v30 = vld [vmem:[%s12494_s0 + $0x348] sm:$0xff]  ;;  %v900_v34 = vadd.f32 %v10235_v18, %v884_v31  ;;  %v7098_v15 = vpop.f32.mrb[48].mxu1 }
 0x250   :  { %v7544_v17 = vpop.f32.mrb[175].mxu0  ;;  %v885_v27 = vmul.f32 0.003921569, %v7097_v16  ;;  %v2874_v13 = vunpack.c.l.u8.bf16 %v2866_v30 }
 0x251   :  { %v2341_v44 = vmul.f32 0.003921569, %v7542_v26  ;;  %v7545_v24 = vadd.f32 %v7544_v17, %v7543_v59  ;;  %v2385_v46 = vpack.c.bf16 %v2372_v37, %v2371_v39  ;;  %12506 = vst [vmem:[#allocation7_spill] sm:$0xff] %v10383_v58  ;;  %v7099_v37 = vpop.f32.mrb[49].mxu1  ;;  %v2873_v26 = vunpack.c.l.u8.bf16 %v2865_v20 }
 0x252   :  { %v901_v39 = vadd.f32 %v10235_v18, %v885_v27  ;;  %v7100_v56 = vadd.f32 %v7099_v37, %v7098_v15  ;;  %2921 = vmatprep.mubr.bf16.mxu1 %v2874_v13 }
 0x253   :  { %v2357_v60 = vadd.f32 %v10235_v18, %v2341_v44  ;;  %v2342_v7 = vmul.f32 0.003921569, %v7545_v24  ;;  %2403 = vrot.lane.b32.xlu0 %v2385_v46, %s9283_s10  ;;  %v916_v44 = vmax.f32 %v900_v34, 0.0 }
 0x254   :  { %v917_v24 = vmax.f32 %v901_v39, 0.0  ;;  %v886_v58 = vmul.f32 0.003921569, %v7100_v56 }
 0x255   :  { %v2358_v33 = vadd.f32 %v10235_v18, %v2342_v7  ;;  %v7546_v8 = vpop.f32.mrb[176].mxu0  ;;  %v2373_v59 = vmax.f32 %v2357_v60, 0.0  ;;  %v7101_v7 = vpop.f32.mrb[50].mxu1 }
 0x256   :  { %v7547_v22 = vpop.f32.mrb[177].mxu0  ;;  %v7102_v46 = vpop.f32.mrb[51].mxu1  ;;  %2922 = vmatmul.mubr.bf16.vlgmr.msra.gmra.mrb[192].mxu1 %v2873_v26  ;;  %v902_v60 = vadd.f32 %v10235_v18, %v886_v58 }
 0x257   :  { %v2374_v47 = vmax.f32 %v2358_v33, 0.0  ;;  %v7548_v0 = vadd.f32 %v7547_v22, %v7546_v8  ;;  %v7549_v17 = vpop.f32.mrb[178].mxu0  ;;  %v7103_v43 = vadd.f32 %v7102_v46, %v7101_v7  ;;  %7827 = vmatpush3.bf16.msra.mxu1 %v10222_v10  ;;  %v7104_v33 = vpop.f32.mrb[52].mxu1  ;;  %v2876_v8 = vunpack.c.h.u8.bf16 %v2866_v30 }
 0x258   :  { %v7550_v55 = vpop.f32.mrb[179].mxu0  ;;  %7828 = vmatprep.subr.bf16.mxu1 %v10228_v63  ;;  %v7105_v13 = vpop.f32.mrb[53].mxu1  ;;  %v10399_v22 = vpack.c.bf16 %v917_v24, %v916_v44 }
 0x259   :  { %v2343_v57 = vmul.f32 0.003921569, %v7548_v0  ;;  %v7551_v16 = vadd.f32 %v7550_v55, %v7549_v17  ;;  %v2386_v31 = vpack.c.bf16 %v2374_v47, %v2373_v59  ;;  %v887_v15 = vmul.f32 0.003921569, %v7103_v43  ;;  %2929 = vmatprep.mubr.bf16.mxu1 %v2876_v8  ;;  %v7107_v17 = vpop.f32.mrb[54].mxu1  ;;  %v2868_v8 = vld [vmem:[%s12494_s0 + $0x358] sm:$0xff] }
 0x25a   :  { %v7106_v26 = vadd.f32 %v7105_v13, %v7104_v33  ;;  %v918_v59 = vmax.f32 %v902_v60, 0.0  ;;  %v2875_v43 = vunpack.c.h.u8.bf16 %v2865_v20  ;;  %v7108_v44 = vpop.f32.mrb[55].mxu1 }
 0x25b   :  { %v2344_v27 = vmul.f32 0.003921569, %v7551_v16  ;;  %2405 = vrot.lane.b32.xlu0 %v2386_v31, %s9283_s10  ;;  %v2359_v34 = vadd.f32 %v10235_v18, %v2343_v57  ;;  %v903_v47 = vadd.f32 %v10235_v18, %v887_v15  ;;  %7829 = vmatpush3.bf16.msra.mxu1 %v10244_v32  ;;  %v7109_v16 = vadd.f32 %v7108_v44, %v7107_v17  ;;  %v7110_v60 = vpop.f32.mrb[56].mxu1 }
 0x25c   :  { %v888_v0 = vmul.f32 0.003921569, %v7106_v26  ;;  %7830 = vmatprep.subr.bf16.mxu1 %v10251_v35  ;;  %v7111_v33 = vpop.f32.mrb[57].mxu1 }
 0x25d   :  { %v2360_v39 = vadd.f32 %v10235_v18, %v2344_v27  ;;  %v7552_v37 = vpop.f32.mrb[180].mxu0  ;;  %v2375_v56 = vmax.f32 %v2359_v34, 0.0  ;;  %v919_v55 = vmax.f32 %v903_v47, 0.0  ;;  %v889_v35 = vmul.f32 0.003921569, %v7109_v16 }
 0x25e   :  { %v7553_v10 = vpop.f32.mrb[181].mxu0  ;;  %v904_v57 = vadd.f32 %v10235_v18, %v888_v0  ;;  %2930 = vmatmul.mubr.bf16.gmra.mrb[196].mxu1 %v2875_v43  ;;  %v7113_v0 = vpop.f32.mrb[58].mxu1 }
 0x25f   :  { %v2376_v58 = vmax.f32 %v2360_v39, 0.0  ;;  %v7554_v30 = vadd.f32 %v7553_v10, %v7552_v37  ;;  %v7555_v63 = vpop.f32.mrb[182].mxu0  ;;  %v10406_v31 = vpack.c.bf16 %v919_v55, %v918_v59  ;;  %7831 = vmatpush3.bf16.msra.mxu1 %v10258_v52  ;;  %v905_v39 = vadd.f32 %v10235_v18, %v889_v35  ;;  %v2867_v59 = vld [vmem:[%s12494_s0 + $0x350] sm:$0xff] }
 0x260   :  { %v7556_v7 = vpop.f32.mrb[183].mxu0  ;;  %7832 = vmatprep.subr.bf16.mxu1 %v10264_v54  ;;  %v920_v13 = vmax.f32 %v904_v57, 0.0  ;;  %v7112_v37 = vadd.f32 %v7111_v33, %v7110_v60  ;;  %v2878_v10 = vunpack.c.l.u8.bf16 %v2868_v8  ;;  %v2877_v43 = vunpack.c.l.u8.bf16 %v2867_v59 }
 0x261   :  { %v2345_v24 = vmul.f32 0.003921569, %v7554_v30  ;;  %v7557_v46 = vadd.f32 %v7556_v7, %v7555_v63  ;;  %12507 = vst [vmem:[#allocation8_spill] sm:$0xff] %v10406_v31  ;;  %v10408_v32 = vpack.c.bf16 %v2376_v58, %v2375_v56  ;;  %v921_v30 = vmax.f32 %v905_v39, 0.0  ;;  %v7114_v56 = vpop.f32.mrb[59].mxu1 }
 0x262   :  { %v890_v63 = vmul.f32 0.003921569, %v7112_v37  ;;  %2937 = vmatprep.mubr.bf16.mxu1 %v2878_v10  ;;  %v7116_v16 = vpop.f32.mrb[60].mxu1  ;;  %v2879_v10 = vunpack.c.h.u8.bf16 %v2867_v59 }
 0x263   :  { %v2361_v20 = vadd.f32 %v10235_v18, %v2345_v24  ;;  %v2346_v27 = vmul.f32 0.003921569, %v7557_v46  ;;  %7833 = vmatpush3.bf16.msra.mxu1 %v10280_v51  ;;  %v10425_v24 = vpack.c.bf16 %v921_v30, %v920_v13  ;;  %v7115_v46 = vadd.f32 %v7114_v56, %v7113_v0  ;;  %v7117_v35 = vpop.f32.mrb[61].mxu1 }
 0x264   :  { %7834 = vmatprep.subr.bf16.mxu1 %v10288_v14  ;;  %v906_v51 = vadd.f32 %v10235_v18, %v890_v63 }
 0x265   :  { %v2362_v34 = vadd.f32 %v10235_v18, %v2346_v27  ;;  %v7558_v15 = vpop.f32.mrb[184].mxu0  ;;  %v2377_v52 = vmax.f32 %v2361_v20, 0.0  ;;  %12508 = vst [vmem:[#allocation9_spill] sm:$0xff] %v10425_v24  ;;  %v2880_v20 = vunpack.c.h.u8.bf16 %v2868_v8  ;;  %v891_v27 = vmul.f32 0.003921569, %v7115_v46 }
 0x266   :  { %v7559_v26 = vpop.f32.mrb[185].mxu0  ;;  %2938 = vmatmul.mubr.bf16.gmra.mrb[200].mxu1 %v2877_v43  ;;  %v922_v13 = vmax.f32 %v906_v51, 0.0 }
 0x267   :  { %v2378_v54 = vmax.f32 %v2362_v34, 0.0  ;;  %v7560_v47 = vadd.f32 %v7559_v26, %v7558_v15  ;;  %v7561_v58 = vpop.f32.mrb[186].mxu0  ;;  %7835 = vmatpush3.bf16.msra.mxu1 %v10294_v1  ;;  %v7118_v34 = vadd.f32 %v7117_v35, %v7116_v16  ;;  %2945 = vmatprep.mubr.bf16.mxu1 %v2880_v20  ;;  %v907_v39 = vadd.f32 %v10235_v18, %v891_v27  ;;  %v7119_v1 = vpop.f32.mrb[62].mxu1 }
 0x268   :  { %v7562_v17 = vpop.f32.mrb[187].mxu0  ;;  %7836 = vmatprep.subr.bf16.mxu1 %v10300_v48 }
 0x269   :  { %v2347_v7 = vmul.f32 0.003921569, %v7560_v47  ;;  %v7563_v55 = vadd.f32 %v7562_v17, %v7561_v58  ;;  %v10423_v44 = vpack.c.bf16 %v2378_v54, %v2377_v52  ;;  %v892_v26 = vmul.f32 0.003921569, %v7118_v34  ;;  %v7120_v58 = vpop.f32.mrb[63].mxu1 }
 0x26a   :  { %v923_v48 = vmax.f32 %v907_v39, 0.0  ;;  %v7121_v17 = vadd.f32 %v7120_v58, %v7119_v1 }
 0x26b   :  { %v2348_v57 = vmul.f32 0.003921569, %v7563_v55  ;;  %v2363_v14 = vadd.f32 %v10235_v18, %v2347_v7  ;;  %7837 = vmatpush3.bf16.msra.mxu1 %v10310_v53  ;;  %v908_v0 = vadd.f32 %v10235_v18, %v892_v26  ;;  %v7202_v55 = vpop.f32.mrb[64].mxu1 }
 0x26c   :  { %7838 = vmatprep.subr.bf16.mxu1 %v10318_v28  ;;  %v10436_v43 = vpack.c.bf16 %v923_v48, %v922_v13  ;;  %v893_v53 = vmul.f32 0.003921569, %v7121_v17  ;;  %v7203_v51 = vpop.f32.mrb[65].mxu1  ;;  %v2870_v28 = vld [vmem:[%s12494_s0 + $0x368] sm:$0xff] }
 0x26d   :  { %v2364_v60 = vadd.f32 %v10235_v18, %v2348_v57  ;;  %v7564_v33 = vpop.f32.mrb[188].mxu0  ;;  %v2379_v54 = vmax.f32 %v2363_v14, 0.0  ;;  %v924_v16 = vmax.f32 %v908_v0, 0.0  ;;  %v7204_v14 = vadd.f32 %v7203_v51, %v7202_v55  ;;  %v10467_v0 = vld [vmem:[%s12496_s3 + $0x48] sm:$0xff]  }
 0x26e   :  { %v7565_v15 = vpop.f32.mrb[189].mxu0  ;;  %12509 = vst [vmem:[#allocation10_spill] sm:$0xff] %v10436_v43  ;;  %2946 = vmatmul.mubr.bf16.gmra.mrb[204].mxu1 %v2879_v10  ;;  %v909_v20 = vadd.f32 %v10235_v18, %v893_v53  ;;  %v2884_v17 = vunpack.c.h.u8.bf16 %v2870_v28 }
 0x26f   :  { %v2380_v37 = vmax.f32 %v2364_v60, 0.0  ;;  %v7566_v52 = vadd.f32 %v7565_v15, %v7564_v33  ;;  %v7567_v8 = vpop.f32.mrb[190].mxu0  ;;  %7839 = vmatpush3.bf16.msra.mxu1 %v10324_v50  ;;  %v2882_v60 = vunpack.c.l.u8.bf16 %v2870_v28  ;;  %v2869_v50 = vld [vmem:[%s12494_s0 + $0x360] sm:$0xff]  ;;  %v1313_v39 = vmul.f32 0.003921569, %v7204_v14 }
 0x270   :  { %v7568_v47 = vpop.f32.mrb[191].mxu0  ;;  %7840 = vmatprep.subr.bf16.mxu1 %v10330_v4  ;;  %v925_v13 = vmax.f32 %v909_v20, 0.0  ;;  %v7205_v4 = vpop.f32.mrb[66].mxu1 }
 0x271   :  { %v2349_v30 = vmul.f32 0.003921569, %v7566_v52  ;;  %v7569_v63 = vadd.f32 %v7568_v47, %v7567_v8  ;;  %v10438_v56 = vpack.c.bf16 %v2380_v37, %v2379_v54  ;;  %2953 = vmatprep.mubr.bf16.mxu1 %v2882_v60  ;;  %v2881_v52 = vunpack.c.l.u8.bf16 %v2869_v50  ;;  %v7206_v8 = vpop.f32.mrb[67].mxu1  ;;  %v10458_v47 = vld [vmem:[%s12496_s3 + $0x40] sm:$0xff]  }
 0x272   :  { %v10452_v10 = vpack.c.bf16 %v925_v13, %v924_v16  ;;  %v1329_v54 = vadd.f32 %v10235_v18, %v1313_v39  ;;  %v7207_v48 = vadd.f32 %v7206_v8, %v7205_v4  ;;  %8256 = vmatprep.subr.bf16.mxu0 %v10458_v47 }
 0x273   :  { %v2365_v59 = vadd.f32 %v10235_v18, %v2349_v30  ;;  %v2350_v7 = vmul.f32 0.003921569, %v7569_v63  ;;  %7841 = vmatpush3.bf16.msra.mxu1 %v10346_v12  ;;  %v7208_v63 = vpop.f32.mrb[68].mxu1  ;;  %8257 = vmatpush3.bf16.msra.mxu0 %v10458_v47 }
 0x274   :  { %12510 = vst [vmem:[#allocation11_spill] sm:$0xff] %v10452_v10  ;;  %8336 = vmatprep.subr.bf16.mxu1 %v10458_v47  ;;  %v1345_v51 = vmax.f32 %v1329_v54, 0.0  ;;  %8258 = vmatprep.subr.bf16.mxu0 %v10467_v0 }
 0x275   :  { %v2366_v46 = vadd.f32 %v10235_v18, %v2350_v7  ;;  %v7650_v57 = vpop.f32.mrb[192].mxu0  ;;  %v2381_v27 = vmax.f32 %v2365_v59, 0.0  ;;  %v1314_v59 = vmul.f32 0.003921569, %v7207_v48  ;;  %v7209_v7 = vpop.f32.mrb[69].mxu1 }
 0x276   :  { %v7651_v35 = vpop.f32.mrb[193].mxu0  ;;  %2954 = vmatmul.mubr.bf16.gmra.mrb[208].mxu1 %v2881_v52  ;;  %v7211_v60 = vpop.f32.mrb[70].mxu1 }
 0x277   :  { %v2382_v33 = vmax.f32 %v2366_v46, 0.0  ;;  %v7652_v34 = vadd.f32 %v7651_v35, %v7650_v57  ;;  %v7653_v15 = vpop.f32.mrb[194].mxu0  ;;  %v7210_v46 = vadd.f32 %v7209_v7, %v7208_v63  ;;  %2961 = vmatprep.mubr.bf16.mxu1 %v2884_v17  ;;  %v1330_v20 = vadd.f32 %v10235_v18, %v1314_v59  ;;  %8259 = vmatpush3.bf16.msra.mxu0 %v10467_v0  ;;  %v7212_v39 = vpop.f32.mrb[71].mxu1  ;;  %v10492_v17 = vld [vmem:[%s12496_s3 + $0x58] sm:$0xff]  }
 0x278   :  { %v7654_v37 = vpop.f32.mrb[195].mxu0  ;;  %v2872_v59 = vld [vmem:[%s12494_s0 + $0x378] sm:$0xff] }
 0x279   :  { %v2769_v26 = vmul.f32 0.003921569, %v7652_v34  ;;  %v7655_v1 = vadd.f32 %v7654_v37, %v7653_v15  ;;  %v10460_v58 = vpack.c.bf16 %v2382_v33, %v2381_v27  ;;  %v1315_v35 = vmul.f32 0.003921569, %v7210_v46  ;;  %v10477_v34 = vld [vmem:[%s12496_s3 + $0x50] sm:$0xff]  }
 0x27a   :  { %v2883_v33 = vunpack.c.h.u8.bf16 %v2869_v50  ;;  %v1346_v13 = vmax.f32 %v1330_v20, 0.0  ;;  %8260 = vmatprep.subr.bf16.mxu0 %v10477_v34  ;;  %v7213_v50 = vadd.f32 %v7212_v39, %v7211_v60  ;;  %v2886_v46 = vunpack.c.l.u8.bf16 %v2872_v59 }
 0x27b   :  { %v2785_v12 = vadd.f32 %v10235_v18, %v2769_v26  ;;  %v2770_v30 = vmul.f32 0.003921569, %v7655_v1  ;;  %v1331_v8 = vadd.f32 %v10235_v18, %v1315_v35  ;;  %8261 = vmatpush3.bf16.msra.mxu0 %v10477_v34  ;;  %v10505_v35 = vld [vmem:[%s12496_s3 + $0x60] sm:$0xff]  }
 0x27c   :  { %v10485_v54 = vpack.c.bf16 %v1346_v13, %v1345_v51  ;;  %v1316_v48 = vmul.f32 0.003921569, %v7213_v50  ;;  %v7214_v51 = vpop.f32.mrb[72].mxu1  ;;  %8262 = vmatprep.subr.bf16.mxu0 %v10492_v17 }
 0x27d   :  { %v2786_v53 = vadd.f32 %v10235_v18, %v2770_v30  ;;  %v7656_v55 = vpop.f32.mrb[196].mxu0  ;;  %v2801_v57 = vmax.f32 %v2785_v12, 0.0  ;;  %v1347_v63 = vmax.f32 %v1331_v8, 0.0 }
 0x27e   :  { %v7657_v16 = vpop.f32.mrb[197].mxu0  ;;  %2962 = vmatmul.mubr.bf16.gmra.mrb[212].mxu1 %v2883_v33 }
 0x27f   :  { %v2802_v14 = vmax.f32 %v2786_v53, 0.0  ;;  %v7658_v28 = vadd.f32 %v7657_v16, %v7656_v55  ;;  %v7659_v27 = vpop.f32.mrb[198].mxu0  ;;  %v1332_v55 = vadd.f32 %v10235_v18, %v1316_v48  ;;  %2969 = vmatprep.mubr.bf16.mxu1 %v2886_v46  ;;  %8263 = vmatpush3.bf16.msra.mxu0 %v10492_v17 }
 0x280   :  { %v7660_v15 = vpop.f32.mrb[199].mxu0  ;;  %8264 = vmatprep.subr.bf16.mxu0 %v10505_v35 }
 0x281   :  { %v2771_v4 = vmul.f32 0.003921569, %v7658_v28  ;;  %v7661_v37 = vadd.f32 %v7660_v15, %v7659_v27  ;;  %v10480_v52 = vpack.c.bf16 %v2802_v14, %v2801_v57  ;;  %v2871_v57 = vld [vmem:[%s12494_s0 + $0x370] sm:$0xff]  ;;  %v7215_v28 = vpop.f32.mrb[73].mxu1 }
 0x282   :  { %v2885_v27 = vunpack.c.l.u8.bf16 %v2871_v57  ;;  %v7216_v33 = vadd.f32 %v7215_v28, %v7214_v51  ;;  %v7217_v15 = vpop.f32.mrb[74].mxu1  ;;  %v10525_v51 = vld [vmem:[%s12496_s3 + $0x68] sm:$0xff]   ;;  %v2887_v28 = vunpack.c.h.u8.bf16 %v2871_v57 }
 0x283   :  { %v2787_v26 = vadd.f32 %v10235_v18, %v2771_v4  ;;  %v2772_v1 = vmul.f32 0.003921569, %v7661_v37  ;;  %v7218_v37 = vpop.f32.mrb[75].mxu1  ;;  %8265 = vmatpush3.bf16.msra.mxu0 %v10505_v35 }
 0x284   :  { %v1317_v8 = vmul.f32 0.003921569, %v7216_v33  ;;  %v7219_v50 = vadd.f32 %v7218_v37, %v7217_v15  ;;  %8266 = vmatprep.subr.bf16.mxu0 %v10525_v51 }
 0x285   :  { %v2788_v12 = vadd.f32 %v10235_v18, %v2772_v1  ;;  %v7662_v30 = vpop.f32.mrb[200].mxu0  ;;  %v2803_v7 = vmax.f32 %v2787_v26, 0.0  ;;  %v1348_v18 = vmax.f32 %v1332_v55, 0.0  ;;  %v10514_v26 = vld [vmem:[%s12495_s2] ss:$0 sm:$0xff] }
 0x286   :  { %v7663_v53 = vpop.f32.mrb[201].mxu0  ;;  %2970 = vmatmul.mubr.bf16.gmra.mrb[216].mxu1 %v2885_v27 }
 0x287   :  { %v2804_v16 = vmax.f32 %v2788_v12, 0.0  ;;  %v7664_v20 = vadd.f32 %v7663_v53, %v7662_v30  ;;  %v7665_v14 = vpop.f32.mrb[202].mxu0  ;;  %v10517_v12 = vpack.c.bf16 %v1348_v18, %v1347_v63  ;;  %v1333_v30 = vadd.f32 %v10514_v26, %v1317_v8  ;;  %8267 = vmatpush3.bf16.msra.mxu0 %v10525_v51 }
 0x288   :  { %v7666_v60 = vpop.f32.mrb[203].mxu0  ;;  %v2888_v63 = vunpack.c.h.u8.bf16 %v2872_v59  ;;  %v10533_v59 = vld [vmem:[%s12496_s3 + $0x70] sm:$0xff]  }
 0x289   :  { %v2773_v13 = vmul.f32 0.003921569, %v7664_v20  ;;  %v7667_v39 = vadd.f32 %v7666_v60, %v7665_v14  ;;  %v10508_v4 = vpack.c.bf16 %v2804_v16, %v2803_v7  ;;  %v1318_v7 = vmul.f32 0.003921569, %v7219_v50  ;;  %v7220_v14 = vpop.f32.mrb[76].mxu1  ;;  %8268 = vmatprep.subr.bf16.mxu0 %v10533_v59 }
 0x28a   :  { %v1349_v33 = vmax.f32 %v1333_v30, 0.0  ;;  %v7221_v15 = vpop.f32.mrb[77].mxu1  ;;  %2977 = vmatprep.mubr.bf16.mxu1 %v2888_v63 }
 0x28b   :  { %v2789_v1 = vadd.f32 %v10514_v26, %v2773_v13  ;;  %v2774_v48 = vmul.f32 0.003921569, %v7667_v39  ;;  %v1334_v20 = vadd.f32 %v10514_v26, %v1318_v7  ;;  %v7222_v37 = vadd.f32 %v7221_v15, %v7220_v14  ;;  %v7223_v8 = vpop.f32.mrb[78].mxu1  ;;  %8269 = vmatpush3.bf16.msra.mxu0 %v10533_v59 }
 0x28c   :  { %v7224_v7 = vpop.f32.mrb[79].mxu1 }
 0x28d   :  { %v2790_v53 = vadd.f32 %v10514_v26, %v2774_v48  ;;  %v7668_v55 = vpop.f32.mrb[204].mxu0  ;;  %v2805_v46 = vmax.f32 %v2789_v1, 0.0  ;;  %v1350_v39 = vmax.f32 %v1334_v20, 0.0  ;;  %v1319_v57 = vmul.f32 0.003921569, %v7222_v37  ;;  %v7226_v15 = vpop.f32.mrb[80].mxu1 }
 0x28e   :  { %v7669_v16 = vpop.f32.mrb[205].mxu0  ;;  %2978 = vmatmul.mubr.bf16.gmra.mrb[220].mxu1 %v2887_v28  ;;  %v7225_v30 = vadd.f32 %v7224_v7, %v7223_v8  ;;  %v10546_v28 = vld [vmem:[%s12496_s3 + $0x78] sm:$0xff]  }
 0x28f   :  { %v2806_v27 = vmax.f32 %v2790_v53, 0.0  ;;  %v7670_v60 = vadd.f32 %v7669_v16, %v7668_v55  ;;  %v7671_v18 = vpop.f32.mrb[206].mxu0  ;;  %v10538_v16 = vpack.c.bf16 %v1350_v39, %v1349_v33  ;;  %v3299_v39 = vld [vmem:[%s12494_s0 + $0x3c0] sm:$0xff]  ;;  %8270 = vmatprep.subr.bf16.mxu0 %v10546_v28 }
 0x290   :  { %v7672_v13 = vpop.f32.mrb[207].mxu0  ;;  %v1320_v20 = vmul.f32 0.003921569, %v7225_v30  ;;  %v3307_v7 = vunpack.c.l.u8.bf16 %v3299_v39  ;;  %8271 = vmatpush3.bf16.msra.mxu0 %v10546_v28 }
 0x291   :  { %v2775_v50 = vmul.f32 0.003921569, %v7670_v60  ;;  %v7673_v1 = vadd.f32 %v7672_v13, %v7671_v18  ;;  %v2819_v48 = vpack.c.bf16 %v2806_v27, %v2805_v46  ;;  %v1335_v46 = vadd.f32 %v10514_v26, %v1319_v57  ;;  %v3300_v27 = vld [vmem:[%s12494_s0 + $0x3c8] sm:$0xff] }
 0x292   :  { %v1336_v33 = vadd.f32 %v10514_v26, %v1320_v20  ;;  %v3308_v13 = vunpack.c.l.u8.bf16 %v3300_v27 }
 0x293   :  { %v2791_v53 = vadd.f32 %v10514_v26, %v2775_v50  ;;  %v2776_v55 = vmul.f32 0.003921569, %v7673_v1  ;;  %2837 = vrot.lane.b32.xlu1 %v2819_v48, %s9284_s15  ;;  %v1351_v1 = vmax.f32 %v1335_v46, 0.0  ;;  %v7227_v48 = vpop.f32.mrb[81].mxu1 }
 0x294   :  { %v1352_v30 = vmax.f32 %v1336_v33, 0.0  ;;  %3355 = vmatprep.mubr.bf16.mxu1 %v3308_v13 }
 0x295   :  { %v2792_v14 = vadd.f32 %v10514_v26, %v2776_v55  ;;  %v7674_v63 = vpop.f32.mrb[208].mxu0  ;;  %v2807_v60 = vmax.f32 %v2791_v53, 0.0  ;;  %v7228_v53 = vadd.f32 %v7227_v48, %v7226_v15  ;;  %v7229_v55 = vpop.f32.mrb[82].mxu1  ;;  %v3309_v48 = vunpack.c.h.u8.bf16 %v3299_v39 }
 0x296   :  { %v7675_v18 = vpop.f32.mrb[209].mxu0  ;;  %v7230_v24 = vpop.f32.mrb[83].mxu1  ;;  %3356 = vmatmul.mubr.bf16.vlgmr.msra.gmra.mrb[224].mxu1 %v3307_v7 }
 0x297   :  { %v2808_v37 = vmax.f32 %v2792_v14, 0.0  ;;  %v7676_v8 = vadd.f32 %v7675_v18, %v7674_v63  ;;  %v7677_v50 = vpop.f32.mrb[210].mxu0  ;;  %v1321_v31 = vmul.f32 0.003921569, %v7228_v53  ;;  %v7231_v14 = vadd.f32 %v7230_v24, %v7229_v55  ;;  %8337 = vmatpush3.bf16.msra.mxu1 %v10458_v47 }
 0x298   :  { %v7678_v57 = vpop.f32.mrb[211].mxu0  ;;  %v10560_v18 = vpack.c.bf16 %v1352_v30, %v1351_v1  ;;  %8338 = vmatprep.subr.bf16.mxu1 %v10467_v0 }
 0x299   :  { %v2777_v20 = vmul.f32 0.003921569, %v7676_v8  ;;  %v7679_v10 = vadd.f32 %v7678_v57, %v7677_v50  ;;  %v2820_v43 = vpack.c.bf16 %v2808_v37, %v2807_v60  ;;  %v1337_v33 = vadd.f32 %v10514_v26, %v1321_v31  ;;  %v7232_v50 = vpop.f32.mrb[84].mxu1 }
 0x29a   :  { %v1322_v15 = vmul.f32 0.003921569, %v7231_v14  ;;  %v7233_v31 = vpop.f32.mrb[85].mxu1 }
 0x29b   :  { %v2793_v46 = vadd.f32 %v10514_v26, %v2777_v20  ;;  %v2778_v63 = vmul.f32 0.003921569, %v7679_v10  ;;  %2839 = vrot.lane.b32.xlu0 %v2820_v43, %s9284_s15  ;;  %v1353_v8 = vmax.f32 %v1337_v33, 0.0  ;;  %v3310_v10 = vunpack.c.h.u8.bf16 %v3300_v27  ;;  %8339 = vmatpush3.bf16.msra.mxu1 %v10467_v0  ;;  %v7235_v55 = vpop.f32.mrb[86].mxu1 }
 0x29c   :  { %v1338_v24 = vadd.f32 %v10514_v26, %v1322_v15  ;;  %v7234_v53 = vadd.f32 %v7233_v31, %v7232_v50  ;;  %8340 = vmatprep.subr.bf16.mxu1 %v10477_v34  ;;  %v7236_v14 = vpop.f32.mrb[87].mxu1 }
 0x29d   :  { %v2794_v60 = vadd.f32 %v10514_v26, %v2778_v63  ;;  %v7680_v13 = vpop.f32.mrb[212].mxu0  ;;  %v2809_v43 = vmax.f32 %v2793_v46, 0.0  ;;  %3363 = vmatprep.mubr.bf16.mxu1 %v3310_v10  ;;  %v7238_v10 = vpop.f32.mrb[88].mxu1 }
 0x29e   :  { %v7681_v37 = vpop.f32.mrb[213].mxu0  ;;  %v1354_v30 = vmax.f32 %v1338_v24, 0.0  ;;  %v1323_v63 = vmul.f32 0.003921569, %v7234_v53  ;;  %3364 = vmatmul.mubr.bf16.gmra.mrb[228].mxu1 %v3309_v48 }
 0x29f   :  { %v2810_v7 = vmax.f32 %v2794_v60, 0.0  ;;  %v7682_v47 = vadd.f32 %v7681_v37, %v7680_v13  ;;  %v7683_v1 = vpop.f32.mrb[214].mxu0  ;;  %1600 = vrot.lane.b32.xlu0 %v10093_v25, %s9285_s29  ;;  %v7237_v25 = vadd.f32 %v7236_v14, %v7235_v55  ;;  %8341 = vmatpush3.bf16.msra.mxu1 %v10477_v34 }
 0x2a0   :  { %v7684_v57 = vpop.f32.mrb[215].mxu0  ;;  %v10572_v46 = vpack.c.bf16 %v1354_v30, %v1353_v8  ;;  %v1339_v15 = vadd.f32 %v10514_v26, %v1323_v63  ;;  %8342 = vmatprep.subr.bf16.mxu1 %v10492_v17 }
 0x2a1   :  { %v2779_v20 = vmul.f32 0.003921569, %v7682_v47  ;;  %v7685_v27 = vadd.f32 %v7684_v57, %v7683_v1  ;;  %v10570_v39 = vpack.c.bf16 %v2810_v7, %v2809_v43  ;;  %v1324_v60 = vmul.f32 0.003921569, %v7237_v25 }
 0x2a2   :  { %v1355_v24 = vmax.f32 %v1339_v15, 0.0 }
 0x2a3   :  { %v2795_v33 = vadd.f32 %v10514_v26, %v2779_v20  ;;  %v2780_v0 = vmul.f32 0.003921569, %v7685_v27  ;;  %724 = vrot.lane.b32.xlu0 %v9755_v40, %s9283_s10  ;;  %v1340_v50 = vadd.f32 %v10514_v26, %v1324_v60  ;;  %v7239_v40 = vpop.f32.mrb[89].mxu1  ;;  %8343 = vmatpush3.bf16.msra.mxu1 %v10492_v17 }
 0x2a4   :  { %v7240_v31 = vadd.f32 %v7239_v40, %v7238_v10  ;;  %v7241_v57 = vpop.f32.mrb[90].mxu1  ;;  %8344 = vmatprep.subr.bf16.mxu1 %v10505_v35 }
 0x2a5   :  { %v2796_v13 = vadd.f32 %v10514_v26, %v2780_v0  ;;  %v7686_v37 = vpop.f32.mrb[216].mxu0  ;;  %v2811_v48 = vmax.f32 %v2795_v33, 0.0  ;;  %v1356_v1 = vmax.f32 %v1340_v50, 0.0  ;;  %v7242_v20 = vpop.f32.mrb[91].mxu1 }
 0x2a6   :  { %v7687_v8 = vpop.f32.mrb[217].mxu0  ;;  %v1325_v14 = vmul.f32 0.003921569, %v7240_v31  ;;  %v7243_v63 = vadd.f32 %v7242_v20, %v7241_v57 }
 0x2a7   :  { %v2812_v43 = vmax.f32 %v2796_v13, 0.0  ;;  %v7688_v7 = vadd.f32 %v7687_v8, %v7686_v37  ;;  %v7689_v47 = vpop.f32.mrb[218].mxu0  ;;  %726 = vrot.lane.b32.xlu0 %v9768_v5, %s9283_s10  ;;  %v10588_v27 = vpack.c.bf16 %v1356_v1, %v1355_v24  ;;  %8345 = vmatpush3.bf16.msra.mxu1 %v10505_v35  ;;  %v7244_v8 = vpop.f32.mrb[92].mxu1 }
 0x2a8   :  { %v7690_v34 = vpop.f32.mrb[219].mxu0  ;;  %v1341_v17 = vadd.f32 %v10514_v26, %v1325_v14  ;;  %v1326_v33 = vmul.f32 0.003921569, %v7243_v63  ;;  %8346 = vmatprep.subr.bf16.mxu1 %v10525_v51 }
 0x2a9   :  { %v2781_v30 = vmul.f32 0.003921569, %v7688_v7  ;;  %v7691_v53 = vadd.f32 %v7690_v34, %v7689_v47  ;;  %v10586_v55 = vpack.c.bf16 %v2812_v43, %v2811_v48 }
 0x2aa   :  { %v1357_v13 = vmax.f32 %v1341_v17, 0.0  ;;  %v1342_v37 = vadd.f32 %v10514_v26, %v1326_v33 }
 0x2ab   :  { %v2797_v5 = vadd.f32 %v10514_v26, %v2781_v30  ;;  %v2782_v25 = vmul.f32 0.003921569, %v7691_v53  ;;  %2401 = vrot.lane.b32.xlu0 %v10373_v49, %s9283_s10  ;;  %v7245_v49 = vpop.f32.mrb[93].mxu1  ;;  %8347 = vmatpush3.bf16.msra.mxu1 %v10525_v51 }
 0x2ac   :  { %v1358_v43 = vmax.f32 %v1342_v37, 0.0  ;;  %v7246_v7 = vadd.f32 %v7245_v49, %v7244_v8  ;;  %v7247_v47 = vpop.f32.mrb[94].mxu1  ;;  %8348 = vmatprep.subr.bf16.mxu1 %v10533_v59 }
 0x2ad   :  { %v2798_v0 = vadd.f32 %v10514_v26, %v2782_v25  ;;  %v7692_v15 = vpop.f32.mrb[220].mxu0  ;;  %v2813_v24 = vmax.f32 %v2797_v5, 0.0  ;;  %v7248_v1 = vpop.f32.mrb[95].mxu1  ;;  %v3302_v25 = vld [vmem:[%s12494_s0 + $0x3d8] sm:$0xff] }
 0x2ae   :  { %v7693_v60 = vpop.f32.mrb[221].mxu0  ;;  %v10604_v57 = vpack.c.bf16 %v1358_v43, %v1357_v13  ;;  %v1327_v30 = vmul.f32 0.003921569, %v7246_v7  ;;  %v7249_v53 = vadd.f32 %v7248_v1, %v7247_v47 }
 0x2af   :  { %v2814_v50 = vmax.f32 %v2798_v0, 0.0  ;;  %v7694_v10 = vadd.f32 %v7693_v60, %v7692_v15  ;;  %v7695_v48 = vpop.f32.mrb[222].mxu0  ;;  %1161 = vrot.lane.b32.xlu0 %v9957_v11, %s9284_s15  ;;  %8349 = vmatpush3.bf16.msra.mxu1 %v10533_v59  ;;  %v7330_v15 = vpop.f32.mrb[96].mxu1  ;;  %v3301_v59 = vld [vmem:[%s12494_s0 + $0x3d0] sm:$0xff] }
 0x2b0   :  { %v7696_v35 = vpop.f32.mrb[223].mxu0  ;;  %12511 = vst [vmem:[#allocation12_spill] sm:$0xff] %v10604_v57  ;;  %v1343_v51 = vadd.f32 %v10514_v26, %v1327_v30  ;;  %v1328_v14 = vmul.f32 0.003921569, %v7249_v53  ;;  %8350 = vmatprep.subr.bf16.mxu1 %v10546_v28 }
 0x2b1   :  { %v2783_v40 = vmul.f32 0.003921569, %v7694_v10  ;;  %v7697_v34 = vadd.f32 %v7696_v35, %v7695_v48  ;;  %v10602_v31 = vpack.c.bf16 %v2814_v50, %v2813_v24  ;;  %v7331_v24 = vpop.f32.mrb[97].mxu1  ;;  %v3311_v50 = vunpack.c.l.u8.bf16 %v3301_v59 }
 0x2b2   :  { %v1359_v33 = vmax.f32 %v1343_v51, 0.0  ;;  %v1344_v0 = vadd.f32 %v10514_v26, %v1328_v14  ;;  %v7332_v49 = vadd.f32 %v7331_v24, %v7330_v15  ;;  %v7333_v35 = vpop.f32.mrb[98].mxu1 }
 0x2b3   :  { %v2799_v11 = vadd.f32 %v10514_v26, %v2783_v40  ;;  %v2784_v20 = vmul.f32 0.003921569, %v7697_v34  ;;  %2835 = vrot.lane.b32.xlu0 %v10508_v4, %s9284_s15  ;;  %v3312_v4 = vunpack.c.l.u8.bf16 %v3302_v25  ;;  %8351 = vmatpush3.bf16.msra.mxu1 %v10546_v28  ;;  %v7334_v40 = vpop.f32.mrb[99].mxu1 }
 0x2b4   :  { %v1360_v48 = vmax.f32 %v1344_v0, 0.0  ;;  %v1748_v1 = vmul.f32 0.003921569, %v7332_v49  ;;  %v7335_v30 = vadd.f32 %v7334_v40, %v7333_v35 }
 0x2b5   :  { %v2800_v63 = vadd.f32 %v10514_v26, %v2784_v20  ;;  %v7778_v5 = vpop.f32.mrb[224].mxu0  ;;  %v2815_v60 = vmax.f32 %v2799_v11, 0.0  ;;  %3371 = vmatprep.mubr.bf16.mxu1 %v3312_v4 }
 0x2b6   :  { %v7779_v17 = vpop.f32.mrb[225].mxu0  ;;  %3372 = vmatmul.mubr.bf16.gmra.mrb[232].mxu1 %v3311_v50  ;;  %v10625_v34 = vpack.c.bf16 %v1360_v48, %v1359_v33  ;;  %v1764_v28 = vadd.f32 %v10514_v26, %v1748_v1  ;;  %v1749_v11 = vmul.f32 0.003921569, %v7335_v30  ;;  %v3313_v33 = vunpack.c.h.u8.bf16 %v3301_v59 }
 0x2b7   :  { %v2816_v13 = vmax.f32 %v2800_v63, 0.0  ;;  %v7780_v37 = vadd.f32 %v7779_v17, %v7778_v5  ;;  %v7781_v8 = vpop.f32.mrb[226].mxu0  ;;  %1596 = vrot.lane.b32.xlu0 %v10072_v19, %s9285_s29  ;;  %v7336_v5 = vpop.f32.mrb[100].mxu1  ;;  %v3314_v17 = vunpack.c.h.u8.bf16 %v3302_v25 }
 0x2b8   :  { %v7782_v10 = vpop.f32.mrb[227].mxu0  ;;  %12512 = vst [vmem:[#allocation13_spill] sm:$0xff] %v10625_v34  ;;  %v1765_v63 = vadd.f32 %v10514_v26, %v1749_v11 }
 0x2b9   :  { %v3203_v43 = vmul.f32 0.003921569, %v7780_v37  ;;  %v7783_v7 = vadd.f32 %v7782_v10, %v7781_v8  ;;  %v10623_v47 = vpack.c.bf16 %v2816_v13, %v2815_v60  ;;  %v7337_v13 = vpop.f32.mrb[101].mxu1  ;;  %3379 = vmatprep.mubr.bf16.mxu1 %v3314_v17 }
 0x2ba   :  { %v1781_v8 = vmax.f32 %v1765_v63, 0.0  ;;  %v7338_v24 = vadd.f32 %v7337_v13, %v7336_v5  ;;  %v7339_v50 = vpop.f32.mrb[102].mxu1 }
 0x2bb   :  { %v3219_v19 = vadd.f32 %v10514_v26, %v3203_v43  ;;  %v3204_v53 = vmul.f32 0.003921569, %v7783_v7  ;;  %732 = vrot.lane.b32.xlu0 %v9823_v6, %s9283_s10  ;;  %v1780_v6 = vmax.f32 %v1764_v28, 0.0  ;;  %v7340_v25 = vpop.f32.mrb[103].mxu1  ;;  %v10647_v28 = vld [vmem:[%s12496_s3] sm:$0xff]  }
 0x2bc   :  { %v1750_v59 = vmul.f32 0.003921569, %v7338_v24  ;;  %v7341_v35 = vadd.f32 %v7340_v25, %v7339_v50  ;;  %8276 = vmatprep.subr.bf16.mxu0 %v10647_v28  ;;  %8356 = vmatprep.subr.bf16.mxu1 %v10647_v28 }
 0x2bd   :  { %v3220_v20 = vadd.f32 %v10514_v26, %v3204_v53  ;;  %v7784_v51 = vpop.f32.mrb[228].mxu0  ;;  %v3235_v0 = vmax.f32 %v3219_v19, 0.0 }
 0x2be   :  { %v7785_v14 = vpop.f32.mrb[229].mxu0  ;;  %3380 = vmatmul.mubr.bf16.gmra.mrb[236].mxu1 %v3313_v33  ;;  %v1766_v40 = vadd.f32 %v10514_v26, %v1750_v59  ;;  %v1751_v1 = vmul.f32 0.003921569, %v7341_v35 }
 0x2bf   :  { %v3236_v15 = vmax.f32 %v3220_v20, 0.0  ;;  %v7786_v4 = vadd.f32 %v7785_v14, %v7784_v51  ;;  %v7787_v60 = vpop.f32.mrb[230].mxu0  ;;  %734 = vrot.lane.b32.xlu0 %v9867_v29, %s9283_s10  ;;  %v10640_v29 = vpack.c.bf16 %v1781_v8, %v1780_v6 }
 0x2c0   :  { %v7788_v37 = vpop.f32.mrb[231].mxu0  ;;  %v1767_v20 = vadd.f32 %v10514_v26, %v1751_v1  ;;  %v1782_v17 = vmax.f32 %v1766_v40, 0.0 }
 0x2c1   :  { %v3205_v10 = vmul.f32 0.003921569, %v7786_v4  ;;  %v7789_v48 = vadd.f32 %v7788_v37, %v7787_v60  ;;  %v10635_v49 = vpack.c.bf16 %v3236_v15, %v3235_v0 }
 0x2c2   :  { %v1783_v15 = vmax.f32 %v1767_v20, 0.0 }
 0x2c3   :  { %v3221_v43 = vadd.f32 %v10514_v26, %v3205_v10  ;;  %v3206_v7 = vmul.f32 0.003921569, %v7789_v48  ;;  %2409 = vrot.lane.b32.xlu0 %v10423_v44, %s9283_s10  ;;  %v7342_v44 = vpop.f32.mrb[104].mxu1 }
 0x2c4   :  { %v7343_v33 = vpop.f32.mrb[105].mxu1  ;;  %v10660_v48 = vpack.c.bf16 %v1783_v15, %v1782_v17 }
 0x2c5   :  { %v3222_v30 = vadd.f32 %v10514_v26, %v3206_v7  ;;  %v7790_v19 = vpop.f32.mrb[232].mxu0  ;;  %v2404_v53 = vpop.permute.xlu0 %2403  ;;  %v3237_v51 = vmax.f32 %v3221_v43, 0.0  ;;  %v7344_v4 = vadd.f32 %v7343_v33, %v7342_v44 }
 0x2c6   :  { %2425 = vst.msk [vmem:[#allocation2 + $0x28] sm:$0xff] %vm748_vm1, %v2404_v53  ;;  %v7791_v11 = vpop.f32.mrb[233].mxu0  ;;  %v7345_v60 = vpop.f32.mrb[106].mxu1 }
 0x2c7   :  { %v3238_v14 = vmax.f32 %v3222_v30, 0.0  ;;  %v7792_v63 = vadd.f32 %v7791_v11, %v7790_v19  ;;  %v7793_v5 = vpop.f32.mrb[234].mxu0  ;;  %1169 = vrot.lane.b32.xlu0 %v10013_v61, %s9284_s15  ;;  %v7346_v8 = vpop.f32.mrb[107].mxu1  ;;  %v1752_v24 = vmul.f32 0.003921569, %v7344_v4 }
 0x2c8   :  { %v7794_v0 = vpop.f32.mrb[235].mxu0  ;;  %v7347_v50 = vadd.f32 %v7346_v8, %v7345_v60  ;;  %v7348_v30 = vpop.f32.mrb[108].mxu1  ;;  %v9223_v8 = vld [vmem:[#allocation2 + $0x20] sm:$0xff] }
 0x2c9   :  { %v3207_v6 = vmul.f32 0.003921569, %v7792_v63  ;;  %v7795_v13 = vadd.f32 %v7794_v0, %v7793_v5  ;;  %v10655_v37 = vpack.c.bf16 %v3238_v14, %v3237_v51  ;;  %v1768_v25 = vadd.f32 %v10514_v26, %v1752_v24  ;;  %v7349_v44 = vpop.f32.mrb[109].mxu1 }
 0x2ca   :  { %v1753_v59 = vmul.f32 0.003921569, %v7347_v50  ;;  %v7350_v63 = vadd.f32 %v7349_v44, %v7348_v30  ;;  %v7351_v5 = vpop.f32.mrb[110].mxu1 }
 0x2cb   :  { %v3223_v10 = vadd.f32 %v10514_v26, %v3207_v6  ;;  %v3208_v61 = vmul.f32 0.003921569, %v7795_v13  ;;  %2843 = vrot.lane.b32.xlu0 %v10586_v55, %s9284_s15  ;;  %v1784_v55 = vmax.f32 %v1768_v25, 0.0  ;;  %v7352_v15 = vpop.f32.mrb[111].mxu1 }
 0x2cc   :  { %v1769_v1 = vadd.f32 %v10514_v26, %v1753_v59  ;;  %v1754_v4 = vmul.f32 0.003921569, %v7350_v63  ;;  %v7353_v60 = vadd.f32 %v7352_v15, %v7351_v5 }
 0x2cd   :  { %v3224_v35 = vadd.f32 %v10514_v26, %v3208_v61  ;;  %v7796_v43 = vpop.f32.mrb[236].mxu0  ;;  %v2406_v7 = vpop.permute.xlu0 %2405  ;;  %v3239_v19 = vmax.f32 %v3223_v10, 0.0 }
 0x2ce   :  { %2426 = vst.msk [vmem:[#allocation2 + $0x38] sm:$0xff] %vm748_vm1, %v2406_v7  ;;  %v7797_v40 = vpop.f32.mrb[237].mxu0  ;;  %v1785_v14 = vmax.f32 %v1769_v1, 0.0  ;;  %v1770_v24 = vadd.f32 %v10514_v26, %v1754_v4  ;;  %v1755_v50 = vmul.f32 0.003921569, %v7353_v60 }
 0x2cf   :  { %v3240_v53 = vmax.f32 %v3224_v35, 0.0  ;;  %v7798_v11 = vadd.f32 %v7797_v40, %v7796_v43  ;;  %v7799_v20 = vpop.f32.mrb[238].mxu0  ;;  %1604 = vrot.lane.b32.xlu0 %v10121_v23, %s9285_s29  ;;  %v7354_v35 = vpop.f32.mrb[112].mxu1 }
 0x2d0   :  { %v7800_v51 = vpop.f32.mrb[239].mxu0  ;;  %v10671_v23 = vpack.c.bf16 %v1785_v14, %v1784_v55  ;;  %v1771_v59 = vadd.f32 %v10514_v26, %v1755_v50  ;;  %v1786_v30 = vmax.f32 %v1770_v24, 0.0 }
 0x2d1   :  { %v3209_v17 = vmul.f32 0.003921569, %v7798_v11  ;;  %v7801_v33 = vadd.f32 %v7800_v51, %v7799_v20  ;;  %v3253_v0 = vpack.c.bf16 %v3240_v53, %v3239_v19  ;;  %v7355_v19 = vpop.f32.mrb[113].mxu1 }
 0x2d2   :  { %v1787_v11 = vmax.f32 %v1771_v59, 0.0  ;;  %v7356_v20 = vadd.f32 %v7355_v19, %v7354_v35  ;;  %v7357_v55 = vpop.f32.mrb[114].mxu1 }
 0x2d3   :  { %v3225_v6 = vadd.f32 %v10514_v26, %v3209_v17  ;;  %v3210_v13 = vmul.f32 0.003921569, %v7801_v33  ;;  %3271 = vrot.lane.b32.xlu1 %v3253_v0, %s9285_s29  ;;  %4019 = vrot.lane.b32.xlu0 %v9223_v8, %s9284_s15  ;;  %v7358_v63 = vpop.f32.mrb[115].mxu1 }
 0x2d4   :  { %v1756_v5 = vmul.f32 0.003921569, %v7356_v20  ;;  %v7359_v17 = vadd.f32 %v7358_v63, %v7357_v55  ;;  %v10678_v15 = vpack.c.bf16 %v1787_v11, %v1786_v30 }
 0x2d5   :  { %v3226_v10 = vadd.f32 %v10514_v26, %v3210_v13  ;;  %v7802_v61 = vpop.f32.mrb[240].mxu0  ;;  %v3241_v43 = vmax.f32 %v3225_v6, 0.0 }
 0x2d6   :  { %v7803_v25 = vpop.f32.mrb[241].mxu0  ;;  %v1772_v4 = vadd.f32 %v10514_v26, %v1756_v5  ;;  %v1757_v60 = vmul.f32 0.003921569, %v7359_v17 }
 0x2d7   :  { %v3242_v7 = vmax.f32 %v3226_v10, 0.0  ;;  %v7804_v40 = vadd.f32 %v7803_v25, %v7802_v61  ;;  %v7805_v1 = vpop.f32.mrb[242].mxu0  ;;  %v7360_v61 = vpop.f32.mrb[116].mxu1 }
 0x2d8   :  { %v7806_v53 = vpop.f32.mrb[243].mxu0  ;;  %v1788_v50 = vmax.f32 %v1772_v4, 0.0  ;;  %v1773_v10 = vadd.f32 %v10514_v26, %v1757_v60 }
 0x2d9   :  { %v3254_v44 = vpack.c.bf16 %v3242_v7, %v3241_v43  ;;  %v3211_v51 = vmul.f32 0.003921569, %v7804_v40  ;;  %v7807_v14 = vadd.f32 %v7806_v53, %v7805_v1  ;;  %v7361_v43 = vpop.f32.mrb[117].mxu1 }
 0x2da   :  { %v1789_v40 = vmax.f32 %v1773_v10, 0.0  ;;  %v7362_v1 = vadd.f32 %v7361_v43, %v7360_v61  ;;  %v7363_v30 = vpop.f32.mrb[118].mxu1 }
 0x2db   :  { %3273 = vrot.lane.b32.xlu1 %v3254_v44, %s9285_s29  ;;  %v3227_v33 = vadd.f32 %v10514_v26, %v3211_v51  ;;  %v3212_v0 = vmul.f32 0.003921569, %v7807_v14  ;;  %v7364_v20 = vpop.f32.mrb[119].mxu1 }
 0x2dc   :  { %v10687_v55 = vpack.c.bf16 %v1789_v40, %v1788_v50  ;;  %v1758_v44 = vmul.f32 0.003921569, %v7362_v1  ;;  %v7365_v51 = vadd.f32 %v7364_v20, %v7363_v30 }
 0x2dd   :  { %v3243_v6 = vmax.f32 %v3227_v33, 0.0  ;;  %v3228_v13 = vadd.f32 %v10514_v26, %v3212_v0  ;;  %v7808_v8 = vpop.f32.mrb[244].mxu0 }
 0x2de   :  { %v7809_v24 = vpop.f32.mrb[245].mxu0  ;;  %v1774_v63 = vadd.f32 %v10514_v26, %v1758_v44  ;;  %v1759_v5 = vmul.f32 0.003921569, %v7365_v51 }
 0x2df   :  { %2399 = vrot.lane.b32.xlu1 %v10358_v45, %s9283_s10  ;;  %v3244_v25 = vmax.f32 %v3228_v13, 0.0  ;;  %v7810_v59 = vadd.f32 %v7809_v24, %v7808_v8  ;;  %v7811_v35 = vpop.f32.mrb[246].mxu0  ;;  %v7366_v13 = vpop.f32.mrb[120].mxu1 }
 0x2e0   :  { %v7812_v7 = vpop.f32.mrb[247].mxu0  ;;  %v1790_v60 = vmax.f32 %v1774_v63, 0.0  ;;  %v7367_v50 = vpop.f32.mrb[121].mxu1 }
 0x2e1   :  { %v3213_v19 = vmul.f32 0.003921569, %v7810_v59  ;;  %v7813_v53 = vadd.f32 %v7812_v7, %v7811_v35  ;;  %v10685_v11 = vpack.c.bf16 %v3244_v25, %v3243_v6  ;;  %v1775_v6 = vadd.f32 %v10514_v26, %v1759_v5  ;;  %v7369_v7 = vpop.f32.mrb[122].mxu1 }
 0x2e2   :  { %v7368_v25 = vadd.f32 %v7367_v50, %v7366_v13  ;;  %v7370_v30 = vpop.f32.mrb[123].mxu1 }
 0x2e3   :  { %1159 = vrot.lane.b32.xlu1 %v9944_v42, %s9284_s15  ;;  %v3229_v45 = vadd.f32 %v10514_v26, %v3213_v19  ;;  %v3214_v14 = vmul.f32 0.003921569, %v7813_v53  ;;  %v1791_v61 = vmax.f32 %v1775_v6, 0.0  ;;  %v7371_v53 = vadd.f32 %v7370_v30, %v7369_v7  ;;  %v7372_v5 = vpop.f32.mrb[124].mxu1 }
 0x2e4   :  { %v1760_v1 = vmul.f32 0.003921569, %v7368_v25 }
 0x2e5   :  { %v3245_v17 = vmax.f32 %v3229_v45, 0.0  ;;  %v3230_v33 = vadd.f32 %v10514_v26, %v3214_v14  ;;  %v7814_v0 = vpop.f32.mrb[248].mxu0  ;;  %v10699_v40 = vpack.c.bf16 %v1791_v61, %v1790_v60  ;;  %v1761_v14 = vmul.f32 0.003921569, %v7371_v53  ;;  %v7373_v60 = vpop.f32.mrb[125].mxu1 }
 0x2e6   :  { %v7815_v4 = vpop.f32.mrb[249].mxu0  ;;  %v1776_v20 = vadd.f32 %v10514_v26, %v1760_v1  ;;  %v7374_v13 = vadd.f32 %v7373_v60, %v7372_v5 }
 0x2e7   :  { %2833 = vrot.lane.b32.xlu1 %v10480_v52, %s9284_s15  ;;  %v3246_v8 = vmax.f32 %v3230_v33, 0.0  ;;  %v7816_v42 = vadd.f32 %v7815_v4, %v7814_v0  ;;  %v7817_v24 = vpop.f32.mrb[250].mxu0  ;;  %v1777_v4 = vadd.f32 %v10514_v26, %v1761_v14 }
 0x2e8   :  { %v7818_v10 = vpop.f32.mrb[251].mxu0  ;;  %v1762_v61 = vmul.f32 0.003921569, %v7374_v13 }
 0x2e9   :  { %v10697_v59 = vpack.c.bf16 %v3246_v8, %v3245_v17  ;;  %v3215_v35 = vmul.f32 0.003921569, %v7816_v42  ;;  %v7819_v43 = vadd.f32 %v7818_v10, %v7817_v24  ;;  %v1793_v24 = vmax.f32 %v1777_v4, 0.0  ;;  %v7375_v10 = vpop.f32.mrb[126].mxu1 }
 0x2ea   :  { %v7376_v25 = vpop.f32.mrb[127].mxu1  ;;  %v1778_v1 = vadd.f32 %v10514_v26, %v1762_v61 }
 0x2eb   :  { %1594 = vrot.lane.b32.xlu1 %v10058_v38, %s9285_s29  ;;  %v3231_v52 = vadd.f32 %v10514_v26, %v3215_v35  ;;  %v3216_v19 = vmul.f32 0.003921569, %v7819_v43  ;;  %v1792_v38 = vmax.f32 %v1776_v20, 0.0  ;;  %v7377_v7 = vadd.f32 %v7376_v25, %v7375_v10  ;;  %v7458_v53 = vpop.f32.mrb[128].mxu1 }
 0x2ed   :  { %v3247_v44 = vmax.f32 %v3231_v52, 0.0  ;;  %v3232_v51 = vadd.f32 %v10514_v26, %v3216_v19  ;;  %v7820_v45 = vpop.f32.mrb[252].mxu0  ;;  %v10714_v43 = vpack.c.bf16 %v1793_v24, %v1792_v38  ;;  %v1763_v19 = vmul.f32 0.003921569, %v7377_v7 }
 0x2ee   :  { %v7821_v63 = vpop.f32.mrb[253].mxu0 }
 0x2ef   :  { %3267 = vrot.lane.b32.xlu1 %v10635_v49, %s9285_s29  ;;  %v3248_v17 = vmax.f32 %v3232_v51, 0.0  ;;  %v7822_v33 = vadd.f32 %v7821_v63, %v7820_v45  ;;  %v7823_v0 = vpop.f32.mrb[254].mxu0  ;;  %12513 = vst [vmem:[#allocation14_spill] sm:$0xff] %v10714_v43  ;;  %v7459_v51 = vpop.f32.mrb[129].mxu1 }
 0x2f0   :  { %v7824_v6 = vpop.f32.mrb[255].mxu0  ;;  %v7460_v45 = vadd.f32 %v7459_v51, %v7458_v53  ;;  %v7461_v5 = vpop.f32.mrb[130].mxu1 }
 0x2f1   :  { %v3217_v8 = vmul.f32 0.003921569, %v7822_v33  ;;  %v7825_v42 = vadd.f32 %v7824_v6, %v7823_v0  ;;  %v10709_v50 = vpack.c.bf16 %v3248_v17, %v3247_v44  ;;  %v1794_v44 = vmax.f32 %v1778_v1, 0.0  ;;  %v7462_v33 = vpop.f32.mrb[131].mxu1 }
 0x2f2   :  { %v2150_v17 = vmul.f32 0.003921569, %v7460_v45  ;;  %v7463_v38 = vadd.f32 %v7462_v33, %v7461_v5  ;;  %v7464_v60 = vpop.f32.mrb[132].mxu1 }
 0x2f3   :  { %3269 = vrot.lane.b32.xlu1 %v10655_v37, %s9285_s29  ;;  %v3233_v49 = vadd.f32 %v10514_v26, %v3217_v8  ;;  %v3218_v35 = vmul.f32 0.003921569, %v7825_v42  ;;  %v1779_v37 = vadd.f32 %v10514_v26, %v1763_v19  ;;  %v7465_v8 = vpop.f32.mrb[133].mxu1 }
 0x2f4   :  { %v2151_v4 = vmul.f32 0.003921569, %v7463_v38  ;;  %v7466_v42 = vadd.f32 %v7465_v8, %v7464_v60  ;;  %v7467_v10 = vpop.f32.mrb[134].mxu1 }
 0x2f5   :  { %v3249_v30 = vmax.f32 %v3233_v49, 0.0  ;;  %v3234_v52 = vadd.f32 %v10514_v26, %v3218_v35  ;;  %v1795_v63 = vmax.f32 %v1779_v37, 0.0  ;;  %v7468_v25 = vpop.f32.mrb[135].mxu1 }
 0x2f6   :  { %v2167_v13 = vadd.f32 %v10514_v26, %v2151_v4  ;;  %v2152_v61 = vmul.f32 0.003921569, %v7466_v42  ;;  %v7469_v49 = vadd.f32 %v7468_v25, %v7467_v10  ;;  %v7470_v1 = vpop.f32.mrb[136].mxu1 }
 0x2f7   :  { %2407 = vrot.lane.b32.xlu1 %v10408_v32, %s9283_s10  ;;  %v3250_v20 = vmax.f32 %v3234_v52, 0.0  ;;  %v10725_v0 = vpack.c.bf16 %v1795_v63, %v1794_v44  ;;  %v2166_v32 = vadd.f32 %v10514_v26, %v2150_v17  ;;  %v7471_v19 = vpop.f32.mrb[137].mxu1 }
 0x2f8   :  { %v2183_v24 = vmax.f32 %v2167_v13, 0.0  ;;  %v2168_v35 = vadd.f32 %v10514_v26, %v2152_v61 }
 0x2f9   :  { %v10721_v14 = vpack.c.bf16 %v3250_v20, %v3249_v30  ;;  %12514 = vst [vmem:[#allocation15_spill] sm:$0xff] %v10725_v0  ;;  %v2182_v6 = vmax.f32 %v2166_v32, 0.0  ;;  %v7473_v20 = vpop.f32.mrb[138].mxu1 }
 0x2fa   :  { %v2184_v30 = vmax.f32 %v2168_v35, 0.0  ;;  %v7474_v44 = vpop.f32.mrb[139].mxu1 }
 0x2fb   :  { %1167 = vrot.lane.b32.xlu1 %v9992_v36, %s9284_s15  ;;  %v2198_v36 = vpack.c.bf16 %v2183_v24, %v2182_v6  ;;  %v7475_v45 = vadd.f32 %v7474_v44, %v7473_v20  ;;  %v7476_v63 = vpop.f32.mrb[140].mxu1 }
 0x2fc   :  { %v7477_v33 = vpop.f32.mrb[141].mxu1 }
 0x2fd   :  { %2206 = vst.msk [vmem:[#allocation2 + $0x88] sm:$0xff] %vm345_vm0, %v2198_v36  ;;  %v2155_v17 = vmul.f32 0.003921569, %v7475_v45  ;;  %v7478_v38 = vadd.f32 %v7477_v33, %v7476_v63  ;;  %v10765_v45 = vld [vmem:[%s12496_s3 + $0x10] sm:$0xff]  }
 0x2ff   :  { %2841 = vrot.lane.b32.xlu1 %v10570_v39, %s9284_s15  ;;  %v2153_v39 = vmul.f32 0.003921569, %v7469_v49  ;;  %v2156_v60 = vmul.f32 0.003921569, %v7478_v38 }
 0x301   :  { %v2169_v52 = vadd.f32 %v10514_v26, %v2153_v39 }
 0x303   :  { %1602 = vrot.lane.b32.xlu1 %v10104_v41, %s9285_s29  ;;  %v2185_v53 = vmax.f32 %v2169_v52, 0.0  ;;  %v7472_v41 = vadd.f32 %v7471_v19, %v7470_v1 }
 0x305   :  { %v2838_v7 = vpop.permute.xlu1 %2837  ;;  %v2199_v37 = vpack.c.bf16 %v2185_v53, %v2184_v30  ;;  %v2154_v51 = vmul.f32 0.003921569, %v7472_v41  ;;  %v9125_v30 = vld [vmem:[%s12496_s3 + $0x8] sm:$0xff]  }
 0x306   :  { %2859 = vst.msk [vmem:[#allocation2 + $0x28] sm:$0xff] %vm1183_vm2, %v2838_v7 }
 0x307   :  { %3275 = vrot.lane.b32.xlu1 %v10685_v11, %s9285_s29  ;;  %2207 = vst.msk [vmem:[#allocation2 + $0x98] sm:$0xff] %vm345_vm0, %v2199_v37  ;;  %v10745_v11 = vld [vmem:[%s12495_s2] ss:$0 sm:$0xff] }
 0x308   :  { %v2170_v26 = vadd.f32 %v10745_v11, %v2154_v51  ;;  %v2171_v4 = vadd.f32 %v10745_v11, %v2155_v17  ;;  %v2172_v42 = vadd.f32 %v10745_v11, %v2156_v60 }
 0x30a   :  { %v2186_v32 = vmax.f32 %v2170_v26, 0.0  ;;  %v2187_v13 = vmax.f32 %v2171_v4, 0.0  ;;  %v2188_v49 = vmax.f32 %v2172_v42, 0.0 }
 0x30b   :  { %3277 = vrot.lane.b32.xlu1 %v10697_v59, %s9285_s29  ;;  %v7479_v59 = vpop.f32.mrb[142].mxu1 }
 0x30c   :  { %v7480_v8 = vpop.f32.mrb[143].mxu1  ;;  %v2200_v10 = vpack.c.bf16 %v2187_v13, %v2186_v32  ;;  %v10776_v32 = vld [vmem:[%s12496_s3 + $0x18] sm:$0xff]  }
 0x30d   :  { %v2840_v5 = vpop.permute.xlu0 %2839  ;;  %v7481_v24 = vadd.f32 %v7480_v8, %v7479_v59  ;;  %v7482_v36 = vpop.f32.mrb[144].mxu1 }
 0x30e   :  { %2860 = vst.msk [vmem:[#allocation2 + $0x38] sm:$0xff] %vm1183_vm2, %v2840_v5  ;;  %v7483_v7 = vpop.f32.mrb[145].mxu1 }
 0x30f   :  { %v2157_v61 = vmul.f32 0.003921569, %v7481_v24  ;;  %2208 = vst.msk [vmem:[#allocation2 + $0xa8] sm:$0xff] %vm345_vm0, %v2200_v10  ;;  %v7484_v39 = vadd.f32 %v7483_v7, %v7482_v36  ;;  %v7485_v1 = vpop.f32.mrb[146].mxu1  ;;  %v10787_v24 = vld [vmem:[%s12496_s3 + $0x20] sm:$0xff]  }
 0x310   :  { %v7486_v20 = vpop.f32.mrb[147].mxu1 }
 0x311   :  { %v1601_v6 = vpop.permute.xlu0 %1600  ;;  %v2173_v35 = vadd.f32 %v10745_v11, %v2157_v61  ;;  %v2158_v41 = vmul.f32 0.003921569, %v7484_v39  ;;  %v7487_v37 = vadd.f32 %v7486_v20, %v7485_v1  ;;  %v7488_v26 = vpop.f32.mrb[148].mxu1 }
 0x312   :  { %1622 = vst.msk [vmem:[#allocation2 + $0x30] sm:$0xff] %vm1618_vm3, %v1601_v6  ;;  %v7489_v33 = vpop.f32.mrb[149].mxu1 }
 0x313   :  { %v2189_v52 = vmax.f32 %v2173_v35, 0.0  ;;  %v2174_v51 = vadd.f32 %v10745_v11, %v2158_v41  ;;  %v2159_v63 = vmul.f32 0.003921569, %v7487_v37  ;;  %v7490_v38 = vadd.f32 %v7489_v33, %v7488_v26  ;;  %v7491_v59 = vpop.f32.mrb[150].mxu1 }
 0x314   :  { %v7492_v13 = vpop.f32.mrb[151].mxu1 }
 0x315   :  { %v725_v25 = vpop.permute.xlu0 %724  ;;  %v2201_v44 = vpack.c.bf16 %v2189_v52, %v2188_v49  ;;  %v2190_v17 = vmax.f32 %v2174_v51, 0.0  ;;  %v2160_v6 = vmul.f32 0.003921569, %v7490_v38  ;;  %v7493_v8 = vadd.f32 %v7492_v13, %v7491_v59  ;;  %v7494_v36 = vpop.f32.mrb[152].mxu1  ;;  %v3303_v49 = vld [vmem:[%s12494_s0 + $0x3e0] sm:$0xff]  ;;  %v10815_v38 = vld [vmem:[%s12494_s0 + $0x3f8] sm:$0xff] }
 0x316   :  { %749 = vst.msk [vmem:[#allocation2] sm:$0xff] %vm748_vm1, %v725_v25  ;;  %v7495_v7 = vpop.f32.mrb[153].mxu1  ;;  %v3315_v1 = vunpack.c.l.u8.bf16 %v3303_v49 }
 0x317   :  { %2209 = vst.msk [vmem:[#allocation2 + $0xb8] sm:$0xff] %vm345_vm0, %v2201_v44  ;;  %v2176_v42 = vadd.f32 %v10745_v11, %v2160_v6  ;;  %v2161_v10 = vmul.f32 0.003921569, %v7493_v8  ;;  %v7496_v52 = vadd.f32 %v7495_v7, %v7494_v36  ;;  %v10835_v7 = vld [vmem:[%s12496_s3 + $0x38] sm:$0xff]  }
 0x319   :  { %v727_v19 = vpop.permute.xlu0 %726  ;;  %v4013_v53 = vld [vmem:[#allocation2 + $0x30] sm:$0xff]  ;;  %v2192_v25 = vmax.f32 %v2176_v42, 0.0  ;;  %v2177_v35 = vadd.f32 %v10745_v11, %v2161_v10  ;;  %v2162_v44 = vmul.f32 0.003921569, %v7496_v52 }
 0x31a   :  { %750 = vst.msk [vmem:[#allocation2 + $0x10] sm:$0xff] %vm748_vm1, %v727_v19  ;;  %4023 = vrot.lane.b32.xlu0 %v4013_v53, %s9284_s15  ;;  %8273 = vmatmul.mubr.bf16.vlgmr.msra.gmra.mrb[0].mxu0 %v4013_v53  ;;  %v7497_v19 = vpop.f32.mrb[154].mxu1  ;;  %v10805_v53 = vld [vmem:[%s12496_s3 + $0x28] sm:$0xff]  }
 0x31b   :  { %8277 = vmatpush3.bf16.msra.mxu0 %v10647_v28  ;;  %v2175_v28 = vadd.f32 %v10745_v11, %v2159_v63  ;;  %v2193_v41 = vmax.f32 %v2177_v35, 0.0  ;;  %v2178_v26 = vadd.f32 %v10745_v11, %v2162_v44 }
 0x31c   :  { %8278 = vmatprep.subr.bf16.mxu0 %v9125_v30 }
 0x31d   :  { %v2402_v5 = vpop.permute.xlu0 %2401  ;;  %v2191_v4 = vmax.f32 %v2175_v28, 0.0  ;;  %v2203_v63 = vpack.c.bf16 %v2193_v41, %v2192_v25  ;;  %v2194_v6 = vmax.f32 %v2178_v26, 0.0 }
 0x31e   :  { %2424 = vst.msk [vmem:[#allocation2 + $0x18] sm:$0xff] %vm748_vm1, %v2402_v5  ;;  %736 = vrot.lane.b32.xlu0 %v9903_v3, %s9283_s10 }
 0x31f   :  { %8279 = vmatpush3.bf16.msra.mxu0 %v9125_v30  ;;  %v2202_v3 = vpack.c.bf16 %v2191_v4, %v2190_v17  ;;  %2211 = vst.msk [vmem:[#allocation2 + $0xd8] sm:$0xff] %vm345_vm0, %v2203_v63  ;;  %v3317_v4 = vunpack.c.h.u8.bf16 %v3303_v49 }
 0x320   :  { %8280 = vmatprep.subr.bf16.mxu0 %v10765_v45 }
 0x321   :  { %v1162_v60 = vpop.permute.xlu0 %1161  ;;  %2210 = vst.msk [vmem:[#allocation2 + $0xc8] sm:$0xff] %vm345_vm0, %v2202_v3 }
 0x322   :  { %1185 = vst.msk [vmem:[#allocation2 + $0x10] sm:$0xff] %vm1183_vm2, %v1162_v60  ;;  %738 = vrot.lane.b32.xlu0 %v9933_v21, %s9283_s10  ;;  %v3304_v21 = vld [vmem:[%s12494_s0 + $0x3e8] sm:$0xff] }
 0x323   :  { %8281 = vmatpush3.bf16.msra.mxu0 %v10765_v45  ;;  %v3316_v39 = vunpack.c.l.u8.bf16 %v3304_v21  ;;  %v3318_v30 = vunpack.c.h.u8.bf16 %v3304_v21 }
 0x324   :  { %8282 = vmatprep.subr.bf16.mxu0 %v10776_v32 }
 0x325   :  { %v2836_v61 = vpop.permute.xlu0 %2835  ;;  %3387 = vmatprep.mubr.bf16.mxu1 %v3316_v39 }
 0x326   :  { %2858 = vst.msk [vmem:[#allocation2 + $0x18] sm:$0xff] %vm1183_vm2, %v2836_v61  ;;  %2413 = vrot.lane.b32.xlu0 %v10460_v58, %s9283_s10  ;;  %v7498_v58 = vpop.f32.mrb[155].mxu1  ;;  %3388 = vmatmul.mubr.bf16.gmra.mrb[240].mxu1 %v3315_v1  ;;  %v3320_v61 = vunpack.c.l.u8.bf16 %v10815_v38 }
 0x327   :  { %8283 = vmatpush3.bf16.msra.mxu0 %v10776_v32  ;;  %v7499_v37 = vadd.f32 %v7498_v58, %v7497_v19  ;;  %v7500_v51 = vpop.f32.mrb[156].mxu1  ;;  %3395 = vmatprep.mubr.bf16.mxu1 %v3318_v30 }
 0x328   :  { %8284 = vmatprep.subr.bf16.mxu0 %v10787_v24  ;;  %v7501_v5 = vpop.f32.mrb[157].mxu1 }
 0x329   :  { %v1597_v20 = vpop.permute.xlu0 %1596  ;;  %v2163_v17 = vmul.f32 0.003921569, %v7499_v37  ;;  %v7502_v28 = vadd.f32 %v7501_v5, %v7500_v51  ;;  %v7503_v33 = vpop.f32.mrb[158].mxu1 }
 0x32a   :  { %1620 = vst.msk [vmem:[#allocation2 + $0x10] sm:$0xff] %vm1618_vm3, %v1597_v20  ;;  %1173 = vrot.lane.b32.xlu0 %v10048_v62, %s9284_s15  ;;  %v10821_v62 = vld [vmem:[%s12496_s3 + $0x30] sm:$0xff]   ;;  %v7504_v59 = vpop.f32.mrb[159].mxu1 }
 0x32b   :  { %8285 = vmatpush3.bf16.msra.mxu0 %v10787_v24  ;;  %v2179_v13 = vadd.f32 %v10745_v11, %v2163_v17  ;;  %v2164_v3 = vmul.f32 0.003921569, %v7502_v28  ;;  %v7505_v8 = vadd.f32 %v7504_v59, %v7503_v33  ;;  %v7586_v42 = vpop.f32.mrb[160].mxu1  ;;  %v3305_v20 = vld [vmem:[%s12494_s0 + $0x3f0] sm:$0xff] }
 0x32c   :  { %8286 = vmatprep.subr.bf16.mxu0 %v10805_v53  ;;  %v7587_v10 = vpop.f32.mrb[161].mxu1  ;;  %v3319_v33 = vunpack.c.l.u8.bf16 %v3305_v20 }
 0x32d   :  { %v733_v60 = vpop.permute.xlu0 %732  ;;  %v2195_v25 = vmax.f32 %v2179_v13, 0.0  ;;  %v2180_v36 = vadd.f32 %v10745_v11, %v2164_v3  ;;  %v2165_v21 = vmul.f32 0.003921569, %v7505_v8  ;;  %v7588_v49 = vadd.f32 %v7587_v10, %v7586_v42  ;;  %v7589_v35 = vpop.f32.mrb[162].mxu1 }
 0x32e   :  { %753 = vst.msk [vmem:[#allocation2 + $0x40] sm:$0xff] %vm748_vm1, %v733_v60  ;;  %2847 = vrot.lane.b32.xlu0 %v10623_v47, %s9284_s15  ;;  %v7590_v39 = vpop.f32.mrb[163].mxu1  ;;  %3396 = vmatmul.mubr.bf16.gmra.mrb[244].mxu1 %v3317_v4  ;;  %v3322_v60 = vunpack.c.h.u8.bf16 %v10815_v38 }
 0x32f   :  { %8287 = vmatpush3.bf16.msra.mxu0 %v10805_v53  ;;  %v2204_v1 = vpack.c.bf16 %v2195_v25, %v2194_v6  ;;  %v2196_v30 = vmax.f32 %v2180_v36, 0.0  ;;  %v2181_v52 = vadd.f32 %v10745_v11, %v2165_v21  ;;  %v7592_v19 = vpop.f32.mrb[164].mxu1  ;;  %v7591_v41 = vadd.f32 %v7590_v39, %v7589_v35  ;;  %3403 = vmatprep.mubr.bf16.mxu1 %v3320_v61 }
 0x330   :  { %8288 = vmatprep.subr.bf16.mxu0 %v10821_v62  ;;  %v7593_v58 = vpop.f32.mrb[165].mxu1  ;;  %v2552_v59 = vmul.f32 0.003921569, %v7588_v49 }
 0x331   :  { %v735_v47 = vpop.permute.xlu0 %734  ;;  %2212 = vst.msk [vmem:[#allocation2 + $0xe8] sm:$0xff] %vm345_vm0, %v2204_v1  ;;  %v2197_v44 = vmax.f32 %v2181_v52, 0.0  ;;  %v7594_v37 = vadd.f32 %v7593_v58, %v7592_v19  ;;  %v7595_v51 = vpop.f32.mrb[166].mxu1  ;;  %v2553_v6 = vmul.f32 0.003921569, %v7591_v41 }
 0x332   :  { %754 = vst.msk [vmem:[#allocation2 + $0x50] sm:$0xff] %vm748_vm1, %v735_v47  ;;  %1608 = vrot.lane.b32.xlu0 %v10156_v9, %s9285_s29  ;;  %v10850_v9 = vld [vmem:[%s12496_s3 + $0x80] sm:$0xff]   ;;  %v7596_v63 = vpop.f32.mrb[167].mxu1  ;;  %v2568_v25 = vadd.f32 %v10745_v11, %v2552_v59 }
 0x333   :  { %8289 = vmatpush3.bf16.msra.mxu0 %v10821_v62  ;;  %v2205_v26 = vpack.c.bf16 %v2197_v44, %v2196_v30  ;;  %v7597_v17 = vadd.f32 %v7596_v63, %v7595_v51  ;;  %v7598_v28 = vpop.f32.mrb[168].mxu1  ;;  %v2569_v38 = vadd.f32 %v10745_v11, %v2553_v6  ;;  %v2554_v41 = vmul.f32 0.003921569, %v7594_v37 }
 0x334   :  { %8290 = vmatprep.subr.bf16.mxu0 %v10835_v7  ;;  %v7599_v4 = vpop.f32.mrb[169].mxu1  ;;  %v2584_v30 = vmax.f32 %v2568_v25, 0.0  ;;  %v3321_v63 = vunpack.c.h.u8.bf16 %v3305_v20 }
 0x335   :  { %v2410_v5 = vpop.permute.xlu0 %2409  ;;  %2213 = vst.msk [vmem:[#allocation2 + $0xf8] sm:$0xff] %vm345_vm0, %v2205_v26  ;;  %v7600_v13 = vadd.f32 %v7599_v4, %v7598_v28  ;;  %v7601_v3 = vpop.f32.mrb[170].mxu1  ;;  %v2585_v19 = vmax.f32 %v2569_v38, 0.0  ;;  %v2555_v58 = vmul.f32 0.003921569, %v7597_v17  ;;  %v2570_v4 = vadd.f32 %v10745_v11, %v2554_v41 }
 0x336   :  { %2428 = vst.msk [vmem:[#allocation2 + $0x58] sm:$0xff] %vm748_vm1, %v2410_v5  ;;  %v7602_v8 = vpop.f32.mrb[171].mxu1  ;;  %3404 = vmatmul.mubr.bf16.gmra.mrb[248].mxu1 %v3319_v33 }
 0x337   :  { %8291 = vmatpush3.bf16.msra.mxu0 %v10835_v7  ;;  %v7603_v10 = vadd.f32 %v7602_v8, %v7601_v3  ;;  %v7604_v61 = vpop.f32.mrb[172].mxu1  ;;  %3411 = vmatprep.mubr.bf16.mxu1 %v3322_v60  ;;  %v2571_v60 = vadd.f32 %v10745_v11, %v2555_v58  ;;  %v10869_v37 = vpack.c.bf16 %v2585_v19, %v2584_v30 }
 0x338   :  { %8296 = vmatprep.subr.bf16.mxu0 %v10850_v9  ;;  %v7605_v36 = vpop.f32.mrb[173].mxu1 }
 0x339   :  { %v1170_v42 = vpop.permute.xlu0 %1169  ;;  %v10860_v21 = vadd.f32 %v7605_v36, %v7604_v61  ;;  %v7607_v49 = vpop.f32.mrb[174].mxu1  ;;  %v2557_v41 = vmul.f32 0.003921569, %v7603_v10 }
 0x33a   :  { %1189 = vst.msk [vmem:[#allocation2 + $0x50] sm:$0xff] %vm1183_vm2, %v1170_v42  ;;  %v7608_v35 = vpop.f32.mrb[175].mxu1 }
 0x33b   :  { %v10862_v47 = vadd.f32 %v7608_v35, %v7607_v49  ;;  %v7610_v1 = vpop.f32.mrb[176].mxu1  ;;  %v2586_v49 = vmax.f32 %v2570_v4, 0.0  ;;  %v2587_v35 = vmax.f32 %v2571_v60, 0.0  ;;  %v2573_v10 = vadd.f32 %v10745_v11, %v2557_v41 }
 0x33c   :  { %v7611_v52 = vpop.f32.mrb[177].mxu1 }
 0x33d   :  { %v2844_v39 = vpop.permute.xlu0 %2843  ;;  %v7612_v44 = vadd.f32 %v7611_v52, %v7610_v1  ;;  %v7613_v51 = vpop.f32.mrb[178].mxu1  ;;  %v2556_v52 = vmul.f32 0.003921569, %v7600_v13 }
 0x33e   :  { %2862 = vst.msk [vmem:[#allocation2 + $0x58] sm:$0xff] %vm1183_vm2, %v2844_v39  ;;  %v7614_v28 = vpop.f32.mrb[179].mxu1  ;;  %3412 = vmatmul.mubr.bf16.gmra.mrb[252].mxu1 %v3321_v63 }
 0x33f   :  { %v2560_v26 = vmul.f32 0.003921569, %v7612_v44  ;;  %v7615_v33 = vadd.f32 %v7614_v28, %v7613_v51  ;;  %v7616_v59 = vpop.f32.mrb[180].mxu1  ;;  %v2572_v13 = vadd.f32 %v10745_v11, %v2556_v52 }
 0x340   :  { %v7617_v3 = vpop.f32.mrb[181].mxu1 }
 0x341   :  { %v1605_v5 = vpop.permute.xlu0 %1604  ;;  %v2576_v6 = vadd.f32 %v10745_v11, %v2560_v26  ;;  %v2561_v17 = vmul.f32 0.003921569, %v7615_v33  ;;  %v7618_v8 = vadd.f32 %v7617_v3, %v7616_v59  ;;  %v7619_v20 = vpop.f32.mrb[182].mxu1 }
 0x342   :  { %1624 = vst.msk [vmem:[#allocation2 + $0x50] sm:$0xff] %vm1618_vm3, %v1605_v5  ;;  %v7620_v38 = vpop.f32.mrb[183].mxu1 }
 0x343   :  { %v2592_v61 = vmax.f32 %v2576_v6, 0.0  ;;  %v2577_v25 = vadd.f32 %v10745_v11, %v2561_v17  ;;  %v2562_v36 = vmul.f32 0.003921569, %v7618_v8  ;;  %v7621_v39 = vadd.f32 %v7620_v38, %v7619_v20  ;;  %v7622_v1 = vpop.f32.mrb[184].mxu1 }
 0x344   :  { %v7623_v19 = vpop.f32.mrb[185].mxu1  ;;  %v10877_v6 = vpack.c.bf16 %v2587_v35, %v2586_v49  ;;  %v2558_v38 = vmul.f32 0.003921569, %v10860_v21 }
 0x345   :  { %v3272_v42 = vpop.permute.xlu1 %3271  ;;  %v2593_v58 = vmax.f32 %v2577_v25, 0.0  ;;  %v2578_v30 = vadd.f32 %v10745_v11, %v2562_v36  ;;  %v2563_v44 = vmul.f32 0.003921569, %v7621_v39  ;;  %v7624_v51 = vadd.f32 %v7623_v19, %v7622_v1  ;;  %v7625_v63 = vpop.f32.mrb[186].mxu1 }
 0x346   :  { %3293 = vst.msk [vmem:[#allocation2 + $0x28] sm:$0xff] %vm1618_vm3, %v3272_v42  ;;  %v7626_v28 = vpop.f32.mrb[187].mxu1  ;;  %v2559_v19 = vmul.f32 0.003921569, %v10862_v47 }
 0x347   :  { %v10874_v5 = vpack.c.bf16 %v2593_v58, %v2592_v61  ;;  %v2594_v26 = vmax.f32 %v2578_v30, 0.0  ;;  %v2579_v33 = vadd.f32 %v10745_v11, %v2563_v44  ;;  %v2564_v59 = vmul.f32 0.003921569, %v7624_v51  ;;  %v7628_v60 = vpop.f32.mrb[188].mxu1 }
 0x348   :  { %v7627_v4 = vadd.f32 %v7626_v28, %v7625_v63  ;;  %v7629_v3 = vpop.f32.mrb[189].mxu1  ;;  %v2588_v58 = vmax.f32 %v2572_v13, 0.0  ;;  %v2589_v30 = vmax.f32 %v2573_v10, 0.0  ;;  %v2575_v10 = vadd.f32 %v10745_v11, %v2559_v19 }
 0x349   :  { %v2595_v20 = vmax.f32 %v2579_v33, 0.0  ;;  %v2580_v42 = vadd.f32 %v10745_v11, %v2564_v59  ;;  %v7630_v25 = vadd.f32 %v7629_v3, %v7628_v60  ;;  %v7631_v36 = vpop.f32.mrb[190].mxu1  ;;  %v2574_v60 = vadd.f32 %v10745_v11, %v2558_v38 }
 0x34a   :  { %v2565_v61 = vmul.f32 0.003921569, %v7627_v4  ;;  %v7632_v49 = vpop.f32.mrb[191].mxu1  ;;  %v2591_v19 = vmax.f32 %v2575_v10, 0.0 }
 0x34b   :  { %v10885_v35 = vpack.c.bf16 %v2595_v20, %v2594_v26  ;;  %v2596_v39 = vmax.f32 %v2580_v42, 0.0  ;;  %v2566_v52 = vmul.f32 0.003921569, %v7630_v25  ;;  %v7714_v41 = vpop.f32.mrb[192].mxu1  ;;  %v7633_v44 = vadd.f32 %v7632_v49, %v7631_v36 }
 0x34c   :  { %v2581_v1 = vadd.f32 %v10745_v11, %v2565_v61  ;;  %v7715_v51 = vpop.f32.mrb[193].mxu1  ;;  %v10900_v42 = vpack.c.bf16 %v2589_v30, %v2588_v58 }
 0x34d   :  { %v3274_v17 = vpop.permute.xlu1 %3273  ;;  %v4012_v8 = vld [vmem:[#allocation2 + $0x28] sm:$0xff]  ;;  %12515 = vst [vmem:[#allocation16_spill] sm:$0xff] %v10885_v35  ;;  %v2582_v33 = vadd.f32 %v10745_v11, %v2566_v52  ;;  %v10890_v59 = vadd.f32 %v7715_v51, %v7714_v41  ;;  %v7717_v21 = vpop.f32.mrb[194].mxu1  ;;  %v2567_v26 = vmul.f32 0.003921569, %v7633_v44  ;;  %v2590_v41 = vmax.f32 %v2574_v60, 0.0 }
 0x34e   :  { %3294 = vst.msk [vmem:[#allocation2 + $0x38] sm:$0xff] %vm1618_vm3, %v3274_v17  ;;  %4021 = vrot.lane.b32.xlu1 %v4012_v8, %s9284_s15  ;;  %v2597_v28 = vmax.f32 %v2581_v1, 0.0  ;;  %v7718_v4 = vpop.f32.mrb[195].mxu1 }
 0x34f   :  { %v10896_v13 = vadd.f32 %v7718_v4, %v7717_v21  ;;  %v7720_v47 = vpop.f32.mrb[196].mxu1  ;;  %v2598_v17 = vmax.f32 %v2582_v33, 0.0  ;;  %v2583_v8 = vadd.f32 %v10745_v11, %v2567_v26  ;;  %v10917_v4 = vpack.c.bf16 %v2591_v19, %v2590_v41 }
 0x350   :  { %v10894_v3 = vpack.c.bf16 %v2597_v28, %v2596_v39  ;;  %v7721_v20 = vpop.f32.mrb[197].mxu1 }
 0x351   :  { %v2400_v63 = vpop.permute.xlu1 %2399  ;;  %v10902_v36 = vadd.f32 %v7721_v20, %v7720_v47  ;;  %v7723_v49 = vpop.f32.mrb[198].mxu1  ;;  %v2599_v38 = vmax.f32 %v2583_v8, 0.0 }
 0x352   :  { %2423 = vst.msk [vmem:[#allocation2 + $0x8] sm:$0xff] %vm748_vm1, %v2400_v63  ;;  %12516 = vst [vmem:[#allocation17_spill] sm:$0xff] %v10894_v3  ;;  %v7724_v39 = vpop.f32.mrb[199].mxu1 }
 0x353   :  { %v10906_v1 = vadd.f32 %v7724_v39, %v7723_v49  ;;  %v7726_v52 = vpop.f32.mrb[200].mxu1  ;;  %v10908_v44 = vpack.c.bf16 %v2599_v38, %v2598_v17 }
 0x354   :  { %v7727_v58 = vpop.f32.mrb[201].mxu1 }
 0x355   :  { %v1160_v61 = vpop.permute.xlu1 %1159  ;;  %v4014_v25 = vld [vmem:[#allocation2 + $0x38] sm:$0xff]  ;;  %12517 = vst [vmem:[#allocation18_spill] sm:$0xff] %v10908_v44  ;;  %v10910_v51 = vadd.f32 %v7727_v58, %v7726_v52  ;;  %v7729_v63 = vpop.f32.mrb[202].mxu1 }
 0x356   :  { %1184 = vst.msk [vmem:[#allocation2] sm:$0xff] %vm1183_vm2, %v1160_v61  ;;  %4025 = vrot.lane.b32.xlu1 %v4014_v25, %s9284_s15  ;;  %v7730_v28 = vpop.f32.mrb[203].mxu1 }
 0x357   :  { %v10915_v33 = vadd.f32 %v7730_v28, %v7729_v63  ;;  %v7732_v21 = vpop.f32.mrb[204].mxu1 }
 0x358   :  { %v7733_v26 = vpop.f32.mrb[205].mxu1 }
 0x359   :  { %v2834_v30 = vpop.permute.xlu1 %2833  ;;  %v10919_v47 = vadd.f32 %v7733_v26, %v7732_v21  ;;  %v7735_v10 = vpop.f32.mrb[206].mxu1  ;;  %v12518_v26 = vld [vmem:[#allocation4_spill] sm:$0xff] }
 0x35a   :  { %2857 = vst.msk [vmem:[#allocation2 + $0x8] sm:$0xff] %vm1183_vm2, %v2834_v30  ;;  %2411 = vrot.lane.b32.xlu1 %v10438_v56, %s9283_s10  ;;  %v7736_v17 = vpop.f32.mrb[207].mxu1 }
 0x35b   :  { %v10924_v8 = vadd.f32 %v7736_v17, %v7735_v10  ;;  %v7738_v56 = vpop.f32.mrb[208].mxu1  ;;  %v10937_v10 = vld [vmem:[%s12496_s3 + $0x88] sm:$0xff]  }
 0x35c   :  { %v7739_v20 = vpop.f32.mrb[209].mxu1 }
 0x35d   :  { %v1595_v60 = vpop.permute.xlu1 %1594  ;;  %v7740_v25 = vadd.f32 %v7739_v20, %v7738_v56  ;;  %v7741_v49 = vpop.f32.mrb[210].mxu1 }
 0x35e   :  { %1619 = vst.msk [vmem:[#allocation2] sm:$0xff] %vm1618_vm3, %v1595_v60  ;;  %1171 = vrot.lane.b32.xlu1 %v10028_v2, %s9284_s15  ;;  %v7742_v38 = vpop.f32.mrb[211].mxu1  ;;  %v3585_v60 = vld [vmem:[#allocation2 + $0x10] sm:$0xff] }
 0x35f   :  { %v2994_v39 = vmul.f32 0.003921569, %v7740_v25  ;;  %v7743_v52 = vadd.f32 %v7742_v38, %v7741_v49  ;;  %v7744_v41 = vpop.f32.mrb[212].mxu1 }
 0x360   :  { %v7745_v19 = vpop.f32.mrb[213].mxu1 }
 0x361   :  { %v3268_v61 = vpop.permute.xlu1 %3267  ;;  %v3010_v30 = vadd.f32 %v10745_v11, %v2994_v39  ;;  %v2995_v63 = vmul.f32 0.003921569, %v7743_v52  ;;  %v7746_v28 = vadd.f32 %v7745_v19, %v7744_v41  ;;  %v7747_v21 = vpop.f32.mrb[214].mxu1 }
 0x362   :  { %3291 = vst.msk [vmem:[#allocation2 + $0x8] sm:$0xff] %vm1618_vm3, %v3268_v61  ;;  %2845 = vrot.lane.b32.xlu1 %v10602_v31, %s9284_s15  ;;  %v7748_v31 = vpop.f32.mrb[215].mxu1 }
 0x363   :  { %v3026_v17 = vmax.f32 %v3010_v30, 0.0  ;;  %v3011_v56 = vadd.f32 %v10745_v11, %v2995_v63  ;;  %v2996_v20 = vmul.f32 0.003921569, %v7746_v28  ;;  %v7749_v61 = vadd.f32 %v7748_v31, %v7747_v21  ;;  %v7750_v25 = vpop.f32.mrb[216].mxu1 }
 0x364   :  { %v7751_v49 = vpop.f32.mrb[217].mxu1 }
 0x365   :  { %v3270_v58 = vpop.permute.xlu1 %3269  ;;  %v4007_v2 = vld [vmem:[#allocation2] sm:$0xff]  ;;  %v3027_v39 = vmax.f32 %v3011_v56, 0.0  ;;  %v3012_v52 = vadd.f32 %v10745_v11, %v2996_v20  ;;  %v2997_v41 = vmul.f32 0.003921569, %v7749_v61  ;;  %v7752_v19 = vadd.f32 %v7751_v49, %v7750_v25 }
 0x366   :  { %3292 = vst.msk [vmem:[#allocation2 + $0x18] sm:$0xff] %vm1618_vm3, %v3270_v58  ;;  %1606 = vrot.lane.b32.xlu1 %v12518_v26, %s9285_s29  ;;  %4085 = vrot.lane.b32.xlu0 %v4007_v2, %s9284_s15  ;;  %v7753_v58 = vpop.f32.mrb[218].mxu1  ;;  %v2986_v56 = vmul.f32 0.003921569, %v10890_v59  ;;  %v2988_v25 = vmul.f32 0.003921569, %v10902_v36 }
 0x367   :  { %8292 = vmatprep.mubr.bf16.mxu0 %v4007_v2  ;;  %v10949_v2 = vld [vmem:[%s12496_s3 + $0x90] sm:$0xff]   ;;  %v7754_v30 = vpop.f32.mrb[219].mxu1  ;;  %v10952_v63 = vpack.c.bf16 %v3027_v39, %v3026_v17  ;;  %v3028_v28 = vmax.f32 %v3012_v52, 0.0  ;;  %v3013_v21 = vadd.f32 %v10745_v11, %v2997_v41  ;;  %v2998_v26 = vmul.f32 0.003921569, %v7752_v19  ;;  %v10967_v59 = vld [vmem:[%s12496_s3 + $0x98] sm:$0xff]  }
 0x368   :  { %8293 = vmatmul.mubr.bf16.vlgmr.msra.gmra.mrb[0].mxu0 %v3585_v60  ;;  %v7756_v31 = vpop.f32.mrb[220].mxu1 }
 0x369   :  { %8297 = vmatpush3.bf16.msra.mxu0 %v10850_v9  ;;  %v2408_v38 = vpop.permute.xlu1 %2407  ;;  %v7757_v20 = vpop.f32.mrb[221].mxu1  ;;  %v3029_v49 = vmax.f32 %v3013_v21, 0.0  ;;  %v3014_v17 = vadd.f32 %v10745_v11, %v2998_v26  ;;  %v3002_v21 = vadd.f32 %v10745_v11, %v2986_v56  ;;  %v10983_v56 = vld [vmem:[%s12496_s3 + $0xa0] sm:$0xff]  }
 0x36a   :  { %2427 = vst.msk [vmem:[#allocation2 + $0x48] sm:$0xff] %vm748_vm1, %v2408_v38  ;;  %3279 = vrot.lane.b32.xlu1 %v10709_v50, %s9285_s29  ;;  %4089 = vrot.lane.b32.xlu0 %v3585_v60, %s9284_s15  ;;  %v2987_v50 = vmul.f32 0.003921569, %v10896_v13  ;;  %v7755_v60 = vadd.f32 %v7754_v30, %v7753_v58  ;;  %v7758_v38 = vadd.f32 %v7757_v20, %v7756_v31  ;;  %v7759_v39 = vpop.f32.mrb[222].mxu1  ;;  %v2989_v13 = vmul.f32 0.003921569, %v10906_v1 }
 0x36b   :  { %8298 = vmatprep.subr.bf16.mxu0 %v10937_v10  ;;  %v7760_v52 = vpop.f32.mrb[223].mxu1  ;;  %v10970_v41 = vpack.c.bf16 %v3029_v49, %v3028_v28  ;;  %v3030_v26 = vmax.f32 %v3014_v17, 0.0  ;;  %v3004_v17 = vadd.f32 %v10745_v11, %v2988_v25 }
 0x36c   :  { %v2999_v36 = vmul.f32 0.003921569, %v7755_v60  ;;  %v3000_v19 = vmul.f32 0.003921569, %v7758_v38  ;;  %v7761_v58 = vadd.f32 %v7760_v52, %v7759_v39  ;;  %v7842_v30 = vpop.f32.mrb[224].mxu1  ;;  %v3003_v44 = vadd.f32 %v10745_v11, %v2987_v50 }
 0x36d   :  { %8299 = vmatpush3.bf16.msra.mxu0 %v10937_v10  ;;  %v1168_v61 = vpop.permute.xlu1 %1167  ;;  %12519 = vst [vmem:[#allocation4_spill] sm:$0xff] %v10970_v41  ;;  %v7843_v31 = vpop.f32.mrb[225].mxu1  ;;  %v3005_v50 = vadd.f32 %v10745_v11, %v2989_v13 }
 0x36e   :  { %1188 = vst.msk [vmem:[#allocation2 + $0x40] sm:$0xff] %vm1183_vm2, %v1168_v61  ;;  %3281 = vrot.lane.b32.xlu1 %v10721_v14, %s9285_s29  ;;  %8300 = vmatprep.subr.bf16.mxu0 %v10949_v2  ;;  %v3015_v14 = vadd.f32 %v10745_v11, %v2999_v36  ;;  %v4008_v61 = vld [vmem:[#allocation2 + $0x8] sm:$0xff]  ;;  %v3016_v1 = vadd.f32 %v10745_v11, %v3000_v19  ;;  %v3001_v60 = vmul.f32 0.003921569, %v7761_v58  ;;  %v7845_v49 = vpop.f32.mrb[226].mxu1  ;;  %v3019_v0 = vmax.f32 %v3003_v44, 0.0 }
 0x36f   :  { %v7844_v28 = vadd.f32 %v7843_v31, %v7842_v30  ;;  %v7846_v39 = vpop.f32.mrb[227].mxu1  ;;  %v3018_v30 = vmax.f32 %v3002_v21, 0.0  ;;  %v10998_v21 = vld [vmem:[%s12496_s3 + $0xa8] sm:$0xff]  }
 0x370   :  { %v3031_v38 = vmax.f32 %v3015_v14, 0.0  ;;  %v3032_v36 = vmax.f32 %v3016_v1, 0.0  ;;  %v3017_v52 = vadd.f32 %v10745_v11, %v3001_v60  ;;  %v7847_v58 = vadd.f32 %v7846_v39, %v7845_v49 }
 0x371   :  { %8301 = vmatpush3.bf16.msra.mxu0 %v10949_v2  ;;  %v2842_v20 = vpop.permute.xlu1 %2841  ;;  %v3420_v19 = vmul.f32 0.003921569, %v7844_v28  ;;  %v7848_v13 = vpop.f32.mrb[228].mxu1  ;;  %v3021_v1 = vmax.f32 %v3005_v50, 0.0 }
 0x372   :  { %2861 = vst.msk [vmem:[#allocation2 + $0x48] sm:$0xff] %vm1183_vm2, %v2842_v20  ;;  %4087 = vrot.lane.b32.xlu1 %v4008_v61, %s9284_s15  ;;  %8302 = vmatprep.subr.bf16.mxu0 %v10967_v59  ;;  %v10988_v31 = vpack.c.bf16 %v3031_v38, %v3030_v26  ;;  %v4010_v61 = vld [vmem:[#allocation2 + $0x18] sm:$0xff]  ;;  %v3033_v34 = vmax.f32 %v3017_v52, 0.0  ;;  %v3421_v3 = vmul.f32 0.003921569, %v7847_v58  ;;  %v3020_v26 = vmax.f32 %v3004_v17, 0.0 }
 0x373   :  { %v3436_v25 = vadd.f32 %v10745_v11, %v3420_v19  ;;  %v7849_v14 = vpop.f32.mrb[229].mxu1 }
 0x374   :  { %12520 = vst [vmem:[#allocation19_spill] sm:$0xff] %v10988_v31  ;;  %v11000_v44 = vpack.c.bf16 %v3033_v34, %v3032_v36  ;;  %v3437_v60 = vadd.f32 %v10745_v11, %v3421_v3  ;;  %v7850_v28 = vadd.f32 %v7849_v14, %v7848_v13  ;;  %v7851_v49 = vpop.f32.mrb[230].mxu1  ;;  %v11011_v34 = vld [vmem:[%s12496_s3 + $0xb0] sm:$0xff]   ;;  %v11014_v50 = vpack.c.bf16 %v3021_v1, %v3020_v26  ;;  %v11026_v26 = vld [vmem:[%s12496_s3 + $0xb8] sm:$0xff]  }
 0x375   :  { %8303 = vmatpush3.bf16.msra.mxu0 %v10967_v59  ;;  %v1603_v20 = vpop.permute.xlu1 %1602  ;;  %v3452_v38 = vmax.f32 %v3436_v25, 0.0  ;;  %v7852_v39 = vpop.f32.mrb[231].mxu1 }
 0x376   :  { %1623 = vst.msk [vmem:[#allocation2 + $0x40] sm:$0xff] %vm1618_vm3, %v1603_v20  ;;  %4091 = vrot.lane.b32.xlu1 %v4010_v61, %s9284_s15  ;;  %8304 = vmatprep.subr.bf16.mxu0 %v10983_v56  ;;  %12521 = vst [vmem:[#allocation20_spill] sm:$0xff] %v11000_v44  ;;  %v3453_v19 = vmax.f32 %v3437_v60, 0.0  ;;  %v3422_v58 = vmul.f32 0.003921569, %v7850_v28  ;;  %v7853_v20 = vadd.f32 %v7852_v39, %v7851_v49  ;;  %v4148_v60 = vld [vmem:[#allocation2 + $0x50] sm:$0xff] }
 0x377   :  { %v11004_v61 = vpack.c.bf16 %v3019_v0, %v3018_v30  ;;  %v11036_v49 = vld [vmem:[%s12496_s3 + $0xc0] sm:$0xff]   ;;  %v11045_v39 = vld [vmem:[%s12496_s3 + $0xc8] sm:$0xff]  }
 0x378   :  { %v3438_v3 = vadd.f32 %v10745_v11, %v3422_v58  ;;  %v3423_v17 = vmul.f32 0.003921569, %v7853_v20  ;;  %v11018_v13 = vpack.c.bf16 %v3453_v19, %v3452_v38  ;;  %v2991_v19 = vmul.f32 0.003921569, %v10915_v33  ;;  %v11049_v58 = vpop.permute.xlu0 %4019  ;;  %v11056_v20 = vld [vmem:[%s12496_s3 + $0xd0] sm:$0xff]  }
 0x379   :  { %8305 = vmatpush3.bf16.msra.mxu0 %v10983_v56  ;;  %v3276_v52 = vpop.permute.xlu1 %3275  ;;  %v2992_v33 = vmul.f32 0.003921569, %v10919_v47 }
 0x37a   :  { %3295 = vst.msk [vmem:[#allocation2 + $0x48] sm:$0xff] %vm1618_vm3, %v3276_v52  ;;  %8306 = vmatprep.subr.bf16.mxu0 %v10998_v21  ;;  %v3454_v0 = vmax.f32 %v3438_v3, 0.0  ;;  %v3439_v30 = vadd.f32 %v10745_v11, %v3423_v17  ;;  %v2990_v52 = vmul.f32 0.003921569, %v10910_v51  ;;  %v3007_v17 = vadd.f32 %v10745_v11, %v2991_v19  ;;  %v11067_v51 = vld [vmem:[%s12496_s3 + $0xd8] sm:$0xff]   ;;  %v11077_v19 = vld [vmem:[%s12496_s3 + $0xe0] sm:$0xff]  }
 0x37b   :  { %v3008_v47 = vadd.f32 %v10745_v11, %v2992_v33  ;;  %v11090_v33 = vld [vmem:[%s12496_s3 + $0xe8] sm:$0xff]  }
 0x37c   :  { %v3455_v14 = vmax.f32 %v3439_v30, 0.0  ;;  %v3006_v3 = vadd.f32 %v10745_v11, %v2990_v52  ;;  %v2993_v30 = vmul.f32 0.003921569, %v10924_v8 }
 0x37d   :  { %8307 = vmatpush3.bf16.msra.mxu0 %v10998_v21  ;;  %v3278_v36 = vpop.permute.xlu1 %3277  ;;  %v4146_v25 = vld [vmem:[#allocation2 + $0x40] sm:$0xff] }
 0x37e   :  { %3296 = vst.msk [vmem:[#allocation2 + $0x58] sm:$0xff] %vm1618_vm3, %v3278_v36  ;;  %4154 = vrot.lane.b32.xlu0 %v4146_v25, %s9284_s15  ;;  %8308 = vmatprep.subr.bf16.mxu0 %v11011_v34  ;;  %v11029_v28 = vpack.c.bf16 %v3455_v14, %v3454_v0  ;;  %v3023_v0 = vmax.f32 %v3007_v17, 0.0  ;;  %v3009_v8 = vadd.f32 %v10745_v11, %v2993_v30 }
 0x37f   :  { %8312 = vmatprep.mubr.bf16.mxu0 %v4146_v25  ;;  %v3022_v25 = vmax.f32 %v3006_v3, 0.0 }
 0x381   :  { %8309 = vmatpush3.bf16.msra.mxu0 %v11011_v34  ;;  %v4147_v1 = vld [vmem:[#allocation2 + $0x48] sm:$0xff]  ;;  %v11081_v31 = vpack.c.bf16 %v3023_v0, %v3022_v25  ;;  %v3024_v0 = vmax.f32 %v3008_v47, 0.0 }
 0x382   :  { %4156 = vrot.lane.b32.xlu1 %v4147_v1, %s9284_s15  ;;  %4158 = vrot.lane.b32.xlu0 %v4148_v60, %s9284_s15 }
 0x383   :  { %8310 = vmatprep.subr.bf16.mxu0 %v11026_v26 }
 0x385   :  { %8311 = vmatpush3.bf16.msra.mxu0 %v11026_v26  ;;  %v4149_v38 = vld [vmem:[#allocation2 + $0x58] sm:$0xff] }
 0x386   :  { %4160 = vrot.lane.b32.xlu1 %v4149_v38, %s9284_s15  ;;  %8316 = vmatprep.subr.bf16.mxu0 %v11036_v49 }
 0x388   :  { %8313 = vmatmul.mubr.bf16.vlgmr.msra.gmra.mrb[0].mxu0 %v4148_v60 }
 0x389   :  { %8317 = vmatpush3.bf16.msra.mxu0 %v11036_v49  ;;  %v7854_v14 = vpop.f32.mrb[232].mxu1 }
 0x38a   :  { %8318 = vmatprep.subr.bf16.mxu0 %v11045_v39  ;;  %v7855_v60 = vpop.f32.mrb[233].mxu1 }
 0x38b   :  { %v7856_v38 = vadd.f32 %v7855_v60, %v7854_v14  ;;  %v7857_v52 = vpop.f32.mrb[234].mxu1 }
 0x38c   :  { %v11060_v36 = vpop.permute.xlu0 %4023  ;;  %v7858_v3 = vpop.f32.mrb[235].mxu1 }
 0x38d   :  { %8319 = vmatpush3.bf16.msra.mxu0 %v11045_v39  ;;  %v3424_v17 = vmul.f32 0.003921569, %v7856_v38  ;;  %v7859_v44 = vadd.f32 %v7858_v3, %v7857_v52  ;;  %v3025_v38 = vmax.f32 %v3009_v8, 0.0 }
 0x38e   :  { %8320 = vmatprep.subr.bf16.mxu0 %v11056_v20 }
 0x38f   :  { %v3440_v14 = vadd.f32 %v10745_v11, %v3424_v17  ;;  %v3425_v60 = vmul.f32 0.003921569, %v7859_v44  ;;  %v11107_v8 = vpack.c.bf16 %v3025_v38, %v3024_v0 }
 0x390   :  { %v737_v1 = vpop.permute.xlu0 %736 }
 0x391   :  { %755 = vst.msk [vmem:[#allocation2 + $0x60] sm:$0xff] %vm748_vm1, %v737_v1  ;;  %8321 = vmatpush3.bf16.msra.mxu0 %v11056_v20  ;;  %v7860_v43 = vpop.f32.mrb[236].mxu1  ;;  %v3441_v52 = vadd.f32 %v10745_v11, %v3425_v60  ;;  %v3456_v44 = vmax.f32 %v3440_v14, 0.0 }
 0x392   :  { %8322 = vmatprep.subr.bf16.mxu0 %v11067_v51  ;;  %v7861_v57 = vpop.f32.mrb[237].mxu1 }
 0x393   :  { %v7862_v30 = vadd.f32 %v7861_v57, %v7860_v43  ;;  %v7863_v25 = vpop.f32.mrb[238].mxu1  ;;  %v3457_v17 = vmax.f32 %v3441_v52, 0.0  ;;  %v11099_v57 = vld [vmem:[%s12496_s3 + $0xf0] sm:$0xff]   ;;  %v11104_v43 = vld [vmem:[%s12495_s2] ss:$0 sm:$0xff]  ;;  %v11118_v52 = vld [vmem:[%s12496_s3 + $0xf8] sm:$0xff]  }
 0x394   :  { %v739_v1 = vpop.permute.xlu0 %738  ;;  %v7864_v3 = vpop.f32.mrb[239].mxu1 }
 0x395   :  { %756 = vst.msk [vmem:[#allocation2 + $0x70] sm:$0xff] %vm748_vm1, %v739_v1  ;;  %8323 = vmatpush3.bf16.msra.mxu0 %v11067_v51  ;;  %v3426_v41 = vmul.f32 0.003921569, %v7862_v30  ;;  %v7865_v35 = vadd.f32 %v7864_v3, %v7863_v25  ;;  %v11112_v25 = vpack.c.bf16 %v3457_v17, %v3456_v44  ;;  %v11130_v3 = vld [vmem:[%s12496_s3 + $0x40] sm:$0xff]  }
 0x396   :  { %8324 = vmatprep.subr.bf16.mxu0 %v11077_v19 }
 0x397   :  { %v3442_v11 = vadd.f32 %v11104_v43, %v3426_v41  ;;  %v3427_v47 = vmul.f32 0.003921569, %v7865_v35 }
 0x398   :  { %v2414_v1 = vpop.permute.xlu0 %2413 }
 0x399   :  { %2430 = vst.msk [vmem:[#allocation2 + $0x78] sm:$0xff] %vm748_vm1, %v2414_v1  ;;  %8325 = vmatpush3.bf16.msra.mxu0 %v11077_v19  ;;  %v3458_v14 = vmax.f32 %v3442_v11, 0.0  ;;  %v3443_v30 = vadd.f32 %v11104_v43, %v3427_v47  ;;  %v11140_v47 = vld [vmem:[%s12496_s3] sm:$0xff]  }
 0x39a   :  { %8326 = vmatprep.subr.bf16.mxu0 %v11090_v33 }
 0x39b   :  { %v3459_v35 = vmax.f32 %v3443_v30, 0.0 }
 0x39c   :  { %v1174_v60 = vpop.permute.xlu0 %1173 }
 0x39d   :  { %1191 = vst.msk [vmem:[#allocation2 + $0x70] sm:$0xff] %vm1183_vm2, %v1174_v60  ;;  %8327 = vmatpush3.bf16.msra.mxu0 %v11090_v33  ;;  %v11120_v0 = vpack.c.bf16 %v3459_v35, %v3458_v14  ;;  %v11146_v14 = vld [vmem:[%s12496_s3 + $0x8] sm:$0xff]  }
 0x39e   :  { %8328 = vmatprep.subr.bf16.mxu0 %v11099_v57 }
 0x3a0   :  { %v2848_v41 = vpop.permute.xlu0 %2847 }
 0x3a1   :  { %2864 = vst.msk [vmem:[#allocation2 + $0x78] sm:$0xff] %vm1183_vm2, %v2848_v41  ;;  %8329 = vmatpush3.bf16.msra.mxu0 %v11099_v57 }
 0x3a2   :  { %8330 = vmatprep.subr.bf16.mxu0 %v11118_v52 }
 0x3a4   :  { %v1609_v38 = vpop.permute.xlu0 %1608 }
 0x3a5   :  { %1626 = vst.msk [vmem:[#allocation2 + $0x70] sm:$0xff] %vm1618_vm3, %v1609_v38  ;;  %8331 = vmatpush3.bf16.msra.mxu0 %v11118_v52 }
 0x3a6   :  { %8416 = vmatprep.subr.bf16.mxu0 %v11130_v3 }
 0x3c0   :  { %v4022_v1 = vpop.permute.xlu1 %4021 }
 0x3c1   :  { %v4028_v44 = vsel %vm4004_vm4, %v11049_v58, %v4022_v1 }
 0x3c2   :  { %8352 = vmatprep.mubr.bf16.mxu1 %v4028_v44 }
 0x3c8   :  { %v4026_v17 = vpop.permute.xlu1 %4025 }
 0x3c9   :  { %v4029_v11 = vsel %vm4004_vm4, %v11060_v36, %v4026_v17 }
 0x3ca   :  { %8353 = vmatmul.mubr.bf16.vlgmr.msra.gmra.mrb[0].mxu1 %v4029_v11 }
 0x3cb   :  { %8357 = vmatpush3.bf16.msra.mxu1 %v11140_v47 }
 0x3cc   :  { %v2412_v60 = vpop.permute.xlu1 %2411  ;;  %8358 = vmatprep.subr.bf16.mxu1 %v11146_v14 }
 0x3cd   :  { %2429 = vst.msk [vmem:[#allocation2 + $0x68] sm:$0xff] %vm748_vm1, %v2412_v60 }
 0x3cf   :  { %8359 = vmatpush3.bf16.msra.mxu1 %v11146_v14 }
 0x3d0   :  { %v1172_v58 = vpop.permute.xlu1 %1171  ;;  %8360 = vmatprep.subr.bf16.mxu1 %v10765_v45 }
 0x3d1   :  { %1190 = vst.msk [vmem:[#allocation2 + $0x60] sm:$0xff] %vm1183_vm2, %v1172_v58  ;;  %v11197_v58 = vld [vmem:[%s12496_s3 + $0x50] sm:$0xff]  }
 0x3d3   :  { %8361 = vmatpush3.bf16.msra.mxu1 %v10765_v45 }
 0x3d4   :  { %v2846_v36 = vpop.permute.xlu1 %2845  ;;  %8362 = vmatprep.subr.bf16.mxu1 %v10776_v32 }
 0x3d5   :  { %2863 = vst.msk [vmem:[#allocation2 + $0x68] sm:$0xff] %vm1183_vm2, %v2846_v36 }
 0x3d7   :  { %8363 = vmatpush3.bf16.msra.mxu1 %v10776_v32  ;;  %v11170_v32 = vld [vmem:[#allocation2 + $0x70] sm:$0xff] }
 0x3d8   :  { %v1607_v30 = vpop.permute.xlu1 %1606  ;;  %8364 = vmatprep.subr.bf16.mxu1 %v10787_v24 }
 0x3d9   :  { %1625 = vst.msk [vmem:[#allocation2 + $0x60] sm:$0xff] %vm1618_vm3, %v1607_v30  ;;  %v11211_v30 = vld [vmem:[%s12496_s3 + $0x58] sm:$0xff]  }
 0x3db   :  { %8365 = vmatpush3.bf16.msra.mxu1 %v10787_v24  ;;  %v4086_v24 = vpop.permute.xlu0 %4085 }
 0x3dc   :  { %v3280_v35 = vpop.permute.xlu1 %3279  ;;  %8366 = vmatprep.subr.bf16.mxu1 %v10805_v53 }
 0x3dd   :  { %3297 = vst.msk [vmem:[#allocation2 + $0x68] sm:$0xff] %vm1618_vm3, %v3280_v35  ;;  %v12523_v35 = vld [vmem:[#allocation6_spill] sm:$0xff] }
 0x3df   :  { %8367 = vmatpush3.bf16.msra.mxu1 %v10805_v53  ;;  %v4315_v53 = vld [vmem:[#allocation2 + $0x28] sm:$0xff]  ;;  %v4090_v17 = vpop.permute.xlu0 %4089 }
 0x3e0   :  { %v3282_v45 = vpop.permute.xlu1 %3281  ;;  %8368 = vmatprep.subr.bf16.mxu1 %v10821_v62  ;;  %v11164_v41 = vld [vmem:[#allocation2 + $0x60] sm:$0xff] }
 0x3e1   :  { %3298 = vst.msk [vmem:[#allocation2 + $0x78] sm:$0xff] %vm1618_vm3, %v3282_v45  ;;  %4227 = vrot.lane.b32.xlu0 %v11164_v41, %s9284_s15  ;;  %8332 = vmatprep.mubr.bf16.mxu0 %v11164_v41 }
 0x3e2   :  { %8333 = vmatmul.mubr.bf16.vlgmr.msra.gmra.mrb[0].mxu0 %v11170_v32 }
 0x3e3   :  { %8369 = vmatpush3.bf16.msra.mxu1 %v10821_v62  ;;  %8417 = vmatpush3.bf16.msra.mxu0 %v11130_v3  ;;  %v11186_v62 = vld [vmem:[%s12496_s3 + $0x48] sm:$0xff]  }
 0x3e4   :  { %8432 = vmatprep.mubr.bf16.mxu0 %v4315_v53  ;;  %v4088_v38 = vpop.permute.xlu1 %4087  ;;  %v11175_v1 = vld [vmem:[#allocation2 + $0x68] sm:$0xff]  ;;  %8370 = vmatprep.subr.bf16.mxu1 %v10835_v7 }
 0x3e5   :  { %4229 = vrot.lane.b32.xlu1 %v11175_v1, %s9284_s15  ;;  %4231 = vrot.lane.b32.xlu0 %v11170_v32, %s9284_s15  ;;  %v4093_v44 = vsel %vm4004_vm4, %v4086_v24, %v4088_v38  ;;  %v11237_v24 = vld [vmem:[%s12496_s3 + $0x68] sm:$0xff]   ;;  %v11306_v38 = vld [vmem:[%s12496_s3 + $0x18] sm:$0xff]  }
 0x3e6   :  { %8418 = vmatprep.subr.bf16.mxu0 %v11186_v62  ;;  %8372 = vmatprep.mubr.bf16.mxu1 %v4093_v44  ;;  %v12524_v53 = vld [vmem:[#allocation7_spill] sm:$0xff] }
 0x3e7   :  { %8371 = vmatpush3.bf16.msra.mxu1 %v10835_v7  ;;  %8419 = vmatpush3.bf16.msra.mxu0 %v11186_v62  ;;  %v12522_v7 = vld [vmem:[#allocation5_spill] sm:$0xff] }
 0x3e8   :  { %v4092_v11 = vpop.permute.xlu1 %4091  ;;  %8376 = vmatprep.subr.bf16.mxu1 %v10850_v9  ;;  %v11192_v60 = vld [vmem:[#allocation2 + $0x78] sm:$0xff]  ;;  %8420 = vmatprep.subr.bf16.mxu0 %v11197_v58 }
 0x3e9   :  { %v4094_v36 = vsel %vm4004_vm4, %v4090_v17, %v4092_v11  ;;  %4233 = vrot.lane.b32.xlu1 %v11192_v60, %s9284_s15  ;;  %942 = vrot.lane.b32.xlu0 %v12522_v7, %s9283_s10  ;;  %v11373_v7 = vld [vmem:[%s12496_s3 + $0x80] sm:$0xff]  }
 0x3ea   :  { %8373 = vmatmul.mubr.bf16.vlgmr.msra.gmra.mrb[0].mxu1 %v4094_v36  ;;  %v11368_v36 = vld [vmem:[#allocation2 + $0x40] sm:$0xff] }
 0x3eb   :  { %8377 = vmatpush3.bf16.msra.mxu1 %v10850_v9  ;;  %8421 = vmatpush3.bf16.msra.mxu0 %v11197_v58  ;;  %v11224_v9 = vld [vmem:[%s12496_s3 + $0x60] sm:$0xff]  }
 0x3ec   :  { %8378 = vmatprep.subr.bf16.mxu1 %v10937_v10  ;;  %8422 = vmatprep.subr.bf16.mxu0 %v11211_v30 }
 0x3ed   :  { %944 = vrot.lane.b32.xlu1 %v12523_v35, %s9283_s10  ;;  %1377 = vrot.lane.b32.xlu0 %v10485_v54, %s9284_s15  ;;  %v4314_v35 = vld [vmem:[#allocation2 + $0x18] sm:$0xff] }
 0x3ef   :  { %8379 = vmatpush3.bf16.msra.mxu1 %v10937_v10  ;;  %8423 = vmatpush3.bf16.msra.mxu0 %v11211_v30 }
 0x3f0   :  { %8380 = vmatprep.subr.bf16.mxu1 %v10949_v2  ;;  %8424 = vmatprep.subr.bf16.mxu0 %v11224_v9  ;;  %v4155_v54 = vpop.permute.xlu0 %4154 }
 0x3f1   :  { %1379 = vrot.lane.b32.xlu1 %v10517_v12, %s9284_s15  ;;  %1812 = vrot.lane.b32.xlu0 %v10640_v29, %s9285_s29  ;;  %v11251_v29 = vld [vmem:[%s12496_s3 + $0x70] sm:$0xff]  }
 0x3f3   :  { %8381 = vmatpush3.bf16.msra.mxu1 %v10949_v2  ;;  %8425 = vmatpush3.bf16.msra.mxu0 %v11224_v9 }
 0x3f4   :  { %v4157_v45 = vpop.permute.xlu1 %4156  ;;  %8382 = vmatprep.subr.bf16.mxu1 %v10967_v59  ;;  %8426 = vmatprep.subr.bf16.mxu0 %v11237_v24 }
 0x3f5   :  { %1814 = vrot.lane.b32.xlu1 %v10660_v48, %s9285_s29  ;;  %2616 = vrot.lane.b32.xlu0 %v10869_v37, %s9283_s10  ;;  %v4162_v12 = vsel %vm4004_vm4, %v4155_v54, %v4157_v45  ;;  %v11264_v48 = vld [vmem:[%s12496_s3 + $0x78] sm:$0xff]   ;;  %v11382_v54 = vld [vmem:[#allocation2 + $0x48] sm:$0xff] }
 0x3f6   :  { %8392 = vmatprep.mubr.bf16.mxu1 %v4162_v12  ;;  %v4316_v37 = vld [vmem:[#allocation2 + $0x38] sm:$0xff] }
 0x3f7   :  { %8383 = vmatpush3.bf16.msra.mxu1 %v10967_v59  ;;  %8427 = vmatpush3.bf16.msra.mxu0 %v11237_v24 }
 0x3f8   :  { %8384 = vmatprep.subr.bf16.mxu1 %v10983_v56  ;;  %8428 = vmatprep.subr.bf16.mxu0 %v11251_v29 }
 0x3f9   :  { %2618 = vrot.lane.b32.xlu1 %v10877_v6, %s9283_s10  ;;  %3050 = vrot.lane.b32.xlu0 %v11004_v61, %s9284_s15  ;;  %v4313_v6 = vld [vmem:[#allocation2 + $0x8] sm:$0xff]  ;;  %v4161_v61 = vpop.permute.xlu1 %4160 }
 0x3fb   :  { %8385 = vmatpush3.bf16.msra.mxu1 %v10983_v56  ;;  %8429 = vmatpush3.bf16.msra.mxu0 %v11251_v29 }
 0x3fc   :  { %8386 = vmatprep.subr.bf16.mxu1 %v10998_v21  ;;  %8430 = vmatprep.subr.bf16.mxu0 %v11264_v48 }
 0x3fd   :  { %3052 = vrot.lane.b32.xlu1 %v11014_v50, %s9284_s15  ;;  %3484 = vrot.lane.b32.xlu0 %v11018_v13, %s9285_s29  ;;  %v4159_v50 = vpop.permute.xlu0 %4158  ;;  %v11292_v13 = vld [vmem:[%s12496_s3 + $0x10] sm:$0xff]  }
 0x3ff   :  { %8387 = vmatpush3.bf16.msra.mxu1 %v10998_v21  ;;  %8431 = vmatpush3.bf16.msra.mxu0 %v11264_v48 }
 0x400   :  { %8388 = vmatprep.subr.bf16.mxu1 %v11011_v34  ;;  %8436 = vmatprep.subr.bf16.mxu0 %v11140_v47 }
 0x401   :  { %3486 = vrot.lane.b32.xlu1 %v11029_v28, %s9285_s29  ;;  %4781 = vrot.lane.b32.xlu0 %v11164_v41, %s9284_s15  ;;  %v4163_v28 = vsel %vm4004_vm4, %v4159_v50, %v4161_v61 }
 0x402   :  { %8433 = vmatmul.mubr.bf16.vlgmr.msra.gmra.mrb[4].mxu0 %v4316_v37  ;;  %v11387_v37 = vld [vmem:[#allocation2 + $0x50] sm:$0xff] }
 0x403   :  { %8389 = vmatpush3.bf16.msra.mxu1 %v11011_v34  ;;  %8437 = vmatpush3.bf16.msra.mxu0 %v11140_v47 }
 0x404   :  { %8452 = vmatprep.mubr.bf16.mxu0 %v4313_v6  ;;  %8390 = vmatprep.subr.bf16.mxu1 %v11026_v26 }
 0x405   :  { %4783 = vrot.lane.b32.xlu1 %v11175_v1, %s9284_s15  ;;  %4785 = vrot.lane.b32.xlu0 %v11170_v32, %s9284_s15 }
 0x406   :  { %8438 = vmatprep.subr.bf16.mxu0 %v11146_v14 }
 0x407   :  { %8391 = vmatpush3.bf16.msra.mxu1 %v11026_v26  ;;  %8439 = vmatpush3.bf16.msra.mxu0 %v11146_v14 }
 0x408   :  { %8440 = vmatprep.subr.bf16.mxu0 %v11292_v13  ;;  %8396 = vmatprep.subr.bf16.mxu1 %v11036_v49 }
 0x409   :  { %948 = vrot.lane.b32.xlu1 %v10399_v22, %s9283_s10  ;;  %946 = vrot.lane.b32.xlu0 %v12524_v53, %s9283_s10  ;;  %v11319_v22 = vld [vmem:[%s12496_s3 + $0x20] sm:$0xff]  }
 0x40a   :  { %8393 = vmatmul.mubr.bf16.vlgmr.msra.gmra.mrb[0].mxu1 %v4163_v28  ;;  %v4772_v28 = vld [vmem:[#allocation2 + $0x58] sm:$0xff] }
 0x40b   :  { %8441 = vmatpush3.bf16.msra.mxu0 %v11292_v13  ;;  %8397 = vmatpush3.bf16.msra.mxu1 %v11036_v49 }
 0x40c   :  { %8442 = vmatprep.subr.bf16.mxu0 %v11306_v38  ;;  %8398 = vmatprep.subr.bf16.mxu1 %v11045_v39 }
 0x40d   :  { %4787 = vrot.lane.b32.xlu1 %v11192_v60, %s9284_s15  ;;  %1381 = vrot.lane.b32.xlu0 %v10538_v16, %s9284_s15  ;;  %v11332_v16 = vld [vmem:[%s12496_s3 + $0x28] sm:$0xff]  }
 0x40f   :  { %8443 = vmatpush3.bf16.msra.mxu0 %v11306_v38  ;;  %8399 = vmatpush3.bf16.msra.mxu1 %v11045_v39 }
 0x410   :  { %8444 = vmatprep.subr.bf16.mxu0 %v11319_v22  ;;  %8400 = vmatprep.subr.bf16.mxu1 %v11056_v20 }
 0x411   :  { %1383 = vrot.lane.b32.xlu1 %v10560_v18, %s9284_s15  ;;  %1816 = vrot.lane.b32.xlu0 %v10671_v23, %s9285_s29  ;;  %v11345_v18 = vld [vmem:[%s12496_s3 + $0x30] sm:$0xff]   ;;  %v7866_v23 = vpop.f32.mrb[240].mxu1 }
 0x413   :  { %8445 = vmatpush3.bf16.msra.mxu0 %v11319_v22  ;;  %8401 = vmatpush3.bf16.msra.mxu1 %v11056_v20 }
 0x414   :  { %8446 = vmatprep.subr.bf16.mxu0 %v11332_v16  ;;  %8402 = vmatprep.subr.bf16.mxu1 %v11067_v51 }
 0x415   :  { %1818 = vrot.lane.b32.xlu1 %v10678_v15, %s9285_s29  ;;  %2620 = vrot.lane.b32.xlu0 %v10900_v42, %s9283_s10  ;;  %v7867_v15 = vpop.f32.mrb[241].mxu1  ;;  %v11358_v42 = vld [vmem:[%s12496_s3 + $0x38] sm:$0xff]  }
 0x416   :  { %v7868_v44 = vadd.f32 %v7867_v15, %v7866_v23 }
 0x417   :  { %8447 = vmatpush3.bf16.msra.mxu0 %v11332_v16  ;;  %8403 = vmatpush3.bf16.msra.mxu1 %v11067_v51 }
 0x418   :  { %8448 = vmatprep.subr.bf16.mxu0 %v11345_v18  ;;  %8404 = vmatprep.subr.bf16.mxu1 %v11077_v19  ;;  %v3428_v17 = vmul.f32 0.003921569, %v7868_v44 }
 0x419   :  { %2622 = vrot.lane.b32.xlu1 %v10917_v4, %s9283_s10  ;;  %3054 = vrot.lane.b32.xlu0 %v11081_v31, %s9284_s15  ;;  %v7869_v4 = vpop.f32.mrb[242].mxu1 }
 0x41a   :  { %v7870_v31 = vpop.f32.mrb[243].mxu1 }
 0x41b   :  { %8449 = vmatpush3.bf16.msra.mxu0 %v11345_v18  ;;  %8405 = vmatpush3.bf16.msra.mxu1 %v11077_v19  ;;  %v7871_v11 = vadd.f32 %v7870_v31, %v7869_v4  ;;  %v7872_v61 = vpop.f32.mrb[244].mxu1 }
 0x41c   :  { %8450 = vmatprep.subr.bf16.mxu0 %v11358_v42  ;;  %8406 = vmatprep.subr.bf16.mxu1 %v11090_v33  ;;  %v7873_v50 = vpop.f32.mrb[245].mxu1 }
 0x41d   :  { %3056 = vrot.lane.b32.xlu1 %v11107_v8, %s9284_s15  ;;  %3488 = vrot.lane.b32.xlu0 %v11112_v25, %s9285_s29  ;;  %v3444_v8 = vadd.f32 %v11104_v43, %v3428_v17  ;;  %v3429_v25 = vmul.f32 0.003921569, %v7871_v11  ;;  %v7874_v53 = vadd.f32 %v7873_v50, %v7872_v61  ;;  %v7875_v23 = vpop.f32.mrb[246].mxu1 }
 0x41e   :  { %v7876_v15 = vpop.f32.mrb[247].mxu1 }
 0x41f   :  { %8451 = vmatpush3.bf16.msra.mxu0 %v11358_v42  ;;  %8407 = vmatpush3.bf16.msra.mxu1 %v11090_v33  ;;  %v3460_v45 = vmax.f32 %v3444_v8, 0.0  ;;  %v3445_v12 = vadd.f32 %v11104_v43, %v3429_v25  ;;  %v3430_v44 = vmul.f32 0.003921569, %v7874_v53  ;;  %v7877_v4 = vadd.f32 %v7876_v15, %v7875_v23 }
 0x420   :  { %8456 = vmatprep.subr.bf16.mxu0 %v11373_v7  ;;  %8408 = vmatprep.subr.bf16.mxu1 %v11099_v57 }
 0x421   :  { %3490 = vrot.lane.b32.xlu1 %v11120_v0, %s9285_s29  ;;  %4846 = vrot.lane.b32.xlu0 %v11368_v36, %s9284_s15  ;;  %v3461_v0 = vmax.f32 %v3445_v12, 0.0  ;;  %v3431_v31 = vmul.f32 0.003921569, %v7877_v4 }
 0x422   :  { %8453 = vmatmul.mubr.bf16.vlgmr.msra.gmra.mrb[4].mxu0 %v4314_v35 }
 0x423   :  { %8457 = vmatpush3.bf16.msra.mxu0 %v11373_v7  ;;  %8472 = vmatprep.mubr.bf16.mxu0 %v11382_v54  ;;  %v11396_v6 = vpack.c.bf16 %v3461_v0, %v3460_v45  ;;  %v3447_v11 = vadd.f32 %v11104_v43, %v3431_v31 }
 0x424   :  { %8458 = vmatprep.subr.bf16.mxu0 %v10937_v10  ;;  %8409 = vmatpush3.bf16.msra.mxu1 %v11099_v57 }
 0x425   :  { %4848 = vrot.lane.b32.xlu1 %v11382_v54, %s9284_s15  ;;  %4850 = vrot.lane.b32.xlu0 %v11387_v37, %s9284_s15  ;;  %v3463_v8 = vmax.f32 %v3447_v11, 0.0 }
 0x426   :  { %8410 = vmatprep.subr.bf16.mxu1 %v11118_v52 }
 0x427   :  { %8459 = vmatpush3.bf16.msra.mxu0 %v10937_v10  ;;  %v3446_v10 = vadd.f32 %v11104_v43, %v3430_v44 }
 0x428   :  { %8460 = vmatprep.subr.bf16.mxu0 %v10949_v2  ;;  %8411 = vmatpush3.bf16.msra.mxu1 %v11118_v52 }
 0x429   :  { %4852 = vrot.lane.b32.xlu1 %v4772_v28, %s9284_s15  ;;  %8496 = vmatprep.subr.bf16.mxu1 %v11130_v3  ;;  %v3462_v17 = vmax.f32 %v3446_v10, 0.0 }
 0x42b   :  { %8461 = vmatpush3.bf16.msra.mxu0 %v10949_v2  ;;  %v11409_v25 = vpack.c.bf16 %v3463_v8, %v3462_v17  ;;  %v7878_v2 = vpop.f32.mrb[248].mxu1 }
 0x42c   :  { %8462 = vmatprep.subr.bf16.mxu0 %v10967_v59  ;;  %v7879_v35 = vpop.f32.mrb[249].mxu1 }
 0x42d   :  { %v7880_v45 = vadd.f32 %v7879_v35, %v7878_v2 }
 0x42f   :  { %8463 = vmatpush3.bf16.msra.mxu0 %v10967_v59  ;;  %v7881_v59 = vpop.f32.mrb[250].mxu1  ;;  %v3432_v0 = vmul.f32 0.003921569, %v7880_v45 }
 0x430   :  { %8464 = vmatprep.subr.bf16.mxu0 %v10983_v56  ;;  %v7882_v12 = vpop.f32.mrb[251].mxu1 }
 0x431   :  { %v7884_v53 = vpop.f32.mrb[252].mxu1 }
 0x432   :  { %v7885_v23 = vpop.f32.mrb[253].mxu1 }
 0x433   :  { %8465 = vmatpush3.bf16.msra.mxu0 %v10983_v56  ;;  %v7883_v56 = vadd.f32 %v7882_v12, %v7881_v59  ;;  %v7886_v15 = vadd.f32 %v7885_v23, %v7884_v53 }
 0x434   :  { %8466 = vmatprep.subr.bf16.mxu0 %v10998_v21 }
 0x435   :  { %v3433_v61 = vmul.f32 0.003921569, %v7883_v56 }
 0x437   :  { %8467 = vmatpush3.bf16.msra.mxu0 %v10998_v21  ;;  %v3448_v21 = vadd.f32 %v11104_v43, %v3432_v0 }
 0x438   :  { %8468 = vmatprep.subr.bf16.mxu0 %v11011_v34 }
 0x439   :  { %v3464_v50 = vmax.f32 %v3448_v21, 0.0 }
 0x43b   :  { %8469 = vmatpush3.bf16.msra.mxu0 %v11011_v34  ;;  %v3449_v34 = vadd.f32 %v11104_v43, %v3433_v61 }
 0x43c   :  { %8470 = vmatprep.subr.bf16.mxu0 %v11026_v26 }
 0x43f   :  { %8471 = vmatpush3.bf16.msra.mxu0 %v11026_v26  ;;  %v3465_v26 = vmax.f32 %v3449_v34, 0.0 }
 0x440   :  { %8476 = vmatprep.subr.bf16.mxu0 %v11036_v49 }
 0x442   :  { %8473 = vmatmul.mubr.bf16.vlgmr.msra.gmra.mrb[4].mxu0 %v4772_v28  ;;  %v11426_v28 = vpack.c.bf16 %v3465_v26, %v3464_v50 }
 0x443   :  { %8477 = vmatpush3.bf16.msra.mxu0 %v11036_v49  ;;  %8492 = vmatprep.mubr.bf16.mxu0 %v11175_v1  ;;  %v7887_v49 = vpop.f32.mrb[254].mxu1  ;;  %v3434_v1 = vmul.f32 0.003921569, %v7886_v15 }
 0x444   :  { %8478 = vmatprep.subr.bf16.mxu0 %v11045_v39  ;;  %v7888_v44 = vpop.f32.mrb[255].mxu1 }
 0x445   :  { %v7889_v4 = vadd.f32 %v7888_v44, %v7887_v49  ;;  %v3450_v10 = vadd.f32 %v11104_v43, %v3434_v1 }
 0x447   :  { %8479 = vmatpush3.bf16.msra.mxu0 %v11045_v39  ;;  %v3435_v31 = vmul.f32 0.003921569, %v7889_v4  ;;  %v3466_v17 = vmax.f32 %v3450_v10, 0.0 }
 0x448   :  { %8480 = vmatprep.subr.bf16.mxu0 %v11056_v20 }
 0x449   :  { %v3451_v39 = vadd.f32 %v11104_v43, %v3435_v31 }
 0x44b   :  { %8481 = vmatpush3.bf16.msra.mxu0 %v11056_v20  ;;  %v3467_v11 = vmax.f32 %v3451_v39, 0.0 }
 0x44c   :  { %8482 = vmatprep.subr.bf16.mxu0 %v11067_v51 }
 0x44d   :  { %v11434_v8 = vpack.c.bf16 %v3467_v11, %v3466_v17 }
 0x44f   :  { %8483 = vmatpush3.bf16.msra.mxu0 %v11067_v51 }
 0x450   :  { %8484 = vmatprep.subr.bf16.mxu0 %v11077_v19 }
 0x453   :  { %8485 = vmatpush3.bf16.msra.mxu0 %v11077_v19  ;;  %v4228_v2 = vpop.permute.xlu0 %4227 }
 0x454   :  { %8486 = vmatprep.subr.bf16.mxu0 %v11090_v33 }
 0x457   :  { %8487 = vmatpush3.bf16.msra.mxu0 %v11090_v33  ;;  %v4230_v20 = vpop.permute.xlu1 %4229  ;;  %v4232_v35 = vpop.permute.xlu0 %4231 }
 0x458   :  { %v4235_v59 = vsel %vm4004_vm4, %v4228_v2, %v4230_v20  ;;  %8488 = vmatprep.subr.bf16.mxu0 %v11099_v57 }
 0x459   :  { %8412 = vmatprep.mubr.bf16.mxu1 %v4235_v59 }
 0x45b   :  { %8489 = vmatpush3.bf16.msra.mxu0 %v11099_v57  ;;  %v4234_v51 = vpop.permute.xlu1 %4233  ;;  %v943_v43 = vpop.permute.xlu0 %942 }
 0x45c   :  { %v4236_v45 = vsel %vm4004_vm4, %v4232_v35, %v4234_v51  ;;  %966 = vst.msk [vmem:[#allocation2 + $0x80] sm:$0xff] %vm748_vm1, %v943_v43  ;;  %8490 = vmatprep.subr.bf16.mxu0 %v11118_v52  ;;  %v12525_v51 = vld [vmem:[#allocation8_spill] sm:$0xff] }
 0x45d   :  { %8413 = vmatmul.mubr.bf16.vlgmr.msra.gmra.mrb[0].mxu1 %v4236_v45 }
 0x45e   :  { %8497 = vmatpush3.bf16.msra.mxu1 %v11130_v3  ;;  %8512 = vmatprep.mubr.bf16.mxu1 %v11164_v41 }
 0x45f   :  { %8491 = vmatpush3.bf16.msra.mxu0 %v11118_v52  ;;  %v945_v19 = vpop.permute.xlu1 %944  ;;  %v1378_v33 = vpop.permute.xlu0 %1377  ;;  %8498 = vmatprep.subr.bf16.mxu1 %v11186_v62 }
 0x460   :  { %967 = vst.msk [vmem:[#allocation2 + $0x90] sm:$0xff] %vm748_vm1, %v945_v19  ;;  %8576 = vmatprep.subr.bf16.mxu0 %v11130_v3 }
 0x461   :  { %1401 = vst.msk [vmem:[#allocation2 + $0x80] sm:$0xff] %vm1183_vm2, %v1378_v33 }
 0x462   :  { %8493 = vmatmul.mubr.bf16.vlgmr.msra.gmra.mrb[4].mxu0 %v11192_v60  ;;  %8499 = vmatpush3.bf16.msra.mxu1 %v11186_v62 }
 0x463   :  { %8577 = vmatpush3.bf16.msra.mxu0 %v11130_v3  ;;  %v1380_v57 = vpop.permute.xlu1 %1379  ;;  %v1813_v41 = vpop.permute.xlu0 %1812  ;;  %8500 = vmatprep.subr.bf16.mxu1 %v11197_v58 }
 0x464   :  { %1402 = vst.msk [vmem:[#allocation2 + $0x90] sm:$0xff] %vm1183_vm2, %v1380_v57  ;;  %8578 = vmatprep.subr.bf16.mxu0 %v11186_v62 }
 0x465   :  { %1836 = vst.msk [vmem:[#allocation2 + $0x80] sm:$0xff] %vm1618_vm3, %v1813_v41  ;;  %v11584_v41 = vld [vmem:[%s12496_s3 + $0x88] sm:$0xff]  }
 0x466   :  { %8501 = vmatpush3.bf16.msra.mxu1 %v11197_v58 }
 0x467   :  { %8579 = vmatpush3.bf16.msra.mxu0 %v11186_v62  ;;  %v1815_v52 = vpop.permute.xlu1 %1814  ;;  %v2617_v60 = vpop.permute.xlu0 %2616  ;;  %8502 = vmatprep.subr.bf16.mxu1 %v11211_v30 }
 0x468   :  { %1837 = vst.msk [vmem:[#allocation2 + $0x90] sm:$0xff] %vm1618_vm3, %v1815_v52  ;;  %8580 = vmatprep.subr.bf16.mxu0 %v11197_v58 }
 0x469   :  { %2640 = vst.msk [vmem:[#allocation2 + $0x88] sm:$0xff] %vm748_vm1, %v2617_v60  ;;  %v11597_v60 = vld [vmem:[%s12496_s3 + $0x90] sm:$0xff]  }
 0x46a   :  { %8503 = vmatpush3.bf16.msra.mxu1 %v11211_v30 }
 0x46b   :  { %8581 = vmatpush3.bf16.msra.mxu0 %v11197_v58  ;;  %v2619_v3 = vpop.permute.xlu1 %2618  ;;  %v3051_v12 = vpop.permute.xlu0 %3050  ;;  %8504 = vmatprep.subr.bf16.mxu1 %v11224_v9 }
 0x46c   :  { %v11468_v56 = vld [vmem:[#allocation2 + $0x80] sm:$0xff]  ;;  %2641 = vst.msk [vmem:[#allocation2 + $0x98] sm:$0xff] %vm748_vm1, %v2619_v3  ;;  %8582 = vmatprep.subr.bf16.mxu0 %v11211_v30  ;;  %v11649_v3 = vld [vmem:[%s12496_s3 + $0xb0] sm:$0xff]  }
 0x46d   :  { %3074 = vst.msk [vmem:[#allocation2 + $0x88] sm:$0xff] %vm1183_vm2, %v3051_v12  ;;  %4915 = vrot.lane.b32.xlu0 %v11468_v56, %s9284_s15  ;;  %v11655_v12 = vld [vmem:[%s12497_s4] ss:$0 sm:$0xff] }
 0x46e   :  { %8505 = vmatpush3.bf16.msra.mxu1 %v11224_v9 }
 0x46f   :  { %8583 = vmatpush3.bf16.msra.mxu0 %v11211_v30  ;;  %v3053_v0 = vpop.permute.xlu1 %3052  ;;  %v3485_v61 = vpop.permute.xlu0 %3484  ;;  %8506 = vmatprep.subr.bf16.mxu1 %v11237_v24  ;;  %v11478_v21 = vld [vmem:[#allocation2 + $0x90] sm:$0xff] }
 0x470   :  { %3075 = vst.msk [vmem:[#allocation2 + $0x98] sm:$0xff] %vm1183_vm2, %v3053_v0  ;;  %8584 = vmatprep.subr.bf16.mxu0 %v11224_v9  ;;  %v12529_v0 = vld [vmem:[#allocation10_spill] sm:$0xff] }
 0x471   :  { %3508 = vst.msk [vmem:[#allocation2 + $0x88] sm:$0xff] %vm1618_vm3, %v3485_v61  ;;  %4919 = vrot.lane.b32.xlu0 %v11478_v21, %s9284_s15 }
 0x472   :  { %8507 = vmatpush3.bf16.msra.mxu1 %v11237_v24 }
 0x473   :  { %8585 = vmatpush3.bf16.msra.mxu0 %v11224_v9  ;;  %v3487_v34 = vpop.permute.xlu1 %3486  ;;  %v4782_v50 = vpop.permute.xlu0 %4781  ;;  %8508 = vmatprep.subr.bf16.mxu1 %v11251_v29 }
 0x474   :  { %3509 = vst.msk [vmem:[#allocation2 + $0x98] sm:$0xff] %vm1618_vm3, %v3487_v34  ;;  %8586 = vmatprep.subr.bf16.mxu0 %v11237_v24 }
 0x476   :  { %8509 = vmatpush3.bf16.msra.mxu1 %v11251_v29 }
 0x477   :  { %8587 = vmatpush3.bf16.msra.mxu0 %v11237_v24  ;;  %v4784_v26 = vpop.permute.xlu1 %4783  ;;  %v4786_v53 = vpop.permute.xlu0 %4785  ;;  %8510 = vmatprep.subr.bf16.mxu1 %v11264_v48 }
 0x478   :  { %v11493_v23 = vld [vmem:[#allocation2 + $0x88] sm:$0xff]  ;;  %8588 = vmatprep.subr.bf16.mxu0 %v11251_v29  ;;  %v4789_v15 = vsel %vm4004_vm4, %v4782_v50, %v4784_v26 }
 0x479   :  { %4917 = vrot.lane.b32.xlu1 %v11493_v23, %s9284_s15  ;;  %8592 = vmatprep.mubr.bf16.mxu0 %v4789_v15  ;;  %v11669_v15 = vld [vmem:[%s12496_s3 + $0xb8] sm:$0xff]  }
 0x47a   :  { %8511 = vmatpush3.bf16.msra.mxu1 %v11264_v48 }
 0x47b   :  { %8589 = vmatpush3.bf16.msra.mxu0 %v11251_v29  ;;  %v949_v49 = vpop.permute.xlu1 %948  ;;  %v947_v44 = vpop.permute.xlu0 %946  ;;  %8516 = vmatprep.subr.bf16.mxu1 %v11140_v47  ;;  %v11502_v1 = vld [vmem:[#allocation2 + $0x98] sm:$0xff] }
 0x47c   :  { %969 = vst.msk [vmem:[#allocation2 + $0xb0] sm:$0xff] %vm748_vm1, %v949_v49  ;;  %968 = vst.msk [vmem:[#allocation2 + $0xa0] sm:$0xff] %vm748_vm1, %v947_v44  ;;  %8590 = vmatprep.subr.bf16.mxu0 %v11264_v48  ;;  %v12530_v49 = vld [vmem:[#allocation12_spill] sm:$0xff] }
 0x47d   :  { %4921 = vrot.lane.b32.xlu1 %v11502_v1, %s9284_s15  ;;  %8513 = vmatmul.mubr.bf16.vlgmr.msra.gmra.mrb[4].mxu1 %v11170_v32 }
 0x47e   :  { %8517 = vmatpush3.bf16.msra.mxu1 %v11140_v47  ;;  %8532 = vmatprep.mubr.bf16.mxu1 %v11368_v36 }
 0x47f   :  { %8591 = vmatpush3.bf16.msra.mxu0 %v11264_v48  ;;  %v4788_v4 = vpop.permute.xlu1 %4787  ;;  %v1382_v10 = vpop.permute.xlu0 %1381  ;;  %8518 = vmatprep.subr.bf16.mxu1 %v11146_v14 }
 0x480   :  { %v4790_v31 = vsel %vm4004_vm4, %v4786_v53, %v4788_v4  ;;  %1403 = vst.msk [vmem:[#allocation2 + $0xa0] sm:$0xff] %vm1183_vm2, %v1382_v10  ;;  %8596 = vmatprep.subr.bf16.mxu0 %v11140_v47 }
 0x482   :  { %8519 = vmatpush3.bf16.msra.mxu1 %v11146_v14  ;;  %8593 = vmatmul.mubr.bf16.vlgmr.msra.gmra.mrb[8].mxu0 %v4790_v31 }
 0x483   :  { %8597 = vmatpush3.bf16.msra.mxu0 %v11140_v47  ;;  %v1384_v32 = vpop.permute.xlu1 %1383  ;;  %v1817_v17 = vpop.permute.xlu0 %1816  ;;  %8520 = vmatprep.subr.bf16.mxu1 %v11292_v13 }
 0x484   :  { %1404 = vst.msk [vmem:[#allocation2 + $0xb0] sm:$0xff] %vm1183_vm2, %v1384_v32  ;;  %8598 = vmatprep.subr.bf16.mxu0 %v11146_v14 }
 0x485   :  { %1838 = vst.msk [vmem:[#allocation2 + $0xa0] sm:$0xff] %vm1618_vm3, %v1817_v17 }
 0x486   :  { %8521 = vmatpush3.bf16.msra.mxu1 %v11292_v13 }
 0x487   :  { %8599 = vmatpush3.bf16.msra.mxu0 %v11146_v14  ;;  %v1819_v36 = vpop.permute.xlu1 %1818  ;;  %v2621_v39 = vpop.permute.xlu0 %2620  ;;  %8522 = vmatprep.subr.bf16.mxu1 %v11306_v38 }
 0x488   :  { %1839 = vst.msk [vmem:[#allocation2 + $0xb0] sm:$0xff] %vm1618_vm3, %v1819_v36  ;;  %8600 = vmatprep.subr.bf16.mxu0 %v11292_v13  ;;  %v11684_v36 = vld [vmem:[%s12496_s3 + $0xc0] sm:$0xff]  }
 0x489   :  { %2642 = vst.msk [vmem:[#allocation2 + $0xa8] sm:$0xff] %vm748_vm1, %v2621_v39 }
 0x48a   :  { %8523 = vmatpush3.bf16.msra.mxu1 %v11306_v38 }
 0x48b   :  { %8601 = vmatpush3.bf16.msra.mxu0 %v11292_v13  ;;  %v2623_v47 = vpop.permute.xlu1 %2622  ;;  %v3055_v11 = vpop.permute.xlu0 %3054  ;;  %8524 = vmatprep.subr.bf16.mxu1 %v11319_v22 }
 0x48c   :  { %v11532_v2 = vld [vmem:[#allocation2 + $0xa0] sm:$0xff]  ;;  %2643 = vst.msk [vmem:[#allocation2 + $0xb8] sm:$0xff] %vm748_vm1, %v2623_v47  ;;  %8602 = vmatprep.subr.bf16.mxu0 %v11306_v38 }
 0x48d   :  { %3076 = vst.msk [vmem:[#allocation2 + $0xa8] sm:$0xff] %vm1183_vm2, %v3055_v11  ;;  %4988 = vrot.lane.b32.xlu0 %v11532_v2, %s9284_s15  ;;  %v12531_v47 = vld [vmem:[#allocation14_spill] sm:$0xff] }
 0x48e   :  { %8525 = vmatpush3.bf16.msra.mxu1 %v11319_v22 }
 0x48f   :  { %8603 = vmatpush3.bf16.msra.mxu0 %v11306_v38  ;;  %v3057_v14 = vpop.permute.xlu1 %3056  ;;  %v3489_v20 = vpop.permute.xlu0 %3488  ;;  %8526 = vmatprep.subr.bf16.mxu1 %v11332_v16  ;;  %v11542_v35 = vld [vmem:[#allocation2 + $0xb0] sm:$0xff] }
 0x490   :  { %3077 = vst.msk [vmem:[#allocation2 + $0xb8] sm:$0xff] %vm1183_vm2, %v3057_v14  ;;  %8604 = vmatprep.subr.bf16.mxu0 %v11319_v22  ;;  %v11701_v14 = vld [vmem:[%s12496_s3 + $0xc8] sm:$0xff]  }
 0x491   :  { %3510 = vst.msk [vmem:[#allocation2 + $0xa8] sm:$0xff] %vm1618_vm3, %v3489_v20  ;;  %4992 = vrot.lane.b32.xlu0 %v11542_v35, %s9284_s15  ;;  %v12532_v20 = vld [vmem:[#allocation17_spill] sm:$0xff] }
 0x492   :  { %8527 = vmatpush3.bf16.msra.mxu1 %v11332_v16 }
 0x493   :  { %8605 = vmatpush3.bf16.msra.mxu0 %v11319_v22  ;;  %v3491_v59 = vpop.permute.xlu1 %3490  ;;  %8528 = vmatprep.subr.bf16.mxu1 %v11345_v18  ;;  %v4847_v43 = vpop.permute.xlu0 %4846 }
 0x494   :  { %3511 = vst.msk [vmem:[#allocation2 + $0xb8] sm:$0xff] %vm1618_vm3, %v3491_v59  ;;  %8606 = vmatprep.subr.bf16.mxu0 %v11332_v16  ;;  %v12533_v59 = vld [vmem:[#allocation11_spill] sm:$0xff] }
 0x495   :  { %950 = vrot.lane.b32.xlu0 %v12525_v51, %s9283_s10  ;;  %v11714_v51 = vld [vmem:[%s12496_s3 + $0xd0] sm:$0xff]  }
 0x496   :  { %8529 = vmatpush3.bf16.msra.mxu1 %v11345_v18 }
 0x497   :  { %8607 = vmatpush3.bf16.msra.mxu0 %v11332_v16  ;;  %v4849_v45 = vpop.permute.xlu1 %4848  ;;  %8530 = vmatprep.subr.bf16.mxu1 %v11358_v42 }
 0x498   :  { %v11559_v19 = vld [vmem:[#allocation2 + $0xa8] sm:$0xff]  ;;  %v4854_v33 = vsel %vm4004_vm4, %v4847_v43, %v4849_v45  ;;  %8608 = vmatprep.subr.bf16.mxu0 %v11345_v18  ;;  %v12535_v45 = vld [vmem:[#allocation13_spill] sm:$0xff] }
 0x499   :  { %1385 = vrot.lane.b32.xlu0 %v10572_v46, %s9284_s15  ;;  %4990 = vrot.lane.b32.xlu1 %v11559_v19, %s9284_s15  ;;  %v12534_v43 = vld [vmem:[#allocation19_spill] sm:$0xff] }
 0x49a   :  { %8612 = vmatprep.mubr.bf16.mxu0 %v4854_v33  ;;  %8531 = vmatpush3.bf16.msra.mxu1 %v11358_v42  ;;  %v11725_v33 = vld [vmem:[%s12496_s3 + $0xd8] sm:$0xff]  }
 0x49b   :  { %8609 = vmatpush3.bf16.msra.mxu0 %v11345_v18  ;;  %8536 = vmatprep.subr.bf16.mxu1 %v11373_v7  ;;  %v11570_v57 = vld [vmem:[#allocation2 + $0xb8] sm:$0xff]  ;;  %v4853_v46 = vpop.permute.xlu1 %4852 }
 0x49c   :  { %8610 = vmatprep.subr.bf16.mxu0 %v11358_v42 }
 0x49d   :  { %1820 = vrot.lane.b32.xlu0 %v10687_v55, %s9285_s29  ;;  %4994 = vrot.lane.b32.xlu1 %v11570_v57, %s9284_s15  ;;  %v4851_v55 = vpop.permute.xlu0 %4850 }
 0x49e   :  { %8533 = vmatmul.mubr.bf16.vlgmr.msra.gmra.mrb[4].mxu1 %v11387_v37  ;;  %v12526_v37 = vld [vmem:[#allocation9_spill] sm:$0xff]  ;;  %v4855_v52 = vsel %vm4004_vm4, %v4851_v55, %v4853_v46  ;;  %v12536_v46 = vld [vmem:[#allocation15_spill] sm:$0xff]  ;;  %v11736_v55 = vld [vmem:[%s12496_s3 + $0xe0] sm:$0xff]  }
 0x49f   :  { %8537 = vmatpush3.bf16.msra.mxu1 %v11373_v7  ;;  %8552 = vmatprep.mubr.bf16.mxu1 %v11468_v56 }
 0x4a0   :  { %8611 = vmatpush3.bf16.msra.mxu0 %v11358_v42  ;;  %8538 = vmatprep.subr.bf16.mxu1 %v11584_v41 }
 0x4a1   :  { %2624 = vrot.lane.b32.xlu0 %v10874_v5, %s9283_s10  ;;  %952 = vrot.lane.b32.xlu1 %v12526_v37, %s9283_s10  ;;  %v11610_v5 = vld [vmem:[%s12496_s3 + $0x98] sm:$0xff]   ;;  %v12537_v37 = vld [vmem:[#allocation18_spill] sm:$0xff] }
 0x4a2   :  { %8616 = vmatprep.subr.bf16.mxu0 %v11373_v7 }
 0x4a3   :  { %8539 = vmatpush3.bf16.msra.mxu1 %v11584_v41  ;;  %8613 = vmatmul.mubr.bf16.vlgmr.msra.gmra.mrb[8].mxu0 %v4855_v52  ;;  %v12538_v52 = vld [vmem:[#allocation20_spill] sm:$0xff] }
 0x4a4   :  { %8540 = vmatprep.subr.bf16.mxu1 %v11597_v60  ;;  %8617 = vmatpush3.bf16.msra.mxu0 %v11373_v7 }
 0x4a5   :  { %3058 = vrot.lane.b32.xlu0 %v10952_v63, %s9284_s15  ;;  %1387 = vrot.lane.b32.xlu1 %v10588_v27, %s9284_s15  ;;  %v11623_v27 = vld [vmem:[%s12496_s3 + $0xa0] sm:$0xff]   ;;  %v12527_v63 = vld [vmem:[#allocation16_spill] sm:$0xff] }
 0x4a6   :  { %8618 = vmatprep.subr.bf16.mxu0 %v11584_v41 }
 0x4a7   :  { %8541 = vmatpush3.bf16.msra.mxu1 %v11597_v60 }
 0x4a8   :  { %8542 = vmatprep.subr.bf16.mxu1 %v11610_v5  ;;  %8619 = vmatpush3.bf16.msra.mxu0 %v11584_v41 }
 0x4a9   :  { %3492 = vrot.lane.b32.xlu0 %v11396_v6, %s9285_s29  ;;  %1822 = vrot.lane.b32.xlu1 %v10699_v40, %s9285_s29  ;;  %v11636_v40 = vld [vmem:[%s12496_s3 + $0xa8] sm:$0xff]   ;;  %v12528_v6 = vld [vmem:[#allocation4_spill] sm:$0xff] }
 0x4aa   :  { %8620 = vmatprep.subr.bf16.mxu0 %v11597_v60 }
 0x4ab   :  { %8543 = vmatpush3.bf16.msra.mxu1 %v11610_v5 }
 0x4ac   :  { %8544 = vmatprep.subr.bf16.mxu1 %v11623_v27  ;;  %8621 = vmatpush3.bf16.msra.mxu0 %v11597_v60 }
 0x4ad   :  { %5533 = vrot.lane.b32.xlu0 %v11532_v2, %s9284_s15  ;;  %2626 = vrot.lane.b32.xlu1 %v12527_v63, %s9283_s10  ;;  %v11758_v63 = vld [vmem:[%s12496_s3 + $0xf0] sm:$0xff]  }
 0x4ae   :  { %8622 = vmatprep.subr.bf16.mxu0 %v11610_v5 }
 0x4af   :  { %8545 = vmatpush3.bf16.msra.mxu1 %v11623_v27 }
 0x4b0   :  { %8546 = vmatprep.subr.bf16.mxu1 %v11636_v40  ;;  %8623 = vmatpush3.bf16.msra.mxu0 %v11610_v5 }
 0x4b1   :  { %5537 = vrot.lane.b32.xlu0 %v11542_v35, %s9284_s15  ;;  %3060 = vrot.lane.b32.xlu1 %v12528_v6, %s9284_s15  ;;  %v11776_v6 = vld [vmem:[%s12496_s3 + $0x40] sm:$0xff]  }
 0x4b2   :  { %8624 = vmatprep.subr.bf16.mxu0 %v11623_v27 }
 0x4b3   :  { %8547 = vmatpush3.bf16.msra.mxu1 %v11636_v40 }
 0x4b4   :  { %8548 = vmatprep.subr.bf16.mxu1 %v11649_v3  ;;  %8625 = vmatpush3.bf16.msra.mxu0 %v11623_v27 }
 0x4b5   :  { %954 = vrot.lane.b32.xlu0 %v12529_v0, %s9283_s10  ;;  %3494 = vrot.lane.b32.xlu1 %v11409_v25, %s9285_s29  ;;  %v8334_v61 = vpop.f32.mrb[0].mxu0 }
 0x4b6   :  { %8626 = vmatprep.subr.bf16.mxu0 %v11636_v40  ;;  %v3996_v34 = vadd.f32 %v8334_v61, %v11655_v12  ;;  %v3969_v50 = vpop.f32.mrb[1].mxu0 }
 0x4b7   :  { %8549 = vmatpush3.bf16.msra.mxu1 %v11649_v3  ;;  %v3994_v26 = vadd.f32 %v11655_v12, %v3969_v50  ;;  %v8335_v53 = vpop.f32.mrb[2].mxu0 }
 0x4b8   :  { %8550 = vmatprep.subr.bf16.mxu1 %v11669_v15  ;;  %8627 = vmatpush3.bf16.msra.mxu0 %v11636_v40  ;;  %v3997_v25 = vadd.f32 %v8335_v53, %v11655_v12  ;;  %v3972_v44 = vpop.f32.mrb[3].mxu0  ;;  %v4000_v10 = vmax.f32 %v3996_v34, 0.0 }
 0x4b9   :  { %1389 = vrot.lane.b32.xlu0 %v12530_v49, %s9284_s15  ;;  %5535 = vrot.lane.b32.xlu1 %v11559_v19, %s9284_s15  ;;  %v3995_v4 = vadd.f32 %v11655_v12, %v3972_v44  ;;  %v3998_v32 = vmax.f32 %v3994_v26, 0.0 }
 0x4ba   :  { %8628 = vmatprep.subr.bf16.mxu0 %v11649_v3  ;;  %v4001_v31 = vmax.f32 %v3997_v25, 0.0 }
 0x4bb   :  { %8551 = vmatpush3.bf16.msra.mxu1 %v11669_v15  ;;  %v3999_v17 = vmax.f32 %v3995_v4, 0.0 }
 0x4bc   :  { %8556 = vmatprep.subr.bf16.mxu1 %v11684_v36  ;;  %8629 = vmatpush3.bf16.msra.mxu0 %v11649_v3  ;;  %v4003_v39 = vpack.c.bf16 %v4001_v31, %v4000_v10  ;;  %v11861_v31 = vld [vmem:[%s12496_s3 + $0x50] sm:$0xff]  }
 0x4bd   :  { %1824 = vrot.lane.b32.xlu0 %v12531_v47, %s9285_s29  ;;  %5539 = vrot.lane.b32.xlu1 %v11570_v57, %s9284_s15  ;;  %v4002_v11 = vpack.c.bf16 %v3999_v17, %v3998_v32  ;;  %v11874_v17 = vld [vmem:[%s12496_s3 + $0x58] sm:$0xff]  }
 0x4be   :  { %8553 = vmatmul.mubr.bf16.vlgmr.msra.gmra.mrb[4].mxu1 %v11478_v21  ;;  %8630 = vmatprep.subr.bf16.mxu0 %v11669_v15  ;;  %4006 = vst.msk [vmem:[#allocation3 + $0x28] sm:$0xff] %vm4004_vm4, %v4003_v39  ;;  %v5066_v39 = vld [vmem:[#allocation2 + $0x58] sm:$0xff] }
 0x4bf   :  { %8557 = vmatpush3.bf16.msra.mxu1 %v11684_v36  ;;  %8572 = vmatprep.mubr.bf16.mxu1 %v11532_v2  ;;  %4005 = vst.msk [vmem:[#allocation3] sm:$0xff] %vm4004_vm4, %v4002_v11  ;;  %v11889_v11 = vld [vmem:[%s12496_s3 + $0x60] sm:$0xff]  }
 0x4c0   :  { %8558 = vmatprep.subr.bf16.mxu1 %v11701_v14  ;;  %8631 = vmatpush3.bf16.msra.mxu0 %v11669_v15 }
 0x4c1   :  { %2628 = vrot.lane.b32.xlu0 %v12532_v20, %s9283_s10  ;;  %956 = vrot.lane.b32.xlu1 %v12533_v59, %s9283_s10 }
 0x4c2   :  { %8636 = vmatprep.subr.bf16.mxu0 %v11684_v36 }
 0x4c3   :  { %8559 = vmatpush3.bf16.msra.mxu1 %v11701_v14 }
 0x4c4   :  { %8560 = vmatprep.subr.bf16.mxu1 %v11714_v51 }
 0x4c5   :  { %3062 = vrot.lane.b32.xlu0 %v12534_v43, %s9284_s15  ;;  %1391 = vrot.lane.b32.xlu1 %v12535_v45, %s9284_s15  ;;  %v11902_v43 = vld [vmem:[%s12496_s3 + $0x68] sm:$0xff]  }
 0x4c7   :  { %8561 = vmatpush3.bf16.msra.mxu1 %v11714_v51 }
 0x4c8   :  { %8562 = vmatprep.subr.bf16.mxu1 %v11725_v33 }
 0x4c9   :  { %3496 = vrot.lane.b32.xlu0 %v11426_v28, %s9285_s29  ;;  %1826 = vrot.lane.b32.xlu1 %v12536_v46, %s9285_s29  ;;  %v11747_v28 = vld [vmem:[%s12496_s3 + $0xe8] sm:$0xff]  }
 0x4cb   :  { %8563 = vmatpush3.bf16.msra.mxu1 %v11725_v33 }
 0x4cc   :  { %8564 = vmatprep.subr.bf16.mxu1 %v11736_v55 }
 0x4cd   :  { %5598 = vrot.lane.b32.xlu0 %v11468_v56, %s9284_s15  ;;  %2630 = vrot.lane.b32.xlu1 %v12537_v37, %s9283_s10  ;;  %v11916_v37 = vld [vmem:[%s12496_s3 + $0x70] sm:$0xff]  }
 0x4cf   :  { %8565 = vmatpush3.bf16.msra.mxu1 %v11736_v55 }
 0x4d0   :  { %8566 = vmatprep.subr.bf16.mxu1 %v11747_v28 }
 0x4d1   :  { %5602 = vrot.lane.b32.xlu0 %v11478_v21, %s9284_s15  ;;  %3064 = vrot.lane.b32.xlu1 %v12538_v52, %s9284_s15  ;;  %v11767_v21 = vld [vmem:[%s12496_s3 + $0xf8] sm:$0xff]  }
 0x4d3   :  { %8567 = vmatpush3.bf16.msra.mxu1 %v11747_v28 }
 0x4d4   :  { %8568 = vmatprep.subr.bf16.mxu1 %v11758_v63 }
 0x4d5   :  { %3498 = vrot.lane.b32.xlu1 %v11434_v8, %s9285_s29  ;;  %v5067_v8 = vld [vmem:[#allocation2 + $0x68] sm:$0xff] }
 0x4d7   :  { %8569 = vmatpush3.bf16.msra.mxu1 %v11758_v63 }
 0x4d8   :  { %8570 = vmatprep.subr.bf16.mxu1 %v11767_v21 }
 0x4d9   :  { %5600 = vrot.lane.b32.xlu1 %v11493_v23, %s9284_s15 }
 0x4db   :  { %8571 = vmatpush3.bf16.msra.mxu1 %v11767_v21 }
 0x4dc   :  { %8656 = vmatprep.subr.bf16.mxu1 %v11776_v6 }
 0x4dd   :  { %5604 = vrot.lane.b32.xlu1 %v11502_v1, %s9284_s15 }
 0x4de   :  { %8573 = vmatmul.mubr.bf16.vlgmr.msra.gmra.mrb[4].mxu1 %v11542_v35 }
 0x4df   :  { %8657 = vmatpush3.bf16.msra.mxu1 %v11776_v6  ;;  %8672 = vmatprep.mubr.bf16.mxu1 %v5067_v8  ;;  %v4916_v0 = vpop.permute.xlu0 %4915 }
 0x4e0   :  { %8658 = vmatprep.subr.bf16.mxu1 %v11186_v62 }
 0x4e3   :  { %8659 = vmatpush3.bf16.msra.mxu1 %v11186_v62  ;;  %v4920_v50 = vpop.permute.xlu0 %4919 }
 0x4e4   :  { %8660 = vmatprep.subr.bf16.mxu1 %v11197_v58 }
 0x4e7   :  { %8661 = vmatpush3.bf16.msra.mxu1 %v11197_v58  ;;  %v11808_v58 = vld [vmem:[%s12496_s3] sm:$0xff]  }
 0x4e8   :  { %8662 = vmatprep.subr.bf16.mxu1 %v11211_v30 }
 0x4eb   :  { %8663 = vmatpush3.bf16.msra.mxu1 %v11211_v30  ;;  %v4918_v61 = vpop.permute.xlu1 %4917  ;;  %v5068_v30 = vld [vmem:[#allocation2 + $0x78] sm:$0xff] }
 0x4ec   :  { %v4923_v34 = vsel %vm4004_vm4, %v4916_v0, %v4918_v61  ;;  %8664 = vmatprep.subr.bf16.mxu1 %v11224_v9  ;;  %v11929_v0 = vld [vmem:[%s12496_s3 + $0x78] sm:$0xff]  }
 0x4ed   :  { %8632 = vmatprep.mubr.bf16.mxu0 %v4923_v34 }
 0x4ef   :  { %8665 = vmatpush3.bf16.msra.mxu1 %v11224_v9  ;;  %v4922_v26 = vpop.permute.xlu1 %4921 }
 0x4f0   :  { %v4924_v62 = vsel %vm4004_vm4, %v4920_v50, %v4922_v26  ;;  %8666 = vmatprep.subr.bf16.mxu1 %v11237_v24 }
 0x4f1   :  { %8633 = vmatmul.mubr.bf16.vlgmr.msra.gmra.mrb[8].mxu0 %v4924_v62 }
 0x4f2   :  { %8637 = vmatpush3.bf16.msra.mxu0 %v11684_v36 }
 0x4f3   :  { %8667 = vmatpush3.bf16.msra.mxu1 %v11237_v24  ;;  %8638 = vmatprep.subr.bf16.mxu0 %v11701_v14  ;;  %v11818_v24 = vld [vmem:[%s12496_s3 + $0x8] sm:$0xff]  }
 0x4f4   :  { %8668 = vmatprep.subr.bf16.mxu1 %v11251_v29 }
 0x4f6   :  { %8639 = vmatpush3.bf16.msra.mxu0 %v11701_v14 }
 0x4f7   :  { %8669 = vmatpush3.bf16.msra.mxu1 %v11251_v29  ;;  %8640 = vmatprep.subr.bf16.mxu0 %v11714_v51 }
 0x4f8   :  { %8670 = vmatprep.subr.bf16.mxu1 %v11264_v48 }
 0x4fa   :  { %8641 = vmatpush3.bf16.msra.mxu0 %v11714_v51 }
 0x4fb   :  { %8671 = vmatpush3.bf16.msra.mxu1 %v11264_v48  ;;  %8642 = vmatprep.subr.bf16.mxu0 %v11725_v33 }
 0x4fc   :  { %8676 = vmatprep.subr.bf16.mxu1 %v11808_v58 }
 0x4fe   :  { %8643 = vmatpush3.bf16.msra.mxu0 %v11725_v33  ;;  %8673 = vmatmul.mubr.bf16.vlgmr.msra.gmra.mrb[8].mxu1 %v5068_v30 }
 0x4ff   :  { %8677 = vmatpush3.bf16.msra.mxu1 %v11808_v58  ;;  %8692 = vmatprep.mubr.bf16.mxu1 %v11382_v54  ;;  %v4989_v9 = vpop.permute.xlu0 %4988 }
 0x500   :  { %8644 = vmatprep.subr.bf16.mxu0 %v11736_v55  ;;  %8678 = vmatprep.subr.bf16.mxu1 %v11818_v24 }
 0x502   :  { %8645 = vmatpush3.bf16.msra.mxu0 %v11736_v55 }
 0x503   :  { %8679 = vmatpush3.bf16.msra.mxu1 %v11818_v24  ;;  %v4993_v29 = vpop.permute.xlu0 %4992  ;;  %8646 = vmatprep.subr.bf16.mxu0 %v11747_v28 }
 0x504   :  { %8680 = vmatprep.subr.bf16.mxu1 %v11292_v13 }
 0x506   :  { %8647 = vmatpush3.bf16.msra.mxu0 %v11747_v28 }
 0x507   :  { %8681 = vmatpush3.bf16.msra.mxu1 %v11292_v13  ;;  %v951_v48 = vpop.permute.xlu0 %950  ;;  %8648 = vmatprep.subr.bf16.mxu0 %v11758_v63 }
 0x508   :  { %970 = vst.msk [vmem:[#allocation2 + $0xc0] sm:$0xff] %vm748_vm1, %v951_v48  ;;  %8682 = vmatprep.subr.bf16.mxu1 %v11306_v38 }
 0x50a   :  { %8649 = vmatpush3.bf16.msra.mxu0 %v11758_v63 }
 0x50b   :  { %8683 = vmatpush3.bf16.msra.mxu1 %v11306_v38  ;;  %v4991_v54 = vpop.permute.xlu1 %4990  ;;  %v1386_v53 = vpop.permute.xlu0 %1385  ;;  %8650 = vmatprep.subr.bf16.mxu0 %v11767_v21 }
 0x50c   :  { %1405 = vst.msk [vmem:[#allocation2 + $0xc0] sm:$0xff] %vm1183_vm2, %v1386_v53  ;;  %v4996_v25 = vsel %vm4004_vm4, %v4989_v9, %v4991_v54  ;;  %8684 = vmatprep.subr.bf16.mxu1 %v11319_v22 }
 0x50d   :  { %8652 = vmatprep.mubr.bf16.mxu0 %v4996_v25 }
 0x50e   :  { %8651 = vmatpush3.bf16.msra.mxu0 %v11767_v21 }
 0x50f   :  { %8685 = vmatpush3.bf16.msra.mxu1 %v11319_v22  ;;  %v4995_v13 = vpop.permute.xlu1 %4994  ;;  %v1821_v49 = vpop.permute.xlu0 %1820  ;;  %8736 = vmatprep.subr.bf16.mxu0 %v11776_v6  ;;  %v11848_v22 = vld [vmem:[%s12496_s3 + $0x48] sm:$0xff]  }
 0x510   :  { %v4997_v38 = vsel %vm4004_vm4, %v4993_v29, %v4995_v13  ;;  %1840 = vst.msk [vmem:[#allocation2 + $0xc0] sm:$0xff] %vm1618_vm3, %v1821_v49  ;;  %8686 = vmatprep.subr.bf16.mxu1 %v11332_v16 }
 0x511   :  { %8653 = vmatmul.mubr.bf16.vlgmr.msra.gmra.mrb[8].mxu0 %v4997_v38 }
 0x512   :  { %8737 = vmatpush3.bf16.msra.mxu0 %v11776_v6  ;;  %8752 = vmatprep.mubr.bf16.mxu0 %v11532_v2 }
 0x513   :  { %8687 = vmatpush3.bf16.msra.mxu1 %v11332_v16  ;;  %v953_v44 = vpop.permute.xlu1 %952  ;;  %v2625_v4 = vpop.permute.xlu0 %2624  ;;  %8738 = vmatprep.subr.bf16.mxu0 %v11848_v22 }
 0x514   :  { %971 = vst.msk [vmem:[#allocation2 + $0xd0] sm:$0xff] %vm748_vm1, %v953_v44  ;;  %2644 = vst.msk [vmem:[#allocation2 + $0xc8] sm:$0xff] %vm748_vm1, %v2625_v4  ;;  %8688 = vmatprep.subr.bf16.mxu1 %v11345_v18 }
 0x516   :  { %8739 = vmatpush3.bf16.msra.mxu0 %v11848_v22 }
 0x517   :  { %8689 = vmatpush3.bf16.msra.mxu1 %v11345_v18  ;;  %v1388_v16 = vpop.permute.xlu1 %1387  ;;  %v3059_v2 = vpop.permute.xlu0 %3058  ;;  %v11856_v10 = vld [vmem:[#allocation2 + $0xc0] sm:$0xff]  ;;  %8740 = vmatprep.subr.bf16.mxu0 %v11861_v31 }
 0x518   :  { %1406 = vst.msk [vmem:[#allocation2 + $0xd0] sm:$0xff] %vm1183_vm2, %v1388_v16  ;;  %3078 = vst.msk [vmem:[#allocation2 + $0xc8] sm:$0xff] %vm1183_vm2, %v3059_v2  ;;  %5667 = vrot.lane.b32.xlu0 %v11856_v10, %s9284_s15  ;;  %8690 = vmatprep.subr.bf16.mxu1 %v11358_v42 }
 0x51a   :  { %8741 = vmatpush3.bf16.msra.mxu0 %v11861_v31 }
 0x51b   :  { %8691 = vmatpush3.bf16.msra.mxu1 %v11358_v42  ;;  %v1823_v18 = vpop.permute.xlu1 %1822  ;;  %v3493_v32 = vpop.permute.xlu0 %3492  ;;  %8742 = vmatprep.subr.bf16.mxu0 %v11874_v17 }
 0x51c   :  { %1841 = vst.msk [vmem:[#allocation2 + $0xd0] sm:$0xff] %vm1618_vm3, %v1823_v18  ;;  %3512 = vst.msk [vmem:[#allocation2 + $0xc8] sm:$0xff] %vm1618_vm3, %v3493_v32  ;;  %8696 = vmatprep.subr.bf16.mxu1 %v11373_v7 }
 0x51e   :  { %8693 = vmatmul.mubr.bf16.vlgmr.msra.gmra.mrb[8].mxu1 %v5066_v39  ;;  %8743 = vmatpush3.bf16.msra.mxu0 %v11874_v17  ;;  %v11966_v39 = vld [vmem:[%s12496_s3 + $0x10] sm:$0xff]  }
 0x51f   :  { %8697 = vmatpush3.bf16.msra.mxu1 %v11373_v7  ;;  %8712 = vmatprep.mubr.bf16.mxu1 %v11493_v23  ;;  %v2627_v42 = vpop.permute.xlu1 %2626  ;;  %v11883_v47 = vpop.permute.xlu0 %5533 }
 0x520   :  { %2645 = vst.msk [vmem:[#allocation2 + $0xd8] sm:$0xff] %vm748_vm1, %v2627_v42  ;;  %8744 = vmatprep.subr.bf16.mxu0 %v11889_v11  ;;  %8698 = vmatprep.subr.bf16.mxu1 %v11584_v41 }
 0x522   :  { %8745 = vmatpush3.bf16.msra.mxu0 %v11889_v11 }
 0x523   :  { %8699 = vmatpush3.bf16.msra.mxu1 %v11584_v41  ;;  %v3061_v7 = vpop.permute.xlu1 %3060  ;;  %v5538_v23 = vpop.permute.xlu0 %5537  ;;  %v11895_v20 = vld [vmem:[#allocation2 + $0xd0] sm:$0xff]  ;;  %v11897_v59 = vld [vmem:[#allocation2 + $0xc8] sm:$0xff]  ;;  %8746 = vmatprep.subr.bf16.mxu0 %v11902_v43 }
 0x524   :  { %3079 = vst.msk [vmem:[#allocation2 + $0xd8] sm:$0xff] %vm1183_vm2, %v3061_v7  ;;  %5671 = vrot.lane.b32.xlu0 %v11895_v20, %s9284_s15  ;;  %5669 = vrot.lane.b32.xlu1 %v11897_v59, %s9284_s15 }
 0x525   :  { %8700 = vmatprep.subr.bf16.mxu1 %v11597_v60 }
 0x526   :  { %8747 = vmatpush3.bf16.msra.mxu0 %v11902_v43 }
 0x527   :  { %8701 = vmatpush3.bf16.msra.mxu1 %v11597_v60  ;;  %v3495_v45 = vpop.permute.xlu1 %3494  ;;  %v955_v46 = vpop.permute.xlu0 %954  ;;  %8748 = vmatprep.subr.bf16.mxu0 %v11916_v37 }
 0x528   :  { %3513 = vst.msk [vmem:[#allocation2 + $0xd8] sm:$0xff] %vm1618_vm3, %v3495_v45  ;;  %8702 = vmatprep.subr.bf16.mxu1 %v11610_v5 }
 0x529   :  { %972 = vst.msk [vmem:[#allocation2 + $0xe0] sm:$0xff] %vm748_vm1, %v955_v46 }
 0x52a   :  { %8749 = vmatpush3.bf16.msra.mxu0 %v11916_v37 }
 0x52b   :  { %8703 = vmatpush3.bf16.msra.mxu1 %v11610_v5  ;;  %v11924_v52 = vpop.permute.xlu1 %5535  ;;  %v1390_v8 = vpop.permute.xlu0 %1389  ;;  %8750 = vmatprep.subr.bf16.mxu0 %v11929_v0 }
 0x52c   :  { %1407 = vst.msk [vmem:[#allocation2 + $0xe0] sm:$0xff] %vm1183_vm2, %v1390_v8  ;;  %8704 = vmatprep.subr.bf16.mxu1 %v11623_v27 }
 0x52e   :  { %8751 = vmatpush3.bf16.msra.mxu0 %v11929_v0 }
 0x52f   :  { %8705 = vmatpush3.bf16.msra.mxu1 %v11623_v27  ;;  %v5540_v61 = vpop.permute.xlu1 %5539  ;;  %v1825_v34 = vpop.permute.xlu0 %1824  ;;  %v11936_v50 = vld [vmem:[#allocation2 + $0xd8] sm:$0xff]  ;;  %8756 = vmatprep.subr.bf16.mxu0 %v11808_v58 }
 0x530   :  { %v11940_v26 = vsel %vm4004_vm4, %v5538_v23, %v5540_v61  ;;  %1842 = vst.msk [vmem:[#allocation2 + $0xe0] sm:$0xff] %vm1618_vm3, %v1825_v34  ;;  %5673 = vrot.lane.b32.xlu1 %v11936_v50, %s9284_s15  ;;  %8706 = vmatprep.subr.bf16.mxu1 %v11636_v40  ;;  %v8414_v62 = vpop.f32.mrb[0].mxu1 }
 0x531   :  { %8753 = vmatmul.mubr.bf16.vlgmr.msra.gmra.mrb[12].mxu0 %v11542_v35  ;;  %v4294_v30 = vadd.f32 %v8414_v62, %v11655_v12  ;;  %v4273_v9 = vpop.f32.mrb[1].mxu1 }
 0x532   :  { %8757 = vmatpush3.bf16.msra.mxu0 %v11808_v58  ;;  %8772 = vmatprep.mubr.bf16.mxu0 %v11468_v56  ;;  %v4292_v29 = vadd.f32 %v11655_v12, %v4273_v9  ;;  %v8415_v48 = vpop.f32.mrb[2].mxu1 }
 0x533   :  { %8707 = vmatpush3.bf16.msra.mxu1 %v11636_v40  ;;  %v957_v54 = vpop.permute.xlu1 %956  ;;  %8758 = vmatprep.subr.bf16.mxu0 %v11818_v24  ;;  %v4295_v53 = vadd.f32 %v8415_v48, %v11655_v12  ;;  %v2629_v35 = vpop.permute.xlu0 %2628  ;;  %v4298_v13 = vmax.f32 %v4294_v30, 0.0 }
 0x534   :  { %973 = vst.msk [vmem:[#allocation2 + $0xf0] sm:$0xff] %vm748_vm1, %v957_v54  ;;  %v4276_v25 = vpop.f32.mrb[3].mxu1  ;;  %8708 = vmatprep.subr.bf16.mxu1 %v11649_v3  ;;  %2646 = vst.msk [vmem:[#allocation2 + $0xe8] sm:$0xff] %vm748_vm1, %v2629_v35  ;;  %v4296_v44 = vmax.f32 %v4292_v29, 0.0  ;;  %v11986_v29 = vld [vmem:[%s12496_s3 + $0x18] sm:$0xff]  }
 0x535   :  { %v4293_v56 = vadd.f32 %v11655_v12, %v4276_v25  ;;  %v4299_v49 = vmax.f32 %v4295_v53, 0.0  ;;  %v8494_v38 = vpop.f32.mrb[4].mxu0 }
 0x536   :  { %8759 = vmatpush3.bf16.msra.mxu0 %v11818_v24  ;;  %v4527_v16 = vadd.f32 %v8494_v38, %v11655_v12  ;;  %v4506_v2 = vpop.f32.mrb[5].mxu0 }
 0x537   :  { %v4297_v4 = vmax.f32 %v4293_v56, 0.0  ;;  %8709 = vmatpush3.bf16.msra.mxu1 %v11649_v3  ;;  %v1392_v18 = vpop.permute.xlu1 %1391  ;;  %v11961_v32 = vld [vmem:[#allocation2 + $0xe0] sm:$0xff]  ;;  %8760 = vmatprep.subr.bf16.mxu0 %v11966_v39  ;;  %v11969_v42 = vpack.c.bf16 %v4299_v49, %v4298_v13  ;;  %v4525_v7 = vadd.f32 %v11655_v12, %v4506_v2  ;;  %v3063_v23 = vpop.permute.xlu0 %3062  ;;  %v12013_v49 = vld [vmem:[%s12496_s3 + $0x28] sm:$0xff]  }
 0x538   :  { %1408 = vst.msk [vmem:[#allocation2 + $0xf0] sm:$0xff] %vm1183_vm2, %v1392_v18  ;;  %v8495_v45 = vpop.f32.mrb[6].mxu0  ;;  %5740 = vrot.lane.b32.xlu0 %v11961_v32, %s9284_s15  ;;  %8710 = vmatprep.subr.bf16.mxu1 %v11669_v15  ;;  %3080 = vst.msk [vmem:[#allocation2 + $0xe8] sm:$0xff] %vm1183_vm2, %v3063_v23  ;;  %v4531_v62 = vmax.f32 %v4527_v16, 0.0  ;;  %v12002_v13 = vld [vmem:[%s12496_s3 + $0x20] sm:$0xff]   ;;  %v12039_v16 = vld [vmem:[%s12496_s3 + $0x38] sm:$0xff]  }
 0x539   :  { %v11976_v46 = vpack.c.bf16 %v4297_v4, %v4296_v44  ;;  %v4528_v8 = vadd.f32 %v8495_v45, %v11655_v12  ;;  %v4509_v61 = vpop.f32.mrb[7].mxu0  ;;  %v4529_v48 = vmax.f32 %v4525_v7, 0.0  ;;  %v12029_v4 = vld [vmem:[%s12496_s3 + $0x30] sm:$0xff]   ;;  %v12050_v18 = vld [vmem:[%s12496_s3 + $0x80] sm:$0xff]  }
 0x53a   :  { %v4526_v34 = vadd.f32 %v11655_v12, %v4509_v61  ;;  %8761 = vmatpush3.bf16.msra.mxu0 %v11966_v39  ;;  %v5298_v7 = vld [vmem:[#allocation2 + $0x90] sm:$0xff] }
 0x53b   :  { %v4532_v30 = vmax.f32 %v4528_v8, 0.0  ;;  %8711 = vmatpush3.bf16.msra.mxu1 %v11669_v15  ;;  %v1827_v9 = vpop.permute.xlu1 %1826  ;;  %8762 = vmatprep.subr.bf16.mxu0 %v11986_v29  ;;  %v3497_v53 = vpop.permute.xlu0 %3496 }
 0x53c   :  { %v4530_v54 = vmax.f32 %v4526_v34, 0.0  ;;  %1843 = vst.msk [vmem:[#allocation2 + $0xf0] sm:$0xff] %vm1618_vm3, %v1827_v9  ;;  %8716 = vmatprep.subr.bf16.mxu1 %v11684_v36  ;;  %3514 = vst.msk [vmem:[#allocation2 + $0xe8] sm:$0xff] %vm1618_vm3, %v3497_v53  ;;  %v9275_v53 = vld [vmem:[%s12496_s3 + $0x88] sm:$0xff]  }
 0x53d   :  { %v4534_v35 = vpack.c.bf16 %v4532_v30, %v4531_v62 }
 0x53e   :  { %v4533_v25 = vpack.c.bf16 %v4530_v54, %v4529_v48  ;;  %8713 = vmatmul.mubr.bf16.vlgmr.msra.gmra.mrb[8].mxu1 %v11502_v1  ;;  %8763 = vmatpush3.bf16.msra.mxu0 %v11986_v29 }
 0x53f   :  { %4536 = vst.msk [vmem:[#allocation3 + $0x30] sm:$0xff] %vm4004_vm4, %v4534_v35  ;;  %8717 = vmatpush3.bf16.msra.mxu1 %v11684_v36  ;;  %8732 = vmatprep.mubr.bf16.mxu1 %v11559_v19  ;;  %v2631_v56 = vpop.permute.xlu1 %2630  ;;  %v9276_v35 = vld [vmem:[%s12496_s3 + $0x90] sm:$0xff]  }
 0x540   :  { %4535 = vst.msk [vmem:[#allocation3 + $0x8] sm:$0xff] %vm4004_vm4, %v4533_v25  ;;  %8764 = vmatprep.subr.bf16.mxu0 %v12002_v13  ;;  %8718 = vmatprep.subr.bf16.mxu1 %v11701_v14  ;;  %v9277_v25 = vld [vmem:[%s12496_s3 + $0x98] sm:$0xff]  }
 0x541   :  { %2647 = vst.msk [vmem:[#allocation2 + $0xf8] sm:$0xff] %vm748_vm1, %v2631_v56 }
 0x542   :  { %8765 = vmatpush3.bf16.msra.mxu0 %v12002_v13 }
 0x543   :  { %8719 = vmatpush3.bf16.msra.mxu1 %v11701_v14  ;;  %v3065_v1 = vpop.permute.xlu1 %3064  ;;  %v12008_v19 = vld [vmem:[#allocation2 + $0xf0] sm:$0xff]  ;;  %8766 = vmatprep.subr.bf16.mxu0 %v12013_v49  ;;  %v12019_v38 = vld [vmem:[#allocation2 + $0xe8] sm:$0xff] }
 0x544   :  { %3081 = vst.msk [vmem:[#allocation2 + $0xf8] sm:$0xff] %vm1183_vm2, %v3065_v1  ;;  %5744 = vrot.lane.b32.xlu0 %v12008_v19, %s9284_s15  ;;  %8720 = vmatprep.subr.bf16.mxu1 %v11714_v51  ;;  %v9278_v1 = vld [vmem:[%s12496_s3 + $0xa0] sm:$0xff]  }
 0x545   :  { %5742 = vrot.lane.b32.xlu1 %v12019_v38, %s9284_s15 }
 0x546   :  { %8767 = vmatpush3.bf16.msra.mxu0 %v12013_v49 }
 0x547   :  { %8721 = vmatpush3.bf16.msra.mxu1 %v11714_v51  ;;  %v3499_v44 = vpop.permute.xlu1 %3498  ;;  %8768 = vmatprep.subr.bf16.mxu0 %v12029_v4 }
 0x548   :  { %3515 = vst.msk [vmem:[#allocation2 + $0xf8] sm:$0xff] %vm1618_vm3, %v3499_v44  ;;  %8722 = vmatprep.subr.bf16.mxu1 %v11725_v33 }
 0x54a   :  { %8769 = vmatpush3.bf16.msra.mxu0 %v12029_v4 }
 0x54b   :  { %8723 = vmatpush3.bf16.msra.mxu1 %v11725_v33  ;;  %8770 = vmatprep.subr.bf16.mxu0 %v12039_v16 }
 0x54c   :  { %8724 = vmatprep.subr.bf16.mxu1 %v11736_v55 }
 0x54e   :  { %8771 = vmatpush3.bf16.msra.mxu0 %v12039_v16 }
 0x54f   :  { %8725 = vmatpush3.bf16.msra.mxu1 %v11736_v55  ;;  %v12045_v2 = vld [vmem:[#allocation2 + $0xf8] sm:$0xff]  ;;  %8776 = vmatprep.subr.bf16.mxu0 %v12050_v18 }
 0x550   :  { %5746 = vrot.lane.b32.xlu1 %v12045_v2, %s9284_s15  ;;  %8726 = vmatprep.subr.bf16.mxu1 %v11747_v28 }
 0x551   :  { %8773 = vmatmul.mubr.bf16.vlgmr.msra.gmra.mrb[12].mxu0 %v5298_v7 }
 0x552   :  { %8777 = vmatpush3.bf16.msra.mxu0 %v12050_v18  ;;  %8792 = vmatprep.mubr.bf16.mxu0 %v11856_v10  ;;  %v5541_v10 = vsel %vm4004_vm4, %v11883_v47, %v11924_v52  ;;  %v5599_v47 = vpop.permute.xlu0 %5598  ;;  %v5827_v52 = vld [vmem:[#allocation2 + $0xa8] sm:$0xff] }
 0x553   :  { %8727 = vmatpush3.bf16.msra.mxu1 %v11747_v28  ;;  %8778 = vmatprep.subr.bf16.mxu0 %v11584_v41 }
 0x554   :  { %8728 = vmatprep.subr.bf16.mxu1 %v11758_v63 }
 0x556   :  { %8779 = vmatpush3.bf16.msra.mxu0 %v11584_v41 }
 0x557   :  { %8729 = vmatpush3.bf16.msra.mxu1 %v11758_v63  ;;  %8780 = vmatprep.subr.bf16.mxu0 %v11597_v60 }
 0x558   :  { %8730 = vmatprep.subr.bf16.mxu1 %v11767_v21 }
 0x55a   :  { %8781 = vmatpush3.bf16.msra.mxu0 %v11597_v60 }
 0x55b   :  { %8731 = vmatpush3.bf16.msra.mxu1 %v11767_v21  ;;  %8782 = vmatprep.subr.bf16.mxu0 %v11610_v5 }
 0x55c   :  { %8816 = vmatprep.subr.bf16.mxu1 %v11776_v6 }
 0x55e   :  { %8733 = vmatmul.mubr.bf16.vlgmr.msra.gmra.mrb[8].mxu1 %v11570_v57  ;;  %8783 = vmatpush3.bf16.msra.mxu0 %v11610_v5  ;;  %v5601_v57 = vpop.permute.xlu1 %5600 }
 0x55f   :  { %8817 = vmatpush3.bf16.msra.mxu1 %v11776_v6  ;;  %8832 = vmatprep.mubr.bf16.mxu1 %v5541_v10 }
 0x560   :  { %8784 = vmatprep.subr.bf16.mxu0 %v11623_v27  ;;  %8818 = vmatprep.subr.bf16.mxu1 %v11848_v22 }
 0x562   :  { %8785 = vmatpush3.bf16.msra.mxu0 %v11623_v27 }
 0x563   :  { %8819 = vmatpush3.bf16.msra.mxu1 %v11848_v22  ;;  %8786 = vmatprep.subr.bf16.mxu0 %v11636_v40 }
 0x564   :  { %8820 = vmatprep.subr.bf16.mxu1 %v11861_v31 }
 0x566   :  { %8787 = vmatpush3.bf16.msra.mxu0 %v11636_v40 }
 0x567   :  { %8821 = vmatpush3.bf16.msra.mxu1 %v11861_v31  ;;  %8788 = vmatprep.subr.bf16.mxu0 %v11649_v3 }
 0x568   :  { %8822 = vmatprep.subr.bf16.mxu1 %v11874_v17 }
 0x56a   :  { %8789 = vmatpush3.bf16.msra.mxu0 %v11649_v3 }
 0x56b   :  { %8823 = vmatpush3.bf16.msra.mxu1 %v11874_v17  ;;  %8790 = vmatprep.subr.bf16.mxu0 %v11669_v15 }
 0x56c   :  { %8824 = vmatprep.subr.bf16.mxu1 %v11889_v11 }
 0x56e   :  { %8791 = vmatpush3.bf16.msra.mxu0 %v11669_v15 }
 0x56f   :  { %8825 = vmatpush3.bf16.msra.mxu1 %v11889_v11  ;;  %8796 = vmatprep.subr.bf16.mxu0 %v11684_v36 }
 0x570   :  { %8826 = vmatprep.subr.bf16.mxu1 %v11902_v43 }
 0x571   :  { %8793 = vmatmul.mubr.bf16.vlgmr.msra.gmra.mrb[12].mxu0 %v11895_v20  ;;  %v5606_v20 = vsel %vm4004_vm4, %v5599_v47, %v5601_v57  ;;  %v9280_v57 = vld [vmem:[%s12496_s3 + $0xb0] sm:$0xff]  }
 0x572   :  { %8797 = vmatpush3.bf16.msra.mxu0 %v11684_v36  ;;  %8812 = vmatprep.mubr.bf16.mxu0 %v11961_v32  ;;  %v5603_v32 = vpop.permute.xlu0 %5602 }
 0x573   :  { %8827 = vmatpush3.bf16.msra.mxu1 %v11902_v43  ;;  %8798 = vmatprep.subr.bf16.mxu0 %v11701_v14 }
 0x574   :  { %8828 = vmatprep.subr.bf16.mxu1 %v11916_v37 }
 0x576   :  { %8799 = vmatpush3.bf16.msra.mxu0 %v11701_v14 }
 0x577   :  { %8829 = vmatpush3.bf16.msra.mxu1 %v11916_v37  ;;  %8800 = vmatprep.subr.bf16.mxu0 %v11714_v51 }
 0x578   :  { %8830 = vmatprep.subr.bf16.mxu1 %v11929_v0 }
 0x57a   :  { %8801 = vmatpush3.bf16.msra.mxu0 %v11714_v51 }
 0x57b   :  { %8831 = vmatpush3.bf16.msra.mxu1 %v11929_v0  ;;  %8802 = vmatprep.subr.bf16.mxu0 %v11725_v33 }
 0x57c   :  { %8836 = vmatprep.subr.bf16.mxu1 %v11808_v58 }
 0x57e   :  { %8803 = vmatpush3.bf16.msra.mxu0 %v11725_v33  ;;  %8833 = vmatmul.mubr.bf16.vlgmr.msra.gmra.mrb[12].mxu1 %v11940_v26  ;;  %v5605_v26 = vpop.permute.xlu1 %5604 }
 0x57f   :  { %8837 = vmatpush3.bf16.msra.mxu1 %v11808_v58  ;;  %8852 = vmatprep.mubr.bf16.mxu1 %v5606_v20  ;;  %v5607_v23 = vsel %vm4004_vm4, %v5603_v32, %v5605_v26 }
 0x580   :  { %8804 = vmatprep.subr.bf16.mxu0 %v11736_v55  ;;  %8838 = vmatprep.subr.bf16.mxu1 %v11818_v24 }
 0x582   :  { %8805 = vmatpush3.bf16.msra.mxu0 %v11736_v55 }
 0x583   :  { %8839 = vmatpush3.bf16.msra.mxu1 %v11818_v24  ;;  %8806 = vmatprep.subr.bf16.mxu0 %v11747_v28 }
 0x584   :  { %8840 = vmatprep.subr.bf16.mxu1 %v11966_v39 }
 0x586   :  { %8807 = vmatpush3.bf16.msra.mxu0 %v11747_v28 }
 0x587   :  { %8841 = vmatpush3.bf16.msra.mxu1 %v11966_v39  ;;  %8808 = vmatprep.subr.bf16.mxu0 %v11758_v63 }
 0x588   :  { %8842 = vmatprep.subr.bf16.mxu1 %v11986_v29 }
 0x58a   :  { %8809 = vmatpush3.bf16.msra.mxu0 %v11758_v63 }
 0x58b   :  { %8843 = vmatpush3.bf16.msra.mxu1 %v11986_v29  ;;  %8810 = vmatprep.subr.bf16.mxu0 %v11767_v21 }
 0x58c   :  { %8844 = vmatprep.subr.bf16.mxu1 %v12002_v13 }
 0x58e   :  { %8811 = vmatpush3.bf16.msra.mxu0 %v11767_v21 }
 0x58f   :  { %8845 = vmatpush3.bf16.msra.mxu1 %v12002_v13  ;;  %8896 = vmatprep.subr.bf16.mxu0 %v11776_v6 }
 0x590   :  { %8846 = vmatprep.subr.bf16.mxu1 %v12013_v49 }
 0x591   :  { %8813 = vmatmul.mubr.bf16.vlgmr.msra.gmra.mrb[12].mxu0 %v12008_v19 }
 0x592   :  { %8897 = vmatpush3.bf16.msra.mxu0 %v11776_v6  ;;  %8912 = vmatprep.mubr.bf16.mxu0 %v5827_v52 }
 0x593   :  { %8847 = vmatpush3.bf16.msra.mxu1 %v12013_v49  ;;  %8898 = vmatprep.subr.bf16.mxu0 %v11848_v22 }
 0x594   :  { %8848 = vmatprep.subr.bf16.mxu1 %v12029_v4 }
 0x596   :  { %8899 = vmatpush3.bf16.msra.mxu0 %v11848_v22  ;;  %v5670_v6 = vpop.permute.xlu1 %5669  ;;  %v5668_v22 = vpop.permute.xlu0 %5667 }
 0x597   :  { %8849 = vmatpush3.bf16.msra.mxu1 %v12029_v4  ;;  %8900 = vmatprep.subr.bf16.mxu0 %v11861_v31  ;;  %v5675_v45 = vsel %vm4004_vm4, %v5668_v22, %v5670_v6 }
 0x598   :  { %8850 = vmatprep.subr.bf16.mxu1 %v12039_v16 }
 0x59a   :  { %8901 = vmatpush3.bf16.msra.mxu0 %v11861_v31  ;;  %v5825_v31 = vld [vmem:[#allocation2 + $0x88] sm:$0xff]  ;;  %v5672_v48 = vpop.permute.xlu0 %5671 }
 0x59b   :  { %8851 = vmatpush3.bf16.msra.mxu1 %v12039_v16  ;;  %8902 = vmatprep.subr.bf16.mxu0 %v11874_v17 }
 0x59c   :  { %8856 = vmatprep.subr.bf16.mxu1 %v12050_v18 }
 0x59e   :  { %8853 = vmatmul.mubr.bf16.vlgmr.msra.gmra.mrb[12].mxu1 %v5607_v23  ;;  %8903 = vmatpush3.bf16.msra.mxu0 %v11874_v17  ;;  %v9282_v23 = vld [vmem:[%s12496_s3 + $0xb8] sm:$0xff]  }
 0x59f   :  { %8857 = vmatpush3.bf16.msra.mxu1 %v12050_v18  ;;  %8872 = vmatprep.mubr.bf16.mxu1 %v5675_v45 }
 0x5a0   :  { %8904 = vmatprep.subr.bf16.mxu0 %v11889_v11  ;;  %8858 = vmatprep.subr.bf16.mxu1 %v11584_v41 }
 0x5a2   :  { %8905 = vmatpush3.bf16.msra.mxu0 %v11889_v11  ;;  %v5674_v62 = vpop.permute.xlu1 %5673 }
 0x5a3   :  { %8859 = vmatpush3.bf16.msra.mxu1 %v11584_v41  ;;  %8906 = vmatprep.subr.bf16.mxu0 %v11902_v43  ;;  %v5828_v41 = vld [vmem:[#allocation2 + $0xb8] sm:$0xff] }
 0x5a4   :  { %8860 = vmatprep.subr.bf16.mxu1 %v11597_v60 }
 0x5a6   :  { %8907 = vmatpush3.bf16.msra.mxu0 %v11902_v43 }
 0x5a7   :  { %8861 = vmatpush3.bf16.msra.mxu1 %v11597_v60  ;;  %8908 = vmatprep.subr.bf16.mxu0 %v11916_v37 }
 0x5a8   :  { %8862 = vmatprep.subr.bf16.mxu1 %v11610_v5 }
 0x5aa   :  { %8909 = vmatpush3.bf16.msra.mxu0 %v11916_v37 }
 0x5ab   :  { %8863 = vmatpush3.bf16.msra.mxu1 %v11610_v5  ;;  %8910 = vmatprep.subr.bf16.mxu0 %v11929_v0 }
 0x5ac   :  { %8864 = vmatprep.subr.bf16.mxu1 %v11623_v27 }
 0x5ae   :  { %8911 = vmatpush3.bf16.msra.mxu0 %v11929_v0 }
 0x5af   :  { %8865 = vmatpush3.bf16.msra.mxu1 %v11623_v27  ;;  %8916 = vmatprep.subr.bf16.mxu0 %v11808_v58 }
 0x5b0   :  { %8866 = vmatprep.subr.bf16.mxu1 %v11636_v40 }
 0x5b1   :  { %v8574_v60 = vpop.f32.mrb[4].mxu1  ;;  %8913 = vmatmul.mubr.bf16.vlgmr.msra.gmra.mrb[16].mxu0 %v5828_v41 }
 0x5b2   :  { %v4751_v17 = vadd.f32 %v8574_v60, %v11655_v12  ;;  %v4730_v11 = vpop.f32.mrb[5].mxu1  ;;  %8917 = vmatpush3.bf16.msra.mxu0 %v11808_v58  ;;  %8932 = vmatprep.mubr.bf16.mxu0 %v5825_v31 }
 0x5b3   :  { %v4749_v5 = vadd.f32 %v11655_v12, %v4730_v11  ;;  %v8575_v43 = vpop.f32.mrb[6].mxu1  ;;  %8867 = vmatpush3.bf16.msra.mxu1 %v11636_v40  ;;  %8918 = vmatprep.subr.bf16.mxu0 %v11818_v24 }
 0x5b4   :  { %v4752_v27 = vadd.f32 %v8575_v43, %v11655_v12  ;;  %v4733_v37 = vpop.f32.mrb[7].mxu1  ;;  %8868 = vmatprep.subr.bf16.mxu1 %v11649_v3  ;;  %v4755_v8 = vmax.f32 %v4751_v17, 0.0 }
 0x5b5   :  { %v4750_v0 = vadd.f32 %v11655_v12, %v4733_v37  ;;  %v4753_v58 = vmax.f32 %v4749_v5, 0.0 }
 0x5b6   :  { %v4756_v61 = vmax.f32 %v4752_v27, 0.0  ;;  %8919 = vmatpush3.bf16.msra.mxu0 %v11818_v24  ;;  %v5741_v24 = vpop.permute.xlu0 %5740 }
 0x5b7   :  { %v4754_v34 = vmax.f32 %v4750_v0, 0.0  ;;  %8869 = vmatpush3.bf16.msra.mxu1 %v11649_v3  ;;  %8920 = vmatprep.subr.bf16.mxu0 %v11966_v39  ;;  %v5743_v54 = vpop.permute.xlu1 %5742  ;;  %v5676_v3 = vsel %vm4004_vm4, %v5672_v48, %v5674_v62  ;;  %v9286_v48 = vmov 0  }
 0x5b8   :  { %v4758_v30 = vpack.c.bf16 %v4756_v61, %v4755_v8  ;;  %8870 = vmatprep.subr.bf16.mxu1 %v11669_v15 }
 0x5b9   :  { %v4757_v9 = vpack.c.bf16 %v4754_v34, %v4753_v58 }
 0x5ba   :  { %8921 = vmatpush3.bf16.msra.mxu0 %v11966_v39  ;;  %v5748_v39 = vsel %vm4004_vm4, %v5741_v24, %v5743_v54  ;;  %v5745_v56 = vpop.permute.xlu0 %5744  ;;  %v9148_v54 = vld [vmem:[%s12498_s5 + $0x60] sm:$0xff]   ;;  %v9150_v24 = vld [vmem:[%s12498_s5 + $0x70] sm:$0xff]  }
 0x5bb   :  { %4761 = vrot.lane.b32.xlu0 %v4757_v9, %s9284_s15  ;;  %8871 = vmatpush3.bf16.msra.mxu1 %v11669_v15 }
 0x5bc   :  { %8922 = vmatprep.subr.bf16.mxu0 %v11986_v29  ;;  %8876 = vmatprep.subr.bf16.mxu1 %v11684_v36 }
 0x5be   :  { %8873 = vmatmul.mubr.bf16.vlgmr.msra.gmra.mrb[12].mxu1 %v5676_v3  ;;  %8923 = vmatpush3.bf16.msra.mxu0 %v11986_v29  ;;  %v5826_v29 = vld [vmem:[#allocation2 + $0x98] sm:$0xff]  ;;  %v9149_v3 = vld [vmem:[%s12498_s5 + $0x68] sm:$0xff]  }
 0x5bf   :  { %4763 = vrot.lane.b32.xlu0 %v4758_v30, %s9284_s15  ;;  %8877 = vmatpush3.bf16.msra.mxu1 %v11684_v36 }
 0x5c0   :  { %8892 = vmatprep.mubr.bf16.mxu1 %v5748_v39  ;;  %8924 = vmatprep.subr.bf16.mxu0 %v12002_v13  ;;  %v9151_v39 = vld [vmem:[%s12498_s5 + $0x78] sm:$0xff]  }
 0x5c1   :  { %8878 = vmatprep.subr.bf16.mxu1 %v11701_v14 }
 0x5c2   :  { %8925 = vmatpush3.bf16.msra.mxu0 %v12002_v13 }
 0x5c3   :  { %8879 = vmatpush3.bf16.msra.mxu1 %v11701_v14  ;;  %8926 = vmatprep.subr.bf16.mxu0 %v12013_v49 }
 0x5c4   :  { %8880 = vmatprep.subr.bf16.mxu1 %v11714_v51 }
 0x5c6   :  { %8927 = vmatpush3.bf16.msra.mxu0 %v12013_v49 }
 0x5c7   :  { %8881 = vmatpush3.bf16.msra.mxu1 %v11714_v51  ;;  %8928 = vmatprep.subr.bf16.mxu0 %v12029_v4 }
 0x5c8   :  { %8882 = vmatprep.subr.bf16.mxu1 %v11725_v33 }
 0x5ca   :  { %8929 = vmatpush3.bf16.msra.mxu0 %v12029_v4 }
 0x5cb   :  { %8883 = vmatpush3.bf16.msra.mxu1 %v11725_v33  ;;  %8930 = vmatprep.subr.bf16.mxu0 %v12039_v16 }
 0x5cc   :  { %8884 = vmatprep.subr.bf16.mxu1 %v11736_v55 }
 0x5ce   :  { %8931 = vmatpush3.bf16.msra.mxu0 %v12039_v16  ;;  %v9279_v16 = vld [vmem:[%s12496_s3 + $0xa8] sm:$0xff]  }
 0x5cf   :  { %8885 = vmatpush3.bf16.msra.mxu1 %v11736_v55  ;;  %8936 = vmatprep.subr.bf16.mxu0 %v12050_v18 }
 0x5d0   :  { %8886 = vmatprep.subr.bf16.mxu1 %v11747_v28 }
 0x5d1   :  { %8933 = vmatmul.mubr.bf16.vlgmr.msra.gmra.mrb[16].mxu0 %v5826_v29  ;;  %v9152_v29 = vld [vmem:[%s12498_s5 + $0x80] sm:$0xff]  }
 0x5d2   :  { %8937 = vmatpush3.bf16.msra.mxu0 %v12050_v18  ;;  %8952 = vmatprep.mubr.bf16.mxu0 %v11897_v59  ;;  %v5747_v59 = vpop.permute.xlu1 %5746 }
 0x5d3   :  { %8887 = vmatpush3.bf16.msra.mxu1 %v11747_v28  ;;  %8938 = vmatprep.subr.bf16.mxu0 %v9275_v53  ;;  %v5749_v13 = vsel %vm4004_vm4, %v5745_v56, %v5747_v59  ;;  %v9155_v59 = vld [vmem:[%s12498_s5 + $0x98] sm:$0xff]   ;;  %v9157_v56 = vld [vmem:[%s12498_s5 + $0xa8] sm:$0xff]  }
 0x5d4   :  { %8888 = vmatprep.subr.bf16.mxu1 %v11758_v63 }
 0x5d6   :  { %8939 = vmatpush3.bf16.msra.mxu0 %v9275_v53  ;;  %v9153_v53 = vld [vmem:[%s12498_s5 + $0x88] sm:$0xff]  }
 0x5d7   :  { %8889 = vmatpush3.bf16.msra.mxu1 %v11758_v63  ;;  %8940 = vmatprep.subr.bf16.mxu0 %v9276_v35 }
 0x5d8   :  { %8890 = vmatprep.subr.bf16.mxu1 %v11767_v21 }
 0x5da   :  { %8941 = vmatpush3.bf16.msra.mxu0 %v9276_v35  ;;  %v9154_v35 = vld [vmem:[%s12498_s5 + $0x90] sm:$0xff]  }
 0x5db   :  { %8891 = vmatpush3.bf16.msra.mxu1 %v11767_v21  ;;  %8942 = vmatprep.subr.bf16.mxu0 %v9277_v25 }
 0x5dc   :  { %6225 = vmatprep.subr.bf16.mxu1 %v9286_v48 }
 0x5de   :  { %8893 = vmatmul.mubr.bf16.vlgmr.msra.gmra.mrb[12].mxu1 %v5749_v13  ;;  %8943 = vmatpush3.bf16.msra.mxu0 %v9277_v25  ;;  %v9156_v25 = vld [vmem:[%s12498_s5 + $0xa0] sm:$0xff]   ;;  %v9158_v13 = vld [vmem:[%s12498_s5 + $0xb0] sm:$0xff]  }
 0x5df   :  { %8944 = vmatprep.subr.bf16.mxu0 %v9278_v1  ;;  %6226 = vmatpush1.bf16.msra.mxu1 %v9148_v54  ;;  %v9168_v54 = vld [vmem:[%s12498_s5 + $0x40] sm:$0xff]  }
 0x5e0   :  { %6227 = vmatprep.subr.bf16.mxu1 %v9286_v48 }
 0x5e2   :  { %8945 = vmatpush3.bf16.msra.mxu0 %v9278_v1  ;;  %v9159_v1 = vld [vmem:[%s12498_s5 + $0xb8] sm:$0xff]  }
 0x5e3   :  { %8946 = vmatprep.subr.bf16.mxu0 %v11636_v40  ;;  %v12237_v40 = vld [vmem:[%s12497_s4] ss:$0 sm:$0xff]  ;;  %6228 = vmatpush1.bf16.msra.mxu1 %v9149_v3  ;;  %v9169_v3 = vld [vmem:[%s12498_s5 + $0x48] sm:$0xff]  }
 0x5e4   :  { %v8654_v19 = vpop.f32.mrb[8].mxu0  ;;  %6229 = vmatprep.subr.bf16.mxu1 %v9286_v48 }
 0x5e5   :  { %v5055_v49 = vadd.f32 %v8654_v19, %v11655_v12  ;;  %v5034_v44 = vpop.f32.mrb[9].mxu0 }
 0x5e6   :  { %v5053_v4 = vadd.f32 %v11655_v12, %v5034_v44  ;;  %8947 = vmatpush3.bf16.msra.mxu0 %v9279_v16  ;;  %v8655_v18 = vpop.f32.mrb[10].mxu0 }
 0x5e7   :  { %v5056_v7 = vadd.f32 %v8655_v18, %v11655_v12  ;;  %v5037_v10 = vpop.f32.mrb[11].mxu0  ;;  %8948 = vmatprep.subr.bf16.mxu0 %v9280_v57  ;;  %v5059_v20 = vmax.f32 %v5055_v49, 0.0  ;;  %6230 = vmatpush1.bf16.msra.mxu1 %v9150_v24  ;;  %v9170_v24 = vld [vmem:[%s12498_s5 + $0x50] sm:$0xff]  }
 0x5e8   :  { %v5054_v47 = vadd.f32 %v12237_v40, %v5037_v10  ;;  %v5057_v26 = vmax.f32 %v5053_v4, 0.0  ;;  %6231 = vmatprep.subr.bf16.mxu1 %v9286_v48 }
 0x5e9   :  { %v5060_v52 = vmax.f32 %v5056_v7, 0.0 }
 0x5ea   :  { %v5058_v32 = vmax.f32 %v5054_v47, 0.0  ;;  %8949 = vmatpush3.bf16.msra.mxu0 %v9280_v57 }
 0x5eb   :  { %v5062_v6 = vpack.c.bf16 %v5060_v52, %v5059_v20  ;;  %8950 = vmatprep.subr.bf16.mxu0 %v11669_v15  ;;  %6232 = vmatpush1.bf16.msra.mxu1 %v9151_v39  ;;  %v9171_v39 = vld [vmem:[%s12498_s5 + $0x58] sm:$0xff]  }
 0x5ec   :  { %v5061_v12 = vpack.c.bf16 %v5058_v32, %v5057_v26  ;;  %6233 = vmatprep.subr.bf16.mxu1 %v9286_v48 }
 0x5ed   :  { %5064 = vst.msk [vmem:[#allocation3 + $0x38] sm:$0xff] %vm4004_vm4, %v5062_v6 }
 0x5ee   :  { %5063 = vst.msk [vmem:[#allocation3 + $0x10] sm:$0xff] %vm4004_vm4, %v5061_v12  ;;  %8951 = vmatpush3.bf16.msra.mxu0 %v9282_v23 }
 0x5ef   :  { %8956 = vmatprep.subr.bf16.mxu0 %v11684_v36  ;;  %6234 = vmatpush1.bf16.msra.mxu1 %v9152_v29  ;;  %v9172_v29 = vld [vmem:[%s12498_s5 + $0xc0] sm:$0xff]  }
 0x5f0   :  { %6235 = vmatprep.subr.bf16.mxu1 %v9286_v48 }
 0x5f1   :  { %8953 = vmatmul.mubr.bf16.vlgmr.msra.gmra.mrb[16].mxu0 %v11936_v50 }
 0x5f2   :  { %8957 = vmatpush3.bf16.msra.mxu0 %v11684_v36  ;;  %8972 = vmatprep.mubr.bf16.mxu0 %v12019_v38 }
 0x5f3   :  { %8958 = vmatprep.subr.bf16.mxu0 %v11701_v14  ;;  %6236 = vmatpush1.bf16.msra.mxu1 %v9153_v53 }
 0x5f4   :  { %6237 = vmatprep.subr.bf16.mxu1 %v9286_v48 }
 0x5f6   :  { %8959 = vmatpush3.bf16.msra.mxu0 %v11701_v14 }
 0x5f7   :  { %8960 = vmatprep.subr.bf16.mxu0 %v11714_v51  ;;  %6238 = vmatpush1.bf16.msra.mxu1 %v9154_v35  ;;  %v9173_v35 = vld [vmem:[%s12498_s5 + $0xc8] sm:$0xff]  }
 0x5f8   :  { %6239 = vmatprep.subr.bf16.mxu1 %v9286_v48 }
 0x5fa   :  { %8961 = vmatpush3.bf16.msra.mxu0 %v11714_v51 }
 0x5fb   :  { %8962 = vmatprep.subr.bf16.mxu0 %v11725_v33  ;;  %6240 = vmatpush1.bf16.msra.mxu1 %v9155_v59  ;;  %v9174_v59 = vld [vmem:[%s12498_s5 + $0xd0] sm:$0xff]  }
 0x5fc   :  { %6241 = vmatprep.subr.bf16.mxu1 %v9286_v48 }
 0x5fe   :  { %8963 = vmatpush3.bf16.msra.mxu0 %v11725_v33 }
 0x5ff   :  { %8964 = vmatprep.subr.bf16.mxu0 %v11736_v55  ;;  %6242 = vmatpush1.bf16.msra.mxu1 %v9156_v25 }
 0x600   :  { %6243 = vmatprep.subr.bf16.mxu1 %v9286_v48 }
 0x602   :  { %8965 = vmatpush3.bf16.msra.mxu0 %v11736_v55 }
 0x603   :  { %8966 = vmatprep.subr.bf16.mxu0 %v11747_v28  ;;  %6244 = vmatpush1.bf16.msra.mxu1 %v9157_v56 }
 0x604   :  { %6245 = vmatprep.subr.bf16.mxu1 %v9286_v48 }
 0x606   :  { %8967 = vmatpush3.bf16.msra.mxu0 %v11747_v28 }
 0x607   :  { %8968 = vmatprep.subr.bf16.mxu0 %v11758_v63  ;;  %6246 = vmatpush1.bf16.msra.mxu1 %v9158_v13  ;;  %v9176_v13 = vld [vmem:[%s12498_s5 + $0xe0] sm:$0xff]  }
 0x608   :  { %6247 = vmatprep.subr.bf16.mxu1 %v9286_v48 }
 0x60a   :  { %8969 = vmatpush3.bf16.msra.mxu0 %v11758_v63 }
 0x60b   :  { %8970 = vmatprep.subr.bf16.mxu0 %v11767_v21  ;;  %6248 = vmatpush1.bf16.msra.mxu1 %v9159_v1  ;;  %v9177_v1 = vld [vmem:[%s12498_s5 + $0xe8] sm:$0xff]  }
 0x60c   :  { %6352 = vmatprep.subr.bf16.mxu1 %v9286_v48 }
 0x60e   :  { %8971 = vmatpush3.bf16.msra.mxu0 %v11767_v21 }
 0x611   :  { %8973 = vmatmul.mubr.bf16.vlgmr.msra.gmra.mrb[16].mxu0 %v12045_v2 }
 0x62d   :  { %v4762_v15 = vpop.permute.xlu0 %4761 }
 0x62e   :  { %4767 = vst.msk [vmem:[#allocation3 + $0x8] sm:$0xff] %vm4310_vm5, %v4762_v15 }
 0x631   :  { %v8734_v36 = vpop.f32.mrb[8].mxu1  ;;  %v4764_v14 = vpop.permute.xlu0 %4763 }
 0x632   :  { %v5279_v51 = vadd.f32 %v12237_v40, %v8734_v36  ;;  %4768 = vst.msk [vmem:[#allocation3 + $0x30] sm:$0xff] %vm4310_vm5, %v4764_v14  ;;  %v5258_v33 = vpop.f32.mrb[9].mxu1 }
 0x633   :  { %v5277_v55 = vadd.f32 %v12237_v40, %v5258_v33  ;;  %v8735_v28 = vpop.f32.mrb[10].mxu1 }
 0x634   :  { %v5280_v63 = vadd.f32 %v12237_v40, %v8735_v28  ;;  %v5261_v50 = vpop.f32.mrb[11].mxu1  ;;  %v5283_v2 = vmax.f32 %v5279_v51, 0.0 }
 0x635   :  { %v5278_v21 = vadd.f32 %v12237_v40, %v5261_v50  ;;  %v12271_v38 = vld [vmem:[#allocation3 + $0x8] sm:$0xff]  ;;  %v5281_v45 = vmax.f32 %v5277_v55, 0.0 }
 0x636   :  { %v5284_v22 = vmax.f32 %v5280_v63, 0.0  ;;  %6135 = vrot.lane.b32.xlu0 %v12271_v38, %s9284_s15 }
 0x637   :  { %v5282_v41 = vmax.f32 %v5278_v21, 0.0 }
 0x638   :  { %v5286_v60 = vpack.c.bf16 %v5284_v22, %v5283_v2 }
 0x639   :  { %v5285_v31 = vpack.c.bf16 %v5282_v41, %v5281_v45  ;;  %v12275_v17 = vld [vmem:[#allocation3 + $0x30] sm:$0xff] }
 0x63a   :  { %6139 = vrot.lane.b32.xlu0 %v12275_v17, %s9284_s15 }
 0x63b   :  { %5289 = vrot.lane.b32.xlu1 %v5285_v31, %s9284_s15 }
 0x63e   :  { %4304 = vrot.lane.b32.xlu0 %v11976_v46, %s9284_s15 }
 0x63f   :  { %5291 = vrot.lane.b32.xlu1 %v5286_v60, %s9284_s15 }
 0x664   :  { %v8814_v11 = vpop.f32.mrb[12].mxu0 }
 0x665   :  { %v5511_v5 = vadd.f32 %v12237_v40, %v8814_v11  ;;  %v5490_v43 = vpop.f32.mrb[13].mxu0 }
 0x666   :  { %v5509_v27 = vadd.f32 %v12237_v40, %v5490_v43  ;;  %v8815_v37 = vpop.f32.mrb[14].mxu0 }
 0x667   :  { %v5512_v0 = vadd.f32 %v12237_v40, %v8815_v37  ;;  %v5493_v8 = vpop.f32.mrb[15].mxu0  ;;  %v5515_v58 = vmax.f32 %v5511_v5, 0.0  ;;  %v9160_v5 = vld [vmem:[%s12498_s5] sm:$0xff]  }
 0x668   :  { %v5510_v61 = vadd.f32 %v12237_v40, %v5493_v8  ;;  %v5513_v62 = vmax.f32 %v5509_v27, 0.0  ;;  %v9162_v8 = vld [vmem:[%s12498_s5 + $0x10] sm:$0xff]  }
 0x669   :  { %v5516_v34 = vmax.f32 %v5512_v0, 0.0 }
 0x66a   :  { %v5514_v30 = vmax.f32 %v5510_v61, 0.0 }
 0x66b   :  { %v5518_v9 = vpack.c.bf16 %v5516_v34, %v5515_v58  ;;  %v9163_v34 = vld [vmem:[%s12498_s5 + $0x18] sm:$0xff]  }
 0x66c   :  { %v5517_v46 = vpack.c.bf16 %v5514_v30, %v5513_v62  ;;  %v9164_v30 = vld [vmem:[%s12498_s5 + $0x20] sm:$0xff]  }
 0x66d   :  { %5520 = vst.msk [vmem:[#allocation3 + $0x40] sm:$0xff] %vm4004_vm4, %v5518_v9  ;;  %v9166_v9 = vld [vmem:[%s12498_s5 + $0x30] sm:$0xff]  }
 0x66e   :  { %5519 = vst.msk [vmem:[#allocation3 + $0x18] sm:$0xff] %vm4004_vm4, %v5517_v46  ;;  %v9167_v46 = vld [vmem:[%s12498_s5 + $0x38] sm:$0xff]  }
 0x6a8   :  { %v6136_v19 = vpop.permute.xlu0 %6135 }
 0x6ac   :  { %v6140_v49 = vpop.permute.xlu0 %6139 }
 0x6ad   :  { %v5290_v44 = vpop.permute.xlu1 %5289 }
 0x6ae   :  { %5295 = vst.msk [vmem:[#allocation3 + $0x10] sm:$0xff] %vm4310_vm5, %v5290_v44  ;;  %v9180_v44 = vld [vmem:[%s12498_s5 + $0x100] sm:$0xff]  }
 0x6b0   :  { %v4305_v4 = vpop.permute.xlu0 %4304 }
 0x6b1   :  { %4311 = vst.msk [vmem:[#allocation3] sm:$0xff] %vm4310_vm5, %v4305_v4  ;;  %v5292_v16 = vpop.permute.xlu1 %5291  ;;  %v8894_v18 = vpop.f32.mrb[12].mxu1  ;;  %v9181_v4 = vld [vmem:[%s12498_s5 + $0x108] sm:$0xff]  }
 0x6b2   :  { %5296 = vst.msk [vmem:[#allocation3 + $0x38] sm:$0xff] %vm4310_vm5, %v5292_v16  ;;  %v5807_v7 = vadd.f32 %v12237_v40, %v8894_v18  ;;  %v5786_v10 = vpop.f32.mrb[13].mxu1  ;;  %v9182_v16 = vld [vmem:[%s12498_s5 + $0x110] sm:$0xff]   ;;  %v9183_v18 = vld [vmem:[%s12498_s5 + $0x118] sm:$0xff]  }
 0x6b3   :  { %v5805_v57 = vadd.f32 %v12237_v40, %v5786_v10  ;;  %v8895_v47 = vpop.f32.mrb[14].mxu1 }
 0x6b4   :  { %v5808_v20 = vadd.f32 %v12237_v40, %v8895_v47  ;;  %v5789_v52 = vpop.f32.mrb[15].mxu1  ;;  %v5811_v6 = vmax.f32 %v5807_v7, 0.0  ;;  %v9184_v47 = vld [vmem:[%s12499_s7] sm:$0xff]  }
 0x6b5   :  { %v5806_v26 = vadd.f32 %v12237_v40, %v5789_v52  ;;  %v6129_v32 = vld [vmem:[#allocation3 + $0x10] sm:$0xff]  ;;  %v5809_v23 = vmax.f32 %v5805_v57, 0.0  ;;  %8976 = vmatprep.subr.bf16.mxu0 %v9184_v47  ;;  %v9187_v52 = vld [vmem:[%s12499_s7 + $0x18] sm:$0xff]  }
 0x6b6   :  { %v5812_v12 = vmax.f32 %v5808_v20, 0.0  ;;  %6137 = vrot.lane.b32.xlu1 %v6129_v32, %s9284_s15  ;;  %8977 = vmatpush3.bf16.msra.mxu0 %v9184_v47  ;;  %v9185_v20 = vld [vmem:[%s12499_s7 + $0x8] sm:$0xff]  }
 0x6b7   :  { %v5810_v15 = vmax.f32 %v5806_v26, 0.0  ;;  %8978 = vmatprep.subr.bf16.mxu0 %v9185_v20 }
 0x6b8   :  { %v5814_v36 = vpack.c.bf16 %v5812_v12, %v5811_v6  ;;  %v6125_v53 = vld [vmem:[#allocation3] sm:$0xff] }
 0x6b9   :  { %v5813_v14 = vpack.c.bf16 %v5810_v15, %v5809_v23  ;;  %v6130_v51 = vld [vmem:[#allocation3 + $0x38] sm:$0xff] }
 0x6ba   :  { %6141 = vrot.lane.b32.xlu1 %v6130_v51, %s9284_s15  ;;  %8979 = vmatpush3.bf16.msra.mxu0 %v9185_v20 }
 0x6bb   :  { %5817 = vrot.lane.b32.xlu0 %v5813_v14, %s9284_s15 }
 0x6be   :  { %4306 = vrot.lane.b32.xlu1 %v11969_v42, %s9284_s15 }
 0x6c2   :  { %5819 = vrot.lane.b32.xlu1 %v5814_v36, %s9284_s15 }
 0x6e4   :  { %v8974_v33 = vpop.f32.mrb[16].mxu0 }
 0x6e5   :  { %v6039_v55 = vadd.f32 %v12237_v40, %v8974_v33  ;;  %v6018_v28 = vpop.f32.mrb[17].mxu0 }
 0x6e6   :  { %v6037_v63 = vadd.f32 %v12237_v40, %v6018_v28  ;;  %v8975_v50 = vpop.f32.mrb[18].mxu0 }
 0x6e7   :  { %v6040_v21 = vadd.f32 %v12237_v40, %v8975_v50  ;;  %v6021_v2 = vpop.f32.mrb[19].mxu0  ;;  %v6043_v45 = vmax.f32 %v6039_v55, 0.0 }
 0x6e8   :  { %v6038_v22 = vadd.f32 %v12237_v40, %v6021_v2  ;;  %v6041_v60 = vmax.f32 %v6037_v63, 0.0  ;;  %v9161_v40 = vld [vmem:[%s12498_s5 + $0x8] sm:$0xff]  }
 0x6e9   :  { %v6044_v41 = vmax.f32 %v6040_v21, 0.0 }
 0x6ea   :  { %v6042_v31 = vmax.f32 %v6038_v22, 0.0 }
 0x6eb   :  { %v6046_v11 = vpack.c.bf16 %v6044_v41, %v6043_v45 }
 0x6ec   :  { %v6045_v42 = vpack.c.bf16 %v6042_v31, %v6041_v60  ;;  %v6858_v31 = vld [vmem:[%s12500_s6] ss:$0 sm:$0xff] }
 0x6ed   :  { %6048 = vst.msk [vmem:[#allocation3 + $0x48] sm:$0xff] %vm4004_vm4, %v6046_v11 }
 0x6ee   :  { %6047 = vst.msk [vmem:[#allocation3 + $0x20] sm:$0xff] %vm4004_vm4, %v6045_v42 }
 0x6f4   :  { %v6404_v10 = vld [vmem:[#allocation3 + $0x48] sm:$0xff] }
 0x6f5   :  { %v6402_v56 = vld [vmem:[#allocation3 + $0x20] sm:$0xff] }
 0x728   :  { %v6138_v43 = vpop.permute.xlu1 %6137 }
 0x729   :  { %v6143_v27 = vsel %vm4004_vm4, %v6136_v19, %v6138_v43  ;;  %6828 = vmatprep.mubr.msk.bf16.mxu1 %vm4004_vm4, %v6138_v43  ;;  %v9178_v19 = vld [vmem:[%s12498_s5 + $0xf0] sm:$0xff]  }
 0x72a   :  { %6258 = vmatmul.mubr.bf16.vlgmr.msra.gmra.mrb[16].mxu1 %v6143_v27 }
 0x72b   :  { %6353 = vmatpush1.bf16.msra.mxu1 %v9160_v5 }
 0x72c   :  { %v6142_v37 = vpop.permute.xlu1 %6141  ;;  %6354 = vmatprep.subr.bf16.mxu1 %v9286_v48 }
 0x72d   :  { %6829 = vmatprep.mubr.msk.bf16.mxu1 %vm4004_vm4, %v6142_v37  ;;  %v5818_v0 = vpop.permute.xlu0 %5817  ;;  %v6144_v58 = vsel %vm4004_vm4, %v6140_v49, %v6142_v37  ;;  %v9179_v49 = vld [vmem:[%s12498_s5 + $0xf8] sm:$0xff]  }
 0x72e   :  { %5823 = vst.msk [vmem:[#allocation3 + $0x18] sm:$0xff] %vm4310_vm5, %v5818_v0 }
 0x72f   :  { %6355 = vmatpush1.bf16.msra.mxu1 %v9161_v40 }
 0x730   :  { %v4307_v61 = vpop.permute.xlu1 %4306  ;;  %6356 = vmatprep.subr.bf16.mxu1 %v9286_v48 }
 0x731   :  { %4312 = vst.msk [vmem:[#allocation3 + $0x28] sm:$0xff] %vm4310_vm5, %v4307_v61 }
 0x732   :  { %6266 = vmatmul.mubr.bf16.gmra.mrb[20].mxu1 %v6144_v58 }
 0x733   :  { %6357 = vmatpush1.bf16.msra.mxu1 %v9162_v8  ;;  %6842 = vmatprep.mubr.msk.bf16.mxu1 %vm4004_vm4, %v12271_v38  ;;  %v9165_v38 = vld [vmem:[%s12498_s5 + $0x28] sm:$0xff]  }
 0x734   :  { %v5820_v62 = vpop.permute.xlu1 %5819  ;;  %6358 = vmatprep.subr.bf16.mxu1 %v9286_v48 }
 0x735   :  { %5824 = vst.msk [vmem:[#allocation3 + $0x40] sm:$0xff] %vm4310_vm5, %v5820_v62  ;;  %v6401_v7 = vld [vmem:[#allocation3 + $0x18] sm:$0xff] }
 0x737   :  { %6359 = vmatpush1.bf16.msra.mxu1 %v9163_v34 }
 0x738   :  { %6360 = vmatprep.subr.bf16.mxu1 %v9286_v48  ;;  %v6127_v25 = vld [vmem:[#allocation3 + $0x28] sm:$0xff] }
 0x73b   :  { %6361 = vmatpush1.bf16.msra.mxu1 %v9164_v30 }
 0x73c   :  { %6362 = vmatprep.subr.bf16.mxu1 %v9286_v48  ;;  %v6403_v57 = vld [vmem:[#allocation3 + $0x40] sm:$0xff] }
 0x73f   :  { %6363 = vmatpush1.bf16.msra.mxu1 %v9165_v38 }
 0x740   :  { %6364 = vmatprep.subr.bf16.mxu1 %v9286_v48 }
 0x743   :  { %6365 = vmatpush1.bf16.msra.mxu1 %v9166_v9 }
 0x744   :  { %6366 = vmatprep.subr.bf16.mxu1 %v9286_v48 }
 0x747   :  { %6367 = vmatpush1.bf16.msra.mxu1 %v9167_v46 }
 0x748   :  { %6368 = vmatprep.subr.bf16.mxu1 %v9286_v48 }
 0x74b   :  { %6369 = vmatpush1.bf16.msra.mxu1 %v9168_v54 }
 0x74c   :  { %6370 = vmatprep.subr.bf16.mxu1 %v9286_v48 }
 0x74f   :  { %6371 = vmatpush1.bf16.msra.mxu1 %v9169_v3 }
 0x750   :  { %6372 = vmatprep.subr.bf16.mxu1 %v9286_v48 }
 0x753   :  { %6373 = vmatpush1.bf16.msra.mxu1 %v9170_v24 }
 0x754   :  { %6374 = vmatprep.subr.bf16.mxu1 %v9286_v48 }
 0x757   :  { %6375 = vmatpush1.bf16.msra.mxu1 %v9171_v39 }
 0x758   :  { %6483 = vmatprep.subr.bf16.mxu1 %v9286_v48 }
 0x75a   :  { %6385 = vmatmul.mubr.bf16.vlgmr.msra.gmra.mrb[24].mxu1 %v6125_v53  ;;  %v6859_v53 = vld [vmem:[%s12501_s8] ss:$0 sm:$0xff] }
 0x75b   :  { %6843 = vmatprep.mubr.msk.bf16.mxu1 %vm4004_vm4, %v12275_v17  ;;  %6484 = vmatpush1.bf16.msra.mxu1 %v9172_v29  ;;  %v9175_v17 = vld [vmem:[%s12498_s5 + $0xd8] sm:$0xff]  }
 0x75c   :  { %6485 = vmatprep.subr.bf16.mxu1 %v9286_v48 }
 0x75f   :  { %6486 = vmatpush1.bf16.msra.mxu1 %v9173_v35 }
 0x760   :  { %6487 = vmatprep.subr.bf16.mxu1 %v9286_v48 }
 0x762   :  { %6393 = vmatmul.mubr.bf16.gmra.mrb[28].mxu1 %v6127_v25 }
 0x763   :  { %6488 = vmatpush1.bf16.msra.mxu1 %v9174_v59  ;;  %6856 = vmatprep.mubr.msk.bf16.mxu1 %vm4004_vm4, %v6402_v56 }
 0x764   :  { %6489 = vmatprep.subr.bf16.mxu1 %v9286_v48 }
 0x767   :  { %6490 = vmatpush1.bf16.msra.mxu1 %v9175_v17 }
 0x768   :  { %6491 = vmatprep.subr.bf16.mxu1 %v9286_v48 }
 0x76b   :  { %6492 = vmatpush1.bf16.msra.mxu1 %v9176_v13 }
 0x76c   :  { %6493 = vmatprep.subr.bf16.mxu1 %v9286_v48 }
 0x76f   :  { %6494 = vmatpush1.bf16.msra.mxu1 %v9177_v1 }
 0x770   :  { %6495 = vmatprep.subr.bf16.mxu1 %v9286_v48 }
 0x773   :  { %6496 = vmatpush1.bf16.msra.mxu1 %v9178_v19 }
 0x774   :  { %6497 = vmatprep.subr.bf16.mxu1 %v9286_v48 }
 0x777   :  { %6498 = vmatpush1.bf16.msra.mxu1 %v9179_v49 }
 0x778   :  { %6499 = vmatprep.subr.bf16.mxu1 %v9286_v48 }
 0x77b   :  { %6500 = vmatpush1.bf16.msra.mxu1 %v9180_v44 }
 0x77c   :  { %6501 = vmatprep.subr.bf16.mxu1 %v9286_v48 }
 0x77f   :  { %6502 = vmatpush1.bf16.msra.mxu1 %v9181_v4 }
 0x780   :  { %6503 = vmatprep.subr.bf16.mxu1 %v9286_v48 }
 0x783   :  { %6504 = vmatpush1.bf16.msra.mxu1 %v9182_v16 }
 0x784   :  { %6505 = vmatprep.subr.bf16.mxu1 %v9286_v48  ;;  %v9186_v48 = vld [vmem:[%s12499_s7 + $0x10] sm:$0xff]  }
 0x785   :  { %8980 = vmatprep.subr.bf16.mxu0 %v9186_v48 }
 0x786   :  { %8981 = vmatpush3.bf16.msra.mxu0 %v9186_v48 }
 0x787   :  { %6506 = vmatpush1.bf16.msra.mxu1 %v9183_v18  ;;  %8982 = vmatprep.subr.bf16.mxu0 %v9187_v52 }
 0x78a   :  { %6516 = vmatmul.mubr.bf16.vlgmr.msra.gmra.mrb[32].mxu1 %v6401_v7  ;;  %8983 = vmatpush3.bf16.msra.mxu0 %v9187_v52 }
 0x78b   :  { %6857 = vmatprep.mubr.msk.bf16.mxu1 %vm4004_vm4, %v6404_v10 }
 0x792   :  { %6524 = vmatmul.mubr.bf16.gmra.mrb[36].mxu1 %v6403_v57 }
 0x7fd   :  { %v6259_v26 = vpop.f32.mrb[16].mxu1 }
 0x7fe   :  { %v6261_v32 = vpop.f32.mrb[17].mxu1 }
 0x7ff   :  { %v6262_v6 = vpop.f32.mrb[18].mxu1 }
 0x800   :  { %v6264_v12 = vpop.f32.mrb[19].mxu1 }
 0x805   :  { %v6267_v23 = vpop.f32.mrb[20].mxu1 }
 0x806   :  { %v6269_v15 = vpop.f32.mrb[21].mxu1 }
 0x807   :  { %v6270_v36 = vpop.f32.mrb[22].mxu1 }
 0x808   :  { %v6272_v14 = vpop.f32.mrb[23].mxu1 }
 0x82d   :  { %v6386_v51 = vpop.f32.mrb[24].mxu1 }
 0x82e   :  { %v6387_v33 = vadd.f32 %v6386_v51, %v6259_v26  ;;  %v6388_v55 = vpop.f32.mrb[25].mxu1 }
 0x82f   :  { %v6389_v28 = vpop.f32.mrb[26].mxu1 }
 0x830   :  { %v6390_v63 = vadd.f32 %v6389_v28, %v6262_v6  ;;  %v6391_v50 = vpop.f32.mrb[27].mxu1 }
 0x835   :  { %v6394_v21 = vpop.f32.mrb[28].mxu1 }
 0x836   :  { %v6395_v2 = vadd.f32 %v6394_v21, %v6267_v23  ;;  %v6396_v22 = vpop.f32.mrb[29].mxu1 }
 0x837   :  { %v6397_v45 = vpop.f32.mrb[30].mxu1 }
 0x838   :  { %v6398_v41 = vadd.f32 %v6397_v45, %v6270_v36  ;;  %v6399_v60 = vpop.f32.mrb[31].mxu1 }
 0x85d   :  { %v6517_v11 = vpop.f32.mrb[32].mxu1 }
 0x85e   :  { %v6532_v42 = vadd.f32 %v6517_v11, %v6387_v33  ;;  %v6519_v5 = vpop.f32.mrb[33].mxu1 }
 0x85f   :  { %v6520_v43 = vpop.f32.mrb[34].mxu1 }
 0x860   :  { %v6542_v27 = vadd.f32 %v6858_v31, %v6532_v42  ;;  %v6533_v40 = vadd.f32 %v6520_v43, %v6390_v63  ;;  %v6522_v37 = vpop.f32.mrb[35].mxu1 }
 0x862   :  { %v6543_v0 = vadd.f32 %v6858_v31, %v6533_v40  ;;  %v6546_v8 = vmax.f32 %v6542_v27, 0.0 }
 0x864   :  { %v6547_v61 = vmax.f32 %v6543_v0, 0.0 }
 0x865   :  { %v6525_v58 = vpop.f32.mrb[36].mxu1 }
 0x866   :  { %v6550_v34 = vpack.c.bf16 %v6547_v61, %v6546_v8  ;;  %v6534_v62 = vadd.f32 %v6525_v58, %v6395_v2  ;;  %v6527_v30 = vpop.f32.mrb[37].mxu1 }
 0x867   :  { %v6528_v38 = vpop.f32.mrb[38].mxu1 }
 0x868   :  { %v6544_v9 = vadd.f32 %v6858_v31, %v6534_v62  ;;  %v6535_v46 = vadd.f32 %v6528_v38, %v6398_v41  ;;  %v6530_v54 = vpop.f32.mrb[39].mxu1  ;;  %8984 = vmatprep.mubr.msk.bf16.mxu0 %vm4004_vm4, %v6550_v34 }
 0x86a   :  { %v6545_v3 = vadd.f32 %v6858_v31, %v6535_v46  ;;  %v6548_v24 = vmax.f32 %v6544_v9, 0.0 }
 0x86c   :  { %v6549_v39 = vmax.f32 %v6545_v3, 0.0 }
 0x86e   :  { %v6551_v29 = vpack.c.bf16 %v6549_v39, %v6548_v24 }
 0x870   :  { %8985 = vmatmul.mubr.msk.bf16.vlgmr.msra.gmra.mrb[20].mxu0 %vm4004_vm4, %v6551_v29 }
 0x943   :  { %v8986_v35 = vpop.f32.mrb[20].mxu0 }
 0x944   :  { %v6639_v59 = vadd.f32 %v8986_v35, %v6859_v53  ;;  %v6630_v25 = vpop.f32.mrb[21].mxu0 }
 0x945   :  { %v6631_v56 = vadd.f32 %v6859_v53, %v6630_v25  ;;  %v8987_v17 = vpop.f32.mrb[22].mxu0 }
 0x946   :  { %v6647_v13 = vmax.f32 %v6639_v59, 0.0  ;;  %v6633_v1 = vpop.f32.mrb[23].mxu0  ;;  %v6642_v49 = vadd.f32 %v8987_v17, %v6859_v53 }
 0x947   :  { %v6634_v19 = vadd.f32 %v6859_v53, %v6633_v1  ;;  %v6645_v16 = vmax.f32 %v6631_v56, 0.0 }
 0x948   :  { %6654 = vrot.lane.b32.xlu1 %v6647_v13, %s9284_s15  ;;  %v6648_v4 = vmax.f32 %v6642_v49, 0.0 }
 0x949   :  { %v6646_v44 = vmax.f32 %v6634_v19, 0.0 }
 0x94b   :  { %6650 = vrot.lane.b32.xlu0 %v6646_v44, %s9283_s10 }
 0x94f   :  { %6658 = vrot.lane.b32.xlu0 %v6648_v4, %s9285_s29 }
 0x9ba   :  { %v6655_v10 = vpop.permute.xlu1 %6654 }
 0x9bd   :  { %v6651_v18 = vpop.permute.xlu0 %6650 }
 0x9be   :  { %v6661_v7 = vsel %vm345_vm0, %v6645_v16, %v6651_v18 }
 0x9bf   :  { %v6662_v47 = vsel %vm4004_vm4, %v6661_v7, %v6655_v10 }
 0x9c1   :  { %v6659_v57 = vpop.permute.xlu0 %6658 }
 0x9c2   :  { %v6664_v20 = vsel %vm6663_vm6, %v6662_v47, %v6659_v57 }
 0x9c3   :  { %6665 = vst [vmem:[%s12502_s9] sm:$0xff] %v6664_v20 }

</bundles_post_ra>
